<compile_context>
chip_gen: v5e
topology: v5e:2x2
jax: 0.10.0
libtpu: 0.0.40
codegen_flags: <defaults>
</compile_context>

<pallas_src>
import functools
import math

import jax
import jax.numpy as jnp
from jax.experimental import pallas as pl
from jax.experimental.pallas import tpu as pltpu


# ----------------------- shared small helpers (wrapper + reference) ----------

# TODO(synk): the MLP (imnet_spec) source is not part of the provided module;
# a standard LIIF-style Linear+ReLU stack is assumed here.
def _mlp_apply(mlp_params, x):
    h = x
    n = len(mlp_params)
    for i, (w, b) in enumerate(mlp_params):
        h = h @ w + b
        if i < n - 1:
            h = jnp.maximum(h, 0.0)
    return h


def _interp_matrix(n_out, n_in):
    """Rows: output positions, cols: input pixels. Bilinear align_corners weights."""
    i = jnp.arange(n_out, dtype=jnp.float32)[:, None]
    p = jnp.arange(n_in, dtype=jnp.float32)[None, :]
    if n_out > 1:
        pos = i * ((n_in - 1.0) / (n_out - 1.0))
    else:  # torch reference would divide by zero here; pick pixel 0.
        pos = jnp.zeros_like(i)
    return jnp.maximum(0.0, 1.0 - jnp.abs(pos - p))


# ----------------------------- Pallas kernel ---------------------------------

def _shift_flat(v, s, hw):
    """y[:, i] = v[:, i + s] for 0 <= i + s < hw, else 0 (static zero-fill shift)."""
    if s == 0:
        return v
    c = v.shape[0]
    z = jnp.zeros((c, abs(s)), v.dtype)
    if s > 0:
        return jnp.concatenate([v[:, s:], z], axis=1)
    return jnp.concatenate([z, v[:, :hw + s]], axis=1)


def _af_resampler_kernel(wsum_ref, x_ref, mt_ref, mask_ref,
                         w1_ref, b1_ref, w2_ref, b2_ref, o_ref, *, out_w):
    hw = mt_ref.shape[1]
    ws = wsum_ref[0]                                   # scalar (SMEM)

    # Bilinear (align_corners) resample of all channels: one MXU matmul.
    x = x_ref[...].astype(jnp.float32)                 # (C_in, inHW)
    feat_r = jnp.dot(x, mt_ref[...],
                     preferred_element_type=jnp.float32,
                     precision=jax.lax.Precision.HIGHEST)   # (C_in, oHW)

    # value / w_sum of the reference (imF weights are spatially constant).
    feat_r = (feat_r * ws) / ws

    def conv3x3(v, w_ref, b_ref):
        n_out = w_ref.shape[1]
        acc = jnp.zeros((n_out, hw), jnp.float32) + b_ref[...]   # bias broadcast
        k = 0
        for dh in (-1, 0, 1):
            for dw in (-1, 0, 1):
                patch = _shift_flat(v, dh * out_w + dw, hw) * mask_ref[k]
                acc = acc + jnp.dot(w_ref[k], patch,
                                    preferred_element_type=jnp.float32,
                                    precision=jax.lax.Precision.HIGHEST)
                k += 1
        return acc

    y = conv3x3(feat_r, w1_ref, b1_ref)                # (C_mid, oHW)
    y = conv3x3(y, w2_ref, b2_ref)                     # (C_out, oHW)
    o_ref[...] = y.astype(o_ref.dtype)


def af_resampler_forward(feat, size, params):
    B, C, in_h, in_w = feat.shape
    out_h, out_w = int(size[0]), int(size[1])
    in_hw, out_hw = in_h * in_w, out_h * out_w
    scale_h, scale_w = in_h / out_h, in_w / out_w

    n_h = math.ceil(scale_h); n_h = n_h + 1 if n_h % 2 == 0 else n_h; n_h //= 2
    n_w = math.ceil(scale_w); n_w = n_w + 1 if n_w % 2 == 0 else n_w; n_w //= 2

    # Per-offset imF weights (spatially constant scalars) -> w_sum.
    wp = jnp.array([[float(dw), float(dh), scale_h, scale_w]
                    for dh in range(-n_h, n_h + 1)
                    for dw in range(-n_w, n_w + 1)], dtype=jnp.float32)   # (K, 4)
    w_sum = jnp.sum(_mlp_apply(params["imF"], wp)).reshape(1).astype(jnp.float32)

    # Resample operator: F_flat = X_flat @ kron(Rh, Rw)^T.
    rh = _interp_matrix(out_h, in_h)                       # (out_h, in_h)
    rw = _interp_matrix(out_w, in_w)                       # (out_w, in_w)
    mt = jnp.kron(rh, rw).T.astype(jnp.float32)            # (in_hw, out_hw)

    c_mid = params["w1"].shape[0]
    c_out = params["w2"].shape[0]
    w1s = params["w1"].transpose(2, 3, 0, 1).reshape(9, c_mid, C).astype(jnp.float32)
    w2s = params["w2"].transpose(2, 3, 0, 1).reshape(9, c_out, c_mid).astype(jnp.float32)
    b1c = params["b1"].reshape(c_mid, 1).astype(jnp.float32)
    b2c = params["b2"].reshape(c_out, 1).astype(jnp.float32)

    # 3x3 "same"-conv boundary masks in flattened (H*W) layout.
    hh, ww = jnp.meshgrid(jnp.arange(out_h), jnp.arange(out_w), indexing="ij")
    masks = jnp.stack(
        [((hh + dh >= 0) & (hh + dh < out_h) & (ww + dw >= 0) & (ww + dw < out_w))
         .reshape(1, out_hw).astype(jnp.float32)
         for dh in (-1, 0, 1) for dw in (-1, 0, 1)], axis=0)      # (9, 1, out_hw)

    x2d = feat.reshape(B, C, in_hw)                        # free row-major collapse

    flops = B * 2 * out_hw * (C * in_hw + 9 * c_mid * C + 9 * c_out * c_mid)
    bytes_accessed = 4 * (B * C * in_hw + in_hw * out_hw + 9 * out_hw
                          + 9 * c_mid * C + c_mid + 9 * c_out * c_mid + c_out
                          + B * c_out * out_hw)

    out = pl.pallas_call(
        functools.partial(_af_resampler_kernel, out_w=out_w),
        out_shape=jax.ShapeDtypeStruct((B, c_out, out_hw), feat.dtype),
        grid=(B,),
        in_specs=[
            pl.BlockSpec(memory_space=pltpu.MemorySpace.SMEM),       # w_sum (1,)
            pl.BlockSpec((None, C, in_hw), lambda b: (b, 0, 0)),     # feat (per batch)
            pl.BlockSpec((in_hw, out_hw), lambda b: (0, 0)),         # resample matrix
            pl.BlockSpec((9, 1, out_hw), lambda b: (0, 0, 0)),       # conv masks
            pl.BlockSpec((9, c_mid, C), lambda b: (0, 0, 0)),        # conv1 weights
            pl.BlockSpec((c_mid, 1), lambda b: (0, 0)),              # conv1 bias
            pl.BlockSpec((9, c_out, c_mid), lambda b: (0, 0, 0)),    # conv2 weights
            pl.BlockSpec((c_out, 1), lambda b: (0, 0)),              # conv2 bias
        ],
        out_specs=pl.BlockSpec((None, c_out, out_hw), lambda b: (b, 0, 0)),
        compiler_params=pltpu.CompilerParams(
            dimension_semantics=("parallel",),
            vmem_limit_bytes=32 * 1024 * 1024),
        cost_estimate=pl.CostEstimate(flops=int(flops), transcendentals=0,
                                      bytes_accessed=int(bytes_accessed)),
    )(w_sum, x2d, mt, masks, w1s, b1c, w2s, b2c)

    return out.reshape(B, c_out, out_h, out_w)


# ------------------- pure-JAX reference (mirrors the PyTorch code) -----------

def _normalize(x):
    x = (x - x.min()) / (x.max() - x.min())
    return x * 2.0 - 1.0


def _grid_sample_bilinear_zeros(feat, grid):
    """F.grid_sample(mode=bilinear, padding_mode=zeros, align_corners=True)."""
    B, C, H, W = feat.shape
    px = (grid[..., 0] + 1.0) * 0.5 * (W - 1)
    py = (grid[..., 1] + 1.0) * 0.5 * (H - 1)

    def sample_one(f, px_b, py_b):
        x0 = jnp.floor(px_b); y0 = jnp.floor(py_b)
        fx = px_b - x0;       fy = py_b - y0

        def tap(yy, xx, wgt):
            inb = ((yy >= 0) & (yy <= H - 1) & (xx >= 0) & (xx <= W - 1))
            yc = jnp.clip(yy, 0, H - 1).astype(jnp.int32)
            xc = jnp.clip(xx, 0, W - 1).astype(jnp.int32)
            return f[:, yc, xc] * (wgt * inb.astype(f.dtype))[None]

        return (tap(y0, x0, (1 - fy) * (1 - fx))
                + tap(y0, x0 + 1, (1 - fy) * fx)
                + tap(y0 + 1, x0, fy * (1 - fx))
                + tap(y0 + 1, x0 + 1, fy * fx))

    return jax.vmap(sample_one)(feat, px, py)


def _conv2d_same(x, w, b):
    y = jax.lax.conv_general_dilated(
        x, w, window_strides=(1, 1), padding=((1, 1), (1, 1)),
        dimension_numbers=("NCHW", "OIHW", "NCHW"),
        precision=jax.lax.Precision.HIGHEST)
    return y + b[None, :, None, None]


def af_resampler_reference(feat, size, params):
    B, C, in_h, in_w = feat.shape
    out_h, out_w = size
    scale_h, scale_w = in_h / out_h, in_w / out_w

    cy = (jnp.arange(out_h, dtype=jnp.float32) + 0.5) * scale_h - 0.5
    cx = (jnp.arange(out_w, dtype=jnp.float32) + 0.5) * scale_w - 0.5
    coord = jnp.stack([jnp.broadcast_to(cx[None, :], (out_h, out_w)),
                       jnp.broadcast_to(cy[:, None], (out_h, out_w))], axis=-1)
    coord = jnp.broadcast_to(coord[None], (B, out_h, out_w, 2))

    n_h = math.ceil(scale_h); n_h = n_h + 1 if n_h % 2 == 0 else n_h; n_h //= 2
    n_w = math.ceil(scale_w); n_w = n_w + 1 if n_w % 2 == 0 else n_w; n_w //= 2

    value, w_sum = 0.0, 0.0
    for off_h in range(-n_h, n_h + 1):
        for off_w in range(-n_w, n_w + 1):
            off = jnp.concatenate(
                [jnp.full((B, out_h, out_w, 1), float(off_w), jnp.float32),
                 jnp.full((B, out_h, out_w, 1), float(off_h), jnp.float32)], axis=-1)
            cc = coord + off
            grid = jnp.stack([_normalize(cc[..., 0]), _normalize(cc[..., 1])], axis=-1)
            curr_f = _grid_sample_bilinear_zeros(feat, grid)
            w_param = jnp.concatenate(
                [off,
                 jnp.full((B, out_h, out_w, 1), scale_h, jnp.float32),
                 jnp.full((B, out_h, out_w, 1), scale_w, jnp.float32)], axis=-1)
            weight = _mlp_apply(params["imF"], w_param).reshape(B, 1, out_h, out_w)
            w_sum = w_sum + weight
            value = value + weight * curr_f

    out = value / w_sum
    out = _conv2d_same(out, params["w1"], params["b1"])
    out = _conv2d_same(out, params["w2"], params["b2"])
    return out


# ----------------------------- params ----------------------------------------

def init_params(key, n_feats, imnet_spec, c_mid=64, c_out=3):
    dims = [imnet_spec["in_dim"]] + list(imnet_spec["hidden_list"]) + [imnet_spec["out_dim"]]
    mlp = []
    for li in range(len(dims) - 1):
        key, kw = jax.random.split(key)
        w = 0.2 * jax.random.normal(kw, (dims[li], dims[li + 1]), jnp.float32)
        # Bias the final layer to 1 so w_sum stays away from 0 in the demo.
        b = (jnp.ones((dims[li + 1],), jnp.float32) if li == len(dims) - 2
             else jnp.zeros((dims[li + 1],), jnp.float32))
        mlp.append((w, b))
    key, k1, k2, k3, k4 = jax.random.split(key, 5)
    params = {
        "imF": mlp,
        "w1": 0.05 * jax.random.normal(k1, (c_mid, n_feats, 3, 3), jnp.float32),
        "b1": 0.05 * jax.random.normal(k2, (c_mid,), jnp.float32),
        "w2": 0.05 * jax.random.normal(k3, (c_out, c_mid, 3, 3), jnp.float32),
        "b2": 0.05 * jax.random.normal(k4, (c_out,), jnp.float32),
    }
    return params, key


if __name__ == "__main__":
    key = jax.random.PRNGKey(0)
    B, n_feats, in_h, in_w = 2, 4, 16, 16
    size = (8, 32)  # downsample H (3 offsets in the neighbor loop), upsample W (1 offset)

    imnet_spec = {"in_dim": 4, "out_dim": 1, "hidden_list": [32, 32]}
    params, key = init_params(key, n_feats, imnet_spec)

    key, kf = jax.random.split(key)
    feat = jax.random.normal(kf, (B, n_feats, in_h, in_w), jnp.float32)

    out = af_resampler_forward(feat, size, params)
    out = jax.block_until_ready(out)

    ref = af_resampler_reference(feat, size, params)
    assert out.shape == (B, 3, size[0], size[1]), out.shape
    max_err = float(jnp.max(jnp.abs(out - ref)))
    assert jnp.allclose(out, ref, atol=2e-3, rtol=2e-3), f"mismatch vs reference, max_err={max_err}"

    print("KERNEL_OK")
</pallas_src>

<mosaic_0001>
module attributes {stable_mosaic.version = 11 : i64} {
  func.func @_af_resampler_kernel(%arg0: i32, %arg1: memref<1xf32, #tpu.memory_space<smem>>, %arg2: memref<1x4x256xf32, #tpu.memory_space<vmem>>, %arg3: memref<256x256xf32, #tpu.memory_space<vmem>>, %arg4: memref<9x1x256xf32, #tpu.memory_space<vmem>>, %arg5: memref<9x64x4xf32, #tpu.memory_space<vmem>>, %arg6: memref<64x1xf32, #tpu.memory_space<vmem>>, %arg7: memref<9x3x64xf32, #tpu.memory_space<vmem>>, %arg8: memref<3x1xf32, #tpu.memory_space<vmem>>, %arg9: memref<1x3x256xf32, #tpu.memory_space<vmem>>) attributes {dimension_semantics = [#tpu.dimension_semantics<parallel>], iteration_bounds = array<i64: 2>, scalar_prefetch = 0 : i64, scratch_operands = 0 : i64, tpu.core_type = #tpu.core_type<tc>, window_params = [{transform_indices = @transform_0, window_bounds = array<i64: 1>}, {transform_indices = @transform_1, window_bounds = array<i64: 1, 4, 256>}, {pipeline_mode = #tpu.pipeline_mode<synchronous>, transform_indices = @transform_2, window_bounds = array<i64: 256, 256>}, {pipeline_mode = #tpu.pipeline_mode<synchronous>, transform_indices = @transform_3, window_bounds = array<i64: 9, 1, 256>}, {pipeline_mode = #tpu.pipeline_mode<synchronous>, transform_indices = @transform_4, window_bounds = array<i64: 9, 64, 4>}, {pipeline_mode = #tpu.pipeline_mode<synchronous>, transform_indices = @transform_5, window_bounds = array<i64: 64, 1>}, {pipeline_mode = #tpu.pipeline_mode<synchronous>, transform_indices = @transform_6, window_bounds = array<i64: 9, 3, 64>}, {pipeline_mode = #tpu.pipeline_mode<synchronous>, transform_indices = @transform_7, window_bounds = array<i64: 3, 1>}, {transform_indices = @transform_8, window_bounds = array<i64: 1, 3, 256>}]} {
    %c0 = arith.constant 0 : index
    %0 = memref.load %arg1[%c0] : memref<1xf32, #tpu.memory_space<smem>>
    %c0_0 = arith.constant 0 : index
    %c0_1 = arith.constant 0 : index
    %c0_2 = arith.constant 0 : index
    %1 = vector.load %arg2[%c0_0, %c0_1, %c0_2] : memref<1x4x256xf32, #tpu.memory_space<vmem>>, vector<1x4x256xf32>
    %2 = vector.shape_cast %1 : vector<1x4x256xf32> to vector<4x256xf32>
    %c0_3 = arith.constant 0 : index
    %c0_4 = arith.constant 0 : index
    %3 = vector.load %arg3[%c0_3, %c0_4] : memref<256x256xf32, #tpu.memory_space<vmem>>, vector<256x256xf32>
    %cst = arith.constant dense<0.000000e+00> : vector<4x256xf32>
    %4 = tpu.matmul %2, %3, %cst {dimension_numbers = #tpu.dot_dimension_numbers<[1], [0], [0], [1], [0, 0, 1, 1], [], []>, precision = #tpu.contract_precision<fp32>} : vector<4x256xf32>, vector<256x256xf32>, vector<4x256xf32> -> vector<4x256xf32>
    %5 = vector.broadcast %0 : f32 to vector<4x256xf32>
    %6 = arith.mulf %4, %5 : vector<4x256xf32>
    %7 = vector.broadcast %0 : f32 to vector<4x256xf32>
    %8 = arith.divf %6, %7 : vector<4x256xf32>
    %cst_5 = arith.constant 0.000000e+00 : f32
    %9 = vector.broadcast %cst_5 : f32 to vector<64x256xf32>
    %c0_6 = arith.constant 0 : index
    %c0_7 = arith.constant 0 : index
    %10 = vector.load %arg6[%c0_6, %c0_7] : memref<64x1xf32, #tpu.memory_space<vmem>>, vector<64x1xf32>
    %11 = vector.broadcast %10 : vector<64x1xf32> to vector<64x256xf32>
    %12 = arith.addf %9, %11 : vector<64x256xf32>
    %cst_8 = arith.constant 0.000000e+00 : f32
    %13 = vector.broadcast %cst_8 : f32 to vector<4x33xf32>
    %14 = vector.extract_strided_slice %8 {offsets = [0, 0], sizes = [4, 223], strides = [1, 1]} : vector<4x256xf32> to vector<4x223xf32>
    %15 = tpu.concatenate %13, %14 in 1 : vector<4x33xf32>, vector<4x223xf32> -> vector<4x256xf32>
    %c0_9 = arith.constant 0 : index
    %c0_10 = arith.constant 0 : index
    %c0_11 = arith.constant 0 : index
    %16 = vector.load %arg4[%c0_9, %c0_10, %c0_11] : memref<9x1x256xf32, #tpu.memory_space<vmem>>, vector<1x1x256xf32>
    %17 = vector.shape_cast %16 : vector<1x1x256xf32> to vector<1x256xf32>
    %18 = vector.broadcast %17 : vector<1x256xf32> to vector<4x256xf32>
    %19 = arith.mulf %15, %18 : vector<4x256xf32>
    %c0_12 = arith.constant 0 : index
    %c0_13 = arith.constant 0 : index
    %c0_14 = arith.constant 0 : index
    %20 = vector.load %arg5[%c0_12, %c0_13, %c0_14] : memref<9x64x4xf32, #tpu.memory_space<vmem>>, vector<1x64x4xf32>
    %21 = vector.shape_cast %20 : vector<1x64x4xf32> to vector<64x4xf32>
    %cst_15 = arith.constant dense<0.000000e+00> : vector<64x256xf32>
    %22 = tpu.matmul %21, %19, %cst_15 {dimension_numbers = #tpu.dot_dimension_numbers<[1], [0], [0], [1], [0, 0, 1, 1], [], []>, precision = #tpu.contract_precision<fp32>} : vector<64x4xf32>, vector<4x256xf32>, vector<64x256xf32> -> vector<64x256xf32>
    %23 = arith.addf %12, %22 : vector<64x256xf32>
    %cst_16 = arith.constant 0.000000e+00 : f32
    %24 = vector.broadcast %cst_16 : f32 to vector<4x32xf32>
    %25 = vector.extract_strided_slice %8 {offsets = [0, 0], sizes = [4, 224], strides = [1, 1]} : vector<4x256xf32> to vector<4x224xf32>
    %26 = tpu.concatenate %24, %25 in 1 : vector<4x32xf32>, vector<4x224xf32> -> vector<4x256xf32>
    %c1 = arith.constant 1 : index
    %c0_17 = arith.constant 0 : index
    %c0_18 = arith.constant 0 : index
    %27 = vector.load %arg4[%c1, %c0_17, %c0_18] : memref<9x1x256xf32, #tpu.memory_space<vmem>>, vector<1x1x256xf32>
    %28 = vector.shape_cast %27 : vector<1x1x256xf32> to vector<1x256xf32>
    %29 = vector.broadcast %28 : vector<1x256xf32> to vector<4x256xf32>
    %30 = arith.mulf %26, %29 : vector<4x256xf32>
    %c1_19 = arith.constant 1 : index
    %c0_20 = arith.constant 0 : index
    %c0_21 = arith.constant 0 : index
    %31 = vector.load %arg5[%c1_19, %c0_20, %c0_21] : memref<9x64x4xf32, #tpu.memory_space<vmem>>, vector<1x64x4xf32>
    %32 = vector.shape_cast %31 : vector<1x64x4xf32> to vector<64x4xf32>
    %cst_22 = arith.constant dense<0.000000e+00> : vector<64x256xf32>
    %33 = tpu.matmul %32, %30, %cst_22 {dimension_numbers = #tpu.dot_dimension_numbers<[1], [0], [0], [1], [0, 0, 1, 1], [], []>, precision = #tpu.contract_precision<fp32>} : vector<64x4xf32>, vector<4x256xf32>, vector<64x256xf32> -> vector<64x256xf32>
    %34 = arith.addf %23, %33 : vector<64x256xf32>
    %cst_23 = arith.constant 0.000000e+00 : f32
    %35 = vector.broadcast %cst_23 : f32 to vector<4x31xf32>
    %36 = vector.extract_strided_slice %8 {offsets = [0, 0], sizes = [4, 225], strides = [1, 1]} : vector<4x256xf32> to vector<4x225xf32>
    %37 = tpu.concatenate %35, %36 in 1 : vector<4x31xf32>, vector<4x225xf32> -> vector<4x256xf32>
    %c2 = arith.constant 2 : index
    %c0_24 = arith.constant 0 : index
    %c0_25 = arith.constant 0 : index
    %38 = vector.load %arg4[%c2, %c0_24, %c0_25] : memref<9x1x256xf32, #tpu.memory_space<vmem>>, vector<1x1x256xf32>
    %39 = vector.shape_cast %38 : vector<1x1x256xf32> to vector<1x256xf32>
    %40 = vector.broadcast %39 : vector<1x256xf32> to vector<4x256xf32>
    %41 = arith.mulf %37, %40 : vector<4x256xf32>
    %c2_26 = arith.constant 2 : index
    %c0_27 = arith.constant 0 : index
    %c0_28 = arith.constant 0 : index
    %42 = vector.load %arg5[%c2_26, %c0_27, %c0_28] : memref<9x64x4xf32, #tpu.memory_space<vmem>>, vector<1x64x4xf32>
    %43 = vector.shape_cast %42 : vector<1x64x4xf32> to vector<64x4xf32>
    %cst_29 = arith.constant dense<0.000000e+00> : vector<64x256xf32>
    %44 = tpu.matmul %43, %41, %cst_29 {dimension_numbers = #tpu.dot_dimension_numbers<[1], [0], [0], [1], [0, 0, 1, 1], [], []>, precision = #tpu.contract_precision<fp32>} : vector<64x4xf32>, vector<4x256xf32>, vector<64x256xf32> -> vector<64x256xf32>
    %45 = arith.addf %34, %44 : vector<64x256xf32>
    %cst_30 = arith.constant 0.000000e+00 : f32
    %46 = vector.broadcast %cst_30 : f32 to vector<4x1xf32>
    %47 = vector.extract_strided_slice %8 {offsets = [0, 0], sizes = [4, 255], strides = [1, 1]} : vector<4x256xf32> to vector<4x255xf32>
    %48 = tpu.concatenate %46, %47 in 1 : vector<4x1xf32>, vector<4x255xf32> -> vector<4x256xf32>
    %c3 = arith.constant 3 : index
    %c0_31 = arith.constant 0 : index
    %c0_32 = arith.constant 0 : index
    %49 = vector.load %arg4[%c3, %c0_31, %c0_32] : memref<9x1x256xf32, #tpu.memory_space<vmem>>, vector<1x1x256xf32>
    %50 = vector.shape_cast %49 : vector<1x1x256xf32> to vector<1x256xf32>
    %51 = vector.broadcast %50 : vector<1x256xf32> to vector<4x256xf32>
    %52 = arith.mulf %48, %51 : vector<4x256xf32>
    %c3_33 = arith.constant 3 : index
    %c0_34 = arith.constant 0 : index
    %c0_35 = arith.constant 0 : index
    %53 = vector.load %arg5[%c3_33, %c0_34, %c0_35] : memref<9x64x4xf32, #tpu.memory_space<vmem>>, vector<1x64x4xf32>
    %54 = vector.shape_cast %53 : vector<1x64x4xf32> to vector<64x4xf32>
    %cst_36 = arith.constant dense<0.000000e+00> : vector<64x256xf32>
    %55 = tpu.matmul %54, %52, %cst_36 {dimension_numbers = #tpu.dot_dimension_numbers<[1], [0], [0], [1], [0, 0, 1, 1], [], []>, precision = #tpu.contract_precision<fp32>} : vector<64x4xf32>, vector<4x256xf32>, vector<64x256xf32> -> vector<64x256xf32>
    %56 = arith.addf %45, %55 : vector<64x256xf32>
    %c4 = arith.constant 4 : index
    %c0_37 = arith.constant 0 : index
    %c0_38 = arith.constant 0 : index
    %57 = vector.load %arg4[%c4, %c0_37, %c0_38] : memref<9x1x256xf32, #tpu.memory_space<vmem>>, vector<1x1x256xf32>
    %58 = vector.shape_cast %57 : vector<1x1x256xf32> to vector<1x256xf32>
    %59 = vector.broadcast %58 : vector<1x256xf32> to vector<4x256xf32>
    %60 = arith.mulf %8, %59 : vector<4x256xf32>
    %c4_39 = arith.constant 4 : index
    %c0_40 = arith.constant 0 : index
    %c0_41 = arith.constant 0 : index
    %61 = vector.load %arg5[%c4_39, %c0_40, %c0_41] : memref<9x64x4xf32, #tpu.memory_space<vmem>>, vector<1x64x4xf32>
    %62 = vector.shape_cast %61 : vector<1x64x4xf32> to vector<64x4xf32>
    %cst_42 = arith.constant dense<0.000000e+00> : vector<64x256xf32>
    %63 = tpu.matmul %62, %60, %cst_42 {dimension_numbers = #tpu.dot_dimension_numbers<[1], [0], [0], [1], [0, 0, 1, 1], [], []>, precision = #tpu.contract_precision<fp32>} : vector<64x4xf32>, vector<4x256xf32>, vector<64x256xf32> -> vector<64x256xf32>
    %64 = arith.addf %56, %63 : vector<64x256xf32>
    %cst_43 = arith.constant 0.000000e+00 : f32
    %65 = vector.broadcast %cst_43 : f32 to vector<4x1xf32>
    %66 = vector.extract_strided_slice %8 {offsets = [0, 1], sizes = [4, 255], strides = [1, 1]} : vector<4x256xf32> to vector<4x255xf32>
    %67 = tpu.concatenate %66, %65 in 1 : vector<4x255xf32>, vector<4x1xf32> -> vector<4x256xf32>
    %c5 = arith.constant 5 : index
    %c0_44 = arith.constant 0 : index
    %c0_45 = arith.constant 0 : index
    %68 = vector.load %arg4[%c5, %c0_44, %c0_45] : memref<9x1x256xf32, #tpu.memory_space<vmem>>, vector<1x1x256xf32>
    %69 = vector.shape_cast %68 : vector<1x1x256xf32> to vector<1x256xf32>
    %70 = vector.broadcast %69 : vector<1x256xf32> to vector<4x256xf32>
    %71 = arith.mulf %67, %70 : vector<4x256xf32>
    %c5_46 = arith.constant 5 : index
    %c0_47 = arith.constant 0 : index
    %c0_48 = arith.constant 0 : index
    %72 = vector.load %arg5[%c5_46, %c0_47, %c0_48] : memref<9x64x4xf32, #tpu.memory_space<vmem>>, vector<1x64x4xf32>
    %73 = vector.shape_cast %72 : vector<1x64x4xf32> to vector<64x4xf32>
    %cst_49 = arith.constant dense<0.000000e+00> : vector<64x256xf32>
    %74 = tpu.matmul %73, %71, %cst_49 {dimension_numbers = #tpu.dot_dimension_numbers<[1], [0], [0], [1], [0, 0, 1, 1], [], []>, precision = #tpu.contract_precision<fp32>} : vector<64x4xf32>, vector<4x256xf32>, vector<64x256xf32> -> vector<64x256xf32>
    %75 = arith.addf %64, %74 : vector<64x256xf32>
    %cst_50 = arith.constant 0.000000e+00 : f32
    %76 = vector.broadcast %cst_50 : f32 to vector<4x31xf32>
    %77 = vector.extract_strided_slice %8 {offsets = [0, 31], sizes = [4, 225], strides = [1, 1]} : vector<4x256xf32> to vector<4x225xf32>
    %78 = tpu.concatenate %77, %76 in 1 : vector<4x225xf32>, vector<4x31xf32> -> vector<4x256xf32>
    %c6 = arith.constant 6 : index
    %c0_51 = arith.constant 0 : index
    %c0_52 = arith.constant 0 : index
    %79 = vector.load %arg4[%c6, %c0_51, %c0_52] : memref<9x1x256xf32, #tpu.memory_space<vmem>>, vector<1x1x256xf32>
    %80 = vector.shape_cast %79 : vector<1x1x256xf32> to vector<1x256xf32>
    %81 = vector.broadcast %80 : vector<1x256xf32> to vector<4x256xf32>
    %82 = arith.mulf %78, %81 : vector<4x256xf32>
    %c6_53 = arith.constant 6 : index
    %c0_54 = arith.constant 0 : index
    %c0_55 = arith.constant 0 : index
    %83 = vector.load %arg5[%c6_53, %c0_54, %c0_55] : memref<9x64x4xf32, #tpu.memory_space<vmem>>, vector<1x64x4xf32>
    %84 = vector.shape_cast %83 : vector<1x64x4xf32> to vector<64x4xf32>
    %cst_56 = arith.constant dense<0.000000e+00> : vector<64x256xf32>
    %85 = tpu.matmul %84, %82, %cst_56 {dimension_numbers = #tpu.dot_dimension_numbers<[1], [0], [0], [1], [0, 0, 1, 1], [], []>, precision = #tpu.contract_precision<fp32>} : vector<64x4xf32>, vector<4x256xf32>, vector<64x256xf32> -> vector<64x256xf32>
    %86 = arith.addf %75, %85 : vector<64x256xf32>
    %cst_57 = arith.constant 0.000000e+00 : f32
    %87 = vector.broadcast %cst_57 : f32 to vector<4x32xf32>
    %88 = vector.extract_strided_slice %8 {offsets = [0, 32], sizes = [4, 224], strides = [1, 1]} : vector<4x256xf32> to vector<4x224xf32>
    %89 = tpu.concatenate %88, %87 in 1 : vector<4x224xf32>, vector<4x32xf32> -> vector<4x256xf32>
    %c7 = arith.constant 7 : index
    %c0_58 = arith.constant 0 : index
    %c0_59 = arith.constant 0 : index
    %90 = vector.load %arg4[%c7, %c0_58, %c0_59] : memref<9x1x256xf32, #tpu.memory_space<vmem>>, vector<1x1x256xf32>
    %91 = vector.shape_cast %90 : vector<1x1x256xf32> to vector<1x256xf32>
    %92 = vector.broadcast %91 : vector<1x256xf32> to vector<4x256xf32>
    %93 = arith.mulf %89, %92 : vector<4x256xf32>
    %c7_60 = arith.constant 7 : index
    %c0_61 = arith.constant 0 : index
    %c0_62 = arith.constant 0 : index
    %94 = vector.load %arg5[%c7_60, %c0_61, %c0_62] : memref<9x64x4xf32, #tpu.memory_space<vmem>>, vector<1x64x4xf32>
    %95 = vector.shape_cast %94 : vector<1x64x4xf32> to vector<64x4xf32>
    %cst_63 = arith.constant dense<0.000000e+00> : vector<64x256xf32>
    %96 = tpu.matmul %95, %93, %cst_63 {dimension_numbers = #tpu.dot_dimension_numbers<[1], [0], [0], [1], [0, 0, 1, 1], [], []>, precision = #tpu.contract_precision<fp32>} : vector<64x4xf32>, vector<4x256xf32>, vector<64x256xf32> -> vector<64x256xf32>
    %97 = arith.addf %86, %96 : vector<64x256xf32>
    %cst_64 = arith.constant 0.000000e+00 : f32
    %98 = vector.broadcast %cst_64 : f32 to vector<4x33xf32>
    %99 = vector.extract_strided_slice %8 {offsets = [0, 33], sizes = [4, 223], strides = [1, 1]} : vector<4x256xf32> to vector<4x223xf32>
    %100 = tpu.concatenate %99, %98 in 1 : vector<4x223xf32>, vector<4x33xf32> -> vector<4x256xf32>
    %c8 = arith.constant 8 : index
    %c0_65 = arith.constant 0 : index
    %c0_66 = arith.constant 0 : index
    %101 = vector.load %arg4[%c8, %c0_65, %c0_66] : memref<9x1x256xf32, #tpu.memory_space<vmem>>, vector<1x1x256xf32>
    %102 = vector.shape_cast %101 : vector<1x1x256xf32> to vector<1x256xf32>
    %103 = vector.broadcast %102 : vector<1x256xf32> to vector<4x256xf32>
    %104 = arith.mulf %100, %103 : vector<4x256xf32>
    %c8_67 = arith.constant 8 : index
    %c0_68 = arith.constant 0 : index
    %c0_69 = arith.constant 0 : index
    %105 = vector.load %arg5[%c8_67, %c0_68, %c0_69] : memref<9x64x4xf32, #tpu.memory_space<vmem>>, vector<1x64x4xf32>
    %106 = vector.shape_cast %105 : vector<1x64x4xf32> to vector<64x4xf32>
    %cst_70 = arith.constant dense<0.000000e+00> : vector<64x256xf32>
    %107 = tpu.matmul %106, %104, %cst_70 {dimension_numbers = #tpu.dot_dimension_numbers<[1], [0], [0], [1], [0, 0, 1, 1], [], []>, precision = #tpu.contract_precision<fp32>} : vector<64x4xf32>, vector<4x256xf32>, vector<64x256xf32> -> vector<64x256xf32>
    %108 = arith.addf %97, %107 : vector<64x256xf32>
    %cst_71 = arith.constant 0.000000e+00 : f32
    %109 = vector.broadcast %cst_71 : f32 to vector<3x256xf32>
    %c0_72 = arith.constant 0 : index
    %c0_73 = arith.constant 0 : index
    %110 = vector.load %arg8[%c0_72, %c0_73] : memref<3x1xf32, #tpu.memory_space<vmem>>, vector<3x1xf32>
    %111 = vector.broadcast %110 : vector<3x1xf32> to vector<3x256xf32>
    %112 = arith.addf %109, %111 : vector<3x256xf32>
    %cst_74 = arith.constant 0.000000e+00 : f32
    %113 = vector.broadcast %cst_74 : f32 to vector<64x33xf32>
    %114 = vector.extract_strided_slice %108 {offsets = [0, 0], sizes = [64, 223], strides = [1, 1]} : vector<64x256xf32> to vector<64x223xf32>
    %115 = tpu.concatenate %113, %114 in 1 : vector<64x33xf32>, vector<64x223xf32> -> vector<64x256xf32>
    %c0_75 = arith.constant 0 : index
    %c0_76 = arith.constant 0 : index
    %c0_77 = arith.constant 0 : index
    %116 = vector.load %arg4[%c0_75, %c0_76, %c0_77] : memref<9x1x256xf32, #tpu.memory_space<vmem>>, vector<1x1x256xf32>
    %117 = vector.shape_cast %116 : vector<1x1x256xf32> to vector<1x256xf32>
    %118 = vector.broadcast %117 : vector<1x256xf32> to vector<64x256xf32>
    %119 = arith.mulf %115, %118 : vector<64x256xf32>
    %c0_78 = arith.constant 0 : index
    %c0_79 = arith.constant 0 : index
    %c0_80 = arith.constant 0 : index
    %120 = vector.load %arg7[%c0_78, %c0_79, %c0_80] : memref<9x3x64xf32, #tpu.memory_space<vmem>>, vector<1x3x64xf32>
    %121 = vector.shape_cast %120 : vector<1x3x64xf32> to vector<3x64xf32>
    %cst_81 = arith.constant dense<0.000000e+00> : vector<3x256xf32>
    %122 = tpu.matmul %121, %119, %cst_81 {dimension_numbers = #tpu.dot_dimension_numbers<[1], [0], [0], [1], [0, 0, 1, 1], [], []>, precision = #tpu.contract_precision<fp32>} : vector<3x64xf32>, vector<64x256xf32>, vector<3x256xf32> -> vector<3x256xf32>
    %123 = arith.addf %112, %122 : vector<3x256xf32>
    %cst_82 = arith.constant 0.000000e+00 : f32
    %124 = vector.broadcast %cst_82 : f32 to vector<64x32xf32>
    %125 = vector.extract_strided_slice %108 {offsets = [0, 0], sizes = [64, 224], strides = [1, 1]} : vector<64x256xf32> to vector<64x224xf32>
    %126 = tpu.concatenate %124, %125 in 1 : vector<64x32xf32>, vector<64x224xf32> -> vector<64x256xf32>
    %c1_83 = arith.constant 1 : index
    %c0_84 = arith.constant 0 : index
    %c0_85 = arith.constant 0 : index
    %127 = vector.load %arg4[%c1_83, %c0_84, %c0_85] : memref<9x1x256xf32, #tpu.memory_space<vmem>>, vector<1x1x256xf32>
    %128 = vector.shape_cast %127 : vector<1x1x256xf32> to vector<1x256xf32>
    %129 = vector.broadcast %128 : vector<1x256xf32> to vector<64x256xf32>
    %130 = arith.mulf %126, %129 : vector<64x256xf32>
    %c1_86 = arith.constant 1 : index
    %c0_87 = arith.constant 0 : index
    %c0_88 = arith.constant 0 : index
    %131 = vector.load %arg7[%c1_86, %c0_87, %c0_88] : memref<9x3x64xf32, #tpu.memory_space<vmem>>, vector<1x3x64xf32>
    %132 = vector.shape_cast %131 : vector<1x3x64xf32> to vector<3x64xf32>
    %cst_89 = arith.constant dense<0.000000e+00> : vector<3x256xf32>
    %133 = tpu.matmul %132, %130, %cst_89 {dimension_numbers = #tpu.dot_dimension_numbers<[1], [0], [0], [1], [0, 0, 1, 1], [], []>, precision = #tpu.contract_precision<fp32>} : vector<3x64xf32>, vector<64x256xf32>, vector<3x256xf32> -> vector<3x256xf32>
    %134 = arith.addf %123, %133 : vector<3x256xf32>
    %cst_90 = arith.constant 0.000000e+00 : f32
    %135 = vector.broadcast %cst_90 : f32 to vector<64x31xf32>
    %136 = vector.extract_strided_slice %108 {offsets = [0, 0], sizes = [64, 225], strides = [1, 1]} : vector<64x256xf32> to vector<64x225xf32>
    %137 = tpu.concatenate %135, %136 in 1 : vector<64x31xf32>, vector<64x225xf32> -> vector<64x256xf32>
    %c2_91 = arith.constant 2 : index
    %c0_92 = arith.constant 0 : index
    %c0_93 = arith.constant 0 : index
    %138 = vector.load %arg4[%c2_91, %c0_92, %c0_93] : memref<9x1x256xf32, #tpu.memory_space<vmem>>, vector<1x1x256xf32>
    %139 = vector.shape_cast %138 : vector<1x1x256xf32> to vector<1x256xf32>
    %140 = vector.broadcast %139 : vector<1x256xf32> to vector<64x256xf32>
    %141 = arith.mulf %137, %140 : vector<64x256xf32>
    %c2_94 = arith.constant 2 : index
    %c0_95 = arith.constant 0 : index
    %c0_96 = arith.constant 0 : index
    %142 = vector.load %arg7[%c2_94, %c0_95, %c0_96] : memref<9x3x64xf32, #tpu.memory_space<vmem>>, vector<1x3x64xf32>
    %143 = vector.shape_cast %142 : vector<1x3x64xf32> to vector<3x64xf32>
    %cst_97 = arith.constant dense<0.000000e+00> : vector<3x256xf32>
    %144 = tpu.matmul %143, %141, %cst_97 {dimension_numbers = #tpu.dot_dimension_numbers<[1], [0], [0], [1], [0, 0, 1, 1], [], []>, precision = #tpu.contract_precision<fp32>} : vector<3x64xf32>, vector<64x256xf32>, vector<3x256xf32> -> vector<3x256xf32>
    %145 = arith.addf %134, %144 : vector<3x256xf32>
    %cst_98 = arith.constant 0.000000e+00 : f32
    %146 = vector.broadcast %cst_98 : f32 to vector<64x1xf32>
    %147 = vector.extract_strided_slice %108 {offsets = [0, 0], sizes = [64, 255], strides = [1, 1]} : vector<64x256xf32> to vector<64x255xf32>
    %148 = tpu.concatenate %146, %147 in 1 : vector<64x1xf32>, vector<64x255xf32> -> vector<64x256xf32>
    %c3_99 = arith.constant 3 : index
    %c0_100 = arith.constant 0 : index
    %c0_101 = arith.constant 0 : index
    %149 = vector.load %arg4[%c3_99, %c0_100, %c0_101] : memref<9x1x256xf32, #tpu.memory_space<vmem>>, vector<1x1x256xf32>
    %150 = vector.shape_cast %149 : vector<1x1x256xf32> to vector<1x256xf32>
    %151 = vector.broadcast %150 : vector<1x256xf32> to vector<64x256xf32>
    %152 = arith.mulf %148, %151 : vector<64x256xf32>
    %c3_102 = arith.constant 3 : index
    %c0_103 = arith.constant 0 : index
    %c0_104 = arith.constant 0 : index
    %153 = vector.load %arg7[%c3_102, %c0_103, %c0_104] : memref<9x3x64xf32, #tpu.memory_space<vmem>>, vector<1x3x64xf32>
    %154 = vector.shape_cast %153 : vector<1x3x64xf32> to vector<3x64xf32>
    %cst_105 = arith.constant dense<0.000000e+00> : vector<3x256xf32>
    %155 = tpu.matmul %154, %152, %cst_105 {dimension_numbers = #tpu.dot_dimension_numbers<[1], [0], [0], [1], [0, 0, 1, 1], [], []>, precision = #tpu.contract_precision<fp32>} : vector<3x64xf32>, vector<64x256xf32>, vector<3x256xf32> -> vector<3x256xf32>
    %156 = arith.addf %145, %155 : vector<3x256xf32>
    %c4_106 = arith.constant 4 : index
    %c0_107 = arith.constant 0 : index
    %c0_108 = arith.constant 0 : index
    %157 = vector.load %arg4[%c4_106, %c0_107, %c0_108] : memref<9x1x256xf32, #tpu.memory_space<vmem>>, vector<1x1x256xf32>
    %158 = vector.shape_cast %157 : vector<1x1x256xf32> to vector<1x256xf32>
    %159 = vector.broadcast %158 : vector<1x256xf32> to vector<64x256xf32>
    %160 = arith.mulf %108, %159 : vector<64x256xf32>
    %c4_109 = arith.constant 4 : index
    %c0_110 = arith.constant 0 : index
    %c0_111 = arith.constant 0 : index
    %161 = vector.load %arg7[%c4_109, %c0_110, %c0_111] : memref<9x3x64xf32, #tpu.memory_space<vmem>>, vector<1x3x64xf32>
    %162 = vector.shape_cast %161 : vector<1x3x64xf32> to vector<3x64xf32>
    %cst_112 = arith.constant dense<0.000000e+00> : vector<3x256xf32>
    %163 = tpu.matmul %162, %160, %cst_112 {dimension_numbers = #tpu.dot_dimension_numbers<[1], [0], [0], [1], [0, 0, 1, 1], [], []>, precision = #tpu.contract_precision<fp32>} : vector<3x64xf32>, vector<64x256xf32>, vector<3x256xf32> -> vector<3x256xf32>
    %164 = arith.addf %156, %163 : vector<3x256xf32>
    %cst_113 = arith.constant 0.000000e+00 : f32
    %165 = vector.broadcast %cst_113 : f32 to vector<64x1xf32>
    %166 = vector.extract_strided_slice %108 {offsets = [0, 1], sizes = [64, 255], strides = [1, 1]} : vector<64x256xf32> to vector<64x255xf32>
    %167 = tpu.concatenate %166, %165 in 1 : vector<64x255xf32>, vector<64x1xf32> -> vector<64x256xf32>
    %c5_114 = arith.constant 5 : index
    %c0_115 = arith.constant 0 : index
    %c0_116 = arith.constant 0 : index
    %168 = vector.load %arg4[%c5_114, %c0_115, %c0_116] : memref<9x1x256xf32, #tpu.memory_space<vmem>>, vector<1x1x256xf32>
    %169 = vector.shape_cast %168 : vector<1x1x256xf32> to vector<1x256xf32>
    %170 = vector.broadcast %169 : vector<1x256xf32> to vector<64x256xf32>
    %171 = arith.mulf %167, %170 : vector<64x256xf32>
    %c5_117 = arith.constant 5 : index
    %c0_118 = arith.constant 0 : index
    %c0_119 = arith.constant 0 : index
    %172 = vector.load %arg7[%c5_117, %c0_118, %c0_119] : memref<9x3x64xf32, #tpu.memory_space<vmem>>, vector<1x3x64xf32>
    %173 = vector.shape_cast %172 : vector<1x3x64xf32> to vector<3x64xf32>
    %cst_120 = arith.constant dense<0.000000e+00> : vector<3x256xf32>
    %174 = tpu.matmul %173, %171, %cst_120 {dimension_numbers = #tpu.dot_dimension_numbers<[1], [0], [0], [1], [0, 0, 1, 1], [], []>, precision = #tpu.contract_precision<fp32>} : vector<3x64xf32>, vector<64x256xf32>, vector<3x256xf32> -> vector<3x256xf32>
    %175 = arith.addf %164, %174 : vector<3x256xf32>
    %cst_121 = arith.constant 0.000000e+00 : f32
    %176 = vector.broadcast %cst_121 : f32 to vector<64x31xf32>
    %177 = vector.extract_strided_slice %108 {offsets = [0, 31], sizes = [64, 225], strides = [1, 1]} : vector<64x256xf32> to vector<64x225xf32>
    %178 = tpu.concatenate %177, %176 in 1 : vector<64x225xf32>, vector<64x31xf32> -> vector<64x256xf32>
    %c6_122 = arith.constant 6 : index
    %c0_123 = arith.constant 0 : index
    %c0_124 = arith.constant 0 : index
    %179 = vector.load %arg4[%c6_122, %c0_123, %c0_124] : memref<9x1x256xf32, #tpu.memory_space<vmem>>, vector<1x1x256xf32>
    %180 = vector.shape_cast %179 : vector<1x1x256xf32> to vector<1x256xf32>
    %181 = vector.broadcast %180 : vector<1x256xf32> to vector<64x256xf32>
    %182 = arith.mulf %178, %181 : vector<64x256xf32>
    %c6_125 = arith.constant 6 : index
    %c0_126 = arith.constant 0 : index
    %c0_127 = arith.constant 0 : index
    %183 = vector.load %arg7[%c6_125, %c0_126, %c0_127] : memref<9x3x64xf32, #tpu.memory_space<vmem>>, vector<1x3x64xf32>
    %184 = vector.shape_cast %183 : vector<1x3x64xf32> to vector<3x64xf32>
    %cst_128 = arith.constant dense<0.000000e+00> : vector<3x256xf32>
    %185 = tpu.matmul %184, %182, %cst_128 {dimension_numbers = #tpu.dot_dimension_numbers<[1], [0], [0], [1], [0, 0, 1, 1], [], []>, precision = #tpu.contract_precision<fp32>} : vector<3x64xf32>, vector<64x256xf32>, vector<3x256xf32> -> vector<3x256xf32>
    %186 = arith.addf %175, %185 : vector<3x256xf32>
    %cst_129 = arith.constant 0.000000e+00 : f32
    %187 = vector.broadcast %cst_129 : f32 to vector<64x32xf32>
    %188 = vector.extract_strided_slice %108 {offsets = [0, 32], sizes = [64, 224], strides = [1, 1]} : vector<64x256xf32> to vector<64x224xf32>
    %189 = tpu.concatenate %188, %187 in 1 : vector<64x224xf32>, vector<64x32xf32> -> vector<64x256xf32>
    %c7_130 = arith.constant 7 : index
    %c0_131 = arith.constant 0 : index
    %c0_132 = arith.constant 0 : index
    %190 = vector.load %arg4[%c7_130, %c0_131, %c0_132] : memref<9x1x256xf32, #tpu.memory_space<vmem>>, vector<1x1x256xf32>
    %191 = vector.shape_cast %190 : vector<1x1x256xf32> to vector<1x256xf32>
    %192 = vector.broadcast %191 : vector<1x256xf32> to vector<64x256xf32>
    %193 = arith.mulf %189, %192 : vector<64x256xf32>
    %c7_133 = arith.constant 7 : index
    %c0_134 = arith.constant 0 : index
    %c0_135 = arith.constant 0 : index
    %194 = vector.load %arg7[%c7_133, %c0_134, %c0_135] : memref<9x3x64xf32, #tpu.memory_space<vmem>>, vector<1x3x64xf32>
    %195 = vector.shape_cast %194 : vector<1x3x64xf32> to vector<3x64xf32>
    %cst_136 = arith.constant dense<0.000000e+00> : vector<3x256xf32>
    %196 = tpu.matmul %195, %193, %cst_136 {dimension_numbers = #tpu.dot_dimension_numbers<[1], [0], [0], [1], [0, 0, 1, 1], [], []>, precision = #tpu.contract_precision<fp32>} : vector<3x64xf32>, vector<64x256xf32>, vector<3x256xf32> -> vector<3x256xf32>
    %197 = arith.addf %186, %196 : vector<3x256xf32>
    %cst_137 = arith.constant 0.000000e+00 : f32
    %198 = vector.broadcast %cst_137 : f32 to vector<64x33xf32>
    %199 = vector.extract_strided_slice %108 {offsets = [0, 33], sizes = [64, 223], strides = [1, 1]} : vector<64x256xf32> to vector<64x223xf32>
    %200 = tpu.concatenate %199, %198 in 1 : vector<64x223xf32>, vector<64x33xf32> -> vector<64x256xf32>
    %c8_138 = arith.constant 8 : index
    %c0_139 = arith.constant 0 : index
    %c0_140 = arith.constant 0 : index
    %201 = vector.load %arg4[%c8_138, %c0_139, %c0_140] : memref<9x1x256xf32, #tpu.memory_space<vmem>>, vector<1x1x256xf32>
    %202 = vector.shape_cast %201 : vector<1x1x256xf32> to vector<1x256xf32>
    %203 = vector.broadcast %202 : vector<1x256xf32> to vector<64x256xf32>
    %204 = arith.mulf %200, %203 : vector<64x256xf32>
    %c8_141 = arith.constant 8 : index
    %c0_142 = arith.constant 0 : index
    %c0_143 = arith.constant 0 : index
    %205 = vector.load %arg7[%c8_141, %c0_142, %c0_143] : memref<9x3x64xf32, #tpu.memory_space<vmem>>, vector<1x3x64xf32>
    %206 = vector.shape_cast %205 : vector<1x3x64xf32> to vector<3x64xf32>
    %cst_144 = arith.constant dense<0.000000e+00> : vector<3x256xf32>
    %207 = tpu.matmul %206, %204, %cst_144 {dimension_numbers = #tpu.dot_dimension_numbers<[1], [0], [0], [1], [0, 0, 1, 1], [], []>, precision = #tpu.contract_precision<fp32>} : vector<3x64xf32>, vector<64x256xf32>, vector<3x256xf32> -> vector<3x256xf32>
    %208 = arith.addf %197, %207 : vector<3x256xf32>
    %c0_145 = arith.constant 0 : index
    %c0_146 = arith.constant 0 : index
    %c0_147 = arith.constant 0 : index
    %209 = vector.load %arg9[%c0_145, %c0_146, %c0_147] : memref<1x3x256xf32, #tpu.memory_space<vmem>>, vector<1x3x256xf32>
    %210 = vector.shape_cast %209 : vector<1x3x256xf32> to vector<3x256xf32>
    %211 = vector.shape_cast %208 : vector<3x256xf32> to vector<1x3x256xf32>
    tpu.vector_store %arg9[%c0_145, %c0_146, %c0_147], %211 {strides = array<i32>} : memref<1x3x256xf32, #tpu.memory_space<vmem>>, vector<1x3x256xf32>,
    return
  }
  func.func @transform_0(%arg0: i32) -> i32 {
    %c0_i32 = arith.constant 0 : i32
    %c0_i32_0 = arith.constant 0 : i32
    return %c0_i32 : i32
  }
  func.func @transform_1(%arg0: i32) -> (i32, i32, i32) {
    %c0_i32 = arith.constant 0 : i32
    %c0_i32_0 = arith.constant 0 : i32
    %c0_i32_1 = arith.constant 0 : i32
    return %arg0, %c0_i32, %c0_i32_0 : i32, i32, i32
  }
  func.func @transform_2(%arg0: i32) -> (i32, i32) {
    %c0_i32 = arith.constant 0 : i32
    %c0_i32_0 = arith.constant 0 : i32
    %c0_i32_1 = arith.constant 0 : i32
    return %c0_i32, %c0_i32_0 : i32, i32
  }
  func.func @transform_3(%arg0: i32) -> (i32, i32, i32) {
    %c0_i32 = arith.constant 0 : i32
    %c0_i32_0 = arith.constant 0 : i32
    %c0_i32_1 = arith.constant 0 : i32
    %c0_i32_2 = arith.constant 0 : i32
    return %c0_i32, %c0_i32_0, %c0_i32_1 : i32, i32, i32
  }
  func.func @transform_4(%arg0: i32) -> (i32, i32, i32) {
    %c0_i32 = arith.constant 0 : i32
    %c0_i32_0 = arith.constant 0 : i32
    %c0_i32_1 = arith.constant 0 : i32
    %c0_i32_2 = arith.constant 0 : i32
    return %c0_i32, %c0_i32_0, %c0_i32_1 : i32, i32, i32
  }
  func.func @transform_5(%arg0: i32) -> (i32, i32) {
    %c0_i32 = arith.constant 0 : i32
    %c0_i32_0 = arith.constant 0 : i32
    %c0_i32_1 = arith.constant 0 : i32
    return %c0_i32, %c0_i32_0 : i32, i32
  }
  func.func @transform_6(%arg0: i32) -> (i32, i32, i32) {
    %c0_i32 = arith.constant 0 : i32
    %c0_i32_0 = arith.constant 0 : i32
    %c0_i32_1 = arith.constant 0 : i32
    %c0_i32_2 = arith.constant 0 : i32
    return %c0_i32, %c0_i32_0, %c0_i32_1 : i32, i32, i32
  }
  func.func @transform_7(%arg0: i32) -> (i32, i32) {
    %c0_i32 = arith.constant 0 : i32
    %c0_i32_0 = arith.constant 0 : i32
    %c0_i32_1 = arith.constant 0 : i32
    return %c0_i32, %c0_i32_0 : i32, i32
  }
  func.func @transform_8(%arg0: i32) -> (i32, i32, i32) {
    %c0_i32 = arith.constant 0 : i32
    %c0_i32_0 = arith.constant 0 : i32
    %c0_i32_1 = arith.constant 0 : i32
    return %arg0, %c0_i32, %c0_i32_0 : i32, i32, i32
  }
}

</mosaic_0001>

<bundles_post_ra>
// kernel: tpu_custom_call.1
= control target key start
LH: loop header
LB: loop body
LE: loop exit
PB: predicated region body
PF: predicated region fallthrough
CT: control target
= control target key end

     0   :  { %s14251_s29 = smov 0   ;;  %s22652_s0 = inlined_call_operand.<no memory space> [shape: f32[1], index: 0, kind: input, shape index: {}]   ;;  %s22653_s1 = inlined_call_operand.vmem [shape: f32[2,4,256], index: 1, kind: input, shape index: {}]   ;;  %s22654_s2 = inlined_call_operand.vmem [shape: f32[256,256], index: 2, kind: input, shape index: {}]   ;;  %s22655_s3 = inlined_call_operand.vmem [shape: f32[9,1,256], index: 3, kind: input, shape index: {}]   ;;  %s22656_s4 = inlined_call_operand.vmem [shape: f32[9,64,4], index: 4, kind: input, shape index: {}]   ;;  %s22657_s5 = inlined_call_operand.vmem [shape: f32[64,1], index: 5, kind: input, shape index: {}]   ;;  %s22658_s6 = inlined_call_operand.vmem [shape: f32[9,3,64], index: 6, kind: input, shape index: {}]   ;;  %s22659_s7 = inlined_call_operand.vmem [shape: f32[3,1], index: 7, kind: input, shape index: {}]   ;;  %s22660_s8 = inlined_call_operand.vmem [shape: f32[2,3,256], index: 8, kind: output, shape index: {}]  }
   0x1   :  { %13 = sst [smem:[#allocation2]] %s22652_s0 }
   0x2 LB: > { %s14071_s30 = sadd.s32 4294967295, %s14192_s29   ;;  %p14075_p0 = scmp.ge.s32.totalorder %s14192_s29, 1  ;;  %s14192_s29 = sphi %s14251_s29, %s19_s29  }
   0x3   : > { %p263_p1 = scmp.lt.s32.totalorder %s14192_s29, 3 }
   0x5   : > { %p264_p2 = pnand %p14075_p0, %p263_p1 }
   0x7   : > { %267 = sbr.rel (%p264_p2) target bundleno = 3020 (0xbcc), region = 52 }
   0xc   : > { %v339_v0 = vld [vmem:[%s22654_s2 + $0xf0] sm:$0xff]  ;;  %v337_v1 = vld [vmem:[%s22654_s2 + $0xe0] sm:$0xff]  ;;  %p14270_p3 = scmp.lt.s32.totalorder %s14071_s30, 1  ;;  %s307_s20 = sld [smem:[#allocation2]]  ;;  %vm1845_vm4 = vcmask 31744   ;;  %vm1824_vm5 = vcmask 269312  }
   0xd   : > { %v335_v2 = vld [vmem:[%s22654_s2 + $0xd0] sm:$0xff]  ;;  %v14274_v3 = vand.u32 4294901760, %v339_v0  ;;  %v14276_v4 = vand.u32 4294901760, %v337_v1  ;;  %v333_v6 = vld [vmem:[%s22654_s2 + $0xc0] sm:$0xff]  ;;  %s14194_s21 = smov 31   ;;  %s14195_s22 = smov 32  }
   0xe   : > { %v14278_v5 = vand.u32 4294901760, %v335_v2  ;;  %v331_v7 = vld [vmem:[%s22654_s2 + $0xb0] sm:$0xff]  ;;  %v329_v8 = vld [vmem:[%s22654_s2 + $0xa0] sm:$0xff]  ;;  %v14289_v9 = vand.u32 4294901760, %v333_v6  ;;  %s23666_s30 = smov (!%p14270_p3, %s14071_s30), 1  ;;  %s14196_s23 = smov 33  }
   0xf   : > { %v14291_v10 = vand.u32 4294901760, %v331_v7  ;;  %v14293_v11 = vand.u32 4294901760, %v329_v8  ;;  %v327_v12 = vld [vmem:[%s22654_s2 + $0x90] sm:$0xff]  ;;  %v325_v13 = vld [vmem:[%s22654_s2 + $0x80] sm:$0xff]  ;;  %380 = vmatpush.msra.mxu0 %v14274_v3  ;;  %v14303_v14 = vsub.f32 %v339_v0, %v14274_v3  ;;  %v14306_v15 = vsub.f32 %v337_v1, %v14276_v4  ;;  %576 = vmatpush.msra.mxu3 %v14274_v3  ;;  %s14162_s0 = sshll.u32 %s23666_s30, 3  ;;  %s14197_s28 = smov 127  }
  0x10   : > { %v14310_v16 = vsub.f32 %v335_v2, %v14278_v5  ;;  %v14312_v17 = vand.u32 4294901760, %v327_v12  ;;  %v323_v18 = vld [vmem:[%s22654_s2 + $0x70] sm:$0xff]  ;;  %v14318_v19 = vsub.f32 %v333_v6, %v14289_v9  ;;  %v14337_v25 = vand.u32 4294901760, %v325_v13  ;;  %v321_v26 = vld [vmem:[%s22654_s2 + $0x60] sm:$0xff]  ;;  %s301_s15 = scalar_lea.vmem %s22653_s1, %s14162_s0  ;;  %s14198_s9 = smov 1  }
  0x11   : > { %v14321_v20 = vsub.f32 %v331_v7, %v14291_v10  ;;  %v14324_v21 = vsub.f32 %v329_v8, %v14293_v11  ;;  %382 = vmatpush.msra.mxu0 %v14276_v4  ;;  %523 = vmatpush.msra.mxu2 %v14303_v14  ;;  %v422_v22 = vand.u32 4294901760, %v14303_v14  ;;  %v22676_v23 = vand.u32 4294901760, %v14306_v15  ;;  %v319_v34 = vld [vmem:[%s22654_s2 + $0x50] sm:$0xff]  ;;  %v317_v42 = vld [vmem:[%s22654_s2 + $0x40] sm:$0xff]  ;;  %s14199_s14 = smov 97   ;;  %s14200_s17 = smov 95  }
  0x12   : > { %v22674_v24 = vand.u32 4294901760, %v14310_v16  ;;  %578 = vmatpush.msra.mxu3 %v14276_v4  ;;  %v22672_v27 = vand.u32 4294901760, %v14318_v19  ;;  %v14344_v28 = vand.u32 4294901760, %v323_v18  ;;  %v14347_v29 = vsub.f32 %v327_v12, %v14312_v17  ;;  %v315_v48 = vld [vmem:[%s22654_s2 + $0x30] sm:$0xff]  ;;  %v313_v54 = vld [vmem:[%s22654_s2 + $0x20] sm:$0xff]  ;;  %s14201_s18 = smov 96  }
  0x13   : > { %384 = vmatpush.msra.mxu0 %v14278_v5  ;;  %526 = vmatpush.msra.mxu2 %v14306_v15  ;;  %v423_v30 = vsub.f32 %v14303_v14, %v422_v22  ;;  %v429_v31 = vsub.f32 %v14306_v15, %v22676_v23  ;;  %v22670_v33 = vand.u32 4294901760, %v14321_v20  ;;  %v14365_v35 = vand.u32 4294901760, %v321_v26  ;;  %v308_v55 = vld [vmem:[%s301_s15] sm:$0xff]  ;;  %v371_v60 = vld [vmem:[%s22654_s2 + $0x1f0] sm:$0xff] }
  0x14   : > { %v435_v32 = vsub.f32 %v14310_v16, %v22674_v24  ;;  %580 = vmatpush.msra.mxu3 %v14278_v5  ;;  %v22669_v36 = vand.u32 4294901760, %v14324_v21  ;;  %v441_v39 = vsub.f32 %v14318_v19, %v22672_v27  ;;  %v14375_v40 = vsub.f32 %v325_v13, %v14337_v25  ;;  %374 = vst [vmem:[#allocation1] ss:$2 sm:$0xff] %v308_v55  ;;  %v311_v62 = vld [vmem:[%s22654_s2 + $0x10] sm:$0xff]  ;;  %v309_v6 = vld [vmem:[%s22654_s2] sm:$0xff] }
  0x15   : > { %386 = vmatpush.msra.mxu0 %v14289_v9  ;;  %v424_v37 = vand.u32 4294901760, %v423_v30  ;;  %529 = vmatpush.msra.mxu2 %v14310_v16  ;;  %v430_v38 = vand.u32 4294901760, %v429_v31  ;;  %v14378_v41 = vand.u32 4294901760, %v319_v34  ;;  %v447_v44 = vsub.f32 %v14321_v20, %v22670_v33  ;;  %v369_v7 = vld [vmem:[%s22654_s2 + $0x1e0] sm:$0xff] }
  0x16   : > { %582 = vmatpush.msra.mxu3 %v14289_v9  ;;  %v436_v43 = vand.u32 4294901760, %v435_v32  ;;  %v22667_v45 = vand.u32 4294901760, %v14347_v29  ;;  %v14389_v46 = vsub.f32 %v323_v18, %v14344_v28  ;;  %v453_v47 = vsub.f32 %v14324_v21, %v22669_v36 }
  0x17   : > { %388 = vmatpush.msra.mxu0 %v14291_v10  ;;  %425 = vmatpush.msra.mxu1 %v424_v37  ;;  %v442_v49 = vand.u32 4294901760, %v441_v39  ;;  %v14405_v50 = vand.u32 4294901760, %v317_v42  ;;  %v22666_v51 = vand.u32 4294901760, %v14375_v40  ;;  %v14409_v52 = vsub.f32 %v321_v26, %v14365_v35 }
  0x18   : > { %532 = vmatpush.msra.mxu2 %v14318_v19  ;;  %584 = vmatpush.msra.mxu3 %v14291_v10  ;;  %v14414_v53 = vsub.f32 %v319_v34, %v14378_v41  ;;  %v448_v56 = vand.u32 4294901760, %v447_v44  ;;  %v459_v57 = vsub.f32 %v14347_v29, %v22667_v45  ;;  %v14423_v58 = vand.u32 4294901760, %v315_v48  ;;  %v367_v34 = vld [vmem:[%s22654_s2 + $0x1d0] sm:$0xff]  ;;  %v357_v45 = vld [vmem:[%s22654_s2 + $0x180] sm:$0xff] }
  0x19   : > { %390 = vmatpush.msra.mxu0 %v14293_v11  ;;  %431 = vmatpush.msra.mxu1 %v430_v38  ;;  %v22665_v59 = vand.u32 4294901760, %v14389_v46  ;;  %v454_v61 = vand.u32 4294901760, %v453_v47  ;;  %v465_v63 = vsub.f32 %v14375_v40, %v22666_v51  ;;  %v14438_v0 = vand.u32 4294901760, %v313_v54  ;;  %v365_v47 = vld [vmem:[%s22654_s2 + $0x1c0] sm:$0xff] }
  0x1a   : > { %535 = vmatpush.msra.mxu2 %v14321_v20  ;;  %586 = vmatpush.msra.mxu3 %v14293_v11  ;;  %v22663_v1 = vand.u32 4294901760, %v14409_v52  ;;  %v14442_v2 = vsub.f32 %v317_v42, %v14405_v50  ;;  %v22662_v8 = vand.u32 4294901760, %v14414_v53  ;;  %v14453_v12 = vand.u32 4294901760, %v371_v60 }
  0x1b   : > { %392 = vmatpush.msra.mxu0 %v14312_v17  ;;  %437 = vmatpush.msra.mxu1 %v436_v43  ;;  %v460_v13 = vand.u32 4294901760, %v459_v57  ;;  %v471_v18 = vsub.f32 %v14389_v46, %v22665_v59  ;;  %v14459_v26 = vand.u32 4294901760, %v311_v62  ;;  %v14462_v30 = vsub.f32 %v315_v48, %v14423_v58 }
  0x1c   : > { %538 = vmatpush.msra.mxu2 %v14324_v21  ;;  %588 = vmatpush.msra.mxu3 %v14312_v17  ;;  %v14466_v31 = vand.u32 4294901760, %v309_v6  ;;  %v14468_v32 = vand.u32 4294901760, %v369_v7  ;;  %v466_v37 = vand.u32 4294901760, %v465_v63  ;;  %v477_v38 = vsub.f32 %v14409_v52, %v22663_v1 }
  0x1d   : > { %394 = vmatpush.msra.mxu0 %v14337_v25  ;;  %443 = vmatpush.msra.mxu1 %v442_v49  ;;  %v22661_v39 = vand.u32 4294901760, %v14442_v2  ;;  %v14479_v42 = vsub.f32 %v313_v54, %v14438_v0  ;;  %v483_v43 = vsub.f32 %v14414_v53, %v22662_v8  ;;  %v14487_v44 = vsub.f32 %v371_v60, %v14453_v12  ;;  %v363_v60 = vld [vmem:[%s22654_s2 + $0x1b0] sm:$0xff] }
  0x1e   : > { %541 = vmatpush.msra.mxu2 %v14347_v29  ;;  %590 = vmatpush.msra.mxu3 %v14337_v25  ;;  %v472_v48 = vand.u32 4294901760, %v471_v18  ;;  %v22664_v49 = vand.u32 4294901760, %v14462_v30  ;;  %v14495_v54 = vsub.f32 %v311_v62, %v14459_v26  ;;  %v14497_v55 = vand.u32 4294901760, %v367_v34  ;;  %v361_v18 = vld [vmem:[%s22654_s2 + $0x1a0] sm:$0xff]  ;;  %v359_v8 = vld [vmem:[%s22654_s2 + $0x190] sm:$0xff] }
  0x1f   : > { %396 = vmatpush.msra.mxu0 %v14344_v28  ;;  %449 = vmatpush.msra.mxu1 %v448_v56  ;;  %v14502_v56 = vsub.f32 %v309_v6, %v14466_v31  ;;  %v14505_v57 = vsub.f32 %v369_v7, %v14468_v32  ;;  %v489_v62 = vsub.f32 %v14442_v2, %v22661_v39  ;;  %v22668_v63 = vand.u32 4294901760, %v14479_v42 }
  0x20   : > { %544 = vmatpush.msra.mxu2 %v14375_v40  ;;  %592 = vmatpush.msra.mxu3 %v14344_v28  ;;  %22898 = vst [vmem:[#allocation3_spill] sm:$0xff] %v14497_v55  ;;  %v484_v6 = vand.u32 4294901760, %v483_v43  ;;  %v22671_v7 = vand.u32 4294901760, %v14487_v44  ;;  %v14529_v39 = vsub.f32 %v367_v34, %v14497_v55  ;;  %v14531_v43 = vand.u32 4294901760, %v363_v60 }
  0x21   : > { %398 = vmatpush.msra.mxu0 %v14365_v35  ;;  %455 = vmatpush.msra.mxu1 %v454_v61  ;;  %v478_v61 = vand.u32 4294901760, %v477_v38  ;;  %v22673_v38 = vand.u32 4294901760, %v14495_v54  ;;  %v22675_v1 = vand.u32 4294901760, %v14505_v57  ;;  %v501_v34 = vsub.f32 %v14479_v42, %v22668_v63 }
  0x22   : > { %547 = vmatpush.msra.mxu2 %v14389_v46  ;;  %594 = vmatpush.msra.mxu3 %v14365_v35  ;;  %v14547_v51 = vand.u32 4294901760, %v361_v18  ;;  %v22678_v36 = vand.u32 4294901760, %v14529_v39  ;;  %v14565_v33 = vsub.f32 %v363_v60, %v14531_v43  ;;  %v14572_v27 = vand.u32 4294901760, %v357_v45 }
  0x23   : > { %400 = vmatpush.msra.mxu0 %v14378_v41  ;;  %461 = vmatpush.msra.mxu1 %v460_v13  ;;  %v14515_v13 = vand.u32 4294901760, %v365_v47  ;;  %v507_v63 = vsub.f32 %v14495_v54, %v22673_v38  ;;  %vm1870_vm6 = vcmask 1043456   ;;  %vm2623_vm7 = vcmask 261120  }
  0x24   : > { %550 = vmatpush.msra.mxu2 %v14409_v52  ;;  %596 = vmatpush.msra.mxu3 %v14378_v41  ;;  %v14583_v24 = vsub.f32 %v361_v18, %v14547_v51  ;;  %v776_v18 = vsub.f32 %v14529_v39, %v22678_v36  ;;  %v22680_v14 = vand.u32 4294901760, %v14565_v33  ;;  %vm3422_vm8 = vcmask 252928  }
  0x25   : > { %402 = vmatpush.msra.mxu0 %v14405_v50  ;;  %467 = vmatpush.msra.mxu1 %v466_v37  ;;  %v495_v37 = vsub.f32 %v14462_v30, %v22664_v49  ;;  %v490_v49 = vand.u32 4294901760, %v489_v62  ;;  %v14545_v59 = vsub.f32 %v365_v47, %v14515_v13  ;;  %v14557_v62 = vand.u32 4294901760, %v359_v8 }
  0x26   : > { %553 = vmatpush.msra.mxu2 %v14414_v53  ;;  %598 = vmatpush.msra.mxu3 %v14405_v50  ;;  %vm4221_vm9 = vcmask 7168   ;;  %vm5810_vm10 = vcmask 1039360   ;;  %vm6609_vm11 = vcmask 793600   ;;  %vm7408_vm12 = vcmask 785408  }
  0x27   : > { %404 = vmatpush.msra.mxu0 %v14423_v58  ;;  %473 = vmatpush.msra.mxu1 %v472_v48  ;;  %v22677_v48 = vand.u32 4294901760, %v14502_v56  ;;  %v496_v47 = vand.u32 4294901760, %v495_v37  ;;  %v502_v37 = vand.u32 4294901760, %v501_v34  ;;  %v22679_v38 = vand.u32 4294901760, %v14545_v59 }
  0x28   : > { %556 = vmatpush.msra.mxu2 %v14442_v2  ;;  %600 = vmatpush.msra.mxu3 %v14423_v58  ;;  %v14589_v23 = vsub.f32 %v359_v8, %v14557_v62  ;;  %v508_v34 = vand.u32 4294901760, %v507_v63  ;;  %v351_v63 = vld [vmem:[%s22654_s2 + $0x150] sm:$0xff]  ;;  %vm8207_vm13 = vcmask 777216   ;;  %vm9106_vm14 = vcmask 523264  }
  0x29   : > { %406 = vmatpush.msra.mxu0 %v14438_v0  ;;  %479 = vmatpush.msra.mxu1 %v478_v61  ;;  %v764_v61 = vsub.f32 %v14487_v44, %v22671_v7  ;;  %v770_v7 = vsub.f32 %v14505_v57, %v22675_v1  ;;  %v513_v60 = vsub.f32 %v14502_v56, %v22677_v48 }
  0x2a   : > { %559 = vmatpush.msra.mxu2 %v14462_v30  ;;  %602 = vmatpush.msra.mxu3 %v14438_v0  ;;  %v14605_v48 = vsub.f32 %v357_v45, %v14572_v27  ;;  %v782_v36 = vsub.f32 %v14545_v59, %v22679_v38  ;;  %v788_v38 = vsub.f32 %v14565_v33, %v22680_v14  ;;  %v22902_v14 = vand.u32 4294901760, %v14583_v24 }
  0x2b   : > { %408 = vmatpush.msra.mxu0 %v14459_v26  ;;  %485 = vmatpush.msra.mxu1 %v484_v6  ;;  %v355_v6 = vld [vmem:[%s22654_s2 + $0x170] sm:$0xff]  ;;  %v765_v1 = vand.u32 4294901760, %v764_v61  ;;  %v22899_v61 = vand.u32 4294901760, %v14306_v15  ;;  %v771_v8 = vand.u32 4294901760, %v770_v7  ;;  %v22900_v7 = vand.u32 4294901760, %v14310_v16 }
  0x2c   : > { %562 = vmatpush.msra.mxu2 %v14479_v42  ;;  %604 = vmatpush.msra.mxu3 %v14459_v26  ;;  %v14630_v16 = vand.u32 4294901760, %v351_v63 }
  0x2d   : > { %410 = vmatpush.msra.mxu0 %v14466_v31  ;;  %491 = vmatpush.msra.mxu1 %v490_v49  ;;  %v353_v49 = vld [vmem:[%s22654_s2 + $0x160] sm:$0xff] }
  0x2e   : > { %565 = vmatpush.msra.mxu2 %v14495_v54  ;;  %606 = vmatpush.msra.mxu3 %v14466_v31 }
  0x2f   : > { %617 = vmatpush.msrb.mxu0 %v422_v22  ;;  %497 = vmatpush.msra.mxu1 %v496_v47  ;;  %v14599_v22 = vand.u32 4294901760, %v355_v6  ;;  %v514_v47 = vand.u32 4294901760, %v513_v60  ;;  %v777_v60 = vand.u32 4294901760, %v776_v18  ;;  %v783_v18 = vand.u32 4294901760, %v782_v36 }
  0x30   : > { %568 = vmatpush.msra.mxu2 %v14502_v56  ;;  %766 = vmatpush.msrb.mxu3 %v765_v1  ;;  %v22901_v1 = vand.u32 4294901760, %v14318_v19  ;;  %v789_v36 = vand.u32 4294901760, %v788_v38  ;;  %v345_v38 = vld [vmem:[%s22654_s2 + $0x120] sm:$0xff] }
  0x31   : > { %621 = vmatpush.msrb.mxu0 %v22899_v61  ;;  %503 = vmatpush.msra.mxu1 %v502_v37  ;;  %v14615_v61 = vand.u32 4294901760, %v353_v49  ;;  %v349_v37 = vld [vmem:[%s22654_s2 + $0x140] sm:$0xff]  ;;  %v14628_v15 = vsub.f32 %v355_v6, %v14599_v22  ;;  %v794_v6 = vsub.f32 %v14583_v24, %v22902_v14 }
  0x32   : > { %721 = vmatpush.msrb.mxu2 %v14453_v12  ;;  %772 = vmatpush.msrb.mxu3 %v771_v8  ;;  %v14645_v19 = vand.u32 4294901760, %v349_v37  ;;  %v22903_v8 = vand.u32 4294901760, %v14321_v20  ;;  %v22905_v20 = vand.u32 4294901760, %v14324_v21 }
  0x33   : > { %625 = vmatpush.msrb.mxu0 %v22900_v7  ;;  %509 = vmatpush.msra.mxu1 %v508_v34  ;;  %v347_v34 = vld [vmem:[%s22654_s2 + $0x130] sm:$0xff]  ;;  %v14643_v45 = vsub.f32 %v353_v49, %v14615_v61  ;;  %v375_v7 = vld.sshfl [vmem:[#allocation1] sm:$0xff pattern:$0x75316420]  ;;  %v22683_v14 = vand.u32 4294901760, %v14628_v15  ;;  %v14656_v49 = vsub.f32 %v351_v63, %v14630_v16  ;;  %v795_v63 = vand.u32 4294901760, %v794_v6 }
  0x34   : > { %723 = vmatpush.msrb.mxu2 %v14468_v32  ;;  %778 = vmatpush.msrb.mxu3 %v777_v60  ;;  %v14674_v21 = vand.u32 4294901760, %v375_v7  ;;  %v14687_v6 = vand.u32 4294901760, %v345_v38 }
  0x35   : > { %629 = vmatpush.msrb.mxu0 %v22901_v1  ;;  %515 = vmatpush.msra.mxu1 %v514_v47  ;;  %v22904_v1 = vand.u32 4294901760, %v14589_v23  ;;  %v22684_v60 = vand.u32 4294901760, %v14643_v45 }
  0x36   : > { %725 = vmatpush.msrb.mxu2 %v14497_v55  ;;  %v14658_v55 = vand.u32 4294901760, %v347_v34  ;;  %784 = vmatpush.msrb.mxu3 %v783_v18  ;;  %22907 = vst [vmem:[#allocation4_spill] sm:$0xff] %v14674_v21  ;;  %v823_v18 = vand.u32 4294901760, %v14656_v49 }
  0x37   : > { %633 = vmatpush.msrb.mxu0 %v22903_v8  ;;  %684 = vmatpush.msrb.mxu1 %v14274_v3  ;;  %v800_v47 = vsub.f32 %v14589_v23, %v22904_v1  ;;  %v22906_v3 = vand.u32 4294901760, %v14605_v48  ;;  %v14672_v1 = vsub.f32 %v349_v37, %v14645_v19  ;;  %v812_v37 = vsub.f32 %v14628_v15, %v22683_v14 }
  0x38   : > { %727 = vmatpush.msrb.mxu2 %v14515_v13  ;;  %790 = vmatpush.msrb.mxu3 %v789_v36  ;;  %v818_v36 = vsub.f32 %v14643_v45, %v22684_v60  ;;  %v14701_v14 = vsub.f32 %v375_v7, %v14674_v21  ;;  %v824_v7 = vsub.f32 %v14656_v49, %v823_v18  ;;  %v22911_v60 = vand.u32 4294901760, %v14409_v52 }
  0x39   : > { %637 = vmatpush.msrb.mxu0 %v22905_v20  ;;  %686 = vmatpush.msrb.mxu1 %v14276_v4  ;;  %v806_v8 = vsub.f32 %v14605_v48, %v22906_v3  ;;  %v22908_v4 = vand.u32 4294901760, %v14347_v29  ;;  %v801_v20 = vand.u32 4294901760, %v800_v47  ;;  %v343_v3 = vld [vmem:[%s22654_s2 + $0x110] sm:$0xff]  ;;  %v14690_v29 = vsub.f32 %v347_v34, %v14658_v55 }
  0x3a   : > { %729 = vmatpush.msrb.mxu2 %v14531_v43  ;;  %796 = vmatpush.msrb.mxu3 %v795_v63  ;;  %v14703_v34 = vand.u32 4294901760, %v343_v3  ;;  %v22912_v52 = vand.u32 4294901760, %v14414_v53 }
  0x3b   : > { %641 = vmatpush.msrb.mxu0 %v22908_v4  ;;  %688 = vmatpush.msrb.mxu1 %v14278_v5  ;;  %v22909_v5 = vand.u32 4294901760, %v14375_v40  ;;  %v807_v47 = vand.u32 4294901760, %v806_v8  ;;  %v829_v4 = vand.u32 4294901760, %v14672_v1  ;;  %v341_v40 = vld [vmem:[%s22654_s2 + $0x100] sm:$0xff]  ;;  %v813_v8 = vand.u32 4294901760, %v812_v37 }
  0x3c   : > { %731 = vmatpush.msrb.mxu2 %v14547_v51  ;;  %802 = vmatpush.msrb.mxu3 %v801_v20  ;;  %v835_v63 = vand.u32 4294901760, %v14690_v29  ;;  %v14729_v37 = vand.u32 4294901760, %v14701_v14 }
  0x3d   : > { %645 = vmatpush.msrb.mxu0 %v22909_v5  ;;  %690 = vmatpush.msrb.mxu1 %v14289_v9  ;;  %v22910_v9 = vand.u32 4294901760, %v14389_v46  ;;  %v14717_v5 = vsub.f32 %v345_v38, %v14687_v6  ;;  %v14722_v46 = vand.u32 4294901760, %v341_v40  ;;  %v830_v20 = vsub.f32 %v14672_v1, %v829_v4 }
  0x3e   : > { %733 = vmatpush.msrb.mxu2 %v14557_v62  ;;  %808 = vmatpush.msrb.mxu3 %v807_v47  ;;  %v14732_v38 = vsub.f32 %v343_v3, %v14703_v34  ;;  %v836_v47 = vsub.f32 %v14690_v29, %v835_v63  ;;  %v414_v3 = vsub.f32 %v14701_v14, %v14729_v37 }
  0x3f   : > { %649 = vmatpush.msrb.mxu0 %v22910_v9  ;;  %692 = vmatpush.msrb.mxu1 %v14291_v10  ;;  %v819_v10 = vand.u32 4294901760, %v818_v36  ;;  %v841_v36 = vand.u32 4294901760, %v14717_v5  ;;  %v22913_v9 = vand.u32 4294901760, %v14442_v2  ;;  %v14746_v53 = vsub.f32 %v341_v40, %v14722_v46 }
  0x40   : > { %735 = vmatpush.msrb.mxu2 %v14572_v27  ;;  %814 = vmatpush.msrb.mxu3 %v813_v8  ;;  %v847_v8 = vand.u32 4294901760, %v14732_v38  ;;  %v22916_v40 = vand.u32 4294901760, %v14479_v42  ;;  %v22919_v42 = vand.u32 4294901760, %v14502_v56 }
  0x41   : > { %653 = vmatpush.msrb.mxu0 %v22911_v60  ;;  %694 = vmatpush.msrb.mxu1 %v14293_v11  ;;  %v376_v11 = vld.sshfl [vmem:[#allocation1 + $0x8] sm:$0xff pattern:$0x75316420]  ;;  %v825_v60 = vand.u32 4294901760, %v824_v7  ;;  %v842_v2 = vsub.f32 %v14717_v5, %v841_v36 }
  0x42   : > { %737 = vmatpush.msrb.mxu2 %v14599_v22  ;;  %820 = vmatpush.msrb.mxu3 %v819_v10  ;;  %v14752_v7 = vand.u32 4294901760, %v376_v11  ;;  %v853_v10 = vand.u32 4294901760, %v14746_v53 }
  0x43   : > { %657 = vmatpush.msrb.mxu0 %v22912_v52  ;;  %696 = vmatpush.msrb.mxu1 %v14312_v17  ;;  %v831_v17 = vand.u32 4294901760, %v830_v20  ;;  %v22915_v52 = vand.u32 4294901760, %v14462_v30  ;;  %v14766_v30 = vand.u32 4294901760, %v414_v3 }
  0x44   : > { %739 = vmatpush.msrb.mxu2 %v14615_v61  ;;  %22914 = vst [vmem:[#allocation5_spill] sm:$0xff] %v14752_v7  ;;  %826 = vmatpush.msrb.mxu3 %v825_v60  ;;  %v14772_v20 = vsub.f32 %v376_v11, %v14752_v7  ;;  %v22918_v60 = vand.u32 4294901760, %v14495_v54 }
  0x45   : > { %661 = vmatpush.msrb.mxu0 %v22913_v9  ;;  %698 = vmatpush.msrb.mxu1 %v14337_v25  ;;  %v837_v25 = vand.u32 4294901760, %v836_v47  ;;  %v854_v47 = vsub.f32 %v14746_v53, %v853_v10 }
  0x46   : > { %741 = vmatpush.msrb.mxu2 %v14630_v16  ;;  %832 = vmatpush.msrb.mxu3 %v831_v17  ;;  %22917 = vst [vmem:[#allocation6_spill] sm:$0xff] %v14772_v20 }
  0x47   : > { %665 = vmatpush.msrb.mxu0 %v22915_v52  ;;  %700 = vmatpush.msrb.mxu1 %v14344_v28  ;;  %v848_v28 = vsub.f32 %v14732_v38, %v847_v8 }
  0x48   : > { %743 = vmatpush.msrb.mxu2 %v14645_v19  ;;  %838 = vmatpush.msrb.mxu3 %v837_v25 }
  0x49   : > { %669 = vmatpush.msrb.mxu0 %v22916_v40  ;;  %702 = vmatpush.msrb.mxu1 %v14365_v35  ;;  %v843_v35 = vand.u32 4294901760, %v842_v2  ;;  %v849_v54 = vand.u32 4294901760, %v848_v28  ;;  %v320_v28 = vld [vmem:[%s22654_s2 + $0x58] sm:$0xff] }
  0x4a   : > { %745 = vmatpush.msrb.mxu2 %v14658_v55  ;;  %416 = vmatmul.f32.vlgmr.msra.gmra.mxu0 %v14766_v30 }
  0x4b   : > { %673 = vmatpush.msrb.mxu0 %v22918_v60  ;;  %704 = vmatpush.msrb.mxu1 %v14378_v41  ;;  %v14787_v41 = vand.u32 4294901760, %v14772_v20 }
  0x4c   : > { %747 = vmatpush.msrb.mxu2 %v14687_v6  ;;  %844 = vmatpush.msrb.mxu3 %v843_v35 }
  0x4d   : > { %677 = vmatpush.msrb.mxu0 %v22919_v42  ;;  %706 = vmatpush.msrb.mxu1 %v14405_v50  ;;  %22920 = vst [vmem:[#allocation7_spill] sm:$0xff] %v14787_v41  ;;  %v855_v50 = vand.u32 4294901760, %v854_v47  ;;  %v755_v56 = vsub.f32 %v14772_v20, %v14787_v41 }
  0x4e   : > { %749 = vmatpush.msrb.mxu2 %v14703_v34  ;;  %850 = vmatpush.msrb.mxu3 %v849_v54 }
  0x4f   : > { %864 = vmatpush.msra.mxu0 %v14487_v44  ;;  %708 = vmatpush.msrb.mxu1 %v14423_v58  ;;  %v22921_v58 = vand.u32 4294901760, %v14487_v44  ;;  %v14806_v11 = vand.u32 4294901760, %v755_v56  ;;  %v22925_v44 = vand.u32 4294901760, %v14545_v59 }
  0x50   : > { %571 = vmatmul.f32.vlgmr.msra.gmra.mxu2 %v14701_v14  ;;  %610 = vmatmul.f32.vlgmr.msra.gmra.mxu3 %v14729_v37 }
  0x51   : > { %867 = vmatpush.msra.mxu0 %v14505_v57  ;;  %710 = vmatpush.msrb.mxu1 %v14438_v0  ;;  %v22922_v0 = vand.u32 4294901760, %v14505_v57  ;;  %22923 = vst [vmem:[#allocation8_spill] sm:$0xff] %v14806_v11  ;;  %v22926_v57 = vld [vmem:[#allocation3_spill] sm:$0xff] }
  0x52   : > { %751 = vmatpush.msrb.mxu2 %v14722_v46  ;;  %856 = vmatpush.msrb.mxu3 %v855_v50 }
  0x53   : > { %870 = vmatpush.msra.mxu0 %v14529_v39  ;;  %712 = vmatpush.msrb.mxu1 %v14459_v26  ;;  %v22924_v26 = vand.u32 4294901760, %v14529_v39 }
  0x54   : > { %958 = vmatpush.msra.mxu2 %v22921_v58  ;;  %517 = vmatmul.f32.vlgmr.msra.gmra.mxu1 %v14674_v21  ;;  %v15003_v58 = vand.u32 4294901760, %v320_v28 }
  0x55   : > { %873 = vmatpush.msra.mxu0 %v14545_v59  ;;  %1025 = vmatpush.msra.mxu3 %v14453_v12  ;;  %v22928_v59 = vand.u32 4294901760, %v14583_v24 }
  0x56   : > { %962 = vmatpush.msra.mxu2 %v22922_v0  ;;  %714 = vmatpush.msrb.mxu1 %v14466_v31  ;;  %v22930_v31 = vand.u32 4294901760, %v14605_v48 }
  0x57   : > { %876 = vmatpush.msra.mxu0 %v14565_v33  ;;  %1027 = vmatpush.msra.mxu3 %v14468_v32 }
  0x58   : > { %917 = vmatpush.msra.mxu1 %v14453_v12  ;;  %966 = vmatpush.msra.mxu2 %v22924_v26  ;;  %v22927_v12 = vand.u32 4294901760, %v14565_v33  ;;  %v22929_v33 = vand.u32 4294901760, %v14589_v23 }
  0x59   : > { %757 = vmatmul.f32.vlgmr.msrb.gmra.mxu2 %v14806_v11  ;;  %879 = vmatpush.msra.mxu0 %v14583_v24  ;;  %v22931_v24 = vand.u32 4294901760, %v14628_v15 }
  0x5a   : > { %919 = vmatpush.msra.mxu1 %v14468_v32  ;;  %970 = vmatpush.msra.mxu2 %v22925_v44  ;;  %v22932_v32 = vand.u32 4294901760, %v14643_v45  ;;  %v316_v44 = vld [vmem:[%s22654_s2 + $0x38] sm:$0xff] }
  0x5b   : > { %1029 = vmatpush.msra.mxu3 %v22926_v57  ;;  %679 = vmatmul.f32.vlgmr.msrb.gmra.mxu0 %v14674_v21 }
  0x5c   : > { %858 = vmatmul.f32.vlgmr.msrb.gmra.mxu3 %v14752_v7  ;;  %882 = vmatpush.msra.mxu0 %v14589_v23  ;;  %v340_v23 = vld [vmem:[%s22654_s2 + $0xf8] sm:$0xff] }
  0x5d   : > { %921 = vmatpush.msra.mxu1 %v22926_v57  ;;  %974 = vmatpush.msra.mxu2 %v22927_v12  ;;  %v14860_v39 = vand.u32 4294901760, %v340_v23 }
  0x5e   : > { %1031 = vmatpush.msra.mxu3 %v14515_v13  ;;  %716 = vmatmul.f32.vlgmr.msrb.gmra.mxu1 %v14674_v21 }
  0x5f   : > { %885 = vmatpush.msra.mxu0 %v14605_v48  ;;  %923 = vmatpush.msra.mxu1 %v14515_v13  ;;  %v336_v13 = vld [vmem:[%s22654_s2 + $0xd8] sm:$0xff] }
  0x60   : > { %978 = vmatpush.msra.mxu2 %v22928_v59  ;;  %1033 = vmatpush.msra.mxu3 %v14531_v43  ;;  %v14880_v48 = vand.u32 4294901760, %v336_v13 }
  0x61   : > { %888 = vmatpush.msra.mxu0 %v14628_v15  ;;  %925 = vmatpush.msra.mxu1 %v14531_v43  ;;  %v334_v43 = vld [vmem:[%s22654_s2 + $0xc8] sm:$0xff] }
  0x62   : > { %982 = vmatpush.msra.mxu2 %v22929_v33  ;;  %1035 = vmatpush.msra.mxu3 %v14547_v51  ;;  %v14893_v15 = vand.u32 4294901760, %v334_v43 }
  0x63   : > { %891 = vmatpush.msra.mxu0 %v14643_v45  ;;  %927 = vmatpush.msra.mxu1 %v14547_v51  ;;  %v338_v51 = vld [vmem:[%s22654_s2 + $0xe8] sm:$0xff] }
  0x64   : > { %986 = vmatpush.msra.mxu2 %v22930_v31  ;;  %1037 = vmatpush.msra.mxu3 %v14557_v62  ;;  %v330_v45 = vld [vmem:[%s22654_s2 + $0xa8] sm:$0xff] }
  0x65   : > { %894 = vmatpush.msra.mxu0 %v14656_v49  ;;  %929 = vmatpush.msra.mxu1 %v14557_v62  ;;  %v14883_v62 = vsub.f32 %v340_v23, %v14860_v39  ;;  %v314_v23 = vld [vmem:[%s22654_s2 + $0x28] sm:$0xff] }
  0x66   : > { %990 = vmatpush.msra.mxu2 %v22931_v24  ;;  %1039 = vmatpush.msra.mxu3 %v14572_v27 }
  0x67   : > { %897 = vmatpush.msra.mxu0 %v14672_v1  ;;  %931 = vmatpush.msra.mxu1 %v14572_v27  ;;  %v14870_v27 = vand.u32 4294901760, %v338_v51  ;;  %v22698_v49 = vand.u32 4294901760, %v14883_v62  ;;  %v14910_v1 = vsub.f32 %v336_v13, %v14880_v48  ;;  %v15034_v13 = vsub.f32 %v320_v28, %v15003_v58 }
  0x68   : > { %994 = vmatpush.msra.mxu2 %v22932_v32  ;;  %1041 = vmatpush.msra.mxu3 %v14599_v22  ;;  %v15031_v32 = vand.u32 4294901760, %v316_v44 }
  0x69   : > { %900 = vmatpush.msra.mxu0 %v14690_v29  ;;  %933 = vmatpush.msra.mxu1 %v14599_v22  ;;  %v332_v22 = vld [vmem:[%s22654_s2 + $0xb8] sm:$0xff]  ;;  %v22687_v28 = vand.u32 4294901760, %v15034_v13 }
  0x6a   : > { %998 = vmatpush.msra.mxu2 %v823_v18  ;;  %1043 = vmatpush.msra.mxu3 %v14615_v61  ;;  %v14920_v18 = vand.u32 4294901760, %v330_v45 }
  0x6b   : > { %903 = vmatpush.msra.mxu0 %v14717_v5  ;;  %935 = vmatpush.msra.mxu1 %v14615_v61  ;;  %v14896_v61 = vsub.f32 %v338_v51, %v14870_v27 }
  0x6c   : > { %1002 = vmatpush.msra.mxu2 %v829_v4  ;;  %1045 = vmatpush.msra.mxu3 %v14630_v16  ;;  %v14924_v4 = vsub.f32 %v334_v43, %v14893_v15  ;;  %v14957_v3 = vsub.f32 %v330_v45, %v14920_v18 }
  0x6d   : > { %906 = vmatpush.msra.mxu0 %v14732_v38  ;;  %937 = vmatpush.msra.mxu1 %v14630_v16  ;;  %v14906_v16 = vand.u32 4294901760, %v332_v22  ;;  %v22696_v29 = vand.u32 4294901760, %v14896_v61  ;;  %v22695_v38 = vand.u32 4294901760, %v14910_v1 }
  0x6e   : > { %1006 = vmatpush.msra.mxu2 %v835_v63  ;;  %1047 = vmatpush.msra.mxu3 %v14645_v19  ;;  %v1105_v63 = vsub.f32 %v14883_v62, %v22698_v49  ;;  %v22693_v17 = vand.u32 4294901760, %v14924_v4  ;;  %v22691_v42 = vand.u32 4294901760, %v14957_v3 }
  0x6f   : > { %909 = vmatpush.msra.mxu0 %v14746_v53  ;;  %939 = vmatpush.msra.mxu1 %v14645_v19  ;;  %v328_v19 = vld [vmem:[%s22654_s2 + $0x98] sm:$0xff]  ;;  %v1111_v9 = vsub.f32 %v14896_v61, %v22696_v29  ;;  %v1117_v2 = vsub.f32 %v14910_v1, %v22695_v38 }
  0x70   : > { %1010 = vmatpush.msra.mxu2 %v841_v36  ;;  %1049 = vmatpush.msra.mxu3 %v14658_v55  ;;  %v14937_v5 = vand.u32 4294901760, %v328_v19  ;;  %v14941_v36 = vsub.f32 %v332_v22, %v14906_v16  ;;  %v1106_v25 = vand.u32 4294901760, %v1105_v63  ;;  %v1123_v35 = vsub.f32 %v14924_v4, %v22693_v17  ;;  %v312_v22 = vld [vmem:[%s22654_s2 + $0x18] sm:$0xff] }
  0x71   : > { %912 = vmatmul.f32.vlgmr.msra.gmra.mxu0 %v14772_v20  ;;  %941 = vmatpush.msra.mxu1 %v14658_v55  ;;  %v326_v55 = vld [vmem:[%s22654_s2 + $0x88] sm:$0xff]  ;;  %v1112_v60 = vand.u32 4294901760, %v1111_v9  ;;  %v1118_v50 = vand.u32 4294901760, %v1117_v2  ;;  %v1135_v12 = vsub.f32 %v14957_v3, %v22691_v42  ;;  %v15063_v2 = vand.u32 4294901760, %v312_v22 }
  0x72   : > { %1062 = vmatpush.msrb.mxu0 %v14860_v39  ;;  %1014 = vmatpush.msra.mxu2 %v847_v8  ;;  %v14953_v53 = vand.u32 4294901760, %v326_v55  ;;  %v322_v8 = vld [vmem:[%s22654_s2 + $0x68] sm:$0xff]  ;;  %v22692_v40 = vand.u32 4294901760, %v14941_v36  ;;  %v1124_v57 = vand.u32 4294901760, %v1123_v35 }
  0x73   : > { %1051 = vmatpush.msra.mxu3 %v14687_v6  ;;  %943 = vmatpush.msra.mxu1 %v14687_v6  ;;  %v324_v6 = vld [vmem:[%s22654_s2 + $0x78] sm:$0xff]  ;;  %v1136_v45 = vand.u32 4294901760, %v1135_v12 }
  0x74   : > { %1064 = vmatpush.msrb.mxu0 %v14870_v27  ;;  %1018 = vmatpush.msra.mxu2 %v853_v10  ;;  %v14964_v52 = vand.u32 4294901760, %v324_v6  ;;  %v14973_v10 = vsub.f32 %v328_v19, %v14937_v5  ;;  %v14989_v47 = vsub.f32 %v326_v55, %v14953_v53  ;;  %v1129_v56 = vsub.f32 %v14941_v36, %v22692_v40 }
  0x75   : > { %1053 = vmatpush.msra.mxu3 %v14703_v34  ;;  %1020 = vmatmul.f32.vlgmr.msra.gmra.mxu2 %v14752_v7  ;;  %v15046_v55 = vand.u32 4294901760, %v314_v23 }
  0x76   : > { %1066 = vmatpush.msrb.mxu0 %v14880_v48  ;;  %1205 = vmatpush.msrb.mxu2 %v14883_v62  ;;  %v14994_v54 = vsub.f32 %v324_v6, %v14964_v52  ;;  %v22689_v0 = vand.u32 4294901760, %v14973_v10  ;;  %v22688_v33 = vand.u32 4294901760, %v14989_v47  ;;  %v1130_v24 = vand.u32 4294901760, %v1129_v56  ;;  %v372_v6 = vld [vmem:[%s22654_s2 + $0x1f8] sm:$0xff] }
  0x77   : > { %945 = vmatpush.msra.mxu1 %v14703_v34  ;;  %1055 = vmatpush.msra.mxu3 %v14722_v46  ;;  %v14977_v34 = vand.u32 4294901760, %v322_v8  ;;  %v15084_v12 = vsub.f32 %v314_v23, %v15046_v55  ;;  %v15097_v23 = vsub.f32 %v312_v22, %v15063_v2 }
  0x78   : > { %1057 = vmatmul.f32.vlgmr.msra.gmra.mxu3 %v14752_v7  ;;  %1068 = vmatpush.msrb.mxu0 %v14893_v15  ;;  %v22686_v31 = vand.u32 4294901760, %v14994_v54  ;;  %v1141_v51 = vsub.f32 %v14973_v10, %v22689_v0  ;;  %v1147_v19 = vsub.f32 %v14989_v47, %v22688_v33 }
  0x79   : > { %1208 = vmatpush.msrb.mxu2 %v14896_v61  ;;  %1258 = vmatpush.msrb.mxu3 %v14860_v39  ;;  %v15009_v26 = vsub.f32 %v322_v8, %v14977_v34  ;;  %v310_v8 = vld [vmem:[%s22654_s2 + $0x8] sm:$0xff] }
  0x7a   : > { %947 = vmatpush.msra.mxu1 %v14722_v46  ;;  %1070 = vmatpush.msrb.mxu0 %v14906_v16  ;;  %v318_v46 = vld [vmem:[%s22654_s2 + $0x48] sm:$0xff]  ;;  %v1153_v9 = vsub.f32 %v14994_v54, %v22686_v31  ;;  %v1148_v56 = vand.u32 4294901760, %v1147_v19 }
  0x7b   : > { %951 = vmatmul.f32.vlgmr.msra.gmra.mxu1 %v14787_v41  ;;  %1211 = vmatpush.msrb.mxu2 %v14910_v1  ;;  %v15018_v59 = vand.u32 4294901760, %v318_v46  ;;  %v22685_v43 = vand.u32 4294901760, %v15009_v26 }
  0x7c   : > { %1107 = vmatpush.msrb.mxu1 %v1106_v25  ;;  %1260 = vmatpush.msrb.mxu3 %v14870_v27  ;;  %v1142_v25 = vand.u32 4294901760, %v1141_v51  ;;  %v368_v51 = vld [vmem:[%s22654_s2 + $0x1d8] sm:$0xff] }
  0x7d   : > { %1072 = vmatpush.msrb.mxu0 %v14920_v18  ;;  %1214 = vmatpush.msrb.mxu2 %v14924_v4  ;;  %v15049_v63 = vsub.f32 %v318_v46, %v15018_v59  ;;  %v1159_v35 = vsub.f32 %v15009_v26, %v22685_v43  ;;  %v15074_v46 = vand.u32 4294901760, %v372_v6  ;;  %v15117_v0 = vand.u32 4294901760, %v368_v51 }
  0x7e   : > { %1113 = vmatpush.msrb.mxu1 %v1112_v60  ;;  %1262 = vmatpush.msrb.mxu3 %v14880_v48  ;;  %v15067_v60 = vsub.f32 %v316_v44, %v15031_v32  ;;  %v15080_v44 = vand.u32 4294901760, %v310_v8 }
  0x7f   : > { %1074 = vmatpush.msrb.mxu0 %v14937_v5  ;;  %1217 = vmatpush.msrb.mxu2 %v14941_v36  ;;  %22933 = vst [vmem:[#allocation3_spill] sm:$0xff] %v15074_v46  ;;  %v15107_v31 = vsub.f32 %v372_v6, %v15074_v46  ;;  %v15148_v38 = vsub.f32 %v368_v51, %v15117_v0 }
  0x80   : > { %1119 = vmatpush.msrb.mxu1 %v1118_v50  ;;  %1264 = vmatpush.msrb.mxu3 %v14893_v15  ;;  %v370_v50 = vld [vmem:[%s22654_s2 + $0x1e8] sm:$0xff]  ;;  %v22694_v19 = vand.u32 4294901760, %v15067_v60  ;;  %v15115_v33 = vsub.f32 %v310_v8, %v15080_v44 }
  0x81   : > { %1076 = vmatpush.msrb.mxu0 %v14953_v53  ;;  %1220 = vmatpush.msrb.mxu2 %v14957_v3  ;;  %v15099_v43 = vand.u32 4294901760, %v370_v50  ;;  %v22702_v40 = vand.u32 4294901760, %v15107_v31 }
  0x82   : > { %1125 = vmatpush.msrb.mxu1 %v1124_v57  ;;  %1266 = vmatpush.msrb.mxu3 %v14906_v16  ;;  %v22690_v57 = vand.u32 4294901760, %v15049_v63  ;;  %v1177_v8 = vsub.f32 %v15067_v60, %v22694_v19  ;;  %v22703_v19 = vand.u32 4294901760, %v15115_v33 }
  0x83   : > { %1078 = vmatpush.msrb.mxu0 %v14964_v52  ;;  %1223 = vmatpush.msrb.mxu2 %v14973_v10  ;;  %22934 = vst [vmem:[#allocation9_spill] sm:$0xff] %v15099_v43  ;;  %v15132_v42 = vsub.f32 %v370_v50, %v15099_v43 }
  0x84   : > { %1131 = vmatpush.msrb.mxu1 %v1130_v24  ;;  %1268 = vmatpush.msrb.mxu3 %v14920_v18  ;;  %v1154_v24 = vand.u32 4294901760, %v1153_v9  ;;  %v366_v9 = vld [vmem:[%s22654_s2 + $0x1c8] sm:$0xff]  ;;  %v1171_v22 = vsub.f32 %v15049_v63, %v22690_v57  ;;  %v22699_v57 = vand.u32 4294901760, %v15097_v23 }
  0x85   : > { %1080 = vmatpush.msrb.mxu0 %v14977_v34  ;;  %1226 = vmatpush.msrb.mxu2 %v14989_v47  ;;  %v15124_v6 = vand.u32 4294901760, %v366_v9 }
  0x86   : > { %1137 = vmatpush.msrb.mxu1 %v1136_v45  ;;  %1270 = vmatpush.msrb.mxu3 %v14937_v5  ;;  %v1165_v45 = vsub.f32 %v15034_v13, %v22687_v28  ;;  %v22697_v28 = vand.u32 4294901760, %v15084_v12  ;;  %v1189_v51 = vsub.f32 %v15097_v23, %v22699_v57 }
  0x87   : > { %1082 = vmatpush.msrb.mxu0 %v15003_v58  ;;  %1229 = vmatpush.msrb.mxu2 %v14994_v54  ;;  %v15153_v29 = vsub.f32 %v366_v9, %v15124_v6  ;;  %v1446_v9 = vsub.f32 %v15107_v31, %v22702_v40  ;;  %v22935_v40 = vand.u32 4294901760, %v14883_v62 }
  0x88   : > { %1143 = vmatpush.msrb.mxu1 %v1142_v25  ;;  %1272 = vmatpush.msrb.mxu3 %v14953_v53  ;;  %v1160_v25 = vand.u32 4294901760, %v1159_v35  ;;  %v364_v35 = vld [vmem:[%s22654_s2 + $0x1b8] sm:$0xff]  ;;  %v1183_v50 = vsub.f32 %v15084_v12, %v22697_v28  ;;  %v1195_v28 = vsub.f32 %v15115_v33, %v22703_v19  ;;  %v22936_v19 = vand.u32 4294901760, %v15132_v42 }
  0x89   : > { %1084 = vmatpush.msrb.mxu0 %v15018_v59  ;;  %1232 = vmatpush.msrb.mxu2 %v15009_v26  ;;  %v15137_v17 = vand.u32 4294901760, %v364_v35 }
  0x8a   : > { %1149 = vmatpush.msrb.mxu1 %v1148_v56  ;;  %1274 = vmatpush.msrb.mxu3 %v14964_v52  ;;  %v1166_v56 = vand.u32 4294901760, %v1165_v45  ;;  %v1172_v45 = vand.u32 4294901760, %v1171_v22  ;;  %v1178_v22 = vand.u32 4294901760, %v1177_v8  ;;  %v358_v8 = vld [vmem:[%s22654_s2 + $0x188] sm:$0xff]  ;;  %v1184_v57 = vand.u32 4294901760, %v1183_v50 }
  0x8b   : > { %1086 = vmatpush.msrb.mxu0 %v15031_v32  ;;  %1235 = vmatpush.msrb.mxu2 %v15034_v13  ;;  %v1190_v50 = vand.u32 4294901760, %v1189_v51  ;;  %v1452_v41 = vsub.f32 %v15132_v42, %v22936_v19  ;;  %v15197_v62 = vand.u32 4294901760, %v358_v8  ;;  %v354_v51 = vld [vmem:[%s22654_s2 + $0x168] sm:$0xff]  ;;  %v1196_v19 = vand.u32 4294901760, %v1195_v28  ;;  %v352_v28 = vld [vmem:[%s22654_s2 + $0x158] sm:$0xff] }
  0x8c   : > { %1155 = vmatpush.msrb.mxu1 %v1154_v24  ;;  %1276 = vmatpush.msrb.mxu3 %v14977_v34  ;;  %v362_v24 = vld [vmem:[%s22654_s2 + $0x1a8] sm:$0xff] }
  0x8d   : > { %1088 = vmatpush.msrb.mxu0 %v15046_v55  ;;  %1238 = vmatpush.msrb.mxu2 %v15049_v63  ;;  %v15163_v49 = vand.u32 4294901760, %v362_v24  ;;  %v15227_v21 = vsub.f32 %v358_v8, %v15197_v62 }
  0x8e   : > { %1161 = vmatpush.msrb.mxu1 %v1160_v25  ;;  %1278 = vmatpush.msrb.mxu3 %v15003_v58  ;;  %v360_v25 = vld [vmem:[%s22654_s2 + $0x198] sm:$0xff] }
  0x8f   : > { %1090 = vmatpush.msrb.mxu0 %v15063_v2  ;;  %1241 = vmatpush.msrb.mxu2 %v15067_v60  ;;  %v15181_v20 = vand.u32 4294901760, %v360_v25  ;;  %v15195_v7 = vsub.f32 %v362_v24, %v15163_v49  ;;  %v22938_v24 = vand.u32 4294901760, %v15148_v38 }
  0x90   : > { %1167 = vmatpush.msrb.mxu1 %v1166_v56  ;;  %1280 = vmatpush.msrb.mxu3 %v15018_v59  ;;  %v15171_v56 = vsub.f32 %v364_v35, %v15137_v17  ;;  %v1447_v35 = vand.u32 4294901760, %v1446_v9  ;;  %v22939_v9 = vand.u32 4294901760, %v14910_v1  ;;  %v15229_v1 = vand.u32 4294901760, %v354_v51 }
  0x91   : > { %1092 = vmatpush.msrb.mxu0 %v15080_v44  ;;  %1244 = vmatpush.msrb.mxu2 %v15084_v12  ;;  %v1458_v11 = vsub.f32 %v15148_v38, %v22938_v24 }
  0x92   : > { %1173 = vmatpush.msrb.mxu1 %v1172_v45  ;;  %1282 = vmatpush.msrb.mxu3 %v15031_v32  ;;  %v356_v45 = vld [vmem:[%s22654_s2 + $0x178] sm:$0xff] }
  0x93   : > { %1299 = vmatpush.msra.mxu0 %v22935_v40  ;;  %1247 = vmatpush.msrb.mxu2 %v15097_v23  ;;  %v22937_v40 = vand.u32 4294901760, %v14896_v61  ;;  %v15211_v61 = vsub.f32 %v360_v25, %v15181_v20  ;;  %v1453_v25 = vand.u32 4294901760, %v1452_v41  ;;  %v350_v41 = vld [vmem:[%s22654_s2 + $0x148] sm:$0xff] }
  0x94   : > { %1179 = vmatpush.msrb.mxu1 %v1178_v22  ;;  %1284 = vmatpush.msrb.mxu3 %v15046_v55  ;;  %v22940_v22 = vand.u32 4294901760, %v15153_v29 }
  0x95   : > { %1303 = vmatpush.msra.mxu0 %v22937_v40  ;;  %1250 = vmatpush.msrb.mxu2 %v15115_v33  ;;  %v15213_v40 = vand.u32 4294901760, %v356_v45  ;;  %v1481_v8 = vand.u32 4294901760, %v15211_v61 }
  0x96   : > { %1185 = vmatpush.msrb.mxu1 %v1184_v57  ;;  %1286 = vmatpush.msrb.mxu3 %v15063_v2  ;;  %v1464_v57 = vsub.f32 %v15153_v29, %v22940_v22  ;;  %v22942_v22 = vand.u32 4294901760, %v15171_v56 }
  0x97   : > { %1307 = vmatpush.msra.mxu0 %v22939_v9  ;;  %1403 = vmatpush.msra.mxu2 %v15074_v46  ;;  %v22941_v9 = vand.u32 4294901760, %v14924_v4  ;;  %v15242_v24 = vsub.f32 %v356_v45, %v15213_v40  ;;  %v15244_v4 = vand.u32 4294901760, %v352_v28  ;;  %v22713_v45 = vand.u32 4294901760, %v15227_v21 }
  0x98   : > { %1191 = vmatpush.msrb.mxu1 %v1190_v50  ;;  %1288 = vmatpush.msrb.mxu3 %v15080_v44  ;;  %v1470_v46 = vsub.f32 %v15171_v56, %v22942_v22  ;;  %v1459_v50 = vand.u32 4294901760, %v1458_v11  ;;  %v1465_v22 = vand.u32 4294901760, %v1464_v57  ;;  %v22944_v11 = vand.u32 4294901760, %v15195_v7 }
  0x99   : > { %1311 = vmatpush.msra.mxu0 %v22941_v9  ;;  %1405 = vmatpush.msra.mxu2 %v15099_v43  ;;  %v22943_v9 = vand.u32 4294901760, %v14941_v36  ;;  %v348_v43 = vld [vmem:[%s22654_s2 + $0x138] sm:$0xff]  ;;  %v15260_v36 = vand.u32 4294901760, %v350_v41 }
  0x9a   : > { %1448 = vmatpush.msra.mxu3 %v1447_v35  ;;  %1197 = vmatpush.msrb.mxu1 %v1196_v19  ;;  %v1476_v35 = vsub.f32 %v15195_v7, %v22944_v11  ;;  %v15258_v19 = vsub.f32 %v354_v51, %v15229_v1  ;;  %v1471_v57 = vand.u32 4294901760, %v1470_v46  ;;  %v15271_v51 = vsub.f32 %v352_v28, %v15244_v4 }
  0x9b   : > { %1315 = vmatpush.msra.mxu0 %v22943_v9  ;;  %1407 = vmatpush.msra.mxu2 %v15117_v0  ;;  %v1493_v9 = vand.u32 4294901760, %v15242_v24  ;;  %v15273_v11 = vand.u32 4294901760, %v348_v43  ;;  %v1488_v28 = vsub.f32 %v15227_v21, %v22713_v45 }
  0x9c   : > { %1366 = vmatpush.msra.mxu1 %v14860_v39  ;;  %1454 = vmatpush.msra.mxu3 %v1453_v25  ;;  %v22945_v39 = vand.u32 4294901760, %v14957_v3  ;;  %v1482_v25 = vsub.f32 %v15211_v61, %v1481_v8  ;;  %v346_v3 = vld [vmem:[%s22654_s2 + $0x128] sm:$0xff]  ;;  %v1477_v46 = vand.u32 4294901760, %v1476_v35  ;;  %v1505_v35 = vand.u32 4294901760, %v15271_v51 }
  0x9d   : > { %1409 = vmatpush.msra.mxu2 %v15124_v6  ;;  %v15303_v45 = vsub.f32 %v348_v43, %v15273_v11  ;;  %1098 = vmatmul.f32.vlgmr.msrb.gmra.mxu0 %v14766_v30  ;;  %v22956_v30 = vand.u32 4294901760, %v15107_v31 }
  0x9e   : > { %1319 = vmatpush.msra.mxu0 %v22945_v39  ;;  %1368 = vmatpush.msra.mxu1 %v14870_v27  ;;  %v22946_v27 = vand.u32 4294901760, %v14973_v10  ;;  %v15287_v39 = vsub.f32 %v350_v41, %v15260_v36  ;;  %v344_v10 = vld [vmem:[%s22654_s2 + $0x118] sm:$0xff]  ;;  %v1494_v41 = vsub.f32 %v15242_v24, %v1493_v9 }
  0x9f   : > { %1460 = vmatpush.msra.mxu3 %v1459_v50  ;;  %1411 = vmatpush.msra.mxu2 %v15137_v17  ;;  %v22714_v50 = vand.u32 4294901760, %v15258_v19 }
  0xa0   : > { %1323 = vmatpush.msra.mxu0 %v22946_v27  ;;  %1370 = vmatpush.msra.mxu1 %v14880_v48  ;;  %v22947_v27 = vand.u32 4294901760, %v14989_v47  ;;  %v15295_v48 = vand.u32 4294901760, %v346_v3  ;;  %v22948_v47 = vand.u32 4294901760, %v14994_v54  ;;  %v22949_v54 = vand.u32 4294901760, %v15009_v26 }
  0xa1   : > { %1466 = vmatpush.msra.mxu3 %v1465_v22  ;;  %1413 = vmatpush.msra.mxu2 %v15163_v49  ;;  %v1483_v22 = vand.u32 4294901760, %v1482_v25  ;;  %v1489_v25 = vand.u32 4294901760, %v1488_v28  ;;  %v1500_v43 = vsub.f32 %v15258_v19, %v22714_v50  ;;  %v1517_v28 = vand.u32 4294901760, %v15303_v45 }
  0xa2   : > { %1327 = vmatpush.msra.mxu0 %v22947_v27  ;;  %1372 = vmatpush.msra.mxu1 %v14893_v15  ;;  %v15308_v15 = vand.u32 4294901760, %v344_v10  ;;  %v1511_v27 = vand.u32 4294901760, %v15287_v39  ;;  %v22950_v26 = vand.u32 4294901760, %v15034_v13 }
  0xa3   : > { %1472 = vmatpush.msra.mxu3 %v1471_v57  ;;  %v342_v57 = vld [vmem:[%s22654_s2 + $0x108] sm:$0xff]  ;;  %1415 = vmatpush.msra.mxu2 %v15181_v20 }
  0xa4   : > { %1331 = vmatpush.msra.mxu0 %v22948_v47  ;;  %1374 = vmatpush.msra.mxu1 %v14906_v16  ;;  %v15322_v16 = vsub.f32 %v346_v3, %v15295_v48  ;;  %v1495_v47 = vand.u32 4294901760, %v1494_v41  ;;  %v15329_v50 = vand.u32 4294901760, %v342_v57  ;;  %v1501_v3 = vand.u32 4294901760, %v1500_v43 }
  0xa5   : > { %1478 = vmatpush.msra.mxu3 %v1477_v46  ;;  %1417 = vmatpush.msra.mxu2 %v15197_v62  ;;  %v1506_v46 = vsub.f32 %v15271_v51, %v1505_v35  ;;  %v22951_v41 = vand.u32 4294901760, %v15049_v63  ;;  %v22952_v43 = vand.u32 4294901760, %v15067_v60 }
  0xa6   : > { %1335 = vmatpush.msra.mxu0 %v22949_v54  ;;  %1376 = vmatpush.msra.mxu1 %v14920_v18  ;;  %v15335_v18 = vsub.f32 %v344_v10, %v15308_v15  ;;  %v1523_v13 = vand.u32 4294901760, %v15322_v16  ;;  %v1518_v10 = vsub.f32 %v15303_v45, %v1517_v28  ;;  %v22953_v54 = vand.u32 4294901760, %v15084_v12 }
  0xa7   : > { %1484 = vmatpush.msra.mxu3 %v1483_v22  ;;  %1419 = vmatpush.msra.mxu2 %v15213_v40  ;;  %v1512_v22 = vsub.f32 %v15287_v39, %v1511_v27 }
  0xa8   : > { %1339 = vmatpush.msra.mxu0 %v22950_v26  ;;  %1378 = vmatpush.msra.mxu1 %v14937_v5  ;;  %v1507_v5 = vand.u32 4294901760, %v1506_v46  ;;  %v1519_v60 = vand.u32 4294901760, %v1518_v10 }
  0xa9   : > { %1490 = vmatpush.msra.mxu3 %v1489_v25  ;;  %1421 = vmatpush.msra.mxu2 %v15229_v1  ;;  %v15350_v25 = vsub.f32 %v342_v57, %v15329_v50  ;;  %v1513_v63 = vand.u32 4294901760, %v1512_v22  ;;  %v1524_v57 = vsub.f32 %v15322_v16, %v1523_v13 }
  0xaa   : > { %1343 = vmatpush.msra.mxu0 %v22951_v41  ;;  %1380 = vmatpush.msra.mxu1 %v14953_v53  ;;  %v1529_v53 = vand.u32 4294901760, %v15335_v18 }
  0xab   : > { %1496 = vmatpush.msra.mxu3 %v1495_v47  ;;  %1423 = vmatpush.msra.mxu2 %v15244_v4  ;;  %v22954_v47 = vand.u32 4294901760, %v15097_v23  ;;  %v1525_v46 = vand.u32 4294901760, %v1524_v57 }
  0xac   : > { %1347 = vmatpush.msra.mxu0 %v22952_v43  ;;  %1382 = vmatpush.msra.mxu1 %v14964_v52  ;;  %v1535_v52 = vand.u32 4294901760, %v15350_v25  ;;  %v1530_v12 = vsub.f32 %v15335_v18, %v1529_v53 }
  0xad   : > { %1502 = vmatpush.msra.mxu3 %v1501_v3  ;;  %1425 = vmatpush.msra.mxu2 %v15260_v36 }
  0xae   : > { %1351 = vmatpush.msra.mxu0 %v22953_v54  ;;  %1384 = vmatpush.msra.mxu1 %v14977_v34  ;;  %v22955_v34 = vand.u32 4294901760, %v15115_v33  ;;  %v1531_v23 = vand.u32 4294901760, %v1530_v12  ;;  %v22957_v33 = vld [vmem:[#allocation4_spill] sm:$0xff] }
  0xaf   : > { %1508 = vmatpush.msra.mxu3 %v1507_v5  ;;  %1427 = vmatpush.msra.mxu2 %v15273_v11 }
  0xb0   : > { %1355 = vmatpush.msra.mxu0 %v22954_v47  ;;  %1386 = vmatpush.msra.mxu1 %v15003_v58  ;;  %v1536_v58 = vsub.f32 %v15350_v25, %v1535_v52 }
  0xb1   : > { %1514 = vmatpush.msra.mxu3 %v1513_v63  ;;  %1429 = vmatpush.msra.mxu2 %v15295_v48 }
  0xb2   : > { %1359 = vmatpush.msra.mxu0 %v22955_v34  ;;  %1388 = vmatpush.msra.mxu1 %v15018_v59  ;;  %v1537_v59 = vand.u32 4294901760, %v1536_v58 }
  0xb3   : > { %1520 = vmatpush.msra.mxu3 %v1519_v60  ;;  %1431 = vmatpush.msra.mxu2 %v15308_v15 }
  0xb4   : > { %1390 = vmatpush.msra.mxu1 %v15031_v32  ;;  %1546 = vmatpush.msrb.mxu0 %v15107_v31  ;;  %v22959_v32 = vld [vmem:[#allocation3_spill] sm:$0xff]  ;;  %v22961_v31 = vld [vmem:[#allocation9_spill] sm:$0xff] }
  0xb5   : > { %1526 = vmatpush.msra.mxu3 %v1525_v46  ;;  %1253 = vmatmul.f32.vlgmr.msrb.gmra.mxu2 %v14701_v14  ;;  %v22958_v14 = vand.u32 4294901760, %v15132_v42 }
  0xb6   : > { %1549 = vmatpush.msrb.mxu0 %v15132_v42  ;;  %1392 = vmatpush.msra.mxu1 %v15046_v55  ;;  %v22962_v55 = vld [vmem:[#allocation8_spill] sm:$0xff]  ;;  %v22963_v42 = vand.u32 4294901760, %v15153_v29 }
  0xb7   : > { %1433 = vmatpush.msra.mxu2 %v15329_v50  ;;  %1532 = vmatpush.msra.mxu3 %v1531_v23 }
  0xb8   : > { %1292 = vmatmul.f32.vlgmr.msrb.gmra.mxu3 %v14729_v37  ;;  %1552 = vmatpush.msrb.mxu0 %v15148_v38  ;;  %v22960_v37 = vand.u32 4294901760, %v15148_v38  ;;  %v22965_v38 = vand.u32 4294901760, %v15171_v56 }
  0xb9   : > { %1640 = vmatpush.msrb.mxu2 %v22956_v30  ;;  %1394 = vmatpush.msra.mxu1 %v15063_v2  ;;  %v22964_v2 = vld [vmem:[#allocation5_spill] sm:$0xff] }
  0xba   : > { %1538 = vmatpush.msra.mxu3 %v1537_v59  ;;  %1199 = vmatmul.f32.vlgmr.msrb.gmra.mxu1 %v22957_v33 }
  0xbb   : > { %1555 = vmatpush.msrb.mxu0 %v15153_v29  ;;  %1644 = vmatpush.msrb.mxu2 %v22958_v14  ;;  %v22966_v29 = vand.u32 4294901760, %v15195_v7 }
  0xbc   : > { %1707 = vmatpush.msrb.mxu3 %v22959_v32  ;;  %1396 = vmatpush.msra.mxu1 %v15080_v44  ;;  %v22970_v44 = vld [vmem:[#allocation7_spill] sm:$0xff] }
  0xbd   : > { %1558 = vmatpush.msrb.mxu0 %v15171_v56  ;;  %1648 = vmatpush.msrb.mxu2 %v22960_v37  ;;  %v15477_v56 = vstv %s307_s20 }
  0xbe   : > { %1599 = vmatpush.msrb.mxu1 %v22959_v32  ;;  %1709 = vmatpush.msrb.mxu3 %v22961_v31  ;;  %14184 = vrcp.f32 %v15477_v56  ;;  %vm1751_vm0 = vweird.f32 %v15477_v56 }
  0xbf   : > { %1439 = vmatmul.f32.vlgmr.msra.gmra.mxu2 %v22962_v55  ;;  %1561 = vmatpush.msrb.mxu0 %v15195_v7  ;;  %v22968_v7 = vand.u32 4294901760, %v15258_v19 }
  0xc0   : > { %1601 = vmatpush.msrb.mxu1 %v22961_v31  ;;  %1652 = vmatpush.msrb.mxu2 %v22963_v42 }
  0xc1   : > { %1711 = vmatpush.msrb.mxu3 %v15117_v0  ;;  %1361 = vmatmul.f32.vlgmr.msra.gmra.mxu0 %v22957_v33 }
  0xc2   : > { %1540 = vmatmul.f32.vlgmr.msra.gmra.mxu3 %v22964_v2  ;;  %1564 = vmatpush.msrb.mxu0 %v15211_v61 }
  0xc3   : > { %1603 = vmatpush.msrb.mxu1 %v15117_v0  ;;  %1656 = vmatpush.msrb.mxu2 %v22965_v38  ;;  %v22967_v0 = vand.u32 4294901760, %v15227_v21 }
  0xc4   : > { %1713 = vmatpush.msrb.mxu3 %v15124_v6  ;;  %1398 = vmatmul.f32.vlgmr.msra.gmra.mxu1 %v22957_v33 }
  0xc5   : > { %1567 = vmatpush.msrb.mxu0 %v15227_v21  ;;  %1605 = vmatpush.msrb.mxu1 %v15124_v6  ;;  %v22969_v21 = vld [vmem:[#allocation6_spill] sm:$0xff] }
  0xc6   : > { %1660 = vmatpush.msrb.mxu2 %v22966_v29  ;;  %1715 = vmatpush.msrb.mxu3 %v15137_v17 }
  0xc7   : > { %1570 = vmatpush.msrb.mxu0 %v15242_v24  ;;  %1607 = vmatpush.msrb.mxu1 %v15137_v17 }
  0xc8   : > { %1664 = vmatpush.msrb.mxu2 %v1481_v8  ;;  %1717 = vmatpush.msrb.mxu3 %v15163_v49 }
  0xc9   : > { %1573 = vmatpush.msrb.mxu0 %v15258_v19  ;;  %1609 = vmatpush.msrb.mxu1 %v15163_v49  ;;  %v417_v49 = vpop.f32.mrf.mxu0 }
  0xca   : > { %1668 = vmatpush.msrb.mxu2 %v22967_v0  ;;  %1719 = vmatpush.msrb.mxu3 %v15181_v20  ;;  %v1837_v0 = vld [vmem:[%s22656_s4] sm:$0xff] }
  0xcb   : > { %1576 = vmatpush.msrb.mxu0 %v15271_v51  ;;  %1611 = vmatpush.msrb.mxu1 %v15181_v20 }
  0xcc   : > { %1672 = vmatpush.msrb.mxu2 %v1493_v9  ;;  %1721 = vmatpush.msrb.mxu3 %v15197_v62 }
  0xcd   : > { %1579 = vmatpush.msrb.mxu0 %v15287_v39  ;;  %1613 = vmatpush.msrb.mxu1 %v15197_v62 }
  0xce   : > { %1676 = vmatpush.msrb.mxu2 %v22968_v7  ;;  %1723 = vmatpush.msrb.mxu3 %v15213_v40 }
  0xcf   : > { %1582 = vmatpush.msrb.mxu0 %v15303_v45  ;;  %1615 = vmatpush.msrb.mxu1 %v15213_v40 }
  0xd0   : > { %1680 = vmatpush.msrb.mxu2 %v1505_v35  ;;  %1725 = vmatpush.msrb.mxu3 %v15229_v1  ;;  %v1757_v35 = vand.u32 2147483648, %v15477_v56 }
  0xd1   : > { %1585 = vmatpush.msrb.mxu0 %v15322_v16  ;;  %1617 = vmatpush.msrb.mxu1 %v15229_v1  ;;  %v518_v20 = vpop.f32.mrf.mxu1  ;;  %v14185_v1 = vpop.eup %14184  ;;  %v1755_v16 = vand.u32 2147483647, %v15477_v56 }
  0xd2   : > { %1684 = vmatpush.msrb.mxu2 %v1511_v27  ;;  %1727 = vmatpush.msrb.mxu3 %v15244_v4  ;;  %v519_v17 = vadd.f32 %v518_v20, %v417_v49  ;;  %v1747_v45 = vmul.f32 %v14185_v1, %v15477_v56  ;;  %vm1752_vm1 = vweird.f32 %v14185_v1  ;;  %v1758_v3 = vor.u32 1.1754944e-38, %v1757_v35  ;;  %v1838_v49 = vld [vmem:[%s22656_s4 + $0x8] sm:$0xff] }
  0xd3   : > { %1588 = vmatpush.msrb.mxu0 %v15335_v18  ;;  %1619 = vmatpush.msrb.mxu1 %v15244_v4  ;;  %v572_v6 = vpop.f32.mrf.mxu2  ;;  %v611_v61 = vpop.f32.mrf.mxu3  ;;  %vm1753_vm2 = vmor %vm1751_vm0, %vm1752_vm1  ;;  %vm1756_vm3 = vcmp.eq.f32.partialorder %v1755_v16, 8.507059e+37 }
  0xd4   : > { %1688 = vmatpush.msrb.mxu2 %v1517_v28  ;;  %1729 = vmatpush.msrb.mxu3 %v15260_v36  ;;  %v573_v62 = vadd.f32 %v572_v6, %v519_v17  ;;  %v1748_v9 = vsub.f32 1.0, %v1747_v45  ;;  %v15524_v6 = vld [vmem:[%s22655_s3] sm:$0x3] }
  0xd5   : > { %1591 = vmatpush.msrb.mxu0 %v15350_v25  ;;  %1621 = vmatpush.msrb.mxu1 %v15260_v36 }
  0xd6   : > { %1692 = vmatpush.msrb.mxu2 %v1523_v13  ;;  %1731 = vmatpush.msrb.mxu3 %v15273_v11  ;;  %v612_v40 = vadd.f32 %v611_v61, %v573_v62  ;;  %v15532_v61 = vperm.slane %v15524_v6, 0 }
  0xd7   : > { %1594 = vmatmul.f32.vlgmr.msrb.gmra.mxu0 %v22969_v21  ;;  %1623 = vmatpush.msrb.mxu1 %v15273_v11  ;;  %v1847_v21 = vsel %vm1845_vm4, %v1837_v0, 0 }
  0xd8   : > { %1696 = vmatpush.msrb.mxu2 %v1529_v53  ;;  %1733 = vmatpush.msrb.mxu3 %v15295_v48  ;;  %v680_v24 = vpop.f32.mrf.mxu0  ;;  %v15506_v20 = vand.u32 4294901760, %v1847_v21  ;;  %22973 = vst [vmem:[#allocation9_spill] sm:$0xff] %v15532_v61 }
  0xd9   : > { %1625 = vmatpush.msrb.mxu1 %v15295_v48  ;;  %v681_v8 = vadd.f32 %v680_v24, %v612_v40  ;;  %v1839_v40 = vld [vmem:[%s22656_s4 + $0x10] sm:$0xff] }
  0xda   : > { %1700 = vmatpush.msrb.mxu2 %v1535_v52  ;;  %1735 = vmatpush.msrb.mxu3 %v15308_v15  ;;  %v15512_v17 = vsub.f32 %v1847_v21, %v15506_v20  ;;  %v1853_v45 = vsel %vm1845_vm4, %v1839_v40, 0 }
  0xdb   : > { %1702 = vmatmul.f32.vlgmr.msrb.gmra.mxu2 %v22964_v2  ;;  %1627 = vmatpush.msrb.mxu1 %v15308_v15  ;;  %v717_v4 = vpop.f32.mrf.mxu1 }
  0xdc   : > { %1737 = vmatpush.msrb.mxu3 %v15329_v50  ;;  %v718_v19 = vadd.f32 %v717_v4, %v681_v8  ;;  %v758_v36 = vpop.f32.mrf.mxu2 }
  0xdd   : > { %1739 = vmatmul.f32.vlgmr.msrb.gmra.mxu3 %v22964_v2  ;;  %1629 = vmatpush.msrb.mxu1 %v15329_v50  ;;  %v1749_v50 = vmul.f32 %v14185_v1, %v1748_v9 }
  0xde   : > { %1633 = vmatmul.f32.vlgmr.msrb.gmra.mxu1 %v22970_v44  ;;  %v759_v51 = vadd.f32 %v758_v36, %v718_v19  ;;  %v1850_v44 = vsel %vm1845_vm4, %v1838_v49, 0 }
  0xdf   : > { %v859_v11 = vpop.f32.mrf.mxu3  ;;  %v1750_v27 = vadd.f32 %v14185_v1, %v1749_v50  ;;  %v15529_v62 = vand.u32 4294901760, %v1850_v44 }
  0xe0   : > { %v860_v48 = vadd.f32 %v859_v11, %v759_v51  ;;  %v15560_v11 = vand.u32 4294901760, %v1853_v45 }
  0xe1   : > { %v1754_v13 = vsel %vm1753_vm2, %v14185_v1, %v1750_v27  ;;  %v15542_v8 = vsub.f32 %v1850_v44, %v15529_v62  ;;  %v14202_v44 = vmov 0  }
  0xe2   : > { %v1759_v10 = vsel %vm1756_vm3, %v1758_v3, %v1754_v13  ;;  %14183 = vset.pattern.permute.xlu0 %v14202_v44  ;;  %14181 = vset.pattern.permute.xlu1 %v14202_v44 }
  0xe3   : > { %v15558_v51 = vand.u32 4294901760, %v15542_v8  ;;  %14182 = vset.pattern.permute.xlu2 %v14202_v44 }
  0xe5   : > { %v1905_v35 = vsub.f32 %v15542_v8, %v15558_v51 }
  0xee   : > { %v913_v39 = vpop.f32.mrf.mxu0 }
  0xef   : > { %v914_v15 = vadd.f32 %v913_v39, %v860_v48  ;;  %v1840_v39 = vld [vmem:[%s22656_s4 + $0x18] sm:$0xff] }
  0xf0   : > { %v1856_v16 = vsel %vm1845_vm4, %v1840_v39, 0 }
  0xf1   : > { %v15585_v3 = vand.u32 4294901760, %v1856_v16 }
  0xf8   : > { %v952_v28 = vpop.f32.mrf.mxu1  ;;  %v1021_v26 = vpop.f32.mrf.mxu2 }
  0xf9   : > { %v953_v18 = vadd.f32 %v952_v28, %v914_v15  ;;  %v15570_v15 = vsub.f32 %v1853_v45, %v15560_v11  ;;  %v1769_v45 = vld [vmem:[%s22657_s5 + $0x38] sm:$0xff] }
  0xfb   : > { %v1022_v22 = vadd.f32 %v1021_v26, %v953_v18  ;;  %v1058_v41 = vpop.f32.mrf.mxu3  ;;  %v15580_v26 = vand.u32 4294901760, %v1905_v35  ;;  %v15583_v18 = vand.u32 4294901760, %v15570_v15 }
  0xfd   : > { %v1059_v5 = vadd.f32 %v1058_v41, %v1022_v22  ;;  %v1841_v41 = vld [vmem:[%s22656_s4 + $0x20] sm:$0xff]  ;;  %v1913_v13 = vsub.f32 %v15570_v15, %v15583_v18 }
  0xff   : > { %v1744_v25 = vmul.f32 %v15477_v56, %v1059_v5  ;;  %v15595_v5 = vsub.f32 %v1856_v16, %v15585_v3  ;;  %v1768_v16 = vld [vmem:[%s22657_s5 + $0x30] sm:$0xff] }
 0x101   : > { %v15485_v43 = vmul.f32 %v1759_v10, %v1744_v25  ;;  %v15602_v25 = vand.u32 4294901760, %v1913_v13  ;;  %v1765_v13 = vld [vmem:[%s22657_s5 + $0x18] sm:$0xff] }
 0x103   : > { %22971 = vst [vmem:[#allocation4_spill] sm:$0xff] %v15485_v43  ;;  %3418 = vrot.lane.b32.xlu2 %v15485_v43, %s14194_s21  ;;  %2619 = vrot.lane.b32.xlu1 %v15485_v43, %s14195_s22 }
 0x104   : > { %1820 = vrot.lane.b32.xlu0 %v15485_v43, %s14196_s23 }
 0x11a   : > { %v1099_v63 = vpop.f32.mrf.mxu0 }
 0x137   : > { %v1200_v53 = vpop.f32.mrf.mxu1 }
 0x138   : > { %v1201_v54 = vadd.f32 %v1200_v53, %v1099_v63  ;;  %v1254_v57 = vpop.f32.mrf.mxu2  ;;  %v15605_v53 = vand.u32 4294901760, %v15595_v5 }
 0x13a   : > { %v1255_v60 = vadd.f32 %v1254_v57, %v1201_v54  ;;  %v1842_v54 = vld [vmem:[%s22656_s4 + $0x28] sm:$0xff]  ;;  %v1921_v57 = vsub.f32 %v15595_v5, %v15605_v53 }
 0x13b   : > { %v1293_v52 = vpop.f32.mrf.mxu3 }
 0x13c   : > { %v1294_v47 = vadd.f32 %v1293_v52, %v1255_v60  ;;  %v1862_v52 = vsel %vm1845_vm4, %v1842_v54, 0  ;;  %v15739_v54 = vperm.slane %v15524_v6, 1 }
 0x13e   : > { %v1362_v12 = vpop.f32.mrf.mxu0  ;;  %22975 = vst [vmem:[#allocation5_spill] sm:$0xff] %v15739_v54 }
 0x13f   : > { %v1363_v34 = vadd.f32 %v1362_v12, %v1294_v47  ;;  %v15622_v47 = vand.u32 4294901760, %v1921_v57 }
 0x141   : > { %v1399_v46 = vpop.f32.mrf.mxu1 }
 0x142   : > { %v1400_v58 = vadd.f32 %v1399_v46, %v1363_v34  ;;  %v1440_v23 = vpop.f32.mrf.mxu2  ;;  %v15627_v34 = vand.u32 4294901760, %v1862_v52  ;;  %v1843_v46 = vld [vmem:[%s22656_s4 + $0x30] sm:$0xff] }
 0x144   : > { %v1441_v59 = vadd.f32 %v1440_v23, %v1400_v58  ;;  %v15637_v23 = vsub.f32 %v1862_v52, %v15627_v34  ;;  %v1763_v52 = vld [vmem:[%s22657_s5 + $0x8] sm:$0xff] }
 0x145   : > { %v1541_v30 = vpop.f32.mrf.mxu3 }
 0x146   : > { %v1542_v14 = vadd.f32 %v1541_v30, %v1441_v59  ;;  %v1865_v59 = vsel %vm1845_vm4, %v1843_v46, 0 }
 0x154   : > { %v1595_v33 = vpop.f32.mrf.mxu0 }
 0x155   : > { %v1596_v32 = vadd.f32 %v1595_v33, %v1542_v14  ;;  %v15645_v33 = vand.u32 4294901760, %v15637_v23  ;;  %v15647_v14 = vand.u32 4294901760, %v1865_v59 }
 0x15b   : > { %v1634_v37 = vpop.f32.mrf.mxu1 }
 0x15c   : > { %v1635_v31 = vadd.f32 %v1634_v37, %v1596_v32  ;;  %v1844_v32 = vld [vmem:[%s22656_s4 + $0x38] sm:$0xff]  ;;  %v1937_v37 = vsub.f32 %v15637_v23, %v15645_v33 }
 0x15e   : > { %v1703_v55 = vpop.f32.mrf.mxu2 }
 0x15f   : > { %v1704_v42 = vadd.f32 %v1703_v55, %v1635_v31  ;;  %v15657_v31 = vsub.f32 %v1865_v59, %v15647_v14  ;;  %v1868_v55 = vsel %vm1845_vm4, %v1844_v32, 0 }
 0x160   : > { %v1740_v2 = vpop.f32.mrf.mxu3 }
 0x161   : > { %v1741_v38 = vadd.f32 %v1740_v2, %v1704_v42  ;;  %v15662_v42 = vand.u32 4294901760, %v1937_v37  ;;  %v15665_v2 = vand.u32 4294901760, %v15657_v31 }
 0x163   : > { %v1745_v29 = vmul.f32 %v15477_v56, %v1741_v38  ;;  %v15527_v56 = vand.u32 4294901760, %v15512_v17  ;;  %v15667_v38 = vand.u32 4294901760, %v1868_v55 }
 0x165   : > { %v15497_v7 = vmul.f32 %v1759_v10, %v1745_v29  ;;  %v1897_v1 = vsub.f32 %v15512_v17, %v15527_v56  ;;  %v1859_v10 = vsel %vm1845_vm4, %v1841_v41, 0  ;;  %v1945_v29 = vsub.f32 %v15657_v31, %v15665_v2 }
 0x166   : > { %v15607_v63 = vand.u32 4294901760, %v1859_v10  ;;  %v15674_v0 = vsub.f32 %v1868_v55, %v15667_v38 }
 0x167   : > { %22972 = vst [vmem:[#allocation3_spill] sm:$0xff] %v15497_v7  ;;  %3420 = vrot.lane.b32.xlu2 %v15497_v7, %s14194_s21  ;;  %2621 = vrot.lane.b32.xlu1 %v15497_v7, %s14195_s22  ;;  %v15555_v9 = vand.u32 4294901760, %v1897_v1  ;;  %v15678_v21 = vand.u32 4294901760, %v1945_v29  ;;  %v1767_v1 = vld [vmem:[%s22657_s5 + $0x28] sm:$0xff] }
 0x168   : > { %1822 = vrot.lane.b32.xlu0 %v15497_v7, %s14196_s23  ;;  %v15617_v60 = vsub.f32 %v1859_v10, %v15607_v63  ;;  %v15681_v49 = vand.u32 4294901760, %v15674_v0 }
 0x16a   : > { %v15625_v12 = vand.u32 4294901760, %v15617_v60  ;;  %v1953_v40 = vsub.f32 %v15674_v0, %v15681_v49 }
 0x16c   : > { %v1929_v58 = vsub.f32 %v15617_v60, %v15625_v12 }
 0x16e   : > { %v15642_v30 = vand.u32 4294901760, %v1929_v58 }
 0x16f   : > { %5806 = vrot.lane.b32.xlu2 %v15485_v43, %s14197_s28  ;;  %4219 = vrot.lane.b32.xlu1 %v15497_v7, %s14198_s9 }
 0x170   : > { %4217 = vrot.lane.b32.xlu0 %v15485_v43, %s14198_s9 }
 0x175   : > { %v15714_v39 = vpop.permute.xlu1 %2619 }
 0x176   : > { %v15537_v24 = vpop.permute.xlu0 %1820  ;;  %v2627_v35 = vsel %vm2623_vm7, 0.0, %v15714_v39 }
 0x177   : > { %6607 = vrot.lane.b32.xlu2 %v15497_v7, %s14199_s14  ;;  %6605 = vrot.lane.b32.xlu1 %v15485_v43, %s14199_s14  ;;  %v1828_v4 = vsel %vm1824_vm5, 0.0, %v15537_v24 }
 0x178   : > { %5808 = vrot.lane.b32.xlu0 %v15497_v7, %s14197_s28  ;;  %v1835_v19 = vmul.f32 %v15532_v61, %v1828_v4  ;;  %v15692_v4 = vand.u32 4294901760, %v1953_v40 }
 0x17a   : > { %v1872_v36 = vsel %vm1870_vm6, %v1835_v19, 0  ;;  %v1762_v19 = vld [vmem:[%s22657_s5] sm:$0xff] }
 0x17b   : > { %v1892_v50 = vand.u32 4294901760, %v1872_v36 }
 0x17d   : > { %1893 = vmatpush.msra.mxu0 %v1892_v50  ;;  %2088 = vmatpush.msra.mxu3 %v1892_v50  ;;  %v1975_v48 = vsub.f32 %v1872_v36, %v1892_v50  ;;  %v1766_v36 = vld [vmem:[%s22657_s5 + $0x20] sm:$0xff] }
 0x17e   : > { %1899 = vmatmul.f32.vlgmr.msra.gmra.mxu0 %v15555_v9  ;;  %2092 = vmatmul.f32.vlgmr.msra.gmra.mxu3 %v15527_v56 }
 0x17f   : > { %8203 = vrot.lane.b32.xlu2 %v15485_v43, %s14200_s17  ;;  %7406 = vrot.lane.b32.xlu1 %v15497_v7, %s14201_s18  ;;  %v1976_v27 = vand.u32 4294901760, %v1975_v48 }
 0x180   : > { %7404 = vrot.lane.b32.xlu0 %v15485_v43, %s14201_s18  ;;  %2030 = vmatpush.msra.mxu2 %v1975_v48 }
 0x181   : > { %2156 = vmatpush.msrb.mxu0 %v1976_v27  ;;  %v1977_v28 = vsub.f32 %v1975_v48, %v1976_v27  ;;  %2033 = vmatmul.f32.vlgmr.msra.gmra.mxu2 %v15512_v17 }
 0x183   : > { %v1978_v22 = vand.u32 4294901760, %v1977_v28  ;;  %v1764_v28 = vld [vmem:[%s22657_s5 + $0x10] sm:$0xff] }
 0x185   : > { %1979 = vmatpush.msra.mxu1 %v1978_v22 }
 0x186   : > { %1907 = vmatmul.f32.gmra.mxu0 %v15580_v26  ;;  %1981 = vmatmul.f32.vlgmr.msra.gmra.mxu1 %v15506_v20 }
 0x187   : > { %2206 = vmatpush.msrb.mxu1 %v1892_v50  ;;  %2098 = vmatmul.f32.gmra.mxu3 %v15558_v51  ;;  %v15712_v50 = vld [vmem:[%s22655_s3 + $0x2] sm:$0x3] }
 0x188   : > { %8205 = vrot.lane.b32.xlu0 %v15497_v7, %s14200_s17  ;;  %1807 = vperm.xlu1 %14181, %v1769_v45   ;;  %v15717_v48 = vperm.slane %v15712_v50, 0 }
 0x189   : > { %2038 = vmatmul.f32.gmra.mxu2 %v15542_v8  ;;  %1802 = vperm.xlu2 %14182, %v1768_v16  }
 0x18a   : > { %22974 = vst [vmem:[#allocation8_spill] sm:$0xff] %v15717_v48  ;;  %v2635_v27 = vmul.f32 %v15717_v48, %v2627_v35 }
 0x18c   : > { %v2671_v22 = vsel %vm1870_vm6, %v2635_v27, 0 }
 0x18d   : > { %v2691_v41 = vand.u32 4294901760, %v2671_v22 }
 0x18e   : > { %1915 = vmatmul.f32.gmra.mxu0 %v15602_v25  ;;  %1985 = vmatmul.f32.gmra.mxu1 %v15529_v62 }
 0x18f   : > { %2104 = vmatmul.f32.gmra.mxu3 %v15583_v18  ;;  %v2774_v10 = vsub.f32 %v2671_v22, %v2691_v41 }
 0x190   : > { %1797 = vperm.xlu0 %14183, %v1767_v1   ;;  %1792 = vperm.xlu1 %14181, %v1766_v36   ;;  %v15782_v1 = vperm.slane %v15712_v50, 1 }
 0x191   : > { %2043 = vmatmul.f32.gmra.mxu2 %v15570_v15  ;;  %1787 = vperm.xlu2 %14182, %v1765_v13   ;;  %v2775_v57 = vand.u32 4294901760, %v2774_v10 }
 0x192   : > { %22979 = vst [vmem:[#allocation11_spill] sm:$0xff] %v15782_v1 }
 0x193   : > { %v2776_v32 = vsub.f32 %v2774_v10, %v2775_v57 }
 0x195   : > { %v2777_v55 = vand.u32 4294901760, %v2776_v32 }
 0x196   : > { %1923 = vmatmul.f32.gmra.mxu0 %v15622_v47  ;;  %1989 = vmatmul.f32.gmra.mxu1 %v15560_v11 }
 0x197   : > { %2110 = vmatmul.f32.gmra.mxu3 %v15605_v53 }
 0x198   : > { %1772 = vperm.xlu0 %14183, %v1762_v19   ;;  %1782 = vperm.xlu1 %14181, %v1764_v28  }
 0x199   : > { %2048 = vmatmul.f32.gmra.mxu2 %v15595_v5  ;;  %1777 = vperm.xlu2 %14182, %v1763_v52  }
 0x19e   : > { %1931 = vmatmul.f32.gmra.mxu0 %v15642_v30  ;;  %1993 = vmatmul.f32.gmra.mxu1 %v15585_v3 }
 0x19f   : > { %2116 = vmatmul.f32.gmra.mxu3 %v15625_v12 }
 0x1a1   : > { %2053 = vmatmul.f32.gmra.mxu2 %v15617_v60 }
 0x1a6   : > { %1939 = vmatmul.f32.gmra.mxu0 %v15662_v42  ;;  %1997 = vmatmul.f32.gmra.mxu1 %v15607_v63 }
 0x1a7   : > { %2122 = vmatmul.f32.gmra.mxu3 %v15645_v33 }
 0x1a9   : > { %2058 = vmatmul.f32.gmra.mxu2 %v15637_v23 }
 0x1ae   : > { %1947 = vmatmul.f32.gmra.mxu0 %v15678_v21  ;;  %2001 = vmatmul.f32.gmra.mxu1 %v15627_v34 }
 0x1af   : > { %2128 = vmatmul.f32.gmra.mxu3 %v15665_v2 }
 0x1b1   : > { %2063 = vmatmul.f32.gmra.mxu2 %v15657_v31 }
 0x1b6   : > { %1955 = vmatmul.f32.gmra.mxu0 %v15692_v4  ;;  %2005 = vmatmul.f32.gmra.mxu1 %v15647_v14 }
 0x1b7   : > { %2134 = vmatmul.f32.gmra.mxu3 %v15681_v49 }
 0x1b9   : > { %2068 = vmatmul.f32.gmra.mxu2 %v15674_v0 }
 0x1be   : > { %2009 = vmatmul.f32.gmra.mxu1 %v15667_v38  ;;  %2158 = vmatmul.f32.vlgmr.msrb.gmra.mxu0 %v15506_v20 }
 0x1c6   : > { %2162 = vmatmul.f32.gmra.mxu0 %v15529_v62  ;;  %2208 = vmatmul.f32.vlgmr.msrb.gmra.mxu1 %v15506_v20 }
 0x1ce   : > { %2166 = vmatmul.f32.gmra.mxu0 %v15560_v11  ;;  %2212 = vmatmul.f32.gmra.mxu1 %v15529_v62 }
 0x1d6   : > { %2170 = vmatmul.f32.gmra.mxu0 %v15585_v3  ;;  %2216 = vmatmul.f32.gmra.mxu1 %v15560_v11 }
 0x1da   : > { %v1823_v46 = vpop.permute.xlu0 %1822 }
 0x1db   : > { %v1825_v58 = vsel %vm1824_vm5, %v15537_v24, %v1823_v46 }
 0x1dc   : > { %v1836_v59 = vmul.f32 %v15739_v54, %v1825_v58 }
 0x1de   : > { %v1875_v37 = vsel %vm1870_vm6, %v1836_v59, 0  ;;  %2174 = vmatmul.f32.gmra.mxu0 %v15607_v63  ;;  %2220 = vmatmul.f32.gmra.mxu1 %v15585_v3 }
 0x1df   : > { %v2255_v6 = vand.u32 4294901760, %v1875_v37 }
 0x1e1   : > { %v2338_v29 = vsub.f32 %v1875_v37, %v2255_v6  ;;  %2256 = vmatpush.msrb.mxu2 %v2255_v6  ;;  %2451 = vmatpush.msra.mxu1 %v2255_v6 }
 0x1e2   : > { %2262 = vmatmul.f32.vlgmr.msrb.gmra.mxu2 %v15555_v9 }
 0x1e3   : > { %2778 = vmatpush.msrb.mxu1 %v2777_v55  ;;  %2393 = vmatpush.msra.mxu0 %v2338_v29  ;;  %v2339_v44 = vand.u32 4294901760, %v2338_v29 }
 0x1e5   : > { %2692 = vmatpush.msrb.mxu0 %v2691_v41  ;;  %2519 = vmatpush.msra.mxu2 %v2339_v44  ;;  %v2340_v24 = vsub.f32 %v2338_v29, %v2339_v44 }
 0x1e6   : > { %2178 = vmatmul.f32.gmra.mxu0 %v15627_v34  ;;  %2224 = vmatmul.f32.gmra.mxu1 %v15607_v63 }
 0x1e7   : > { %2829 = vmatpush.msrb.mxu2 %v2774_v10  ;;  %v2341_v40 = vand.u32 4294901760, %v2340_v24 }
 0x1e9   : > { %2342 = vmatpush.msrb.mxu3 %v2341_v40 }
 0x1ea   : > { %2270 = vmatmul.f32.gmra.mxu2 %v15580_v26  ;;  %2344 = vmatmul.f32.vlgmr.msrb.gmra.mxu3 %v15506_v20 }
 0x1eb   : > { %2569 = vmatpush.msra.mxu3 %v2255_v6 }
 0x1ed   : > { %2887 = vmatpush.msrb.mxu3 %v2691_v41 }
 0x1ee   : > { %2182 = vmatmul.f32.gmra.mxu0 %v15647_v14  ;;  %2228 = vmatmul.f32.gmra.mxu1 %v15627_v34 }
 0x1f2   : > { %2278 = vmatmul.f32.gmra.mxu2 %v15602_v25  ;;  %2348 = vmatmul.f32.gmra.mxu3 %v15529_v62 }
 0x1f6   : > { %2186 = vmatmul.f32.gmra.mxu0 %v15667_v38  ;;  %2232 = vmatmul.f32.gmra.mxu1 %v15647_v14 }
 0x1fa   : > { %2286 = vmatmul.f32.gmra.mxu2 %v15622_v47  ;;  %2352 = vmatmul.f32.gmra.mxu3 %v15560_v11 }
 0x1fb   : > { %v15763_v9 = vpop.f32.mrf.mxu0 }
 0x1fe   : > { %2396 = vmatmul.f32.vlgmr.msra.gmra.mxu0 %v15512_v17  ;;  %2236 = vmatmul.f32.gmra.mxu1 %v15667_v38 }
 0x1ff   : > { %2955 = vmatpush.msra.mxu0 %v2775_v57 }
 0x202   : > { %2294 = vmatmul.f32.gmra.mxu2 %v15642_v30  ;;  %2356 = vmatmul.f32.gmra.mxu3 %v15585_v3  ;;  %v2622_v30 = vpop.permute.xlu1 %2621 }
 0x203   : > { %v15769_v26 = vpop.f32.mrf.mxu0  ;;  %v15771_v25 = vpop.f32.mrf.mxu1 }
 0x204   : > { %22976 = vst [vmem:[#allocation6_spill] sm:$0xff] %v15769_v26  ;;  %v15796_v36 = vpop.f32.mrf.mxu2 }
 0x205   : > { %22982 = vst [vmem:[#allocation14_spill] sm:$0xff] %v15796_v36 }
 0x206   : > { %2401 = vmatmul.f32.gmra.mxu0 %v15542_v8  ;;  %2455 = vmatmul.f32.vlgmr.msra.gmra.mxu1 %v15527_v56  ;;  %v2624_v8 = vsel %vm2623_vm7, %v15714_v39, %v2622_v30  ;;  %v15811_v39 = vpop.f32.mrf.mxu3 }
 0x207   : > { %3005 = vmatpush.msra.mxu1 %v2691_v41  ;;  %v2636_v56 = vmul.f32 %v15782_v1, %v2624_v8  ;;  %22985 = vst [vmem:[#allocation17_spill] sm:$0xff] %v15811_v39 }
 0x209   : > { %v2674_v19 = vsel %vm1870_vm6, %v2636_v56, 0 }
 0x20a   : > { %2302 = vmatmul.f32.gmra.mxu2 %v15662_v42  ;;  %2360 = vmatmul.f32.gmra.mxu3 %v15607_v63 }
 0x20b   : > { %v15777_v17 = vpop.f32.mrf.mxu0  ;;  %v15779_v47 = vpop.f32.mrf.mxu1 }
 0x20c   : > { %22977 = vst [vmem:[#allocation7_spill] sm:$0xff] %v15777_v17 }
 0x20d   : > { %22978 = vst [vmem:[#allocation10_spill] sm:$0xff] %v15779_v47 }
 0x20e   : > { %2406 = vmatmul.f32.gmra.mxu0 %v15570_v15  ;;  %2461 = vmatmul.f32.gmra.mxu1 %v15558_v51  ;;  %v15800_v15 = vand.u32 4294901760, %v2674_v19  ;;  %v15834_v16 = vpop.f32.mrf.mxu3 }
 0x20f   : > { %22989 = vst [vmem:[#allocation21_spill] sm:$0xff] %v15834_v16 }
 0x210   : > { %v15809_v50 = vsub.f32 %v2674_v19, %v15800_v15 }
 0x212   : > { %2310 = vmatmul.f32.gmra.mxu2 %v15678_v21  ;;  %2364 = vmatmul.f32.gmra.mxu3 %v15627_v34 }
 0x213   : > { %v15791_v42 = vpop.f32.mrf.mxu0  ;;  %v15793_v45 = vpop.f32.mrf.mxu1 }
 0x214   : > { %22980 = vst [vmem:[#allocation12_spill] sm:$0xff] %v15791_v42 }
 0x215   : > { %22981 = vst [vmem:[#allocation13_spill] sm:$0xff] %v15793_v45 }
 0x216   : > { %2411 = vmatmul.f32.gmra.mxu0 %v15595_v5  ;;  %2467 = vmatmul.f32.gmra.mxu1 %v15583_v18  ;;  %v15815_v18 = vpop.f32.mrf.mxu2  ;;  %v22715_v5 = vand.u32 4294901760, %v15809_v50  ;;  %v15855_v57 = vpop.f32.mrf.mxu3 }
 0x217   : > { %22986 = vst [vmem:[#allocation18_spill] sm:$0xff] %v15815_v18 }
 0x218   : > { %22993 = vst [vmem:[#allocation25_spill] sm:$0xff] %v15855_v57 }
 0x21a   : > { %2318 = vmatmul.f32.gmra.mxu2 %v15692_v4  ;;  %2368 = vmatmul.f32.gmra.mxu3 %v15647_v14 }
 0x21b   : > { %v15804_v51 = vpop.f32.mrf.mxu0  ;;  %v15806_v21 = vpop.f32.mrf.mxu1 }
 0x21c   : > { %22983 = vst [vmem:[#allocation15_spill] sm:$0xff] %v15804_v51 }
 0x21d   : > { %22984 = vst [vmem:[#allocation16_spill] sm:$0xff] %v15806_v21 }
 0x21e   : > { %2416 = vmatmul.f32.gmra.mxu0 %v15617_v60  ;;  %2473 = vmatmul.f32.gmra.mxu1 %v15605_v53  ;;  %v14081_v60 = vld [vmem:[%s22656_s4 + $0x40] sm:$0xff]  ;;  %v3139_v53 = vsub.f32 %v15809_v50, %v22715_v5  ;;  %v15836_v22 = vpop.f32.mrf.mxu2  ;;  %v15894_v24 = vpop.f32.mrf.mxu3 }
 0x21f   : > { %v2647_v27 = vsel %vm1845_vm4, %v14081_v60, 0  ;;  %22990 = vst [vmem:[#allocation22_spill] sm:$0xff] %v15836_v22 }
 0x220   : > { %v3140_v28 = vand.u32 4294901760, %v3139_v53  ;;  %v15840_v41 = vand.u32 4294901760, %v2647_v27  ;;  %22999 = vst [vmem:[#allocation31_spill] sm:$0xff] %v15894_v24 }
 0x222   : > { %2372 = vmatmul.f32.gmra.mxu3 %v15667_v38  ;;  %2521 = vmatmul.f32.vlgmr.msra.gmra.mxu2 %v15506_v20 }
 0x223   : > { %3055 = vmatpush.msra.mxu2 %v15800_v15  ;;  %v15821_v4 = vpop.f32.mrf.mxu0  ;;  %v15823_v35 = vpop.f32.mrf.mxu1 }
 0x224   : > { %22987 = vst [vmem:[#allocation19_spill] sm:$0xff] %v15821_v4 }
 0x225   : > { %22988 = vst [vmem:[#allocation20_spill] sm:$0xff] %v15823_v35 }
 0x226   : > { %2421 = vmatmul.f32.gmra.mxu0 %v15637_v23  ;;  %2479 = vmatmul.f32.gmra.mxu1 %v15625_v12  ;;  %v14082_v12 = vld [vmem:[%s22656_s4 + $0x48] sm:$0xff]  ;;  %v15851_v23 = vsub.f32 %v2647_v27, %v15840_v41  ;;  %v15868_v59 = vpop.f32.mrf.mxu2 }
 0x227   : > { %22996 = vst [vmem:[#allocation28_spill] sm:$0xff] %v15868_v59 }
 0x228   : > { %v15860_v52 = vand.u32 4294901760, %v15851_v23 }
 0x22a   : > { %2525 = vmatmul.f32.gmra.mxu2 %v15529_v62  ;;  %2571 = vmatmul.f32.vlgmr.msra.gmra.mxu3 %v15506_v20  ;;  %v2650_v20 = vsel %vm1845_vm4, %v14082_v12, 0 }
 0x22b   : > { %3141 = vmatpush.msra.mxu3 %v3140_v28  ;;  %v15842_v13 = vpop.f32.mrf.mxu0  ;;  %v15844_v10 = vpop.f32.mrf.mxu1  ;;  %v15862_v46 = vand.u32 4294901760, %v2650_v20 }
 0x22c   : > { %22991 = vst [vmem:[#allocation23_spill] sm:$0xff] %v15842_v13  ;;  %v15926_v28 = vpop.f32.mrf.mxu3 }
 0x22d   : > { %22992 = vst [vmem:[#allocation24_spill] sm:$0xff] %v15844_v10  ;;  %v15877_v32 = vsub.f32 %v2650_v20, %v15862_v46  ;;  %v23015_v10 = vand.u32 4294901760, %v15809_v50 }
 0x22e   : > { %2426 = vmatmul.f32.gmra.mxu0 %v15657_v31  ;;  %2485 = vmatmul.f32.gmra.mxu1 %v15645_v33  ;;  %v14083_v33 = vld [vmem:[%s22656_s4 + $0x50] sm:$0xff]  ;;  %v15899_v40 = vpop.f32.mrf.mxu2  ;;  %23003 = vst [vmem:[#allocation35_spill] sm:$0xff] %v15926_v28 }
 0x22f   : > { %v2653_v37 = vsel %vm1845_vm4, %v14083_v33, 0  ;;  %v15886_v55 = vand.u32 4294901760, %v15877_v32  ;;  %23000 = vst [vmem:[#allocation32_spill] sm:$0xff] %v15899_v40 }
 0x232   : > { %2529 = vmatmul.f32.gmra.mxu2 %v15560_v11  ;;  %2575 = vmatmul.f32.gmra.mxu3 %v15529_v62  ;;  %v2696_v62 = vsub.f32 %v15851_v23, %v15860_v52 }
 0x233   : > { %v15864_v58 = vpop.f32.mrf.mxu0  ;;  %v15866_v31 = vpop.f32.mrf.mxu1 }
 0x234   : > { %22994 = vst [vmem:[#allocation26_spill] sm:$0xff] %v15864_v58  ;;  %v15883_v6 = vand.u32 4294901760, %v2696_v62  ;;  %v15963_v1 = vpop.f32.mrf.mxu3 }
 0x235   : > { %22995 = vst [vmem:[#allocation27_spill] sm:$0xff] %v15866_v31 }
 0x236   : > { %2431 = vmatmul.f32.gmra.mxu0 %v15674_v0  ;;  %2491 = vmatmul.f32.gmra.mxu1 %v15665_v2  ;;  %v15888_v0 = vand.u32 4294901760, %v2653_v37  ;;  %v14084_v2 = vld [vmem:[%s22656_s4 + $0x58] sm:$0xff]  ;;  %v15936_v33 = vpop.f32.mrf.mxu2  ;;  %23007 = vst [vmem:[#allocation39_spill] sm:$0xff] %v15963_v1 }
 0x237   : > { %v2656_v8 = vsel %vm1845_vm4, %v14084_v2, 0  ;;  %23004 = vst [vmem:[#allocation36_spill] sm:$0xff] %v15936_v33 }
 0x238   : > { %v15905_v30 = vsub.f32 %v2653_v37, %v15888_v0  ;;  %v15917_v60 = vand.u32 4294901760, %v2656_v8 }
 0x23a   : > { %2533 = vmatmul.f32.gmra.mxu2 %v15585_v3  ;;  %2579 = vmatmul.f32.gmra.mxu3 %v15560_v11  ;;  %v2704_v11 = vsub.f32 %v15877_v32, %v15886_v55  ;;  %v15915_v19 = vand.u32 4294901760, %v15905_v30  ;;  %v15932_v12 = vsub.f32 %v2656_v8, %v15917_v60 }
 0x23b   : > { %v15890_v29 = vpop.f32.mrf.mxu1  ;;  %v15892_v44 = vpop.f32.mrf.mxu0 }
 0x23c   : > { %22997 = vst [vmem:[#allocation29_spill] sm:$0xff] %v15890_v29  ;;  %v15912_v56 = vand.u32 4294901760, %v2704_v11  ;;  %v15944_v37 = vand.u32 4294901760, %v15932_v12  ;;  %v15991_v58 = vpop.f32.mrf.mxu3 }
 0x23d   : > { %22998 = vst [vmem:[#allocation30_spill] sm:$0xff] %v15892_v44 }
 0x23e   : > { %2698 = vmatmul.f32.vlgmr.msrb.gmra.mxu0 %v15883_v6  ;;  %2497 = vmatmul.f32.gmra.mxu1 %v15681_v49  ;;  %v14085_v49 = vld [vmem:[%s22656_s4 + $0x60] sm:$0xff]  ;;  %v15965_v48 = vpop.f32.mrf.mxu2  ;;  %23011 = vst [vmem:[#allocation43_spill] sm:$0xff] %v15991_v58 }
 0x23f   : > { %3192 = vmatpush.msrb.mxu0 %v15809_v50  ;;  %v2659_v20 = vsel %vm1845_vm4, %v14085_v49, 0  ;;  %v14086_v49 = vld [vmem:[%s22656_s4 + $0x68] sm:$0xff]  ;;  %23008 = vst [vmem:[#allocation40_spill] sm:$0xff] %v15965_v48  ;;  %v16046_v50 = vld [vmem:[%s22655_s3 + $0x4] sm:$0x3] }
 0x240   : > { %v15946_v2 = vand.u32 4294901760, %v2659_v20  ;;  %v2662_v5 = vsel %vm1845_vm4, %v14086_v49, 0  ;;  %v14087_v49 = vld [vmem:[%s22656_s4 + $0x70] sm:$0xff] }
 0x241   : > { %v15974_v7 = vand.u32 4294901760, %v2662_v5  ;;  %v2665_v29 = vsel %vm1845_vm4, %v14087_v49, 0  ;;  %v14088_v49 = vld [vmem:[%s22656_s4 + $0x78] sm:$0xff] }
 0x242   : > { %2537 = vmatmul.f32.gmra.mxu2 %v15607_v63  ;;  %2583 = vmatmul.f32.gmra.mxu3 %v15585_v3  ;;  %v2712_v3 = vsub.f32 %v15905_v30, %v15915_v19  ;;  %v16000_v31 = vand.u32 4294901760, %v2665_v29  ;;  %v2668_v33 = vsel %vm1845_vm4, %v14088_v49, 0 }
 0x243   : > { %v15919_v53 = vpop.f32.mrf.mxu0  ;;  %v15921_v27 = vpop.f32.mrf.mxu1  ;;  %v16026_v28 = vand.u32 4294901760, %v2668_v33 }
 0x244   : > { %23001 = vst [vmem:[#allocation33_spill] sm:$0xff] %v15919_v53  ;;  %v15941_v62 = vand.u32 4294901760, %v2712_v3  ;;  %v15959_v3 = vsub.f32 %v2659_v20, %v15946_v2 }
 0x245   : > { %23002 = vst [vmem:[#allocation34_spill] sm:$0xff] %v15921_v27 }
 0x246   : > { %2706 = vmatmul.f32.gmra.mxu0 %v15912_v56  ;;  %2780 = vmatmul.f32.vlgmr.msrb.gmra.mxu1 %v15840_v41  ;;  %v15972_v61 = vand.u32 4294901760, %v15959_v3  ;;  %v16009_v58 = vpop.f32.mrf.mxu2 }
 0x247   : > { %3250 = vmatpush.msrb.mxu1 %v15800_v15  ;;  %23014 = vst [vmem:[#allocation46_spill] sm:$0xff] %v16009_v58 }
 0x24a   : > { %2541 = vmatmul.f32.gmra.mxu2 %v15627_v34  ;;  %2587 = vmatmul.f32.gmra.mxu3 %v15607_v63  ;;  %v2720_v63 = vsub.f32 %v15932_v12, %v15944_v37 }
 0x24b   : > { %v15948_v11 = vpop.f32.mrf.mxu0  ;;  %v15950_v8 = vpop.f32.mrf.mxu1 }
 0x24c   : > { %23005 = vst [vmem:[#allocation37_spill] sm:$0xff] %v15948_v11  ;;  %v15969_v54 = vand.u32 4294901760, %v2720_v63  ;;  %v15987_v63 = vsub.f32 %v2662_v5, %v15974_v7 }
 0x24d   : > { %23006 = vst [vmem:[#allocation38_spill] sm:$0xff] %v15950_v8 }
 0x24e   : > { %2714 = vmatmul.f32.gmra.mxu0 %v15941_v62  ;;  %2784 = vmatmul.f32.gmra.mxu1 %v15862_v46  ;;  %v15998_v1 = vand.u32 4294901760, %v15987_v63 }
 0x252   : > { %2545 = vmatmul.f32.gmra.mxu2 %v15647_v14  ;;  %2591 = vmatmul.f32.gmra.mxu3 %v15627_v34  ;;  %v2728_v34 = vsub.f32 %v15959_v3, %v15972_v61 }
 0x253   : > { %v15976_v20 = vpop.f32.mrf.mxu0  ;;  %v15978_v43 = vpop.f32.mrf.mxu1 }
 0x254   : > { %23009 = vst [vmem:[#allocation41_spill] sm:$0xff] %v15976_v20  ;;  %v15995_v48 = vand.u32 4294901760, %v2728_v34  ;;  %v16015_v34 = vsub.f32 %v2665_v29, %v16000_v31 }
 0x255   : > { %23010 = vst [vmem:[#allocation42_spill] sm:$0xff] %v15978_v43 }
 0x256   : > { %2722 = vmatmul.f32.gmra.mxu0 %v15969_v54  ;;  %2788 = vmatmul.f32.gmra.mxu1 %v15888_v0  ;;  %v16024_v58 = vand.u32 4294901760, %v16015_v34 }
 0x25a   : > { %2549 = vmatmul.f32.gmra.mxu2 %v15667_v38  ;;  %2595 = vmatmul.f32.gmra.mxu3 %v15647_v14  ;;  %v2736_v14 = vsub.f32 %v15987_v63, %v15998_v1 }
 0x25b   : > { %v16002_v13 = vpop.f32.mrf.mxu0  ;;  %v16004_v5 = vpop.f32.mrf.mxu1 }
 0x25c   : > { %23012 = vst [vmem:[#allocation44_spill] sm:$0xff] %v16002_v13  ;;  %v16021_v13 = vand.u32 4294901760, %v2736_v14  ;;  %v16040_v14 = vsub.f32 %v2668_v33, %v16026_v28  ;;  %v16058_v33 = vperm.slane %v16046_v50, 0 }
 0x25d   : > { %23013 = vst [vmem:[#allocation45_spill] sm:$0xff] %v16004_v5  ;;  %v16034_v5 = vpop.f32.mrf.mxu3 }
 0x25e   : > { %2730 = vmatmul.f32.gmra.mxu0 %v15995_v48  ;;  %2792 = vmatmul.f32.gmra.mxu1 %v15917_v60  ;;  %23018 = vst [vmem:[#allocation49_spill] sm:$0xff] %v16034_v5 }
 0x25f   : > { %23019 = vst [vmem:[#allocation50_spill] sm:$0xff] %v16058_v33 }
 0x262   : > { %2599 = vmatmul.f32.gmra.mxu3 %v15667_v38  ;;  %2832 = vmatmul.f32.vlgmr.msrb.gmra.mxu2 %v15851_v23  ;;  %v2744_v38 = vsub.f32 %v16015_v34, %v16024_v58 }
 0x263   : > { %3318 = vmatpush.msrb.mxu2 %v23015_v10  ;;  %v16030_v29 = vpop.f32.mrf.mxu0  ;;  %v16032_v4 = vpop.f32.mrf.mxu1 }
 0x264   : > { %23016 = vst [vmem:[#allocation47_spill] sm:$0xff] %v16030_v29  ;;  %v16048_v10 = vpop.permute.xlu2 %3418  ;;  %v16052_v5 = vand.u32 4294901760, %v2744_v38  ;;  %v16055_v29 = vand.u32 4294901760, %v16040_v14 }
 0x265   : > { %23017 = vst [vmem:[#allocation48_spill] sm:$0xff] %v16032_v4  ;;  %v2263_v49 = vpop.f32.mrf.mxu2  ;;  %v3426_v40 = vsel %vm3422_vm8, 0.0, %v16048_v10 }
 0x266   : > { %2738 = vmatmul.f32.gmra.mxu0 %v16021_v13  ;;  %2796 = vmatmul.f32.gmra.mxu1 %v15946_v2  ;;  %v2752_v38 = vsub.f32 %v16040_v14, %v16055_v29  ;;  %v3434_v43 = vmul.f32 %v16058_v33, %v3426_v40 }
 0x26a   : > { %2837 = vmatmul.f32.gmra.mxu2 %v15877_v32  ;;  %2891 = vmatmul.f32.vlgmr.msrb.gmra.mxu3 %v15860_v52 }
 0x26b   : > { %3368 = vmatpush.msrb.mxu3 %v15800_v15  ;;  %v16061_v4 = vpop.f32.mrf.mxu0  ;;  %v16065_v20 = vpop.f32.mrf.mxu1  ;;  %v16076_v15 = vand.u32 4294901760, %v2752_v38 }
 0x26c   : > { %23020 = vst [vmem:[#allocation51_spill] sm:$0xff] %v16061_v4  ;;  %v3470_v4 = vsel %vm1870_vm6, %v3434_v43, 0 }
 0x26d   : > { %23021 = vst [vmem:[#allocation52_spill] sm:$0xff] %v16065_v20  ;;  %v2271_v24 = vpop.f32.mrf.mxu2  ;;  %v2345_v35 = vpop.f32.mrf.mxu3  ;;  %v16083_v11 = vand.u32 4294901760, %v3470_v4 }
 0x26e   : > { %v16067_v51 = vadd.f32 %v2345_v35, %v2263_v49  ;;  %2746 = vmatmul.f32.gmra.mxu0 %v16052_v5  ;;  %2800 = vmatmul.f32.gmra.mxu1 %v15974_v7 }
 0x26f   : > { %v16090_v40 = vsub.f32 %v3470_v4, %v16083_v11 }
 0x272   : > { %2842 = vmatmul.f32.gmra.mxu2 %v15905_v30  ;;  %2897 = vmatmul.f32.gmra.mxu3 %v15886_v55 }
 0x273   : > { %v16079_v20 = vpop.f32.mrf.mxu0  ;;  %v16081_v35 = vpop.f32.mrf.mxu1 }
 0x274   : > { %23022 = vst [vmem:[#allocation53_spill] sm:$0xff] %v16079_v20 }
 0x275   : > { %23023 = vst [vmem:[#allocation54_spill] sm:$0xff] %v16081_v35  ;;  %v2279_v49 = vpop.f32.mrf.mxu2  ;;  %v2349_v59 = vpop.f32.mrf.mxu3 }
 0x276   : > { %v16085_v57 = vadd.f32 %v2349_v59, %v2271_v24  ;;  %2754 = vmatmul.f32.gmra.mxu0 %v16076_v15  ;;  %2804 = vmatmul.f32.gmra.mxu1 %v16000_v31  ;;  %v22728_v59 = vand.u32 4294901760, %v16090_v40 }
 0x278   : > { %v3575_v4 = vsub.f32 %v16090_v40, %v22728_v59 }
 0x27a   : > { %2847 = vmatmul.f32.gmra.mxu2 %v15932_v12  ;;  %2903 = vmatmul.f32.gmra.mxu3 %v15915_v19  ;;  %v3576_v42 = vand.u32 4294901760, %v3575_v4 }
 0x27b   : > { %v2397_v43 = vpop.f32.mrf.mxu0  ;;  %v16094_v38 = vpop.f32.mrf.mxu1 }
 0x27c   : > { %23024 = vst [vmem:[#allocation55_spill] sm:$0xff] %v16094_v38 }
 0x27d   : > { %v2287_v33 = vpop.f32.mrf.mxu2  ;;  %v2353_v20 = vpop.f32.mrf.mxu3 }
 0x27e   : > { %v16096_v35 = vadd.f32 %v2353_v20, %v2279_v49  ;;  %2957 = vmatmul.f32.vlgmr.msra.gmra.mxu0 %v15840_v41  ;;  %2808 = vmatmul.f32.gmra.mxu1 %v16026_v28 }
 0x27f   : > { %3491 = vmatpush.msra.mxu0 %v16083_v11 }
 0x282   : > { %2852 = vmatmul.f32.gmra.mxu2 %v15959_v3  ;;  %2909 = vmatmul.f32.gmra.mxu3 %v15944_v37 }
 0x283   : > { %v2402_v24 = vpop.f32.mrf.mxu0  ;;  %v2456_v38 = vpop.f32.mrf.mxu1 }
 0x285   : > { %v2295_v20 = vpop.f32.mrf.mxu2  ;;  %v2357_v49 = vpop.f32.mrf.mxu3 }
 0x286   : > { %v16107_v21 = vadd.f32 %v2357_v49, %v2287_v33  ;;  %2961 = vmatmul.f32.gmra.mxu0 %v15862_v46  ;;  %3007 = vmatmul.f32.vlgmr.msra.gmra.mxu1 %v15840_v41 }
 0x287   : > { %3577 = vmatpush.msra.mxu1 %v3576_v42 }
 0x28a   : > { %2857 = vmatmul.f32.gmra.mxu2 %v15987_v63  ;;  %2915 = vmatmul.f32.gmra.mxu3 %v15972_v61 }
 0x28b   : > { %v2407_v8 = vpop.f32.mrf.mxu0  ;;  %v2462_v22 = vpop.f32.mrf.mxu1 }
 0x28d   : > { %v2303_v53 = vpop.f32.mrf.mxu2  ;;  %v2361_v59 = vpop.f32.mrf.mxu3 }
 0x28e   : > { %v16113_v16 = vadd.f32 %v2361_v59, %v2295_v20  ;;  %2965 = vmatmul.f32.gmra.mxu0 %v15888_v0  ;;  %3011 = vmatmul.f32.gmra.mxu1 %v15862_v46 }
 0x292   : > { %2862 = vmatmul.f32.gmra.mxu2 %v16015_v34  ;;  %2921 = vmatmul.f32.gmra.mxu3 %v15998_v1 }
 0x293   : > { %v2412_v33 = vpop.f32.mrf.mxu0  ;;  %v2468_v42 = vpop.f32.mrf.mxu1 }
 0x295   : > { %v2311_v4 = vpop.f32.mrf.mxu2  ;;  %v2365_v49 = vpop.f32.mrf.mxu3 }
 0x296   : > { %v16119_v45 = vadd.f32 %v2365_v49, %v2303_v53  ;;  %2969 = vmatmul.f32.gmra.mxu0 %v15917_v60  ;;  %3015 = vmatmul.f32.gmra.mxu1 %v15888_v0  ;;  %v2398_v53 = vadd.f32 %v2397_v43, %v16067_v51  ;;  %v2403_v51 = vadd.f32 %v2402_v24, %v16085_v57 }
 0x297   : > { %v2408_v57 = vadd.f32 %v2407_v8, %v16096_v35 }
 0x298   : > { %v2457_v44 = vadd.f32 %v2456_v38, %v2398_v53  ;;  %v2463_v43 = vadd.f32 %v2462_v22, %v2403_v51 }
 0x29a   : > { %2867 = vmatmul.f32.gmra.mxu2 %v16040_v14  ;;  %2927 = vmatmul.f32.gmra.mxu3 %v16024_v58 }
 0x29b   : > { %v2417_v59 = vpop.f32.mrf.mxu0  ;;  %v2474_v20 = vpop.f32.mrf.mxu1 }
 0x29d   : > { %v2319_v17 = vpop.f32.mrf.mxu2  ;;  %v2369_v27 = vpop.f32.mrf.mxu3 }
 0x29e   : > { %v16125_v18 = vadd.f32 %v2369_v27, %v2311_v4  ;;  %2973 = vmatmul.f32.gmra.mxu0 %v15946_v2  ;;  %3019 = vmatmul.f32.gmra.mxu1 %v15917_v60 }
 0x2a2   : > { %2933 = vmatmul.f32.gmra.mxu3 %v16055_v29  ;;  %3061 = vmatmul.f32.vlgmr.msra.gmra.mxu2 %v15883_v6 }
 0x2a3   : > { %3628 = vmatpush.msra.mxu2 %v16090_v40  ;;  %v2422_v49 = vpop.f32.mrf.mxu0  ;;  %v2480_v39 = vpop.f32.mrf.mxu1 }
 0x2a5   : > { %v2373_v47 = vpop.f32.mrf.mxu3  ;;  %v2522_v26 = vpop.f32.mrf.mxu2 }
 0x2a6   : > { %v16133_v36 = vadd.f32 %v2373_v47, %v2319_v17  ;;  %v2523_v27 = vadd.f32 %v2522_v26, %v2457_v44  ;;  %2977 = vmatmul.f32.gmra.mxu0 %v15974_v7  ;;  %3023 = vmatmul.f32.gmra.mxu1 %v15946_v2 }
 0x2aa   : > { %3069 = vmatmul.f32.gmra.mxu2 %v15912_v56  ;;  %3143 = vmatmul.f32.vlgmr.msra.gmra.mxu3 %v15840_v41  ;;  %v2469_v56 = vadd.f32 %v2468_v42, %v2408_v57 }
 0x2ab   : > { %3686 = vmatpush.msra.mxu3 %v16083_v11  ;;  %v16141_v6 = vpop.f32.mrf.mxu0  ;;  %v2486_v38 = vpop.f32.mrf.mxu1 }
 0x2ad   : > { %v2526_v4 = vpop.f32.mrf.mxu2  ;;  %v2572_v17 = vpop.f32.mrf.mxu3 }
 0x2ae   : > { %v2527_v47 = vadd.f32 %v2526_v4, %v2463_v43  ;;  %v16143_v26 = vadd.f32 %v2572_v17, %v2523_v27  ;;  %2981 = vmatmul.f32.gmra.mxu0 %v16000_v31  ;;  %3027 = vmatmul.f32.gmra.mxu1 %v15974_v7  ;;  %v2413_v27 = vadd.f32 %v2412_v33, %v16107_v21 }
 0x2b0   : > { %v2475_v8 = vadd.f32 %v2474_v20, %v2413_v27 }
 0x2b2   : > { %3077 = vmatmul.f32.gmra.mxu2 %v15941_v62  ;;  %3147 = vmatmul.f32.gmra.mxu3 %v15862_v46 }
 0x2b3   : > { %v16150_v44 = vpop.f32.mrf.mxu0  ;;  %v2492_v22 = vpop.f32.mrf.mxu1 }
 0x2b5   : > { %v2530_v24 = vpop.f32.mrf.mxu2  ;;  %v2576_v53 = vpop.f32.mrf.mxu3 }
 0x2b6   : > { %v2531_v51 = vadd.f32 %v2530_v24, %v2469_v56  ;;  %v16152_v43 = vadd.f32 %v2576_v53, %v2527_v47  ;;  %2985 = vmatmul.f32.gmra.mxu0 %v16026_v28  ;;  %3031 = vmatmul.f32.gmra.mxu1 %v16000_v31  ;;  %v23025_v47 = vand.u32 4294901760, %v16090_v40 }
 0x2ba   : > { %3085 = vmatmul.f32.gmra.mxu2 %v15969_v54  ;;  %3151 = vmatmul.f32.gmra.mxu3 %v15888_v0  ;;  %v2418_v54 = vadd.f32 %v2417_v59, %v16113_v16  ;;  %v2423_v16 = vadd.f32 %v2422_v49, %v16119_v45  ;;  %v2428_v49 = vadd.f32 %v16141_v6, %v16125_v18 }
 0x2bb   : > { %v16159_v62 = vpop.f32.mrf.mxu0  ;;  %v2498_v35 = vpop.f32.mrf.mxu1  ;;  %v2433_v6 = vadd.f32 %v16150_v44, %v16133_v36 }
 0x2bc   : > { %v2481_v33 = vadd.f32 %v2480_v39, %v2418_v54  ;;  %v3421_v39 = vpop.permute.xlu2 %3420 }
 0x2bd   : > { %v2534_v42 = vpop.f32.mrf.mxu2  ;;  %v2580_v4 = vpop.f32.mrf.mxu3  ;;  %v3423_v45 = vsel %vm3422_vm8, %v16048_v10, %v3421_v39  ;;  %v2499_v54 = vadd.f32 %v2498_v35, %v2433_v6 }
 0x2be   : > { %v2535_v17 = vadd.f32 %v2534_v42, %v2475_v8  ;;  %v16161_v57 = vadd.f32 %v2580_v4, %v2531_v51  ;;  %3195 = vmatmul.f32.vlgmr.msrb.gmra.mxu0 %v15851_v23  ;;  %3035 = vmatmul.f32.gmra.mxu1 %v16026_v28  ;;  %v2487_v23 = vadd.f32 %v2486_v38, %v2423_v16 }
 0x2bf   : > { %3754 = vmatpush.msrb.mxu0 %v23025_v47  ;;  %v2493_v38 = vadd.f32 %v2492_v22, %v2428_v49 }
 0x2c2   : > { %3093 = vmatmul.f32.gmra.mxu2 %v15995_v48  ;;  %3155 = vmatmul.f32.gmra.mxu3 %v15917_v60 }
 0x2c3   : > { %v16170_v21 = vpop.f32.mrf.mxu0  ;;  %v2781_v20 = vpop.f32.mrf.mxu1 }
 0x2c4   : > { %v2782_v16 = vadd.f32 %v2781_v20, %v16159_v62 }
 0x2c5   : > { %v2538_v56 = vpop.f32.mrf.mxu2  ;;  %v2584_v24 = vpop.f32.mrf.mxu3 }
 0x2c6   : > { %v2539_v53 = vadd.f32 %v2538_v56, %v2481_v33  ;;  %v16172_v51 = vadd.f32 %v2584_v24, %v2535_v17  ;;  %3200 = vmatmul.f32.gmra.mxu0 %v15877_v32  ;;  %3254 = vmatmul.f32.vlgmr.msrb.gmra.mxu1 %v15860_v52  ;;  %v16185_v32 = vperm.slane %v16046_v50, 1 }
 0x2c7   : > { %3804 = vmatpush.msrb.mxu1 %v16083_v11  ;;  %v16194_v11 = vpop.permute.xlu0 %4217 }
 0x2c8   : > { %23026 = vst [vmem:[#allocation56_spill] sm:$0xff] %v16172_v51  ;;  %v23076_v51 = vld [vmem:[#allocation44_spill] sm:$0xff] }
 0x2c9   : > { %23027 = vst [vmem:[#allocation57_spill] sm:$0xff] %v16185_v32 }
 0x2ca   : > { %3101 = vmatmul.f32.gmra.mxu2 %v16021_v13  ;;  %3159 = vmatmul.f32.gmra.mxu3 %v15946_v2  ;;  %v3435_v13 = vmul.f32 %v16185_v32, %v3423_v45  ;;  %23029 = vst [vmem:[#allocation59_spill] sm:$0xff] %v16194_v11 }
 0x2cb   : > { %v16180_v48 = vpop.f32.mrf.mxu0  ;;  %v16182_v40 = vpop.f32.mrf.mxu1 }
 0x2cd   : > { %v2542_v59 = vpop.f32.mrf.mxu2  ;;  %v2588_v27 = vpop.f32.mrf.mxu3 }
 0x2ce   : > { %v2543_v52 = vadd.f32 %v2542_v59, %v2487_v23  ;;  %v16187_v8 = vadd.f32 %v2588_v27, %v2539_v53  ;;  %3205 = vmatmul.f32.gmra.mxu0 %v15905_v30  ;;  %3260 = vmatmul.f32.gmra.mxu1 %v15886_v55  ;;  %v3473_v55 = vsel %vm1870_vm6, %v3435_v13, 0 }
 0x2cf   : > { %v16209_v18 = vand.u32 4294901760, %v3473_v55  ;;  %v16219_v47 = vpop.permute.xlu0 %5808 }
 0x2d0   : > { %23028 = vst [vmem:[#allocation58_spill] sm:$0xff] %v16187_v8  ;;  %v23068_v8 = vld [vmem:[#allocation41_spill] sm:$0xff] }
 0x2d1   : > { %23032 = vst [vmem:[#allocation62_spill] sm:$0xff] %v16219_v47  ;;  %v23053_v47 = vld [vmem:[#allocation33_spill] sm:$0xff] }
 0x2d2   : > { %3109 = vmatmul.f32.gmra.mxu2 %v16052_v5  ;;  %3163 = vmatmul.f32.gmra.mxu3 %v15974_v7  ;;  %v16211_v5 = vpop.permute.xlu2 %5806 }
 0x2d3   : > { %v16200_v50 = vpop.f32.mrf.mxu0  ;;  %v16202_v30 = vpop.f32.mrf.mxu1  ;;  %23031 = vst [vmem:[#allocation61_spill] sm:$0xff] %v16211_v5 }
 0x2d5   : > { %v2546_v42 = vpop.f32.mrf.mxu2  ;;  %v2592_v10 = vpop.f32.mrf.mxu3 }
 0x2d6   : > { %v2547_v4 = vadd.f32 %v2546_v42, %v2493_v38  ;;  %v16205_v17 = vadd.f32 %v2592_v10, %v2543_v52  ;;  %3210 = vmatmul.f32.gmra.mxu0 %v15932_v12  ;;  %3266 = vmatmul.f32.gmra.mxu1 %v15915_v19  ;;  %v16224_v19 = vsub.f32 %v3473_v55, %v16209_v18 }
 0x2d7   : > { %v16249_v27 = vpop.permute.xlu0 %7404  ;;  %v2786_v42 = vadd.f32 %v16182_v40, %v16170_v21 }
 0x2d8   : > { %23030 = vst [vmem:[#allocation60_spill] sm:$0xff] %v16205_v17  ;;  %v22729_v36 = vand.u32 4294901760, %v16224_v19  ;;  %v23061_v17 = vld [vmem:[#allocation37_spill] sm:$0xff] }
 0x2d9   : > { %23036 = vst [vmem:[#allocation66_spill] sm:$0xff] %v16249_v27 }
 0x2da   : > { %3117 = vmatmul.f32.gmra.mxu2 %v16076_v15  ;;  %3167 = vmatmul.f32.gmra.mxu3 %v16000_v31  ;;  %v16231_v15 = vpop.permute.xlu1 %4219  ;;  %v16238_v35 = vpop.permute.xlu2 %6607  ;;  %v3938_v59 = vsub.f32 %v16224_v19, %v22729_v36 }
 0x2db   : > { %v16217_v22 = vpop.f32.mrf.mxu0  ;;  %v16221_v33 = vpop.f32.mrf.mxu1  ;;  %23034 = vst [vmem:[#allocation64_spill] sm:$0xff] %v16231_v15 }
 0x2dc   : > { %23035 = vst [vmem:[#allocation65_spill] sm:$0xff] %v16238_v35  ;;  %v3939_v20 = vand.u32 4294901760, %v3938_v59 }
 0x2dd   : > { %v2550_v12 = vpop.f32.mrf.mxu2  ;;  %v2596_v56 = vpop.f32.mrf.mxu3 }
 0x2de   : > { %v2551_v24 = vadd.f32 %v2550_v12, %v2499_v54  ;;  %v16226_v53 = vadd.f32 %v2596_v56, %v2547_v4  ;;  %3215 = vmatmul.f32.gmra.mxu0 %v15959_v3  ;;  %3272 = vmatmul.f32.gmra.mxu1 %v15944_v37  ;;  %v14090_v37 = vld [vmem:[%s22656_s4 + $0x80] sm:$0xff] }
 0x2df   : > { %v3446_v62 = vsel %vm1845_vm4, %v14090_v37, 0  ;;  %v16279_v40 = vpop.permute.xlu0 %8205  ;;  %v1983_v37 = vadd.f32 %v15771_v25, %v15763_v9 }
 0x2e0   : > { %23033 = vst [vmem:[#allocation63_spill] sm:$0xff] %v16226_v53  ;;  %v16258_v13 = vand.u32 4294901760, %v3446_v62 }
 0x2e1   : > { %23040 = vst [vmem:[#allocation70_spill] sm:$0xff] %v16279_v40 }
 0x2e2   : > { %3171 = vmatmul.f32.gmra.mxu3 %v16026_v28  ;;  %3320 = vmatmul.f32.vlgmr.msrb.gmra.mxu2 %v15840_v41  ;;  %v16262_v38 = vpop.permute.xlu1 %6605  ;;  %v16271_v4 = vpop.permute.xlu2 %8203  ;;  %v16275_v54 = vsub.f32 %v3446_v62, %v16258_v13 }
 0x2e3   : > { %3854 = vmatpush.msrb.mxu2 %v16209_v18  ;;  %v16236_v44 = vpop.f32.mrf.mxu0  ;;  %v16241_v39 = vpop.f32.mrf.mxu1  ;;  %23038 = vst [vmem:[#allocation68_spill] sm:$0xff] %v16262_v38 }
 0x2e4   : > { %23039 = vst [vmem:[#allocation69_spill] sm:$0xff] %v16271_v4  ;;  %v16284_v12 = vand.u32 4294901760, %v16275_v54  ;;  %v23046_v4 = vld [vmem:[#allocation30_spill] sm:$0xff] }
 0x2e5   : > { %v2600_v3 = vpop.f32.mrf.mxu3  ;;  %v2833_v23 = vpop.f32.mrf.mxu2 }
 0x2e6   : > { %v16251_v52 = vadd.f32 %v2600_v3, %v2551_v24  ;;  %v2834_v45 = vadd.f32 %v2833_v23, %v2782_v16  ;;  %3220 = vmatmul.f32.gmra.mxu0 %v15987_v63  ;;  %3278 = vmatmul.f32.gmra.mxu1 %v15972_v61  ;;  %v14091_v61 = vld [vmem:[%s22656_s4 + $0x88] sm:$0xff] }
 0x2e7   : > { %v3449_v21 = vsel %vm1845_vm4, %v14091_v61, 0  ;;  %v16313_v25 = vpop.permute.xlu0 %1797 }
 0x2e8   : > { %23037 = vst [vmem:[#allocation67_spill] sm:$0xff] %v16251_v52  ;;  %v16286_v56 = vand.u32 4294901760, %v3449_v21 }
 0x2ea   : > { %3324 = vmatmul.f32.gmra.mxu2 %v15862_v46  ;;  %3370 = vmatmul.f32.vlgmr.msrb.gmra.mxu3 %v15840_v41  ;;  %v16299_v23 = vpop.permute.xlu1 %7406  ;;  %v16301_v59 = vpop.permute.xlu2 %1802 }
 0x2eb   : > { %3940 = vmatpush.msrb.mxu3 %v3939_v20  ;;  %v16260_v49 = vpop.f32.mrf.mxu0  ;;  %v16266_v63 = vpop.f32.mrf.mxu1  ;;  %23041 = vst [vmem:[#allocation71_spill] sm:$0xff] %v16299_v23  ;;  %v23042_v20 = vld [vmem:[#allocation14_spill] sm:$0xff] }
 0x2ed   : > { %v2838_v10 = vpop.f32.mrf.mxu2  ;;  %v2892_v55 = vpop.f32.mrf.mxu3 }
 0x2ee   : > { %v2839_v41 = vadd.f32 %v2838_v10, %v2786_v42  ;;  %v2893_v6 = vadd.f32 %v2892_v55, %v2834_v45  ;;  %3225 = vmatmul.f32.gmra.mxu0 %v16015_v34  ;;  %3284 = vmatmul.f32.gmra.mxu1 %v15998_v1  ;;  %v2790_v34 = vadd.f32 %v16202_v30, %v16180_v48  ;;  %v14092_v1 = vld [vmem:[%s22656_s4 + $0x90] sm:$0xff] }
 0x2ef   : > { %v3495_v48 = vsub.f32 %v16275_v54, %v16284_v12  ;;  %v16309_v30 = vsub.f32 %v3449_v21, %v16286_v56  ;;  %v3452_v9 = vsel %vm1845_vm4, %v14092_v1, 0  ;;  %v2035_v42 = vadd.f32 %v23042_v20, %v1983_v37  ;;  %v14093_v21 = vld [vmem:[%s22656_s4 + $0x98] sm:$0xff]  ;;  %v23044_v1 = vld [vmem:[#allocation10_spill] sm:$0xff] }
 0x2f0   : > { %v16323_v10 = vand.u32 4294901760, %v3452_v9  ;;  %v23045_v37 = vld [vmem:[#allocation17_spill] sm:$0xff] }
 0x2f1   : > { %v16318_v61 = vand.u32 4294901760, %v3495_v48 }
 0x2f2   : > { %3328 = vmatmul.f32.gmra.mxu2 %v15888_v0  ;;  %3374 = vmatmul.f32.gmra.mxu3 %v15862_v46  ;;  %v16335_v20 = vpop.permute.xlu1 %1807 }
 0x2f3   : > { %v16288_v24 = vpop.f32.mrf.mxu0  ;;  %v16292_v16 = vpop.f32.mrf.mxu1 }
 0x2f5   : > { %v2843_v46 = vpop.f32.mrf.mxu2  ;;  %v2898_v3 = vpop.f32.mrf.mxu3 }
 0x2f6   : > { %v2844_v45 = vadd.f32 %v2843_v46, %v2790_v34  ;;  %v16303_v62 = vadd.f32 %v2898_v3, %v2839_v41  ;;  %3230 = vmatmul.f32.gmra.mxu0 %v16040_v14  ;;  %3290 = vmatmul.f32.gmra.mxu1 %v16024_v58  ;;  %v16321_v14 = vand.u32 4294901760, %v16309_v30  ;;  %v2794_v58 = vadd.f32 %v16221_v33, %v16200_v50  ;;  %v23043_v34 = vld [vmem:[#allocation6_spill] sm:$0xff] }
 0x2f7   : > { %v2094_v46 = vadd.f32 %v23045_v37, %v2035_v42  ;;  %v16343_v33 = vsub.f32 %v3452_v9, %v16323_v10  ;;  %v3455_v42 = vsel %vm1845_vm4, %v14093_v21, 0 }
 0x2f8   : > { %v3503_v50 = vsub.f32 %v16309_v30, %v16321_v14 }
 0x2f9   : > { %v2160_v40 = vadd.f32 %v23046_v4, %v2094_v46  ;;  %v16362_v4 = vand.u32 4294901760, %v3455_v42 }
 0x2fa   : > { %3332 = vmatmul.f32.gmra.mxu2 %v15917_v60  ;;  %3378 = vmatmul.f32.gmra.mxu3 %v15888_v0  ;;  %v1987_v0 = vadd.f32 %v23044_v1, %v23043_v34  ;;  %v16349_v34 = vpop.permute.xlu2 %1787  ;;  %v23049_v1 = vld [vmem:[#allocation34_spill] sm:$0xff]  ;;  %v16357_v9 = vand.u32 4294901760, %v3503_v50  ;;  %v23052_v50 = vld [vmem:[#allocation21_spill] sm:$0xff] }
 0x2fb   : > { %v2958_v55 = vpop.f32.mrf.mxu0  ;;  %v16327_v41 = vpop.f32.mrf.mxu1  ;;  %23047 = vst [vmem:[#allocation14_spill] sm:$0xff] %v16349_v34  ;;  %v2210_v37 = vadd.f32 %v23049_v1, %v2160_v40  ;;  %v14094_v40 = vld [vmem:[%s22656_s4 + $0xa0] sm:$0xff]  ;;  %v23051_v1 = vld [vmem:[#allocation13_spill] sm:$0xff] }
 0x2fc   : > { %v2959_v21 = vadd.f32 %v2958_v55, %v2893_v6 }
 0x2fd   : > { %v2848_v3 = vpop.f32.mrf.mxu2  ;;  %v2904_v48 = vpop.f32.mrf.mxu3 }
 0x2fe   : > { %v2849_v36 = vadd.f32 %v2848_v3, %v2794_v58  ;;  %v16337_v32 = vadd.f32 %v2904_v48, %v2844_v45  ;;  %3497 = vmatmul.f32.vlgmr.msra.gmra.mxu0 %v16318_v61  ;;  %3296 = vmatmul.f32.gmra.mxu1 %v16055_v29  ;;  %v23048_v45 = vld [vmem:[#allocation18_spill] sm:$0xff]  ;;  %v16353_v3 = vpop.permute.xlu0 %1772  ;;  %v16360_v29 = vand.u32 4294901760, %v16343_v33 }
 0x2ff   : > { %3991 = vmatpush.msra.mxu0 %v16224_v19  ;;  %v2040_v58 = vadd.f32 %v23048_v45, %v1987_v0  ;;  %v2798_v0 = vadd.f32 %v16241_v39, %v16217_v22  ;;  %v23050_v45 = vld [vmem:[#allocation7_spill] sm:$0xff]  ;;  %v2603_v23 = vadd.f32 %v2210_v37, %v16353_v3  ;;  %v16379_v39 = vsub.f32 %v3455_v42, %v16362_v4  ;;  %v16386_v37 = vpop.permute.xlu1 %1792 }
 0x300   : > { %v3511_v22 = vsub.f32 %v16343_v33, %v16360_v29  ;;  %23055 = vst [vmem:[#allocation10_spill] sm:$0xff] %v16386_v37 }
 0x301   : > { %v2100_v27 = vadd.f32 %v23052_v50, %v2040_v58  ;;  %v3458_v58 = vsel %vm1845_vm4, %v14094_v40, 0  ;;  %v23058_v50 = vld [vmem:[#allocation12_spill] sm:$0xff] }
 0x302   : > { %3336 = vmatmul.f32.gmra.mxu2 %v15946_v2  ;;  %3382 = vmatmul.f32.gmra.mxu3 %v15917_v60  ;;  %v1991_v60 = vadd.f32 %v23051_v1, %v23050_v45 }
 0x303   : > { %v2962_v46 = vpop.f32.mrf.mxu0  ;;  %v3008_v48 = vpop.f32.mrf.mxu1  ;;  %v2164_v45 = vadd.f32 %v23053_v47, %v2100_v27  ;;  %v16398_v47 = vand.u32 4294901760, %v16379_v39  ;;  %v16400_v27 = vand.u32 4294901760, %v3458_v58 }
 0x304   : > { %v3009_v5 = vadd.f32 %v3008_v48, %v2959_v21  ;;  %v2802_v48 = vadd.f32 %v16266_v63, %v16236_v44 }
 0x305   : > { %v2853_v38 = vpop.f32.mrf.mxu2  ;;  %v2910_v35 = vpop.f32.mrf.mxu3  ;;  %v3519_v44 = vsub.f32 %v16379_v39, %v16398_v47  ;;  %v16418_v63 = vsub.f32 %v3458_v58, %v16400_v27 }
 0x306   : > { %v2854_v6 = vadd.f32 %v2853_v38, %v2798_v0  ;;  %v16373_v55 = vadd.f32 %v2910_v35, %v2849_v36  ;;  %3505 = vmatmul.f32.gmra.mxu0 %v16357_v9  ;;  %v16382_v1 = vadd.f32 %v3009_v5, %v2603_v23  ;;  %3579 = vmatmul.f32.vlgmr.msra.gmra.mxu1 %v16258_v13  ;;  %v23056_v36 = vld [vmem:[#allocation22_spill] sm:$0xff]  ;;  %v16391_v0 = vpop.permute.xlu2 %1777  ;;  %v16395_v5 = vand.u32 4294901760, %v3511_v22 }
 0x307   : > { %4049 = vmatpush.msra.mxu1 %v16209_v18  ;;  %v2045_v35 = vadd.f32 %v23056_v36, %v1991_v60  ;;  %v23057_v38 = vld [vmem:[#allocation38_spill] sm:$0xff]  ;;  %v2963_v23 = vadd.f32 %v2962_v46, %v16303_v62  ;;  %v14095_v60 = vld [vmem:[%s22656_s4 + $0xa8] sm:$0xff]  ;;  %v16431_v58 = vand.u32 4294901760, %v3519_v44 }
 0x308   : > { %23054 = vst [vmem:[#allocation6_spill] sm:$0xff] %v16382_v1  ;;  %v2214_v21 = vadd.f32 %v23057_v38, %v2164_v45  ;;  %v23060_v45 = vld [vmem:[#allocation25_spill] sm:$0xff]  ;;  %v23067_v44 = vld [vmem:[#allocation31_spill] sm:$0xff] }
 0x309   : > { %v2106_v36 = vadd.f32 %v23060_v45, %v2045_v35  ;;  %v3461_v35 = vsel %vm1845_vm4, %v14095_v60, 0  ;;  %v2806_v60 = vadd.f32 %v16292_v16, %v16260_v49  ;;  %v14096_v45 = vld [vmem:[%s22656_s4 + $0xb0] sm:$0xff] }
 0x30a   : > { %3340 = vmatmul.f32.gmra.mxu2 %v15974_v7  ;;  %3386 = vmatmul.f32.gmra.mxu3 %v15946_v2  ;;  %v23059_v2 = vld [vmem:[#allocation16_spill] sm:$0xff]  ;;  %v2605_v38 = vadd.f32 %v2214_v21, %v16391_v0 }
 0x30b   : > { %v2966_v42 = vpop.f32.mrf.mxu0  ;;  %v3012_v40 = vpop.f32.mrf.mxu1  ;;  %v1995_v22 = vadd.f32 %v23059_v2, %v23058_v50  ;;  %v2168_v50 = vadd.f32 %v23061_v17, %v2106_v36  ;;  %v23063_v21 = vld [vmem:[#allocation28_spill] sm:$0xff]  ;;  %v16434_v17 = vand.u32 4294901760, %v16418_v63  ;;  %v23065_v36 = vld [vmem:[#allocation15_spill] sm:$0xff] }
 0x30c   : > { %v3013_v53 = vadd.f32 %v3012_v40, %v2963_v23  ;;  %v16427_v23 = vpop.permute.xlu1 %1782 }
 0x30d   : > { %v2858_v1 = vpop.f32.mrf.mxu2  ;;  %v2916_v52 = vpop.f32.mrf.mxu3  ;;  %v3527_v49 = vsub.f32 %v16418_v63, %v16434_v17 }
 0x30e   : > { %v2859_v62 = vadd.f32 %v2858_v1, %v2802_v48  ;;  %v16412_v46 = vadd.f32 %v2916_v52, %v2854_v6  ;;  %3513 = vmatmul.f32.gmra.mxu0 %v16395_v5  ;;  %v16421_v2 = vadd.f32 %v3013_v53, %v2605_v38  ;;  %3583 = vmatmul.f32.gmra.mxu1 %v16286_v56  ;;  %v23064_v52 = vld [vmem:[#allocation42_spill] sm:$0xff]  ;;  %v16436_v53 = vand.u32 4294901760, %v3461_v35 }
 0x30f   : > { %v2050_v1 = vadd.f32 %v23063_v21, %v1995_v22  ;;  %v2218_v6 = vadd.f32 %v23064_v52, %v2168_v50  ;;  %v2967_v48 = vadd.f32 %v2966_v42, %v16337_v32 }
 0x310   : > { %23062 = vst [vmem:[#allocation17_spill] sm:$0xff] %v16421_v2  ;;  %v16454_v16 = vsub.f32 %v3461_v35, %v16436_v53 }
 0x311   : > { %v2112_v50 = vadd.f32 %v23067_v44, %v2050_v1  ;;  %v2607_v21 = vadd.f32 %v2218_v6, %v16427_v23  ;;  %v3464_v1 = vsel %vm1845_vm4, %v14096_v45, 0  ;;  %v23070_v6 = vld [vmem:[#allocation32_spill] sm:$0xff]  ;;  %v2810_v45 = vadd.f32 %v16327_v41, %v16288_v24  ;;  %v14097_v44 = vld [vmem:[%s22656_s4 + $0xb8] sm:$0xff] }
 0x312   : > { %3344 = vmatmul.f32.gmra.mxu2 %v16000_v31  ;;  %3390 = vmatmul.f32.gmra.mxu3 %v15974_v7  ;;  %v23066_v7 = vld [vmem:[#allocation20_spill] sm:$0xff]  ;;  %v16468_v35 = vand.u32 4294901760, %v16454_v16 }
 0x313   : > { %v2970_v40 = vpop.f32.mrf.mxu0  ;;  %v3016_v22 = vpop.f32.mrf.mxu1  ;;  %v1999_v38 = vadd.f32 %v23066_v7, %v23065_v36  ;;  %v2172_v36 = vadd.f32 %v23068_v8, %v2112_v50  ;;  %v16470_v8 = vand.u32 4294901760, %v3464_v1  ;;  %v23073_v50 = vld [vmem:[#allocation19_spill] sm:$0xff] }
 0x314   : > { %v3017_v15 = vadd.f32 %v3016_v22, %v2967_v48  ;;  %23072 = vst [vmem:[#allocation18_spill] sm:$0xff] %v16468_v35  ;;  %v3535_v24 = vsub.f32 %v16454_v16, %v16468_v35 }
 0x315   : > { %v2863_v52 = vpop.f32.mrf.mxu2  ;;  %v2922_v2 = vpop.f32.mrf.mxu3  ;;  %v2055_v48 = vadd.f32 %v23070_v6, %v1999_v38  ;;  %v16488_v41 = vsub.f32 %v3464_v1, %v16470_v8 }
 0x316   : > { %v2864_v32 = vadd.f32 %v2863_v52, %v2806_v60  ;;  %v16448_v42 = vadd.f32 %v2922_v2, %v2859_v62  ;;  %3521 = vmatmul.f32.gmra.mxu0 %v16431_v58  ;;  %v16457_v7 = vadd.f32 %v3017_v15, %v2607_v21  ;;  %3587 = vmatmul.f32.gmra.mxu1 %v16323_v10  ;;  %v23071_v62 = vld [vmem:[#allocation45_spill] sm:$0xff]  ;;  %v16465_v60 = vand.u32 4294901760, %v3527_v49  ;;  %v23075_v52 = vld [vmem:[#allocation35_spill] sm:$0xff] }
 0x317   : > { %v2222_v2 = vadd.f32 %v23071_v62, %v2172_v36  ;;  %v2971_v15 = vadd.f32 %v2970_v40, %v16373_v55  ;;  %v2118_v49 = vadd.f32 %v23075_v52, %v2055_v48  ;;  %v3467_v48 = vsel %vm1845_vm4, %v14097_v44, 0 }
 0x318   : > { %23069 = vst [vmem:[#allocation30_spill] sm:$0xff] %v16457_v7  ;;  %v16502_v1 = vand.u32 4294901760, %v16488_v41  ;;  %v23082_v52 = vand.u32 4294901760, %v16224_v19 }
 0x319   : > { %v2609_v36 = vadd.f32 %v2222_v2, %v16349_v34  ;;  %v23078_v2 = vld [vmem:[#allocation36_spill] sm:$0xff] }
 0x31a   : > { %3348 = vmatmul.f32.gmra.mxu2 %v16026_v28  ;;  %3394 = vmatmul.f32.gmra.mxu3 %v16000_v31  ;;  %v23074_v31 = vld [vmem:[#allocation24_spill] sm:$0xff]  ;;  %23081 = vst [vmem:[#allocation13_spill] sm:$0xff] %v16502_v1 }
 0x31b   : > { %v2974_v22 = vpop.f32.mrf.mxu0  ;;  %v3020_v38 = vpop.f32.mrf.mxu1  ;;  %v2003_v21 = vadd.f32 %v23074_v31, %v23073_v50  ;;  %v2176_v50 = vadd.f32 %v23076_v51, %v2118_v49  ;;  %v16504_v51 = vand.u32 4294901760, %v3467_v48  ;;  %v23083_v49 = vld [vmem:[#allocation23_spill] sm:$0xff] }
 0x31c   : > { %v3021_v7 = vadd.f32 %v3020_v38, %v2971_v15  ;;  %v16499_v38 = vand.u32 4294901760, %v3535_v24 }
 0x31d   : > { %v2868_v6 = vpop.f32.mrf.mxu2  ;;  %v2928_v62 = vpop.f32.mrf.mxu3  ;;  %v2060_v15 = vadd.f32 %v23078_v2, %v2003_v21  ;;  %v16517_v19 = vsub.f32 %v3467_v48, %v16504_v51 }
 0x31e   : > { %v2869_v55 = vadd.f32 %v2868_v6, %v2810_v45  ;;  %v16482_v40 = vadd.f32 %v2928_v62, %v2864_v32  ;;  %3529 = vmatmul.f32.gmra.mxu0 %v16465_v60  ;;  %v16491_v31 = vadd.f32 %v3021_v7, %v2609_v36  ;;  %3591 = vmatmul.f32.gmra.mxu1 %v16362_v4  ;;  %v23079_v32 = vld [vmem:[#allocation48_spill] sm:$0xff]  ;;  %v23084_v36 = vld [vmem:[#allocation27_spill] sm:$0xff] }
 0x31f   : > { %v2226_v45 = vadd.f32 %v23079_v32, %v2176_v50  ;;  %23080 = vst [vmem:[#allocation7_spill] sm:$0xff] %v16499_v38  ;;  %v2975_v7 = vadd.f32 %v2974_v22, %v16412_v46  ;;  %v2007_v6 = vadd.f32 %v23084_v36, %v23083_v49  ;;  %v3543_v46 = vsub.f32 %v16488_v41, %v16502_v1  ;;  %v23087_v22 = vld [vmem:[#allocation47_spill] sm:$0xff] }
 0x320   : > { %23077 = vst [vmem:[#allocation34_spill] sm:$0xff] %v16491_v31  ;;  %v16535_v49 = vand.u32 4294901760, %v16517_v19 }
 0x321   : > { %v2611_v24 = vadd.f32 %v2226_v45, %v16386_v37  ;;  %23086 = vst [vmem:[#allocation21_spill] sm:$0xff] %v16517_v19  ;;  %v16532_v48 = vand.u32 4294901760, %v3543_v46  ;;  %v23096_v46 = vld [vmem:[#allocation43_spill] sm:$0xff] }
 0x322   : > { %3398 = vmatmul.f32.gmra.mxu3 %v16026_v28  ;;  %3631 = vmatmul.f32.vlgmr.msra.gmra.mxu2 %v16275_v54  ;;  %v23085_v28 = vld [vmem:[#allocation39_spill] sm:$0xff]  ;;  %23092 = vst [vmem:[#allocation38_spill] sm:$0xff] %v16535_v49 }
 0x323   : > { %4117 = vmatpush.msra.mxu2 %v23082_v52  ;;  %v2978_v44 = vpop.f32.mrf.mxu0  ;;  %v3024_v21 = vpop.f32.mrf.mxu1  ;;  %v2124_v62 = vadd.f32 %v23085_v28, %v2060_v15  ;;  %v16526_v15 = vld [vmem:[%s22655_s3 + $0x6] sm:$0x3] }
 0x324   : > { %v3025_v32 = vadd.f32 %v3024_v21, %v2975_v7  ;;  %23089 = vst [vmem:[#allocation22_spill] sm:$0xff] %v16526_v15  ;;  %v23091_v7 = vld [vmem:[#allocation52_spill] sm:$0xff]  ;;  %v16538_v36 = vperm.slane %v16526_v15, 0  ;;  %v2979_v28 = vadd.f32 %v2978_v44, %v16448_v42  ;;  %v23097_v44 = vld [vmem:[#allocation51_spill] sm:$0xff] }
 0x325   : > { %v2934_v50 = vpop.f32.mrf.mxu3  ;;  %v3062_v2 = vpop.f32.mrf.mxu2  ;;  %v2180_v52 = vadd.f32 %v23087_v22, %v2124_v62 }
 0x326   : > { %v2935_v31 = vadd.f32 %v2934_v50, %v2869_v55  ;;  %3537 = vmatmul.f32.gmra.mxu0 %v16499_v38  ;;  %v16520_v34 = vadd.f32 %v3025_v32, %v2611_v24  ;;  %3595 = vmatmul.f32.gmra.mxu1 %v16400_v27  ;;  %v23090_v55 = vld [vmem:[#allocation40_spill] sm:$0xff]  ;;  %23093 = vst [vmem:[#allocation12_spill] sm:$0xff] %v16538_v36  ;;  %v23094_v50 = vld [vmem:[#allocation26_spill] sm:$0xff]  ;;  %v23095_v32 = vld [vmem:[#allocation29_spill] sm:$0xff] }
 0x327   : > { %v2065_v45 = vadd.f32 %v23090_v55, %v2007_v6  ;;  %v2230_v21 = vadd.f32 %v23091_v7, %v2180_v52  ;;  %v4225_v6 = vsel %vm4221_vm9, 0.0, %v16194_v11  ;;  %v2011_v22 = vadd.f32 %v23095_v32, %v23094_v50  ;;  %v23100_v50 = vld [vmem:[#allocation54_spill] sm:$0xff] }
 0x328   : > { %23088 = vst [vmem:[#allocation33_spill] sm:$0xff] %v16520_v34  ;;  %v4233_v42 = vmul.f32 %v16538_v36, %v4225_v6 }
 0x329   : > { %v2130_v52 = vadd.f32 %v23096_v46, %v2065_v45  ;;  %v2613_v55 = vadd.f32 %v2230_v21, %v16313_v25  ;;  %v23099_v45 = vld [vmem:[#allocation46_spill] sm:$0xff] }
 0x32a   : > { %3636 = vmatmul.f32.gmra.mxu2 %v16309_v30  ;;  %3690 = vmatmul.f32.vlgmr.msra.gmra.mxu3 %v16284_v12  ;;  %v2070_v21 = vadd.f32 %v23099_v45, %v2011_v22 }
 0x32b   : > { %4167 = vmatpush.msra.mxu3 %v16209_v18  ;;  %v2982_v62 = vpop.f32.mrf.mxu0  ;;  %v3028_v24 = vpop.f32.mrf.mxu1  ;;  %v3551_v18 = vsub.f32 %v16517_v19, %v16535_v49  ;;  %v2184_v11 = vadd.f32 %v23097_v44, %v2130_v52 }
 0x32c   : > { %v3029_v37 = vadd.f32 %v3028_v24, %v2979_v28  ;;  %v2983_v28 = vadd.f32 %v2982_v62, %v16482_v40  ;;  %v23104_v40 = vld [vmem:[#allocation55_spill] sm:$0xff] }
 0x32d   : > { %v3070_v7 = vpop.f32.mrf.mxu2  ;;  %v3144_v34 = vpop.f32.mrf.mxu3  ;;  %v2234_v32 = vadd.f32 %v23100_v50, %v2184_v11 }
 0x32e   : > { %v16548_v15 = vadd.f32 %v3144_v34, %v3062_v2  ;;  %3545 = vmatmul.f32.gmra.mxu0 %v16532_v48  ;;  %v16555_v38 = vadd.f32 %v3029_v37, %v2613_v55  ;;  %3599 = vmatmul.f32.gmra.mxu1 %v16436_v53  ;;  %v16562_v34 = vand.u32 4294901760, %v3551_v18  ;;  %v4269_v2 = vsel %vm1870_vm6, %v4233_v42, 0  ;;  %v23101_v37 = vld [vmem:[#allocation49_spill] sm:$0xff] }
 0x32f   : > { %v2136_v46 = vadd.f32 %v23101_v37, %v2070_v21  ;;  %v2615_v52 = vadd.f32 %v2234_v32, %v16301_v59  ;;  %v16568_v11 = vand.u32 4294901760, %v4269_v2  ;;  %v23102_v18 = vld [vmem:[#allocation53_spill] sm:$0xff] }
 0x330   : > { %23098 = vst [vmem:[#allocation16_spill] sm:$0xff] %v16555_v38 }
 0x331   : > { %v2188_v50 = vadd.f32 %v23102_v18, %v2136_v46  ;;  %v16579_v21 = vsub.f32 %v4269_v2, %v16568_v11 }
 0x332   : > { %3641 = vmatmul.f32.gmra.mxu2 %v16343_v33  ;;  %3696 = vmatmul.f32.gmra.mxu3 %v16321_v14 }
 0x333   : > { %v2986_v6 = vpop.f32.mrf.mxu0  ;;  %v3032_v24 = vpop.f32.mrf.mxu1  ;;  %v2238_v62 = vadd.f32 %v23104_v40, %v2188_v50 }
 0x334   : > { %v3033_v44 = vadd.f32 %v3032_v24, %v2983_v28  ;;  %v2987_v32 = vadd.f32 %v2986_v6, %v2935_v31 }
 0x335   : > { %v3078_v55 = vpop.f32.mrf.mxu2  ;;  %v3148_v22 = vpop.f32.mrf.mxu3  ;;  %v2617_v24 = vadd.f32 %v2238_v62, %v16335_v20 }
 0x336   : > { %v16570_v45 = vadd.f32 %v3148_v22, %v3070_v7  ;;  %3553 = vmatmul.f32.gmra.mxu0 %v16562_v34  ;;  %v16574_v42 = vadd.f32 %v3033_v44, %v2615_v52  ;;  %3603 = vmatmul.f32.gmra.mxu1 %v16470_v8  ;;  %v22741_v44 = vand.u32 4294901760, %v16579_v21 }
 0x338   : > { %23103 = vst [vmem:[#allocation25_spill] sm:$0xff] %v16574_v42  ;;  %v4374_v31 = vsub.f32 %v16579_v21, %v22741_v44 }
 0x33a   : > { %3646 = vmatmul.f32.gmra.mxu2 %v16379_v39  ;;  %3702 = vmatmul.f32.gmra.mxu3 %v16360_v29  ;;  %v4375_v62 = vand.u32 4294901760, %v4374_v31 }
 0x33b   : > { %v3196_v7 = vpop.f32.mrf.mxu0  ;;  %v3036_v28 = vpop.f32.mrf.mxu1 }
 0x33c   : > { %v3037_v52 = vadd.f32 %v3036_v28, %v2987_v32 }
 0x33d   : > { %v3086_v37 = vpop.f32.mrf.mxu2  ;;  %v3152_v46 = vpop.f32.mrf.mxu3 }
 0x33e   : > { %v16584_v22 = vadd.f32 %v3152_v46, %v3078_v55  ;;  %3756 = vmatmul.f32.vlgmr.msrb.gmra.mxu0 %v16258_v13  ;;  %v16588_v2 = vadd.f32 %v3037_v52, %v2617_v24  ;;  %3607 = vmatmul.f32.gmra.mxu1 %v16504_v51 }
 0x33f   : > { %4290 = vmatpush.msrb.mxu0 %v16568_v11 }
 0x340   : > { %23105 = vst [vmem:[#allocation37_spill] sm:$0xff] %v16588_v2 }
 0x342   : > { %3651 = vmatmul.f32.gmra.mxu2 %v16418_v63  ;;  %3708 = vmatmul.f32.gmra.mxu3 %v16398_v47 }
 0x343   : > { %v3201_v6 = vpop.f32.mrf.mxu0  ;;  %v3255_v55 = vpop.f32.mrf.mxu1 }
 0x345   : > { %v3094_v18 = vpop.f32.mrf.mxu2  ;;  %v3156_v50 = vpop.f32.mrf.mxu3 }
 0x346   : > { %v16597_v40 = vadd.f32 %v3156_v50, %v3086_v37  ;;  %3760 = vmatmul.f32.gmra.mxu0 %v16286_v56  ;;  %3806 = vmatmul.f32.vlgmr.msrb.gmra.mxu1 %v16258_v13 }
 0x347   : > { %4376 = vmatpush.msrb.mxu1 %v4375_v62 }
 0x34a   : > { %3656 = vmatmul.f32.gmra.mxu2 %v16454_v16  ;;  %3714 = vmatmul.f32.gmra.mxu3 %v16434_v17 }
 0x34b   : > { %v3206_v32 = vpop.f32.mrf.mxu0  ;;  %v3261_v28 = vpop.f32.mrf.mxu1 }
 0x34d   : > { %v3102_v24 = vpop.f32.mrf.mxu2  ;;  %v3160_v46 = vpop.f32.mrf.mxu3 }
 0x34e   : > { %v16603_v52 = vadd.f32 %v3160_v46, %v3094_v18  ;;  %3764 = vmatmul.f32.gmra.mxu0 %v16323_v10  ;;  %3810 = vmatmul.f32.gmra.mxu1 %v16286_v56 }
 0x352   : > { %3661 = vmatmul.f32.gmra.mxu2 %v16488_v41  ;;  %3720 = vmatmul.f32.gmra.mxu3 %v16468_v35 }
 0x353   : > { %v3211_v37 = vpop.f32.mrf.mxu0  ;;  %v3267_v31 = vpop.f32.mrf.mxu1 }
 0x355   : > { %v3110_v50 = vpop.f32.mrf.mxu2  ;;  %v3164_v62 = vpop.f32.mrf.mxu3 }
 0x356   : > { %v16609_v44 = vadd.f32 %v3164_v62, %v3102_v24  ;;  %3768 = vmatmul.f32.gmra.mxu0 %v16362_v4  ;;  %3814 = vmatmul.f32.gmra.mxu1 %v16323_v10  ;;  %v3197_v24 = vadd.f32 %v3196_v7, %v16548_v15  ;;  %v3202_v15 = vadd.f32 %v3201_v6, %v16570_v45 }
 0x357   : > { %v3207_v45 = vadd.f32 %v3206_v32, %v16584_v22 }
 0x358   : > { %v3256_v38 = vadd.f32 %v3255_v55, %v3197_v24  ;;  %v3262_v7 = vadd.f32 %v3261_v28, %v3202_v15 }
 0x359   : > { %v3268_v28 = vadd.f32 %v3267_v31, %v3207_v45  ;;  %v23108_v45 = vld [vmem:[#allocation56_spill] sm:$0xff] }
 0x35a   : > { %3666 = vmatmul.f32.gmra.mxu2 %v16517_v19  ;;  %3726 = vmatmul.f32.gmra.mxu3 %v16502_v1 }
 0x35b   : > { %v16615_v18 = vpop.f32.mrf.mxu0  ;;  %v3273_v46 = vpop.f32.mrf.mxu1 }
 0x35d   : > { %v3118_v36 = vpop.f32.mrf.mxu2  ;;  %v3168_v2 = vpop.f32.mrf.mxu3 }
 0x35e   : > { %v16617_v42 = vadd.f32 %v3168_v2, %v3110_v50  ;;  %3772 = vmatmul.f32.gmra.mxu0 %v16400_v27  ;;  %3818 = vmatmul.f32.gmra.mxu1 %v16362_v4 }
 0x362   : > { %3732 = vmatmul.f32.gmra.mxu3 %v16535_v49  ;;  %3860 = vmatmul.f32.vlgmr.msrb.gmra.mxu2 %v16318_v61 }
 0x363   : > { %4427 = vmatpush.msrb.mxu2 %v16579_v21  ;;  %v16625_v62 = vpop.f32.mrf.mxu0  ;;  %v3279_v1 = vpop.f32.mrf.mxu1 }
 0x365   : > { %v3172_v19 = vpop.f32.mrf.mxu3  ;;  %v3321_v35 = vpop.f32.mrf.mxu2 }
 0x366   : > { %v16627_v2 = vadd.f32 %v3172_v19, %v3118_v36  ;;  %v3322_v50 = vadd.f32 %v3321_v35, %v3256_v38  ;;  %3776 = vmatmul.f32.gmra.mxu0 %v16436_v53  ;;  %3822 = vmatmul.f32.gmra.mxu1 %v16400_v27  ;;  %v2604_v35 = vadd.f32 %v16143_v26, %v16353_v3 }
 0x367   : > { %v2606_v3 = vadd.f32 %v16152_v43, %v16391_v0  ;;  %v2608_v0 = vadd.f32 %v16161_v57, %v16427_v23 }
 0x36a   : > { %3868 = vmatmul.f32.gmra.mxu2 %v16357_v9  ;;  %3942 = vmatmul.f32.vlgmr.msrb.gmra.mxu3 %v16258_v13 }
 0x36b   : > { %4485 = vmatpush.msrb.mxu3 %v16568_v11  ;;  %v16635_v61 = vpop.f32.mrf.mxu0  ;;  %v3285_v55 = vpop.f32.mrf.mxu1 }
 0x36d   : > { %v3325_v24 = vpop.f32.mrf.mxu2  ;;  %v3371_v19 = vpop.f32.mrf.mxu3 }
 0x36e   : > { %v3326_v38 = vadd.f32 %v3325_v24, %v3262_v7  ;;  %v3372_v36 = vadd.f32 %v3371_v19, %v3322_v50  ;;  %3780 = vmatmul.f32.gmra.mxu0 %v16470_v8  ;;  %3826 = vmatmul.f32.gmra.mxu1 %v16436_v53 }
 0x370   : > { %v16641_v9 = vadd.f32 %v3372_v36, %v2604_v35  ;;  %v23107_v36 = vld [vmem:[#allocation14_spill] sm:$0xff] }
 0x372   : > { %3876 = vmatmul.f32.gmra.mxu2 %v16395_v5  ;;  %3946 = vmatmul.f32.gmra.mxu3 %v16286_v56  ;;  %v3212_v5 = vadd.f32 %v3211_v37, %v16597_v40  ;;  %v23106_v40 = vand.u32 4294901760, %v16579_v21  ;;  %v3217_v37 = vadd.f32 %v16615_v18, %v16603_v52  ;;  %v2610_v21 = vadd.f32 %v23108_v45, %v23107_v36  ;;  %v23116_v36 = vld [vmem:[#allocation60_spill] sm:$0xff] }
 0x373   : > { %v16646_v6 = vpop.f32.mrf.mxu0  ;;  %v3291_v15 = vpop.f32.mrf.mxu1  ;;  %v2614_v45 = vadd.f32 %v23116_v36, %v16313_v25 }
 0x374   : > { %v3274_v31 = vadd.f32 %v3273_v46, %v3212_v5  ;;  %v3280_v57 = vadd.f32 %v3279_v1, %v3217_v37  ;;  %v23109_v1 = vld [vmem:[#allocation7_spill] sm:$0xff]  ;;  %v23110_v5 = vld [vmem:[#allocation22_spill] sm:$0xff] }
 0x375   : > { %v3329_v49 = vpop.f32.mrf.mxu2  ;;  %v3375_v26 = vpop.f32.mrf.mxu3 }
 0x376   : > { %v3330_v50 = vadd.f32 %v3329_v49, %v3268_v28  ;;  %v3376_v7 = vadd.f32 %v3375_v26, %v3326_v38  ;;  %3784 = vmatmul.f32.gmra.mxu0 %v16504_v51  ;;  %3830 = vmatmul.f32.gmra.mxu1 %v16470_v8 }
 0x378   : > { %v16652_v22 = vadd.f32 %v3376_v7, %v2606_v3 }
 0x37a   : > { %3884 = vmatmul.f32.gmra.mxu2 %v16431_v58  ;;  %3950 = vmatmul.f32.gmra.mxu3 %v16323_v10 }
 0x37b   : > { %v16657_v32 = vpop.f32.mrf.mxu0  ;;  %v3297_v24 = vpop.f32.mrf.mxu1 }
 0x37d   : > { %v3333_v19 = vpop.f32.mrf.mxu2  ;;  %v3379_v43 = vpop.f32.mrf.mxu3 }
 0x37e   : > { %v3334_v49 = vadd.f32 %v3333_v19, %v3274_v31  ;;  %v3380_v35 = vadd.f32 %v3379_v43, %v3330_v50  ;;  %3994 = vmatmul.f32.vlgmr.msra.gmra.mxu0 %v16275_v54  ;;  %3834 = vmatmul.f32.gmra.mxu1 %v16504_v51  ;;  %v23112_v31 = vld [vmem:[#allocation10_spill] sm:$0xff] }
 0x37f   : > { %4553 = vmatpush.msra.mxu0 %v23106_v40  ;;  %v23113_v19 = vld [vmem:[#allocation58_spill] sm:$0xff]  ;;  %v3227_v40 = vadd.f32 %v16635_v61, %v16617_v42  ;;  %v3232_v61 = vadd.f32 %v16646_v6, %v16627_v2 }
 0x380   : > { %v16665_v58 = vadd.f32 %v3380_v35, %v2608_v0 }
 0x381   : > { %v3298_v25 = vadd.f32 %v3297_v24, %v3232_v61 }
 0x382   : > { %3892 = vmatmul.f32.gmra.mxu2 %v16465_v60  ;;  %3954 = vmatmul.f32.gmra.mxu3 %v16362_v4  ;;  %v3222_v60 = vadd.f32 %v16625_v62, %v16609_v44  ;;  %v23114_v44 = vld [vmem:[#allocation64_spill] sm:$0xff]  ;;  %v23115_v62 = vld [vmem:[#allocation59_spill] sm:$0xff] }
 0x383   : > { %v16671_v46 = vpop.f32.mrf.mxu0  ;;  %v16673_v23 = vpop.f32.mrf.mxu1 }
 0x384   : > { %v3286_v3 = vadd.f32 %v3285_v55, %v3222_v60 }
 0x385   : > { %v3337_v54 = vpop.f32.mrf.mxu2  ;;  %v3383_v38 = vpop.f32.mrf.mxu3 }
 0x386   : > { %v3338_v28 = vadd.f32 %v3337_v54, %v3280_v57  ;;  %v3384_v26 = vadd.f32 %v3383_v38, %v3334_v49  ;;  %3999 = vmatmul.f32.gmra.mxu0 %v16309_v30  ;;  %4053 = vmatmul.f32.vlgmr.msra.gmra.mxu1 %v16284_v12  ;;  %v16691_v12 = vperm.slane %v23110_v5, 1  ;;  %v4222_v49 = vsel %vm4221_vm9, %v23115_v62, %v23114_v44 }
 0x387   : > { %4603 = vmatpush.msra.mxu1 %v16568_v11  ;;  %v2612_v11 = vadd.f32 %v23113_v19, %v23112_v31  ;;  %v23118_v19 = vld [vmem:[#allocation67_spill] sm:$0xff] }
 0x388   : > { %v16679_v52 = vadd.f32 %v3384_v26, %v2610_v21  ;;  %23111 = vst [vmem:[#allocation28_spill] sm:$0xff] %v16691_v12  ;;  %v4234_v35 = vmul.f32 %v16691_v12, %v4222_v49 }
 0x38a   : > { %3900 = vmatmul.f32.gmra.mxu2 %v23109_v1  ;;  %3958 = vmatmul.f32.gmra.mxu3 %v16400_v27  ;;  %v23117_v1 = vld [vmem:[#allocation63_spill] sm:$0xff] }
 0x38b   : > { %v16686_v18 = vpop.f32.mrf.mxu0  ;;  %v16688_v50 = vpop.f32.mrf.mxu1 }
 0x38d   : > { %v3341_v7 = vpop.f32.mrf.mxu2  ;;  %v3387_v30 = vpop.f32.mrf.mxu3 }
 0x38e   : > { %v3342_v43 = vadd.f32 %v3341_v7, %v3286_v3  ;;  %v3388_v0 = vadd.f32 %v3387_v30, %v3338_v28  ;;  %4004 = vmatmul.f32.gmra.mxu0 %v16343_v33  ;;  %4059 = vmatmul.f32.gmra.mxu1 %v16321_v14  ;;  %v3292_v33 = vadd.f32 %v3291_v15, %v3227_v40  ;;  %v4272_v14 = vsel %vm1870_vm6, %v4234_v35, 0 }
 0x38f   : > { %v16718_v42 = vand.u32 4294901760, %v4272_v14  ;;  %v2616_v3 = vadd.f32 %v23117_v1, %v16301_v59  ;;  %v3581_v59 = vadd.f32 %v16673_v23, %v16657_v32 }
 0x390   : > { %v16700_v55 = vadd.f32 %v3388_v0, %v2612_v11  ;;  %v2618_v11 = vadd.f32 %v23118_v19, %v16335_v20  ;;  %v3585_v20 = vadd.f32 %v16688_v50, %v16671_v46 }
 0x392   : > { %3908 = vmatmul.f32.gmra.mxu2 %v16532_v48  ;;  %3962 = vmatmul.f32.gmra.mxu3 %v16436_v53 }
 0x393   : > { %v16707_v37 = vpop.f32.mrf.mxu0  ;;  %v16709_v57 = vpop.f32.mrf.mxu1 }
 0x395   : > { %v3345_v54 = vpop.f32.mrf.mxu2  ;;  %v3391_v38 = vpop.f32.mrf.mxu3 }
 0x396   : > { %v3346_v21 = vadd.f32 %v3345_v54, %v3292_v33  ;;  %v3392_v28 = vadd.f32 %v3391_v38, %v3342_v43  ;;  %4009 = vmatmul.f32.gmra.mxu0 %v16379_v39  ;;  %4065 = vmatmul.f32.gmra.mxu1 %v16360_v29  ;;  %v16729_v39 = vsub.f32 %v4272_v14, %v16718_v42  ;;  %v23119_v38 = vld [vmem:[#allocation18_spill] sm:$0xff] }
 0x398   : > { %v16716_v48 = vadd.f32 %v3392_v28, %v2614_v45  ;;  %v4736_v2 = vand.u32 4294901760, %v16729_v39 }
 0x39a   : > { %3916 = vmatmul.f32.gmra.mxu2 %v16562_v34  ;;  %3966 = vmatmul.f32.gmra.mxu3 %v16470_v8  ;;  %v4737_v31 = vsub.f32 %v16729_v39, %v4736_v2 }
 0x39b   : > { %v16724_v15 = vpop.f32.mrf.mxu0  ;;  %v16726_v26 = vpop.f32.mrf.mxu1 }
 0x39c   : > { %v4738_v44 = vand.u32 4294901760, %v4737_v31 }
 0x39d   : > { %v3349_v29 = vpop.f32.mrf.mxu2  ;;  %v3395_v60 = vpop.f32.mrf.mxu3 }
 0x39e   : > { %v3350_v7 = vadd.f32 %v3349_v29, %v3298_v25  ;;  %v3396_v30 = vadd.f32 %v3395_v60, %v3346_v21  ;;  %4014 = vmatmul.f32.gmra.mxu0 %v16418_v63  ;;  %4071 = vmatmul.f32.gmra.mxu1 %v16398_v47  ;;  %v14099_v47 = vld [vmem:[%s22656_s4 + $0xc0] sm:$0xff]  ;;  %v14101_v21 = vld [vmem:[%s22656_s4 + $0xd0] sm:$0xff]  ;;  %v23120_v29 = vld [vmem:[#allocation21_spill] sm:$0xff] }
 0x39f   : > { %v4245_v32 = vsel %vm1845_vm4, %v14099_v47, 0  ;;  %v3593_v47 = vadd.f32 %v16726_v26, %v16707_v37 }
 0x3a0   : > { %v16735_v34 = vadd.f32 %v3396_v30, %v2616_v3  ;;  %v16762_v62 = vand.u32 4294901760, %v4245_v32  ;;  %v23121_v3 = vld [vmem:[#allocation13_spill] sm:$0xff] }
 0x3a2   : > { %3970 = vmatmul.f32.gmra.mxu3 %v16504_v51  ;;  %4119 = vmatmul.f32.vlgmr.msra.gmra.mxu2 %v16258_v13 }
 0x3a3   : > { %4653 = vmatpush.msra.mxu2 %v16718_v42  ;;  %v16741_v6 = vpop.f32.mrf.mxu0  ;;  %v16745_v24 = vpop.f32.mrf.mxu1 }
 0x3a5   : > { %v3399_v63 = vpop.f32.mrf.mxu3  ;;  %v3632_v5 = vpop.f32.mrf.mxu2 }
 0x3a6   : > { %v3400_v43 = vadd.f32 %v3399_v63, %v3350_v7  ;;  %v3633_v0 = vadd.f32 %v3632_v5, %v3581_v59  ;;  %4019 = vmatmul.f32.gmra.mxu0 %v16454_v16  ;;  %4077 = vmatmul.f32.gmra.mxu1 %v16434_v17  ;;  %v14100_v17 = vld [vmem:[%s22656_s4 + $0xc8] sm:$0xff]  ;;  %v14102_v5 = vld [vmem:[%s22656_s4 + $0xd8] sm:$0xff] }
 0x3a7   : > { %v4248_v14 = vsel %vm1845_vm4, %v14100_v17, 0  ;;  %v4254_v37 = vsel %vm1845_vm4, %v14102_v5, 0 }
 0x3a8   : > { %v16758_v23 = vadd.f32 %v3400_v43, %v2618_v11  ;;  %v16784_v50 = vand.u32 4294901760, %v4248_v14 }
 0x3aa   : > { %4123 = vmatmul.f32.gmra.mxu2 %v16286_v56  ;;  %4169 = vmatmul.f32.vlgmr.msra.gmra.mxu3 %v16258_v13  ;;  %v16775_v13 = vsub.f32 %v4245_v32, %v16762_v62  ;;  %v16799_v1 = vsub.f32 %v4248_v14, %v16784_v50  ;;  %v23122_v32 = vld [vmem:[#allocation38_spill] sm:$0xff] }
 0x3ab   : > { %4739 = vmatpush.msra.mxu3 %v4738_v44  ;;  %v16764_v49 = vpop.f32.mrf.mxu0  ;;  %v16768_v16 = vpop.f32.mrf.mxu1 }
 0x3ac   : > { %v16782_v46 = vand.u32 4294901760, %v16775_v13  ;;  %v16808_v7 = vand.u32 4294901760, %v16799_v1 }
 0x3ad   : > { %v3637_v35 = vpop.f32.mrf.mxu2  ;;  %v3691_v40 = vpop.f32.mrf.mxu3 }
 0x3ae   : > { %v3638_v33 = vadd.f32 %v3637_v35, %v3585_v20  ;;  %v3692_v54 = vadd.f32 %v3691_v40, %v3633_v0  ;;  %4024 = vmatmul.f32.gmra.mxu0 %v16488_v41  ;;  %4083 = vmatmul.f32.gmra.mxu1 %v23119_v38  ;;  %v3589_v41 = vadd.f32 %v16709_v57, %v16686_v18  ;;  %v4251_v18 = vsel %vm1845_vm4, %v14101_v21, 0  ;;  %v14103_v38 = vld [vmem:[%s22656_s4 + $0xe0] sm:$0xff] }
 0x3af   : > { %v4294_v60 = vsub.f32 %v16775_v13, %v16782_v46  ;;  %v16810_v30 = vand.u32 4294901760, %v4251_v18  ;;  %v4302_v43 = vsub.f32 %v16799_v1, %v16808_v7  ;;  %v16835_v20 = vand.u32 4294901760, %v4254_v37 }
 0x3b0   : > { %v3597_v40 = vadd.f32 %v16745_v24, %v16724_v15  ;;  %v4257_v24 = vsel %vm1845_vm4, %v14103_v38, 0 }
 0x3b1   : > { %v16805_v57 = vand.u32 4294901760, %v4294_v60  ;;  %v16823_v0 = vsub.f32 %v4251_v18, %v16810_v30  ;;  %v16830_v26 = vand.u32 4294901760, %v4302_v43 }
 0x3b2   : > { %4127 = vmatmul.f32.gmra.mxu2 %v16323_v10  ;;  %4173 = vmatmul.f32.gmra.mxu3 %v16286_v56 }
 0x3b3   : > { %v16786_v36 = vpop.f32.mrf.mxu0  ;;  %v16790_v45 = vpop.f32.mrf.mxu1  ;;  %v16833_v44 = vand.u32 4294901760, %v16823_v0 }
 0x3b5   : > { %v3642_v28 = vpop.f32.mrf.mxu2  ;;  %v3697_v61 = vpop.f32.mrf.mxu3 }
 0x3b6   : > { %v3643_v25 = vadd.f32 %v3642_v28, %v3589_v41  ;;  %v3698_v56 = vadd.f32 %v3697_v61, %v3638_v33  ;;  %4029 = vmatmul.f32.gmra.mxu0 %v23120_v29  ;;  %4089 = vmatmul.f32.gmra.mxu1 %v23121_v3  ;;  %v4310_v61 = vsub.f32 %v16823_v0, %v16833_v44  ;;  %v16861_v3 = vand.u32 4294901760, %v4257_v24 }
 0x3b8   : > { %v16856_v29 = vand.u32 4294901760, %v4310_v61 }
 0x3ba   : > { %4131 = vmatmul.f32.gmra.mxu2 %v16362_v4  ;;  %4177 = vmatmul.f32.gmra.mxu3 %v16323_v10 }
 0x3bb   : > { %v3757_v59 = vpop.f32.mrf.mxu0  ;;  %v16814_v63 = vpop.f32.mrf.mxu1 }
 0x3bc   : > { %v3758_v17 = vadd.f32 %v3757_v59, %v3692_v54  ;;  %v16846_v54 = vsub.f32 %v4254_v37, %v16835_v20 }
 0x3bd   : > { %v3647_v31 = vpop.f32.mrf.mxu2  ;;  %v3703_v19 = vpop.f32.mrf.mxu3 }
 0x3be   : > { %v3648_v10 = vadd.f32 %v3647_v31, %v3593_v47  ;;  %v3704_v11 = vadd.f32 %v3703_v19, %v3643_v25  ;;  %4296 = vmatmul.f32.vlgmr.msrb.gmra.mxu0 %v16805_v57  ;;  %4095 = vmatmul.f32.gmra.mxu1 %v23122_v32  ;;  %v23123_v25 = vld [vmem:[#allocation6_spill] sm:$0xff]  ;;  %v16859_v60 = vand.u32 4294901760, %v16846_v54  ;;  %v3601_v47 = vadd.f32 %v16768_v16, %v16741_v6  ;;  %v14104_v31 = vld [vmem:[%s22656_s4 + $0xe8] sm:$0xff] }
 0x3bf   : > { %4790 = vmatpush.msrb.mxu0 %v16729_v39  ;;  %v4260_v16 = vsel %vm1845_vm4, %v14104_v31, 0  ;;  %v16953_v39 = vld [vmem:[%s22655_s3 + $0x8] sm:$0x3] }
 0x3c0   : > { %v4318_v37 = vsub.f32 %v16846_v54, %v16859_v60 }
 0x3c2   : > { %4135 = vmatmul.f32.gmra.mxu2 %v16400_v27  ;;  %4181 = vmatmul.f32.gmra.mxu3 %v16362_v4 }
 0x3c3   : > { %v3761_v35 = vpop.f32.mrf.mxu0  ;;  %v3807_v33 = vpop.f32.mrf.mxu1 }
 0x3c4   : > { %v3808_v4 = vadd.f32 %v3807_v33, %v3758_v17  ;;  %v3762_v18 = vadd.f32 %v3761_v35, %v3698_v56  ;;  %v16872_v56 = vsub.f32 %v4257_v24, %v16861_v3  ;;  %v23125_v17 = vld [vmem:[#allocation17_spill] sm:$0xff]  ;;  %v16881_v35 = vand.u32 4294901760, %v4318_v37 }
 0x3c5   : > { %v3652_v14 = vpop.f32.mrf.mxu2  ;;  %v3709_v41 = vpop.f32.mrf.mxu3  ;;  %v16886_v33 = vand.u32 4294901760, %v4260_v16 }
 0x3c6   : > { %v3653_v21 = vadd.f32 %v3652_v14, %v3597_v40  ;;  %v3710_v28 = vadd.f32 %v3709_v41, %v3648_v10  ;;  %4304 = vmatmul.f32.gmra.mxu0 %v16830_v26  ;;  %v16849_v15 = vadd.f32 %v3808_v4, %v23123_v25  ;;  %4378 = vmatmul.f32.vlgmr.msrb.gmra.mxu1 %v16762_v62  ;;  %v16884_v40 = vand.u32 4294901760, %v16872_v56 }
 0x3c7   : > { %4848 = vmatpush.msrb.mxu1 %v16718_v42  ;;  %v3605_v41 = vadd.f32 %v16790_v45, %v16764_v49 }
 0x3c8   : > { %23124 = vst [vmem:[#allocation42_spill] sm:$0xff] %v16849_v15 }
 0x3ca   : > { %4139 = vmatmul.f32.gmra.mxu2 %v16436_v53  ;;  %4185 = vmatmul.f32.gmra.mxu3 %v16400_v27 }
 0x3cb   : > { %v3765_v59 = vpop.f32.mrf.mxu0  ;;  %v3811_v5 = vpop.f32.mrf.mxu1 }
 0x3cc   : > { %v3812_v27 = vadd.f32 %v3811_v5, %v3762_v18  ;;  %v3766_v38 = vadd.f32 %v3765_v59, %v3704_v11  ;;  %v16897_v11 = vsub.f32 %v4260_v16, %v16886_v33  ;;  %v23127_v59 = vld [vmem:[#allocation30_spill] sm:$0xff] }
 0x3cd   : > { %v3657_v19 = vpop.f32.mrf.mxu2  ;;  %v3715_v10 = vpop.f32.mrf.mxu3 }
 0x3ce   : > { %v3658_v43 = vadd.f32 %v3657_v19, %v3601_v47  ;;  %v3716_v32 = vadd.f32 %v3715_v10, %v3653_v21  ;;  %4312 = vmatmul.f32.gmra.mxu0 %v16856_v29  ;;  %v16875_v6 = vadd.f32 %v3812_v27, %v23125_v17  ;;  %4382 = vmatmul.f32.gmra.mxu1 %v16784_v50  ;;  %v14105_v21 = vld [vmem:[%s22656_s4 + $0xf0] sm:$0xff]  ;;  %v16909_v31 = vand.u32 4294901760, %v16897_v11  ;;  %v14106_v17 = vld [vmem:[%s22656_s4 + $0xf8] sm:$0xff] }
 0x3cf   : > { %v4326_v47 = vsub.f32 %v16872_v56, %v16884_v40  ;;  %v4263_v45 = vsel %vm1845_vm4, %v14105_v21, 0 }
 0x3d0   : > { %23126 = vst [vmem:[#allocation15_spill] sm:$0xff] %v16875_v6  ;;  %v16911_v19 = vand.u32 4294901760, %v4263_v45  ;;  %v4334_v21 = vsub.f32 %v16897_v11, %v16909_v31 }
 0x3d1   : > { %v16906_v5 = vand.u32 4294901760, %v4326_v47  ;;  %23129 = vst [vmem:[#allocation31_spill] sm:$0xff] %v16909_v31 }
 0x3d2   : > { %4143 = vmatmul.f32.gmra.mxu2 %v16470_v8  ;;  %4189 = vmatmul.f32.gmra.mxu3 %v16436_v53 }
 0x3d3   : > { %v3769_v14 = vpop.f32.mrf.mxu0  ;;  %v3815_v4 = vpop.f32.mrf.mxu1 }
 0x3d4   : > { %v3816_v53 = vadd.f32 %v3815_v4, %v3766_v38  ;;  %v3770_v10 = vadd.f32 %v3769_v14, %v3710_v28  ;;  %v16922_v28 = vsub.f32 %v4263_v45, %v16911_v19  ;;  %v23131_v14 = vld [vmem:[#allocation34_spill] sm:$0xff] }
 0x3d5   : > { %v3662_v61 = vpop.f32.mrf.mxu2  ;;  %v3721_v25 = vpop.f32.mrf.mxu3 }
 0x3d6   : > { %v3663_v24 = vadd.f32 %v3662_v61, %v3605_v41  ;;  %v3722_v18 = vadd.f32 %v3721_v25, %v3658_v43  ;;  %4320 = vmatmul.f32.gmra.mxu0 %v16881_v35  ;;  %v16900_v49 = vadd.f32 %v3816_v53, %v23127_v59  ;;  %4386 = vmatmul.f32.gmra.mxu1 %v16810_v30  ;;  %v16931_v61 = vand.u32 4294901760, %v4334_v21 }
 0x3d7   : > { %v3609_v43 = vadd.f32 %v16814_v63, %v16786_v36  ;;  %23130 = vst [vmem:[#allocation41_spill] sm:$0xff] %v16922_v28  ;;  %v4266_v63 = vsel %vm1845_vm4, %v14106_v17, 0  ;;  %v16934_v25 = vand.u32 4294901760, %v16922_v28 }
 0x3d8   : > { %23128 = vst [vmem:[#allocation20_spill] sm:$0xff] %v16900_v49  ;;  %v16936_v53 = vand.u32 4294901760, %v4266_v63 }
 0x3d9   : > { %23133 = vst [vmem:[#allocation45_spill] sm:$0xff] %v16934_v25 }
 0x3da   : > { %4147 = vmatmul.f32.gmra.mxu2 %v16504_v51  ;;  %4193 = vmatmul.f32.gmra.mxu3 %v16470_v8  ;;  %v16944_v17 = vsub.f32 %v4266_v63, %v16936_v53 }
 0x3db   : > { %v3773_v27 = vpop.f32.mrf.mxu0  ;;  %v3819_v37 = vpop.f32.mrf.mxu1 }
 0x3dc   : > { %v3820_v8 = vadd.f32 %v3819_v37, %v3770_v10  ;;  %23134 = vst [vmem:[#allocation19_spill] sm:$0xff] %v16944_v17 }
 0x3dd   : > { %v3667_v16 = vpop.f32.mrf.mxu2  ;;  %v3727_v38 = vpop.f32.mrf.mxu3 }
 0x3de   : > { %v3668_v41 = vadd.f32 %v3667_v16, %v3609_v43  ;;  %v3728_v4 = vadd.f32 %v3727_v38, %v3663_v24  ;;  %4328 = vmatmul.f32.gmra.mxu0 %v16906_v5  ;;  %v16925_v36 = vadd.f32 %v3820_v8, %v23131_v14  ;;  %4390 = vmatmul.f32.gmra.mxu1 %v16835_v20  ;;  %v23135_v16 = vld [vmem:[#allocation33_spill] sm:$0xff] }
 0x3df   : > { %v3774_v24 = vadd.f32 %v3773_v27, %v3716_v32  ;;  %v16960_v32 = vand.u32 4294901760, %v16944_v17 }
 0x3e0   : > { %23132 = vst [vmem:[#allocation32_spill] sm:$0xff] %v16925_v36 }
 0x3e2   : > { %4197 = vmatmul.f32.gmra.mxu3 %v16504_v51  ;;  %4430 = vmatmul.f32.vlgmr.msrb.gmra.mxu2 %v16775_v13  ;;  %v4342_v51 = vsub.f32 %v16922_v28, %v16934_v25 }
 0x3e3   : > { %4916 = vmatpush.msrb.mxu2 %v4736_v2  ;;  %v3777_v47 = vpop.f32.mrf.mxu0  ;;  %v3823_v59 = vpop.f32.mrf.mxu1 }
 0x3e4   : > { %v3824_v43 = vadd.f32 %v3823_v59, %v3774_v24  ;;  %v16957_v2 = vand.u32 4294901760, %v4342_v51  ;;  %v3778_v27 = vadd.f32 %v3777_v47, %v3722_v18 }
 0x3e5   : > { %v3733_v45 = vpop.f32.mrf.mxu3  ;;  %v3861_v10 = vpop.f32.mrf.mxu2 }
 0x3e6   : > { %v3734_v37 = vadd.f32 %v3733_v45, %v3668_v41  ;;  %4336 = vmatmul.f32.gmra.mxu0 %v16931_v61  ;;  %v16947_v38 = vadd.f32 %v3824_v43, %v23135_v16  ;;  %4394 = vmatmul.f32.gmra.mxu1 %v16861_v3  ;;  %v16964_v41 = vperm.slane %v16953_v39, 0  ;;  %v4350_v45 = vsub.f32 %v16944_v17, %v16960_v32  ;;  %v23138_v43 = vld [vmem:[#allocation16_spill] sm:$0xff] }
 0x3e8   : > { %23136 = vst [vmem:[#allocation24_spill] sm:$0xff] %v16947_v38  ;;  %v16979_v47 = vand.u32 4294901760, %v4350_v45 }
 0x3e9   : > { %23137 = vst [vmem:[#allocation35_spill] sm:$0xff] %v16964_v41 }
 0x3ea   : > { %4435 = vmatmul.f32.gmra.mxu2 %v16799_v1  ;;  %4489 = vmatmul.f32.vlgmr.msrb.gmra.mxu3 %v16782_v46 }
 0x3eb   : > { %4966 = vmatpush.msrb.mxu3 %v16718_v42  ;;  %v3781_v8 = vpop.f32.mrf.mxu0  ;;  %v3827_v21 = vpop.f32.mrf.mxu1  ;;  %v23140_v42 = vld [vmem:[#allocation4_spill] sm:$0xff] }
 0x3ec   : > { %v3828_v24 = vadd.f32 %v3827_v21, %v3778_v27  ;;  %v5023_v18 = vmul.f32 %v16964_v41, %v23140_v42  ;;  %v23141_v42 = vld [vmem:[#allocation25_spill] sm:$0xff] }
 0x3ed   : > { %v3869_v14 = vpop.f32.mrf.mxu2  ;;  %v3943_v63 = vpop.f32.mrf.mxu3 }
 0x3ee   : > { %v16966_v59 = vadd.f32 %v3943_v63, %v3861_v10  ;;  %4344 = vmatmul.f32.gmra.mxu0 %v16957_v2  ;;  %v16972_v51 = vadd.f32 %v3828_v24, %v23138_v43  ;;  %4398 = vmatmul.f32.gmra.mxu1 %v16886_v33  ;;  %v3782_v10 = vadd.f32 %v3781_v8, %v3728_v4  ;;  %v5059_v27 = vsel %vm1870_vm6, %v5023_v18, 0 }
 0x3f0   : > { %23139 = vst [vmem:[#allocation44_spill] sm:$0xff] %v16972_v51  ;;  %v16985_v51 = vand.u32 4294901760, %v5059_v27 }
 0x3f2   : > { %4440 = vmatmul.f32.gmra.mxu2 %v16823_v0  ;;  %4495 = vmatmul.f32.gmra.mxu3 %v16808_v7  ;;  %v16994_v4 = vsub.f32 %v5059_v27, %v16985_v51 }
 0x3f3   : > { %v3785_v16 = vpop.f32.mrf.mxu0  ;;  %v3831_v21 = vpop.f32.mrf.mxu1 }
 0x3f4   : > { %v3832_v24 = vadd.f32 %v3831_v21, %v3782_v10  ;;  %v3786_v8 = vadd.f32 %v3785_v16, %v3734_v37 }
 0x3f5   : > { %v3877_v63 = vpop.f32.mrf.mxu2  ;;  %v3947_v12 = vpop.f32.mrf.mxu3 }
 0x3f6   : > { %v16982_v43 = vadd.f32 %v3947_v12, %v3869_v14  ;;  %4352 = vmatmul.f32.gmra.mxu0 %v16979_v47  ;;  %v16988_v41 = vadd.f32 %v3832_v24, %v23141_v42  ;;  %4402 = vmatmul.f32.gmra.mxu1 %v16911_v19  ;;  %v22752_v24 = vand.u32 4294901760, %v16994_v4  ;;  %v23143_v42 = vld [vmem:[#allocation37_spill] sm:$0xff] }
 0x3f8   : > { %23142 = vst [vmem:[#allocation36_spill] sm:$0xff] %v16988_v41  ;;  %v5164_v37 = vsub.f32 %v16994_v4, %v22752_v24 }
 0x3fa   : > { %4445 = vmatmul.f32.gmra.mxu2 %v16846_v54  ;;  %4501 = vmatmul.f32.gmra.mxu3 %v16833_v44 }
 0x3fb   : > { %v3995_v45 = vpop.f32.mrf.mxu0  ;;  %v3835_v12 = vpop.f32.mrf.mxu1 }
 0x3fc   : > { %v3836_v10 = vadd.f32 %v3835_v12, %v3786_v8 }
 0x3fd   : > { %v3885_v14 = vpop.f32.mrf.mxu2  ;;  %v3951_v18 = vpop.f32.mrf.mxu3 }
 0x3fe   : > { %v16996_v21 = vadd.f32 %v3951_v18, %v3877_v63  ;;  %4555 = vmatmul.f32.vlgmr.msra.gmra.mxu0 %v16762_v62  ;;  %v17001_v41 = vadd.f32 %v3836_v10, %v23143_v42  ;;  %4406 = vmatmul.f32.gmra.mxu1 %v16936_v53  ;;  %v5165_v18 = vand.u32 4294901760, %v5164_v37 }
 0x3ff   : > { %5080 = vmatpush.msra.mxu0 %v16985_v51 }
 0x400   : > { %23144 = vst [vmem:[#allocation48_spill] sm:$0xff] %v17001_v41 }
 0x402   : > { %4450 = vmatmul.f32.gmra.mxu2 %v16872_v56  ;;  %4507 = vmatmul.f32.gmra.mxu3 %v16859_v60 }
 0x403   : > { %v4000_v16 = vpop.f32.mrf.mxu0  ;;  %v4054_v27 = vpop.f32.mrf.mxu1 }
 0x405   : > { %v3893_v63 = vpop.f32.mrf.mxu2  ;;  %v3955_v8 = vpop.f32.mrf.mxu3 }
 0x406   : > { %v17010_v12 = vadd.f32 %v3955_v8, %v3885_v14  ;;  %4559 = vmatmul.f32.gmra.mxu0 %v16784_v50  ;;  %4605 = vmatmul.f32.vlgmr.msra.gmra.mxu1 %v16762_v62 }
 0x407   : > { %5166 = vmatpush.msra.mxu1 %v5165_v18 }
 0x40a   : > { %4455 = vmatmul.f32.gmra.mxu2 %v16897_v11  ;;  %4513 = vmatmul.f32.gmra.mxu3 %v16884_v40 }
 0x40b   : > { %v4005_v10 = vpop.f32.mrf.mxu0  ;;  %v4060_v42 = vpop.f32.mrf.mxu1 }
 0x40d   : > { %v3901_v41 = vpop.f32.mrf.mxu2  ;;  %v3959_v24 = vpop.f32.mrf.mxu3 }
 0x40e   : > { %v17016_v38 = vadd.f32 %v3959_v24, %v3893_v63  ;;  %4563 = vmatmul.f32.gmra.mxu0 %v16810_v30  ;;  %4609 = vmatmul.f32.gmra.mxu1 %v16784_v50 }
 0x412   : > { %4460 = vmatmul.f32.gmra.mxu2 %v16922_v28  ;;  %4519 = vmatmul.f32.gmra.mxu3 %v16909_v31 }
 0x413   : > { %v4010_v14 = vpop.f32.mrf.mxu0  ;;  %v4066_v37 = vpop.f32.mrf.mxu1 }
 0x415   : > { %v3909_v8 = vpop.f32.mrf.mxu2  ;;  %v3963_v18 = vpop.f32.mrf.mxu3 }
 0x416   : > { %v17022_v36 = vadd.f32 %v3963_v18, %v3901_v41  ;;  %4567 = vmatmul.f32.gmra.mxu0 %v16835_v20  ;;  %4613 = vmatmul.f32.gmra.mxu1 %v16810_v30  ;;  %v3996_v41 = vadd.f32 %v3995_v45, %v16966_v59  ;;  %v4001_v59 = vadd.f32 %v4000_v16, %v16982_v43 }
 0x418   : > { %v4061_v45 = vadd.f32 %v4060_v42, %v4001_v59 }
 0x41a   : > { %4465 = vmatmul.f32.gmra.mxu2 %v16944_v17  ;;  %4525 = vmatmul.f32.gmra.mxu3 %v16934_v25  ;;  %v4055_v25 = vadd.f32 %v4054_v27, %v3996_v41 }
 0x41b   : > { %v4015_v24 = vpop.f32.mrf.mxu0  ;;  %v4072_v63 = vpop.f32.mrf.mxu1 }
 0x41d   : > { %v3917_v49 = vpop.f32.mrf.mxu2  ;;  %v3967_v6 = vpop.f32.mrf.mxu3 }
 0x41e   : > { %v17028_v15 = vadd.f32 %v3967_v6, %v3909_v8  ;;  %4571 = vmatmul.f32.gmra.mxu0 %v16861_v3  ;;  %4617 = vmatmul.f32.gmra.mxu1 %v16835_v20 }
 0x422   : > { %4531 = vmatmul.f32.gmra.mxu3 %v16960_v32  ;;  %4659 = vmatmul.f32.vlgmr.msra.gmra.mxu2 %v16805_v57 }
 0x423   : > { %5217 = vmatpush.msra.mxu2 %v16994_v4  ;;  %v17036_v18 = vpop.f32.mrf.mxu0  ;;  %v4078_v17 = vpop.f32.mrf.mxu1 }
 0x425   : > { %v3971_v31 = vpop.f32.mrf.mxu3  ;;  %v4120_v28 = vpop.f32.mrf.mxu2 }
 0x426   : > { %v17038_v6 = vadd.f32 %v3971_v31, %v3917_v49  ;;  %v4121_v8 = vadd.f32 %v4120_v28, %v4055_v25  ;;  %4575 = vmatmul.f32.gmra.mxu0 %v16886_v33  ;;  %4621 = vmatmul.f32.gmra.mxu1 %v16861_v3 }
 0x42a   : > { %4667 = vmatmul.f32.gmra.mxu2 %v16830_v26  ;;  %4741 = vmatmul.f32.vlgmr.msra.gmra.mxu3 %v16762_v62  ;;  %v4006_v26 = vadd.f32 %v4005_v10, %v16996_v21  ;;  %v4011_v21 = vadd.f32 %v4010_v14, %v17010_v12 }
 0x42b   : > { %5275 = vmatpush.msra.mxu3 %v16985_v51  ;;  %v17046_v57 = vpop.f32.mrf.mxu0  ;;  %v4084_v27 = vpop.f32.mrf.mxu1 }
 0x42c   : > { %v4067_v16 = vadd.f32 %v4066_v37, %v4006_v26  ;;  %v4073_v10 = vadd.f32 %v4072_v63, %v4011_v21 }
 0x42d   : > { %v4124_v41 = vpop.f32.mrf.mxu2  ;;  %v4170_v49 = vpop.f32.mrf.mxu3 }
 0x42e   : > { %v4125_v31 = vadd.f32 %v4124_v41, %v4061_v45  ;;  %v4171_v28 = vadd.f32 %v4170_v49, %v4121_v8  ;;  %4579 = vmatmul.f32.gmra.mxu0 %v16911_v19  ;;  %4625 = vmatmul.f32.gmra.mxu1 %v16886_v33 }
 0x430   : > { %v17051_v25 = vadd.f32 %v4171_v28, %v16641_v9 }
 0x432   : > { %4675 = vmatmul.f32.gmra.mxu2 %v16856_v29  ;;  %4745 = vmatmul.f32.gmra.mxu3 %v16784_v50 }
 0x433   : > { %v17056_v43 = vpop.f32.mrf.mxu0  ;;  %v4090_v42 = vpop.f32.mrf.mxu1 }
 0x435   : > { %v4128_v59 = vpop.f32.mrf.mxu2  ;;  %v4174_v45 = vpop.f32.mrf.mxu3 }
 0x436   : > { %v4129_v8 = vadd.f32 %v4128_v59, %v4067_v16  ;;  %v4175_v41 = vadd.f32 %v4174_v45, %v4125_v31  ;;  %4583 = vmatmul.f32.gmra.mxu0 %v16936_v53  ;;  %4629 = vmatmul.f32.gmra.mxu1 %v16911_v19 }
 0x438   : > { %v17061_v9 = vadd.f32 %v4175_v41, %v16652_v22  ;;  %v23145_v22 = vand.u32 4294901760, %v16994_v4 }
 0x43a   : > { %4683 = vmatmul.f32.gmra.mxu2 %v16881_v35  ;;  %4749 = vmatmul.f32.gmra.mxu3 %v16810_v30  ;;  %v4016_v35 = vadd.f32 %v4015_v24, %v17016_v38 }
 0x43b   : > { %v17066_v29 = vpop.f32.mrf.mxu0  ;;  %v4096_v37 = vpop.f32.mrf.mxu1 }
 0x43c   : > { %v4079_v63 = vadd.f32 %v4078_v17, %v4016_v35 }
 0x43d   : > { %v4132_v49 = vpop.f32.mrf.mxu2  ;;  %v4178_v28 = vpop.f32.mrf.mxu3 }
 0x43e   : > { %v4133_v31 = vadd.f32 %v4132_v49, %v4073_v10  ;;  %v4179_v26 = vadd.f32 %v4178_v28, %v4129_v8  ;;  %4793 = vmatmul.f32.vlgmr.msrb.gmra.mxu0 %v16775_v13  ;;  %4633 = vmatmul.f32.gmra.mxu1 %v16936_v53 }
 0x43f   : > { %5343 = vmatpush.msrb.mxu0 %v23145_v22 }
 0x440   : > { %v17073_v12 = vadd.f32 %v4179_v26, %v16665_v58 }
 0x442   : > { %4691 = vmatmul.f32.gmra.mxu2 %v16906_v5  ;;  %4753 = vmatmul.f32.gmra.mxu3 %v16835_v20  ;;  %v4021_v5 = vadd.f32 %v17036_v18, %v17022_v36 }
 0x443   : > { %v17078_v14 = vpop.f32.mrf.mxu0  ;;  %v4379_v16 = vpop.f32.mrf.mxu1 }
 0x444   : > { %v4085_v38 = vadd.f32 %v4084_v27, %v4021_v5 }
 0x445   : > { %v4136_v59 = vpop.f32.mrf.mxu2  ;;  %v4182_v13 = vpop.f32.mrf.mxu3 }
 0x446   : > { %v4137_v45 = vadd.f32 %v4136_v59, %v4079_v63  ;;  %v4183_v8 = vadd.f32 %v4182_v13, %v4133_v31  ;;  %4798 = vmatmul.f32.gmra.mxu0 %v16799_v1  ;;  %4852 = vmatmul.f32.vlgmr.msrb.gmra.mxu1 %v16782_v46 }
 0x447   : > { %5393 = vmatpush.msrb.mxu1 %v16985_v51  ;;  %v23147_v51 = vld [vmem:[#allocation3_spill] sm:$0xff] }
 0x448   : > { %v17083_v58 = vadd.f32 %v4183_v8, %v16679_v52  ;;  %v17094_v52 = vperm.slane %v16953_v39, 1 }
 0x44a   : > { %4699 = vmatmul.f32.gmra.mxu2 %v16931_v61  ;;  %4757 = vmatmul.f32.gmra.mxu3 %v16861_v3  ;;  %23146 = vst [vmem:[#allocation23_spill] sm:$0xff] %v17094_v52  ;;  %v4026_v61 = vadd.f32 %v17046_v57, %v17028_v15  ;;  %v5024_v18 = vmul.f32 %v17094_v52, %v23147_v51 }
 0x44b   : > { %v17090_v17 = vpop.f32.mrf.mxu0  ;;  %v4383_v4 = vpop.f32.mrf.mxu1 }
 0x44c   : > { %v5062_v15 = vsel %vm1870_vm6, %v5024_v18, 0 }
 0x44d   : > { %v4140_v24 = vpop.f32.mrf.mxu2  ;;  %v4186_v1 = vpop.f32.mrf.mxu3  ;;  %v17116_v57 = vand.u32 4294901760, %v5062_v15 }
 0x44e   : > { %v4141_v41 = vadd.f32 %v4140_v24, %v4085_v38  ;;  %v4187_v46 = vadd.f32 %v4186_v1, %v4137_v45  ;;  %4803 = vmatmul.f32.gmra.mxu0 %v16823_v0  ;;  %4858 = vmatmul.f32.gmra.mxu1 %v16808_v7  ;;  %v4091_v0 = vadd.f32 %v4090_v42, %v4026_v61  ;;  %v23150_v61 = vld [vmem:[#allocation31_spill] sm:$0xff] }
 0x44f   : > { %v4031_v42 = vadd.f32 %v17056_v43, %v17038_v6  ;;  %v4384_v38 = vadd.f32 %v4383_v4, %v17078_v14 }
 0x450   : > { %v17098_v36 = vadd.f32 %v4187_v46, %v16700_v55  ;;  %v23149_v46 = vld [vmem:[#allocation41_spill] sm:$0xff] }
 0x451   : > { %v4097_v28 = vadd.f32 %v4096_v37, %v4031_v42  ;;  %v4380_v37 = vadd.f32 %v4379_v16, %v17066_v29  ;;  %v23151_v42 = vld [vmem:[#allocation19_spill] sm:$0xff] }
 0x452   : > { %4707 = vmatmul.f32.gmra.mxu2 %v16957_v2  ;;  %4761 = vmatmul.f32.gmra.mxu3 %v16886_v33 }
 0x453   : > { %v17106_v27 = vpop.f32.mrf.mxu0  ;;  %v17108_v39 = vpop.f32.mrf.mxu1 }
 0x455   : > { %v4144_v21 = vpop.f32.mrf.mxu2  ;;  %v4190_v7 = vpop.f32.mrf.mxu3 }
 0x456   : > { %v4145_v10 = vadd.f32 %v4144_v21, %v4091_v0  ;;  %v4191_v55 = vadd.f32 %v4190_v7, %v4141_v41  ;;  %4808 = vmatmul.f32.gmra.mxu0 %v16846_v54  ;;  %4864 = vmatmul.f32.gmra.mxu1 %v16833_v44  ;;  %v17127_v44 = vsub.f32 %v5062_v15, %v17116_v57  ;;  %v14110_v7 = vld [vmem:[%s22656_s4 + $0x110] sm:$0xff] }
 0x457   : > { %v4388_v0 = vadd.f32 %v17108_v39, %v17090_v17  ;;  %v5041_v17 = vsel %vm1845_vm4, %v14110_v7, 0 }
 0x458   : > { %v17114_v2 = vadd.f32 %v4191_v55, %v16716_v48  ;;  %v5526_v6 = vand.u32 4294901760, %v17127_v44 }
 0x45a   : > { %4715 = vmatmul.f32.gmra.mxu2 %v16979_v47  ;;  %4765 = vmatmul.f32.gmra.mxu3 %v16911_v19  ;;  %v5527_v63 = vsub.f32 %v17127_v44, %v5526_v6 }
 0x45b   : > { %v17122_v49 = vpop.f32.mrf.mxu0  ;;  %v17124_v54 = vpop.f32.mrf.mxu1 }
 0x45c   : > { %v5528_v45 = vand.u32 4294901760, %v5527_v63 }
 0x45d   : > { %v4148_v31 = vpop.f32.mrf.mxu2  ;;  %v4194_v26 = vpop.f32.mrf.mxu3 }
 0x45e   : > { %v4149_v48 = vadd.f32 %v4148_v31, %v4097_v28  ;;  %v4195_v22 = vadd.f32 %v4194_v26, %v4145_v10  ;;  %4813 = vmatmul.f32.gmra.mxu0 %v16872_v56  ;;  %4870 = vmatmul.f32.gmra.mxu1 %v16859_v60  ;;  %v14108_v60 = vld [vmem:[%s22656_s4 + $0x100] sm:$0xff]  ;;  %v23152_v26 = vld [vmem:[#allocation45_spill] sm:$0xff] }
 0x45f   : > { %v5035_v29 = vsel %vm1845_vm4, %v14108_v60, 0  ;;  %v4392_v60 = vadd.f32 %v17124_v54, %v17106_v27 }
 0x460   : > { %v17132_v47 = vadd.f32 %v4195_v22, %v16735_v34  ;;  %v17157_v8 = vand.u32 4294901760, %v5035_v29  ;;  %v17204_v22 = vand.u32 4294901760, %v5041_v17 }
 0x462   : > { %4769 = vmatmul.f32.gmra.mxu3 %v16936_v53  ;;  %4918 = vmatmul.f32.vlgmr.msrb.gmra.mxu2 %v16762_v62 }
 0x463   : > { %5443 = vmatpush.msrb.mxu2 %v17116_v57  ;;  %v17138_v43 = vpop.f32.mrf.mxu0  ;;  %v17141_v35 = vpop.f32.mrf.mxu1 }
 0x465   : > { %v4198_v34 = vpop.f32.mrf.mxu3  ;;  %v4431_v56 = vpop.f32.mrf.mxu2 }
 0x466   : > { %v4199_v59 = vadd.f32 %v4198_v34, %v4149_v48  ;;  %v4432_v13 = vadd.f32 %v4431_v56, %v4380_v37  ;;  %4818 = vmatmul.f32.gmra.mxu0 %v16897_v11  ;;  %4876 = vmatmul.f32.gmra.mxu1 %v16884_v40  ;;  %v14109_v40 = vld [vmem:[%s22656_s4 + $0x108] sm:$0xff]  ;;  %v14111_v56 = vld [vmem:[%s22656_s4 + $0x118] sm:$0xff] }
 0x467   : > { %v5038_v51 = vsel %vm1845_vm4, %v14109_v40, 0  ;;  %v5044_v27 = vsel %vm1845_vm4, %v14111_v56, 0  ;;  %v14113_v56 = vld [vmem:[%s22656_s4 + $0x128] sm:$0xff] }
 0x468   : > { %v17153_v16 = vadd.f32 %v4199_v59, %v16758_v23  ;;  %v17178_v4 = vand.u32 4294901760, %v5038_v51  ;;  %v17229_v40 = vand.u32 4294901760, %v5044_v27 }
 0x46a   : > { %23148 = vst [vmem:[#allocation27_spill] sm:$0xff] %v17153_v16  ;;  %4922 = vmatmul.f32.gmra.mxu2 %v16784_v50  ;;  %4968 = vmatmul.f32.vlgmr.msrb.gmra.mxu3 %v16762_v62  ;;  %v17169_v62 = vsub.f32 %v5035_v29, %v17157_v8  ;;  %v17193_v31 = vsub.f32 %v5038_v51, %v17178_v4 }
 0x46b   : > { %5529 = vmatpush.msrb.mxu3 %v5528_v45  ;;  %v17159_v5 = vpop.f32.mrf.mxu0  ;;  %v17162_v11 = vpop.f32.mrf.mxu1  ;;  %v17217_v45 = vsub.f32 %v5041_v17, %v17204_v22 }
 0x46c   : > { %v17176_v14 = vand.u32 4294901760, %v17169_v62  ;;  %v17202_v48 = vand.u32 4294901760, %v17193_v31 }
 0x46d   : > { %v4436_v23 = vpop.f32.mrf.mxu2  ;;  %v4490_v24 = vpop.f32.mrf.mxu3 }
 0x46e   : > { %v4437_v1 = vadd.f32 %v4436_v23, %v4384_v38  ;;  %v4491_v41 = vadd.f32 %v4490_v24, %v4432_v13  ;;  %4823 = vmatmul.f32.gmra.mxu0 %v23149_v46  ;;  %4882 = vmatmul.f32.gmra.mxu1 %v23150_v61  ;;  %v5084_v28 = vsub.f32 %v17169_v62, %v17176_v14  ;;  %v17227_v38 = vand.u32 4294901760, %v17217_v45  ;;  %v14112_v46 = vld [vmem:[%s22656_s4 + $0x120] sm:$0xff] }
 0x46f   : > { %v5092_v29 = vsub.f32 %v17193_v31, %v17202_v48 }
 0x470   : > { %v17199_v39 = vand.u32 4294901760, %v5084_v28 }
 0x471   : > { %v17224_v54 = vand.u32 4294901760, %v5092_v29 }
 0x472   : > { %4926 = vmatmul.f32.gmra.mxu2 %v16810_v30  ;;  %4972 = vmatmul.f32.gmra.mxu3 %v16784_v50 }
 0x473   : > { %v17180_v18 = vpop.f32.mrf.mxu0  ;;  %v17184_v21 = vpop.f32.mrf.mxu1 }
 0x475   : > { %v4441_v10 = vpop.f32.mrf.mxu2  ;;  %v4496_v55 = vpop.f32.mrf.mxu3 }
 0x476   : > { %v4442_v15 = vadd.f32 %v4441_v10, %v4388_v0  ;;  %v4497_v50 = vadd.f32 %v4496_v55, %v4437_v1  ;;  %4828 = vmatmul.f32.gmra.mxu0 %v23151_v42  ;;  %4888 = vmatmul.f32.gmra.mxu1 %v23152_v26  ;;  %v5100_v10 = vsub.f32 %v17217_v45, %v17227_v38  ;;  %v23153_v55 = vld [vmem:[#allocation42_spill] sm:$0xff] }
 0x47a   : > { %4930 = vmatmul.f32.gmra.mxu2 %v16835_v20  ;;  %4976 = vmatmul.f32.gmra.mxu3 %v16810_v30 }
 0x47b   : > { %v4556_v37 = vpop.f32.mrf.mxu0  ;;  %v17208_v34 = vpop.f32.mrf.mxu1 }
 0x47c   : > { %v4557_v23 = vadd.f32 %v4556_v37, %v4491_v41  ;;  %v17240_v41 = vsub.f32 %v5044_v27, %v17229_v40  ;;  %v4400_v37 = vadd.f32 %v17162_v11, %v17138_v43  ;;  %v5050_v11 = vsel %vm1845_vm4, %v14113_v56, 0 }
 0x47d   : > { %v4446_v63 = vpop.f32.mrf.mxu2  ;;  %v4502_v59 = vpop.f32.mrf.mxu3 }
 0x47e   : > { %v4447_v30 = vadd.f32 %v4446_v63, %v4392_v60  ;;  %v4503_v13 = vadd.f32 %v4502_v59, %v4442_v15  ;;  %5086 = vmatmul.f32.vlgmr.msra.gmra.mxu0 %v17199_v39  ;;  %4894 = vmatmul.f32.gmra.mxu1 %v16960_v32  ;;  %v4396_v32 = vadd.f32 %v17141_v35, %v17122_v49  ;;  %v5047_v35 = vsel %vm1845_vm4, %v14112_v46, 0 }
 0x47f   : > { %5580 = vmatpush.msra.mxu0 %v17127_v44  ;;  %v17250_v15 = vand.u32 4294901760, %v5100_v10  ;;  %v17253_v42 = vand.u32 4294901760, %v17240_v41  ;;  %v17255_v28 = vand.u32 4294901760, %v5047_v35  ;;  %v17347_v44 = vld [vmem:[%s22655_s3 + $0xa] sm:$0x3] }
 0x481   : > { %v5108_v27 = vsub.f32 %v17240_v41, %v17253_v42 }
 0x482   : > { %4934 = vmatmul.f32.gmra.mxu2 %v16861_v3  ;;  %4980 = vmatmul.f32.gmra.mxu3 %v16835_v20 }
 0x483   : > { %v4560_v24 = vpop.f32.mrf.mxu0  ;;  %v4606_v1 = vpop.f32.mrf.mxu1 }
 0x484   : > { %v4607_v20 = vadd.f32 %v4606_v1, %v4557_v23  ;;  %v4561_v26 = vadd.f32 %v4560_v24, %v4497_v50  ;;  %v17266_v50 = vsub.f32 %v5047_v35, %v17255_v28  ;;  %v23155_v23 = vld [vmem:[#allocation15_spill] sm:$0xff]  ;;  %v17275_v24 = vand.u32 4294901760, %v5108_v27 }
 0x485   : > { %v4451_v61 = vpop.f32.mrf.mxu2  ;;  %v4508_v51 = vpop.f32.mrf.mxu3  ;;  %v17280_v1 = vand.u32 4294901760, %v5050_v11 }
 0x486   : > { %v4452_v0 = vadd.f32 %v4451_v61, %v4396_v32  ;;  %v4509_v7 = vadd.f32 %v4508_v51, %v4447_v30  ;;  %5094 = vmatmul.f32.gmra.mxu0 %v17224_v54  ;;  %v17243_v49 = vadd.f32 %v4607_v20, %v23153_v55  ;;  %5168 = vmatmul.f32.vlgmr.msra.gmra.mxu1 %v17157_v8  ;;  %v17278_v32 = vand.u32 4294901760, %v17266_v50 }
 0x487   : > { %5638 = vmatpush.msra.mxu1 %v17116_v57  ;;  %v4404_v51 = vadd.f32 %v17184_v21, %v17159_v5 }
 0x488   : > { %23154 = vst [vmem:[#allocation39_spill] sm:$0xff] %v17243_v49 }
 0x48a   : > { %4938 = vmatmul.f32.gmra.mxu2 %v16886_v33  ;;  %4984 = vmatmul.f32.gmra.mxu3 %v16861_v3 }
 0x48b   : > { %v4564_v17 = vpop.f32.mrf.mxu0  ;;  %v4610_v60 = vpop.f32.mrf.mxu1 }
 0x48c   : > { %v4611_v3 = vadd.f32 %v4610_v60, %v4561_v26  ;;  %v4565_v46 = vadd.f32 %v4564_v17, %v4503_v13  ;;  %v17291_v13 = vsub.f32 %v5050_v11, %v17280_v1  ;;  %v23157_v17 = vld [vmem:[#allocation20_spill] sm:$0xff] }
 0x48d   : > { %v4456_v63 = vpop.f32.mrf.mxu2  ;;  %v4514_v59 = vpop.f32.mrf.mxu3 }
 0x48e   : > { %v4457_v30 = vadd.f32 %v4456_v63, %v4400_v37  ;;  %v4515_v29 = vadd.f32 %v4514_v59, %v4452_v0  ;;  %5102 = vmatmul.f32.gmra.mxu0 %v17250_v15  ;;  %v17269_v43 = vadd.f32 %v4611_v3, %v23155_v23  ;;  %5172 = vmatmul.f32.gmra.mxu1 %v17178_v4  ;;  %v14114_v0 = vld [vmem:[%s22656_s4 + $0x130] sm:$0xff]  ;;  %v17303_v56 = vand.u32 4294901760, %v17291_v13  ;;  %v14115_v23 = vld [vmem:[%s22656_s4 + $0x138] sm:$0xff] }
 0x48f   : > { %v5116_v37 = vsub.f32 %v17266_v50, %v17278_v32  ;;  %v5053_v21 = vsel %vm1845_vm4, %v14114_v0, 0 }
 0x490   : > { %23156 = vst [vmem:[#allocation47_spill] sm:$0xff] %v17269_v43  ;;  %v17305_v63 = vand.u32 4294901760, %v5053_v21  ;;  %v5124_v0 = vsub.f32 %v17291_v13, %v17303_v56 }
 0x491   : > { %v17300_v60 = vand.u32 4294901760, %v5116_v37  ;;  %23159 = vst [vmem:[#allocation52_spill] sm:$0xff] %v17303_v56 }
 0x492   : > { %4942 = vmatmul.f32.gmra.mxu2 %v16911_v19  ;;  %4988 = vmatmul.f32.gmra.mxu3 %v16886_v33 }
 0x493   : > { %v4568_v61 = vpop.f32.mrf.mxu0  ;;  %v4614_v20 = vpop.f32.mrf.mxu1 }
 0x494   : > { %v4615_v33 = vadd.f32 %v4614_v20, %v4565_v46  ;;  %v4569_v59 = vadd.f32 %v4568_v61, %v4509_v7  ;;  %v17316_v7 = vsub.f32 %v5053_v21, %v17305_v63  ;;  %v23161_v61 = vld [vmem:[#allocation32_spill] sm:$0xff] }
 0x495   : > { %v4461_v10 = vpop.f32.mrf.mxu2  ;;  %v4520_v55 = vpop.f32.mrf.mxu3 }
 0x496   : > { %v4462_v35 = vadd.f32 %v4461_v10, %v4404_v51  ;;  %v4521_v26 = vadd.f32 %v4520_v55, %v4457_v30  ;;  %5110 = vmatmul.f32.gmra.mxu0 %v17275_v24  ;;  %v17294_v5 = vadd.f32 %v4615_v33, %v23157_v17  ;;  %5176 = vmatmul.f32.gmra.mxu1 %v17204_v22  ;;  %v17325_v10 = vand.u32 4294901760, %v5124_v0  ;;  %v23168_v0 = vld [vmem:[#allocation62_spill] sm:$0xff] }
 0x497   : > { %v4408_v30 = vadd.f32 %v17208_v34, %v17180_v18  ;;  %23160 = vst [vmem:[#allocation26_spill] sm:$0xff] %v17316_v7  ;;  %v5056_v34 = vsel %vm1845_vm4, %v14115_v23, 0  ;;  %v17328_v55 = vand.u32 4294901760, %v17316_v7 }
 0x498   : > { %23158 = vst [vmem:[#allocation40_spill] sm:$0xff] %v17294_v5  ;;  %v17330_v33 = vand.u32 4294901760, %v5056_v34 }
 0x499   : > { %23163 = vst [vmem:[#allocation43_spill] sm:$0xff] %v17328_v55 }
 0x49a   : > { %4946 = vmatmul.f32.gmra.mxu2 %v16936_v53  ;;  %4992 = vmatmul.f32.gmra.mxu3 %v16911_v19  ;;  %v17338_v23 = vsub.f32 %v5056_v34, %v17330_v33 }
 0x49b   : > { %v4572_v3 = vpop.f32.mrf.mxu0  ;;  %v4618_v27 = vpop.f32.mrf.mxu1 }
 0x49c   : > { %v4619_v19 = vadd.f32 %v4618_v27, %v4569_v59  ;;  %23164 = vst [vmem:[#allocation51_spill] sm:$0xff] %v17338_v23 }
 0x49d   : > { %v4466_v11 = vpop.f32.mrf.mxu2  ;;  %v4526_v46 = vpop.f32.mrf.mxu3 }
 0x49e   : > { %v4467_v51 = vadd.f32 %v4466_v11, %v4408_v30  ;;  %v4527_v20 = vadd.f32 %v4526_v46, %v4462_v35  ;;  %5118 = vmatmul.f32.gmra.mxu0 %v17300_v60  ;;  %v17319_v18 = vadd.f32 %v4619_v19, %v23161_v61  ;;  %5180 = vmatmul.f32.gmra.mxu1 %v17229_v40  ;;  %v23165_v11 = vld [vmem:[#allocation24_spill] sm:$0xff]  ;;  %v23169_v61 = vld [vmem:[#allocation61_spill] sm:$0xff] }
 0x49f   : > { %v4573_v35 = vadd.f32 %v4572_v3, %v4515_v29  ;;  %v17354_v29 = vand.u32 4294901760, %v17338_v23  ;;  %v17357_v3 = vperm.slane %v17347_v44, 0  ;;  %v5811_v34 = vsel %vm5810_vm10, %v23169_v61, %v23168_v0 }
 0x4a0   : > { %23162 = vst [vmem:[#allocation29_spill] sm:$0xff] %v17319_v18 }
 0x4a1   : > { %23167 = vst [vmem:[#allocation54_spill] sm:$0xff] %v17357_v3 }
 0x4a2   : > { %4996 = vmatmul.f32.gmra.mxu3 %v16936_v53  ;;  %5220 = vmatmul.f32.vlgmr.msra.gmra.mxu2 %v17169_v62  ;;  %v5132_v53 = vsub.f32 %v17316_v7, %v17328_v55 }
 0x4a3   : > { %5706 = vmatpush.msra.mxu2 %v5526_v6  ;;  %v4576_v37 = vpop.f32.mrf.mxu0  ;;  %v4622_v17 = vpop.f32.mrf.mxu1 }
 0x4a4   : > { %v4623_v30 = vadd.f32 %v4622_v17, %v4573_v35  ;;  %v17351_v6 = vand.u32 4294901760, %v5132_v53  ;;  %v4577_v19 = vadd.f32 %v4576_v37, %v4521_v26  ;;  %v5822_v26 = vmul.f32 %v17357_v3, %v5811_v34  ;;  %v23170_v37 = vld [vmem:[#allocation44_spill] sm:$0xff] }
 0x4a5   : > { %v4532_v21 = vpop.f32.mrf.mxu3  ;;  %v4660_v59 = vpop.f32.mrf.mxu2 }
 0x4a6   : > { %v4533_v27 = vadd.f32 %v4532_v21, %v4467_v51  ;;  %5126 = vmatmul.f32.gmra.mxu0 %v17325_v10  ;;  %v17341_v46 = vadd.f32 %v4623_v30, %v23165_v11  ;;  %5184 = vmatmul.f32.gmra.mxu1 %v17255_v28  ;;  %v5140_v11 = vsub.f32 %v17338_v23, %v17354_v29 }
 0x4a8   : > { %23166 = vst [vmem:[#allocation46_spill] sm:$0xff] %v17341_v46  ;;  %v17375_v61 = vand.u32 4294901760, %v5140_v11 }
 0x4aa   : > { %5225 = vmatmul.f32.gmra.mxu2 %v17193_v31  ;;  %5279 = vmatmul.f32.vlgmr.msra.gmra.mxu3 %v17176_v14 }
 0x4ab   : > { %5756 = vmatpush.msra.mxu3 %v17116_v57  ;;  %v4580_v51 = vpop.f32.mrf.mxu0  ;;  %v4626_v35 = vpop.f32.mrf.mxu1 }
 0x4ac   : > { %v4627_v30 = vadd.f32 %v4626_v35, %v4577_v19  ;;  %v4581_v19 = vadd.f32 %v4580_v51, %v4527_v20 }
 0x4ad   : > { %v4668_v17 = vpop.f32.mrf.mxu2  ;;  %v4742_v21 = vpop.f32.mrf.mxu3 }
 0x4ae   : > { %v17363_v53 = vadd.f32 %v4742_v21, %v4660_v59  ;;  %5134 = vmatmul.f32.gmra.mxu0 %v17351_v6  ;;  %v17370_v57 = vadd.f32 %v4627_v30, %v23170_v37  ;;  %5188 = vmatmul.f32.gmra.mxu1 %v17280_v1  ;;  %v5858_v59 = vsel %vm1870_vm6, %v5822_v26, 0  ;;  %v23172_v37 = vld [vmem:[#allocation36_spill] sm:$0xff] }
 0x4af   : > { %v17378_v34 = vand.u32 4294901760, %v5858_v59 }
 0x4b0   : > { %23171 = vst [vmem:[#allocation49_spill] sm:$0xff] %v17370_v57 }
 0x4b1   : > { %v17388_v11 = vsub.f32 %v5858_v59, %v17378_v34 }
 0x4b2   : > { %5230 = vmatmul.f32.gmra.mxu2 %v17217_v45  ;;  %5285 = vmatmul.f32.gmra.mxu3 %v17202_v48 }
 0x4b3   : > { %v4584_v35 = vpop.f32.mrf.mxu0  ;;  %v4630_v21 = vpop.f32.mrf.mxu1 }
 0x4b4   : > { %v4631_v18 = vadd.f32 %v4630_v21, %v4581_v19  ;;  %v4585_v20 = vadd.f32 %v4584_v35, %v4533_v27 }
 0x4b5   : > { %v4676_v52 = vpop.f32.mrf.mxu2  ;;  %v4746_v46 = vpop.f32.mrf.mxu3 }
 0x4b6   : > { %v17380_v30 = vadd.f32 %v4746_v46, %v4668_v17  ;;  %5142 = vmatmul.f32.gmra.mxu0 %v17375_v61  ;;  %v17384_v3 = vadd.f32 %v4631_v18, %v23172_v37  ;;  %5192 = vmatmul.f32.gmra.mxu1 %v17305_v63  ;;  %v22761_v18 = vand.u32 4294901760, %v17388_v11  ;;  %v23174_v37 = vld [vmem:[#allocation48_spill] sm:$0xff] }
 0x4b8   : > { %23173 = vst [vmem:[#allocation53_spill] sm:$0xff] %v17384_v3 }
 0x4ba   : > { %5235 = vmatmul.f32.gmra.mxu2 %v17240_v41  ;;  %5291 = vmatmul.f32.gmra.mxu3 %v17227_v38 }
 0x4bb   : > { %v4794_v51 = vpop.f32.mrf.mxu0  ;;  %v4634_v26 = vpop.f32.mrf.mxu1 }
 0x4bc   : > { %v4635_v17 = vadd.f32 %v4634_v26, %v4585_v20 }
 0x4bd   : > { %v4684_v19 = vpop.f32.mrf.mxu2  ;;  %v4750_v46 = vpop.f32.mrf.mxu3 }
 0x4be   : > { %v17392_v21 = vadd.f32 %v4750_v46, %v4676_v52  ;;  %5345 = vmatmul.f32.vlgmr.msrb.gmra.mxu0 %v17157_v8  ;;  %v17397_v3 = vadd.f32 %v4635_v17, %v23174_v37  ;;  %5196 = vmatmul.f32.gmra.mxu1 %v17330_v33  ;;  %v5963_v52 = vsub.f32 %v17388_v11, %v22761_v18 }
 0x4bf   : > { %5879 = vmatpush.msrb.mxu0 %v17378_v34 }
 0x4c0   : > { %23175 = vst [vmem:[#allocation55_spill] sm:$0xff] %v17397_v3  ;;  %v5964_v46 = vand.u32 4294901760, %v5963_v52 }
 0x4c2   : > { %5240 = vmatmul.f32.gmra.mxu2 %v17266_v50  ;;  %5297 = vmatmul.f32.gmra.mxu3 %v17253_v42 }
 0x4c3   : > { %v4799_v27 = vpop.f32.mrf.mxu0  ;;  %v4853_v59 = vpop.f32.mrf.mxu1 }
 0x4c5   : > { %v4692_v35 = vpop.f32.mrf.mxu2  ;;  %v4754_v20 = vpop.f32.mrf.mxu3 }
 0x4c6   : > { %v17406_v26 = vadd.f32 %v4754_v20, %v4684_v19  ;;  %5349 = vmatmul.f32.gmra.mxu0 %v17178_v4  ;;  %5395 = vmatmul.f32.vlgmr.msrb.gmra.mxu1 %v17157_v8 }
 0x4c7   : > { %5965 = vmatpush.msrb.mxu1 %v5964_v46 }
 0x4ca   : > { %5245 = vmatmul.f32.gmra.mxu2 %v17291_v13  ;;  %5303 = vmatmul.f32.gmra.mxu3 %v17278_v32 }
 0x4cb   : > { %v4804_v17 = vpop.f32.mrf.mxu0  ;;  %v4859_v37 = vpop.f32.mrf.mxu1 }
 0x4cd   : > { %v4700_v3 = vpop.f32.mrf.mxu2  ;;  %v4758_v18 = vpop.f32.mrf.mxu3 }
 0x4ce   : > { %v17412_v57 = vadd.f32 %v4758_v18, %v4692_v35  ;;  %5353 = vmatmul.f32.gmra.mxu0 %v17204_v22  ;;  %5399 = vmatmul.f32.gmra.mxu1 %v17178_v4 }
 0x4d2   : > { %5250 = vmatmul.f32.gmra.mxu2 %v17316_v7  ;;  %5309 = vmatmul.f32.gmra.mxu3 %v17303_v56 }
 0x4d3   : > { %v4809_v19 = vpop.f32.mrf.mxu0  ;;  %v4865_v52 = vpop.f32.mrf.mxu1 }
 0x4d5   : > { %v4708_v20 = vpop.f32.mrf.mxu2  ;;  %v4762_v46 = vpop.f32.mrf.mxu3 }
 0x4d6   : > { %v17418_v5 = vadd.f32 %v4762_v46, %v4700_v3  ;;  %5357 = vmatmul.f32.gmra.mxu0 %v17229_v40  ;;  %5403 = vmatmul.f32.gmra.mxu1 %v17204_v22  ;;  %v4795_v3 = vadd.f32 %v4794_v51, %v17363_v53  ;;  %v4800_v53 = vadd.f32 %v4799_v27, %v17380_v30 }
 0x4d8   : > { %v4860_v51 = vadd.f32 %v4859_v37, %v4800_v53 }
 0x4da   : > { %5255 = vmatmul.f32.gmra.mxu2 %v17338_v23  ;;  %5315 = vmatmul.f32.gmra.mxu3 %v17328_v55  ;;  %v4854_v55 = vadd.f32 %v4853_v59, %v4795_v3 }
 0x4db   : > { %v4814_v18 = vpop.f32.mrf.mxu0  ;;  %v4871_v35 = vpop.f32.mrf.mxu1 }
 0x4dd   : > { %v4716_v43 = vpop.f32.mrf.mxu2  ;;  %v4766_v49 = vpop.f32.mrf.mxu3 }
 0x4de   : > { %v17424_v7 = vadd.f32 %v4766_v49, %v4708_v20  ;;  %5361 = vmatmul.f32.gmra.mxu0 %v17255_v28  ;;  %5407 = vmatmul.f32.gmra.mxu1 %v17229_v40 }
 0x4e2   : > { %5321 = vmatmul.f32.gmra.mxu3 %v17354_v29  ;;  %5449 = vmatmul.f32.vlgmr.msrb.gmra.mxu2 %v17199_v39 }
 0x4e3   : > { %6016 = vmatpush.msrb.mxu2 %v17388_v11  ;;  %v17432_v46 = vpop.f32.mrf.mxu0  ;;  %v4877_v23 = vpop.f32.mrf.mxu1 }
 0x4e5   : > { %v4770_v56 = vpop.f32.mrf.mxu3  ;;  %v4919_v16 = vpop.f32.mrf.mxu2 }
 0x4e6   : > { %v17434_v49 = vadd.f32 %v4770_v56, %v4716_v43  ;;  %v4920_v20 = vadd.f32 %v4919_v16, %v4854_v55  ;;  %5365 = vmatmul.f32.gmra.mxu0 %v17280_v1  ;;  %5411 = vmatmul.f32.gmra.mxu1 %v17255_v28 }
 0x4ea   : > { %5457 = vmatmul.f32.gmra.mxu2 %v17224_v54  ;;  %5531 = vmatmul.f32.vlgmr.msrb.gmra.mxu3 %v17157_v8  ;;  %v4805_v54 = vadd.f32 %v4804_v17, %v17392_v21  ;;  %v4810_v21 = vadd.f32 %v4809_v19, %v17406_v26 }
 0x4eb   : > { %6074 = vmatpush.msrb.mxu3 %v17378_v34  ;;  %v17442_v39 = vpop.f32.mrf.mxu0  ;;  %v4883_v59 = vpop.f32.mrf.mxu1 }
 0x4ec   : > { %v4866_v27 = vadd.f32 %v4865_v52, %v4805_v54  ;;  %v4872_v17 = vadd.f32 %v4871_v35, %v4810_v21 }
 0x4ed   : > { %v4923_v3 = vpop.f32.mrf.mxu2  ;;  %v4969_v43 = vpop.f32.mrf.mxu3 }
 0x4ee   : > { %v4924_v56 = vadd.f32 %v4923_v3, %v4860_v51  ;;  %v4970_v16 = vadd.f32 %v4969_v43, %v4920_v20  ;;  %5369 = vmatmul.f32.gmra.mxu0 %v17305_v63  ;;  %5415 = vmatmul.f32.gmra.mxu1 %v17280_v1 }
 0x4f0   : > { %v17447_v55 = vadd.f32 %v4970_v16, %v17051_v25 }
 0x4f2   : > { %5465 = vmatmul.f32.gmra.mxu2 %v17250_v15  ;;  %5535 = vmatmul.f32.gmra.mxu3 %v17178_v4 }
 0x4f3   : > { %v17452_v30 = vpop.f32.mrf.mxu0  ;;  %v4889_v37 = vpop.f32.mrf.mxu1 }
 0x4f5   : > { %v4927_v53 = vpop.f32.mrf.mxu2  ;;  %v4973_v51 = vpop.f32.mrf.mxu3 }
 0x4f6   : > { %v4928_v20 = vadd.f32 %v4927_v53, %v4866_v27  ;;  %v4974_v3 = vadd.f32 %v4973_v51, %v4924_v56  ;;  %5373 = vmatmul.f32.gmra.mxu0 %v17330_v33  ;;  %5419 = vmatmul.f32.gmra.mxu1 %v17305_v63 }
 0x4f8   : > { %v17457_v25 = vadd.f32 %v4974_v3, %v17061_v9  ;;  %v23176_v9 = vand.u32 4294901760, %v17388_v11 }
 0x4fa   : > { %5473 = vmatmul.f32.gmra.mxu2 %v17275_v24  ;;  %5539 = vmatmul.f32.gmra.mxu3 %v17204_v22  ;;  %v4815_v24 = vadd.f32 %v4814_v18, %v17412_v57 }
 0x4fb   : > { %v17462_v15 = vpop.f32.mrf.mxu0  ;;  %v4895_v52 = vpop.f32.mrf.mxu1 }
 0x4fc   : > { %v4878_v35 = vadd.f32 %v4877_v23, %v4815_v24 }
 0x4fd   : > { %v4931_v43 = vpop.f32.mrf.mxu2  ;;  %v4977_v16 = vpop.f32.mrf.mxu3 }
 0x4fe   : > { %v4932_v56 = vadd.f32 %v4931_v43, %v4872_v17  ;;  %v4978_v54 = vadd.f32 %v4977_v16, %v4928_v20  ;;  %5583 = vmatmul.f32.vlgmr.msra.gmra.mxu0 %v17169_v62  ;;  %5423 = vmatmul.f32.gmra.mxu1 %v17330_v33 }
 0x4ff   : > { %6142 = vmatpush.msra.mxu0 %v23176_v9 }
 0x500   : > { %v17469_v26 = vadd.f32 %v4978_v54, %v17073_v12 }
 0x502   : > { %5481 = vmatmul.f32.gmra.mxu2 %v17300_v60  ;;  %5543 = vmatmul.f32.gmra.mxu3 %v17229_v40  ;;  %v4820_v60 = vadd.f32 %v17432_v46, %v17418_v5  ;;  %v5814_v5 = vsel %vm5810_vm10, %v23168_v0, 0.0  ;;  %v4825_v46 = vadd.f32 %v17442_v39, %v17424_v7  ;;  %v4830_v39 = vadd.f32 %v17452_v30, %v17434_v49 }
 0x503   : > { %v17474_v19 = vpop.f32.mrf.mxu0  ;;  %v5169_v27 = vpop.f32.mrf.mxu1 }
 0x504   : > { %v4884_v57 = vadd.f32 %v4883_v59, %v4820_v60  ;;  %v4896_v43 = vadd.f32 %v4895_v52, %v4830_v39  ;;  %v5170_v52 = vadd.f32 %v5169_v27, %v17462_v15  ;;  %v23178_v27 = vld [vmem:[#allocation27_spill] sm:$0xff] }
 0x505   : > { %v4935_v53 = vpop.f32.mrf.mxu2  ;;  %v4981_v62 = vpop.f32.mrf.mxu3 }
 0x506   : > { %v4936_v51 = vadd.f32 %v4935_v53, %v4878_v35  ;;  %v4982_v20 = vadd.f32 %v4981_v62, %v4932_v56  ;;  %5588 = vmatmul.f32.gmra.mxu0 %v17193_v31  ;;  %5642 = vmatmul.f32.vlgmr.msra.gmra.mxu1 %v17176_v14  ;;  %v17491_v14 = vperm.slane %v17347_v44, 1 }
 0x507   : > { %6192 = vmatpush.msra.mxu1 %v17378_v34 }
 0x508   : > { %v17479_v12 = vadd.f32 %v4982_v20, %v17083_v58  ;;  %23177 = vst [vmem:[#allocation14_spill] sm:$0xff] %v17491_v14  ;;  %v5823_v34 = vmul.f32 %v17491_v14, %v5814_v5  ;;  %v23180_v5 = vld [vmem:[#allocation26_spill] sm:$0xff] }
 0x50a   : > { %5489 = vmatmul.f32.gmra.mxu2 %v17325_v10  ;;  %5547 = vmatmul.f32.gmra.mxu3 %v17255_v28 }
 0x50b   : > { %v17486_v23 = vpop.f32.mrf.mxu0  ;;  %v17488_v11 = vpop.f32.mrf.mxu1 }
 0x50d   : > { %v4939_v31 = vpop.f32.mrf.mxu2  ;;  %v4985_v18 = vpop.f32.mrf.mxu3 }
 0x50e   : > { %v4940_v58 = vadd.f32 %v4939_v31, %v4884_v57  ;;  %v4986_v3 = vadd.f32 %v4985_v18, %v4936_v51  ;;  %5593 = vmatmul.f32.gmra.mxu0 %v17217_v45  ;;  %5648 = vmatmul.f32.gmra.mxu1 %v17202_v48  ;;  %v4890_v45 = vadd.f32 %v4889_v37, %v4825_v46  ;;  %v5861_v48 = vsel %vm1870_vm6, %v5823_v34, 0  ;;  %v23181_v34 = vld [vmem:[#allocation52_spill] sm:$0xff] }
 0x510   : > { %v17498_v10 = vadd.f32 %v4986_v3, %v17098_v36 }
 0x512   : > { %5497 = vmatmul.f32.gmra.mxu2 %v17351_v6  ;;  %5551 = vmatmul.f32.gmra.mxu3 %v17280_v1  ;;  %v17515_v6 = vand.u32 4294901760, %v5861_v48 }
 0x513   : > { %v17505_v44 = vpop.f32.mrf.mxu0  ;;  %v17507_v59 = vpop.f32.mrf.mxu1 }
 0x515   : > { %v4943_v0 = vpop.f32.mrf.mxu2  ;;  %v4989_v21 = vpop.f32.mrf.mxu3 }
 0x516   : > { %v4944_v36 = vadd.f32 %v4943_v0, %v4890_v45  ;;  %v4990_v17 = vadd.f32 %v4989_v21, %v4940_v58  ;;  %5598 = vmatmul.f32.gmra.mxu0 %v17240_v41  ;;  %5654 = vmatmul.f32.gmra.mxu1 %v17227_v38  ;;  %v17526_v41 = vsub.f32 %v5861_v48, %v17515_v6  ;;  %v14119_v48 = vld [vmem:[%s22656_s4 + $0x150] sm:$0xff] }
 0x517   : > { %v5178_v0 = vadd.f32 %v17507_v59, %v17486_v23  ;;  %v5840_v23 = vsel %vm1845_vm4, %v14119_v48, 0 }
 0x518   : > { %v17513_v7 = vadd.f32 %v4990_v17, %v17114_v2  ;;  %v6325_v49 = vand.u32 4294901760, %v17526_v41 }
 0x51a   : > { %5505 = vmatmul.f32.gmra.mxu2 %v17375_v61  ;;  %5555 = vmatmul.f32.gmra.mxu3 %v17305_v63  ;;  %v6326_v24 = vsub.f32 %v17526_v41, %v6325_v49 }
 0x51b   : > { %v17521_v37 = vpop.f32.mrf.mxu0  ;;  %v17523_v16 = vpop.f32.mrf.mxu1 }
 0x51c   : > { %v6327_v51 = vand.u32 4294901760, %v6326_v24  ;;  %v14120_v24 = vld [vmem:[%s22656_s4 + $0x158] sm:$0xff] }
 0x51d   : > { %v4947_v38 = vpop.f32.mrf.mxu2  ;;  %v4993_v2 = vpop.f32.mrf.mxu3 }
 0x51e   : > { %v4948_v56 = vadd.f32 %v4947_v38, %v4896_v43  ;;  %v4994_v54 = vadd.f32 %v4993_v2, %v4944_v36  ;;  %5603 = vmatmul.f32.gmra.mxu0 %v17266_v50  ;;  %5660 = vmatmul.f32.gmra.mxu1 %v17253_v42  ;;  %v14117_v42 = vld [vmem:[%s22656_s4 + $0x140] sm:$0xff]  ;;  %v23182_v43 = vld [vmem:[#allocation51_spill] sm:$0xff] }
 0x51f   : > { %v5834_v15 = vsel %vm1845_vm4, %v14117_v42, 0 }
 0x520   : > { %v17531_v61 = vadd.f32 %v4994_v54, %v17132_v47  ;;  %v17556_v20 = vand.u32 4294901760, %v5834_v15 }
 0x522   : > { %5559 = vmatmul.f32.gmra.mxu3 %v17330_v33  ;;  %5708 = vmatmul.f32.vlgmr.msra.gmra.mxu2 %v17157_v8 }
 0x523   : > { %6242 = vmatpush.msra.mxu2 %v17515_v6  ;;  %v17537_v30 = vpop.f32.mrf.mxu0  ;;  %v17540_v9 = vpop.f32.mrf.mxu1 }
 0x525   : > { %v4997_v47 = vpop.f32.mrf.mxu3  ;;  %v5221_v50 = vpop.f32.mrf.mxu2 }
 0x526   : > { %v4998_v35 = vadd.f32 %v4997_v47, %v4948_v56  ;;  %v5222_v53 = vadd.f32 %v5221_v50, %v5170_v52  ;;  %5608 = vmatmul.f32.gmra.mxu0 %v17291_v13  ;;  %5666 = vmatmul.f32.gmra.mxu1 %v17278_v32  ;;  %v5174_v13 = vadd.f32 %v17488_v11, %v17474_v19  ;;  %v14118_v32 = vld [vmem:[%s22656_s4 + $0x148] sm:$0xff]  ;;  %v17604_v52 = vand.u32 4294901760, %v5840_v23 }
 0x527   : > { %v5837_v46 = vsel %vm1845_vm4, %v14118_v32, 0  ;;  %v23183_v56 = vld [vmem:[#allocation43_spill] sm:$0xff]  ;;  %v5182_v47 = vadd.f32 %v17523_v16, %v17505_v44  ;;  %v5843_v44 = vsel %vm1845_vm4, %v14120_v24, 0 }
 0x528   : > { %v17552_v62 = vadd.f32 %v4998_v35, %v23178_v27  ;;  %v17578_v11 = vand.u32 4294901760, %v5837_v46  ;;  %v17629_v32 = vand.u32 4294901760, %v5843_v44  ;;  %v14122_v24 = vld [vmem:[%s22656_s4 + $0x168] sm:$0xff] }
 0x52a   : > { %23179 = vst [vmem:[#allocation56_spill] sm:$0xff] %v17552_v62  ;;  %5712 = vmatmul.f32.gmra.mxu2 %v17178_v4  ;;  %5758 = vmatmul.f32.vlgmr.msra.gmra.mxu3 %v17157_v8  ;;  %v17569_v8 = vsub.f32 %v5834_v15, %v17556_v20  ;;  %v17593_v2 = vsub.f32 %v5837_v46, %v17578_v11 }
 0x52b   : > { %6328 = vmatpush.msra.mxu3 %v6327_v51  ;;  %v17558_v60 = vpop.f32.mrf.mxu0  ;;  %v17562_v57 = vpop.f32.mrf.mxu1  ;;  %v17617_v51 = vsub.f32 %v5840_v23, %v17604_v52 }
 0x52c   : > { %v17576_v19 = vand.u32 4294901760, %v17569_v8  ;;  %v17602_v54 = vand.u32 4294901760, %v17593_v2 }
 0x52d   : > { %v5226_v31 = vpop.f32.mrf.mxu2  ;;  %v5280_v18 = vpop.f32.mrf.mxu3 }
 0x52e   : > { %v5227_v58 = vadd.f32 %v5226_v31, %v5174_v13  ;;  %v5281_v3 = vadd.f32 %v5280_v18, %v5222_v53  ;;  %5613 = vmatmul.f32.gmra.mxu0 %v23180_v5  ;;  %5672 = vmatmul.f32.gmra.mxu1 %v23181_v34  ;;  %v5883_v38 = vsub.f32 %v17569_v8, %v17576_v19  ;;  %v17627_v13 = vand.u32 4294901760, %v17617_v51  ;;  %v14121_v5 = vld [vmem:[%s22656_s4 + $0x160] sm:$0xff] }
 0x52f   : > { %v5891_v27 = vsub.f32 %v17593_v2, %v17602_v54 }
 0x530   : > { %v17599_v59 = vand.u32 4294901760, %v5883_v38 }
 0x531   : > { %v17624_v16 = vand.u32 4294901760, %v5891_v27 }
 0x532   : > { %5716 = vmatmul.f32.gmra.mxu2 %v17204_v22  ;;  %5762 = vmatmul.f32.gmra.mxu3 %v17178_v4 }
 0x533   : > { %v17580_v45 = vpop.f32.mrf.mxu0  ;;  %v17584_v21 = vpop.f32.mrf.mxu1 }
 0x535   : > { %v5231_v36 = vpop.f32.mrf.mxu2  ;;  %v5286_v17 = vpop.f32.mrf.mxu3 }
 0x536   : > { %v5232_v39 = vadd.f32 %v5231_v36, %v5178_v0  ;;  %v5287_v4 = vadd.f32 %v5286_v17, %v5227_v58  ;;  %5618 = vmatmul.f32.gmra.mxu0 %v23182_v43  ;;  %5678 = vmatmul.f32.gmra.mxu1 %v23183_v56  ;;  %v5899_v36 = vsub.f32 %v17617_v51, %v17627_v13  ;;  %v23184_v17 = vld [vmem:[#allocation39_spill] sm:$0xff] }
 0x53a   : > { %5720 = vmatmul.f32.gmra.mxu2 %v17229_v40  ;;  %5766 = vmatmul.f32.gmra.mxu3 %v17204_v22 }
 0x53b   : > { %v5346_v42 = vpop.f32.mrf.mxu0  ;;  %v17608_v50 = vpop.f32.mrf.mxu1 }
 0x53c   : > { %v5347_v31 = vadd.f32 %v5346_v42, %v5281_v3  ;;  %v17640_v3 = vsub.f32 %v5843_v44, %v17629_v32  ;;  %v5190_v42 = vadd.f32 %v17562_v57, %v17537_v30  ;;  %v5849_v57 = vsel %vm1845_vm4, %v14122_v24, 0 }
 0x53d   : > { %v5236_v35 = vpop.f32.mrf.mxu2  ;;  %v5292_v53 = vpop.f32.mrf.mxu3 }
 0x53e   : > { %v5237_v22 = vadd.f32 %v5236_v35, %v5182_v47  ;;  %v5293_v15 = vadd.f32 %v5292_v53, %v5232_v39  ;;  %5885 = vmatmul.f32.vlgmr.msrb.gmra.mxu0 %v17599_v59  ;;  %5684 = vmatmul.f32.gmra.mxu1 %v17354_v29  ;;  %v5186_v29 = vadd.f32 %v17540_v9, %v17521_v37  ;;  %v5846_v9 = vsel %vm1845_vm4, %v14121_v5, 0 }
 0x53f   : > { %6379 = vmatpush.msrb.mxu0 %v17526_v41  ;;  %v17650_v39 = vand.u32 4294901760, %v5899_v36  ;;  %v17653_v43 = vand.u32 4294901760, %v17640_v3  ;;  %v17655_v38 = vand.u32 4294901760, %v5846_v9  ;;  %v17747_v41 = vld [vmem:[%s22655_s3 + $0xc] sm:$0x3] }
 0x541   : > { %v5907_v44 = vsub.f32 %v17640_v3, %v17653_v43 }
 0x542   : > { %5724 = vmatmul.f32.gmra.mxu2 %v17255_v28  ;;  %5770 = vmatmul.f32.gmra.mxu3 %v17229_v40 }
 0x543   : > { %v5350_v18 = vpop.f32.mrf.mxu0  ;;  %v5396_v58 = vpop.f32.mrf.mxu1 }
 0x544   : > { %v5397_v40 = vadd.f32 %v5396_v58, %v5347_v31  ;;  %v5351_v56 = vadd.f32 %v5350_v18, %v5287_v4  ;;  %v17666_v4 = vsub.f32 %v5846_v9, %v17655_v38  ;;  %v23186_v31 = vld [vmem:[#allocation47_spill] sm:$0xff]  ;;  %v17675_v18 = vand.u32 4294901760, %v5907_v44 }
 0x545   : > { %v5241_v34 = vpop.f32.mrf.mxu2  ;;  %v5298_v46 = vpop.f32.mrf.mxu3  ;;  %v17680_v58 = vand.u32 4294901760, %v5849_v57 }
 0x546   : > { %v5242_v0 = vadd.f32 %v5241_v34, %v5186_v29  ;;  %v5299_v48 = vadd.f32 %v5298_v46, %v5237_v22  ;;  %5893 = vmatmul.f32.gmra.mxu0 %v17624_v16  ;;  %v17643_v37 = vadd.f32 %v5397_v40, %v23184_v17  ;;  %5967 = vmatmul.f32.vlgmr.msrb.gmra.mxu1 %v17556_v20  ;;  %v17678_v29 = vand.u32 4294901760, %v17666_v4 }
 0x547   : > { %6437 = vmatpush.msrb.mxu1 %v17515_v6  ;;  %v5194_v46 = vadd.f32 %v17584_v21, %v17558_v60 }
 0x548   : > { %23185 = vst [vmem:[#allocation7_spill] sm:$0xff] %v17643_v37 }
 0x54a   : > { %5728 = vmatmul.f32.gmra.mxu2 %v17280_v1  ;;  %5774 = vmatmul.f32.gmra.mxu3 %v17255_v28 }
 0x54b   : > { %v5354_v23 = vpop.f32.mrf.mxu0  ;;  %v5400_v47 = vpop.f32.mrf.mxu1 }
 0x54c   : > { %v5401_v28 = vadd.f32 %v5400_v47, %v5351_v56  ;;  %v5355_v5 = vadd.f32 %v5354_v23, %v5293_v15  ;;  %v17691_v15 = vsub.f32 %v5849_v57, %v17680_v58  ;;  %v23188_v23 = vld [vmem:[#allocation40_spill] sm:$0xff] }
 0x54d   : > { %v5246_v35 = vpop.f32.mrf.mxu2  ;;  %v5304_v53 = vpop.f32.mrf.mxu3 }
 0x54e   : > { %v5247_v22 = vadd.f32 %v5246_v35, %v5190_v42  ;;  %v5305_v27 = vadd.f32 %v5304_v53, %v5242_v0  ;;  %5901 = vmatmul.f32.gmra.mxu0 %v17650_v39  ;;  %v17669_v30 = vadd.f32 %v5401_v28, %v23186_v31  ;;  %5971 = vmatmul.f32.gmra.mxu1 %v17578_v11  ;;  %v14123_v0 = vld [vmem:[%s22656_s4 + $0x170] sm:$0xff]  ;;  %v17703_v24 = vand.u32 4294901760, %v17691_v15  ;;  %v14124_v31 = vld [vmem:[%s22656_s4 + $0x178] sm:$0xff] }
 0x54f   : > { %v5915_v42 = vsub.f32 %v17666_v4, %v17678_v29  ;;  %v5852_v21 = vsel %vm1845_vm4, %v14123_v0, 0 }
 0x550   : > { %23187 = vst [vmem:[#allocation22_spill] sm:$0xff] %v17669_v30  ;;  %v17705_v35 = vand.u32 4294901760, %v5852_v21  ;;  %v5923_v0 = vsub.f32 %v17691_v15, %v17703_v24 }
 0x551   : > { %v17700_v47 = vand.u32 4294901760, %v5915_v42  ;;  %23190 = vst [vmem:[#allocation58_spill] sm:$0xff] %v17703_v24 }
 0x552   : > { %5732 = vmatmul.f32.gmra.mxu2 %v17305_v63  ;;  %5778 = vmatmul.f32.gmra.mxu3 %v17280_v1 }
 0x553   : > { %v5358_v34 = vpop.f32.mrf.mxu0  ;;  %v5404_v40 = vpop.f32.mrf.mxu1 }
 0x554   : > { %v5405_v1 = vadd.f32 %v5404_v40, %v5355_v5  ;;  %v5359_v53 = vadd.f32 %v5358_v34, %v5299_v48  ;;  %v17716_v48 = vsub.f32 %v5852_v21, %v17705_v35  ;;  %v23192_v34 = vld [vmem:[#allocation29_spill] sm:$0xff] }
 0x555   : > { %v5251_v36 = vpop.f32.mrf.mxu2  ;;  %v5310_v17 = vpop.f32.mrf.mxu3 }
 0x556   : > { %v5252_v9 = vadd.f32 %v5251_v36, %v5194_v46  ;;  %v5311_v56 = vadd.f32 %v5310_v17, %v5247_v22  ;;  %5909 = vmatmul.f32.gmra.mxu0 %v17675_v18  ;;  %v17694_v60 = vadd.f32 %v5405_v1, %v23188_v23  ;;  %5975 = vmatmul.f32.gmra.mxu1 %v17604_v52  ;;  %v17725_v36 = vand.u32 4294901760, %v5923_v0  ;;  %v23199_v0 = vld [vmem:[#allocation65_spill] sm:$0xff] }
 0x557   : > { %v5198_v22 = vadd.f32 %v17608_v50, %v17580_v45  ;;  %23191 = vst [vmem:[#allocation64_spill] sm:$0xff] %v17716_v48  ;;  %v5855_v50 = vsel %vm1845_vm4, %v14124_v31, 0  ;;  %v17728_v17 = vand.u32 4294901760, %v17716_v48 }
 0x558   : > { %23189 = vst [vmem:[#allocation10_spill] sm:$0xff] %v17694_v60  ;;  %v17730_v1 = vand.u32 4294901760, %v5855_v50 }
 0x559   : > { %23194 = vst [vmem:[#allocation60_spill] sm:$0xff] %v17728_v17 }
 0x55a   : > { %5736 = vmatmul.f32.gmra.mxu2 %v17330_v33  ;;  %5782 = vmatmul.f32.gmra.mxu3 %v17305_v63  ;;  %v17738_v31 = vsub.f32 %v5855_v50, %v17730_v1 }
 0x55b   : > { %v5362_v28 = vpop.f32.mrf.mxu0  ;;  %v5408_v44 = vpop.f32.mrf.mxu1 }
 0x55c   : > { %v5409_v63 = vadd.f32 %v5408_v44, %v5359_v53  ;;  %23195 = vst [vmem:[#allocation63_spill] sm:$0xff] %v17738_v31 }
 0x55d   : > { %v5256_v57 = vpop.f32.mrf.mxu2  ;;  %v5316_v5 = vpop.f32.mrf.mxu3 }
 0x55e   : > { %v5257_v46 = vadd.f32 %v5256_v57, %v5198_v22  ;;  %v5317_v40 = vadd.f32 %v5316_v5, %v5252_v9  ;;  %5917 = vmatmul.f32.gmra.mxu0 %v17700_v47  ;;  %v17719_v45 = vadd.f32 %v5409_v63, %v23192_v34  ;;  %5979 = vmatmul.f32.gmra.mxu1 %v17629_v32  ;;  %v23196_v57 = vld [vmem:[#allocation46_spill] sm:$0xff]  ;;  %v23200_v34 = vld [vmem:[#allocation68_spill] sm:$0xff] }
 0x55f   : > { %v5363_v9 = vadd.f32 %v5362_v28, %v5305_v27  ;;  %v17754_v27 = vand.u32 4294901760, %v17738_v31  ;;  %v17757_v28 = vperm.slane %v17747_v41, 0  ;;  %v6610_v50 = vsel %vm6609_vm11, %v23200_v34, %v23199_v0 }
 0x560   : > { %23193 = vst [vmem:[#allocation59_spill] sm:$0xff] %v17719_v45 }
 0x561   : > { %23198 = vst [vmem:[#allocation18_spill] sm:$0xff] %v17757_v28 }
 0x562   : > { %5786 = vmatmul.f32.gmra.mxu3 %v17330_v33  ;;  %6019 = vmatmul.f32.vlgmr.msrb.gmra.mxu2 %v17569_v8  ;;  %v5931_v33 = vsub.f32 %v17716_v48, %v17728_v17 }
 0x563   : > { %6505 = vmatpush.msrb.mxu2 %v6325_v49  ;;  %v5366_v42 = vpop.f32.mrf.mxu0  ;;  %v5412_v23 = vpop.f32.mrf.mxu1 }
 0x564   : > { %v5413_v22 = vadd.f32 %v5412_v23, %v5363_v9  ;;  %v17751_v49 = vand.u32 4294901760, %v5931_v33  ;;  %v5367_v63 = vadd.f32 %v5366_v42, %v5311_v56  ;;  %v6621_v56 = vmul.f32 %v17757_v28, %v6610_v50  ;;  %v23201_v42 = vld [vmem:[#allocation49_spill] sm:$0xff] }
 0x565   : > { %v5322_v21 = vpop.f32.mrf.mxu3  ;;  %v5450_v53 = vpop.f32.mrf.mxu2 }
 0x566   : > { %v5323_v44 = vadd.f32 %v5322_v21, %v5257_v46  ;;  %5925 = vmatmul.f32.gmra.mxu0 %v17725_v36  ;;  %v17741_v5 = vadd.f32 %v5413_v22, %v23196_v57  ;;  %5983 = vmatmul.f32.gmra.mxu1 %v17655_v38  ;;  %v5939_v57 = vsub.f32 %v17738_v31, %v17754_v27 }
 0x568   : > { %23197 = vst [vmem:[#allocation67_spill] sm:$0xff] %v17741_v5  ;;  %v17775_v34 = vand.u32 4294901760, %v5939_v57 }
 0x56a   : > { %6024 = vmatmul.f32.gmra.mxu2 %v17593_v2  ;;  %6078 = vmatmul.f32.vlgmr.msrb.gmra.mxu3 %v17576_v19 }
 0x56b   : > { %6555 = vmatpush.msrb.mxu3 %v17515_v6  ;;  %v5370_v46 = vpop.f32.mrf.mxu0  ;;  %v5416_v9 = vpop.f32.mrf.mxu1 }
 0x56c   : > { %v5417_v22 = vadd.f32 %v5416_v9, %v5367_v63  ;;  %v5371_v63 = vadd.f32 %v5370_v46, %v5317_v40 }
 0x56d   : > { %v5458_v23 = vpop.f32.mrf.mxu2  ;;  %v5532_v21 = vpop.f32.mrf.mxu3 }
 0x56e   : > { %v17763_v33 = vadd.f32 %v5532_v21, %v5450_v53  ;;  %5933 = vmatmul.f32.gmra.mxu0 %v17751_v49  ;;  %v17770_v6 = vadd.f32 %v5417_v22, %v23201_v42  ;;  %5987 = vmatmul.f32.gmra.mxu1 %v17680_v58  ;;  %v6657_v53 = vsel %vm1870_vm6, %v6621_v56, 0  ;;  %v23203_v42 = vld [vmem:[#allocation53_spill] sm:$0xff] }
 0x56f   : > { %v17778_v50 = vand.u32 4294901760, %v6657_v53 }
 0x570   : > { %23202 = vst [vmem:[#allocation21_spill] sm:$0xff] %v17770_v6 }
 0x571   : > { %v17788_v57 = vsub.f32 %v6657_v53, %v17778_v50 }
 0x572   : > { %6029 = vmatmul.f32.gmra.mxu2 %v17617_v51  ;;  %6084 = vmatmul.f32.gmra.mxu3 %v17602_v54 }
 0x573   : > { %v5374_v9 = vpop.f32.mrf.mxu0  ;;  %v5420_v21 = vpop.f32.mrf.mxu1 }
 0x574   : > { %v5421_v45 = vadd.f32 %v5420_v21, %v5371_v63  ;;  %v5375_v40 = vadd.f32 %v5374_v9, %v5323_v44 }
 0x575   : > { %v5466_v14 = vpop.f32.mrf.mxu2  ;;  %v5536_v5 = vpop.f32.mrf.mxu3 }
 0x576   : > { %v17780_v22 = vadd.f32 %v5536_v5, %v5458_v23  ;;  %5941 = vmatmul.f32.gmra.mxu0 %v17775_v34  ;;  %v17784_v28 = vadd.f32 %v5421_v45, %v23203_v42  ;;  %5991 = vmatmul.f32.gmra.mxu1 %v17705_v35  ;;  %v22770_v45 = vand.u32 4294901760, %v17788_v57  ;;  %v23205_v42 = vld [vmem:[#allocation55_spill] sm:$0xff] }
 0x578   : > { %23204 = vst [vmem:[#allocation13_spill] sm:$0xff] %v17784_v28 }
 0x57a   : > { %6034 = vmatmul.f32.gmra.mxu2 %v17640_v3  ;;  %6090 = vmatmul.f32.gmra.mxu3 %v17627_v13 }
 0x57b   : > { %v5584_v46 = vpop.f32.mrf.mxu0  ;;  %v5424_v56 = vpop.f32.mrf.mxu1 }
 0x57c   : > { %v5425_v23 = vadd.f32 %v5424_v56, %v5375_v40 }
 0x57d   : > { %v5474_v63 = vpop.f32.mrf.mxu2  ;;  %v5540_v5 = vpop.f32.mrf.mxu3 }
 0x57e   : > { %v17792_v21 = vadd.f32 %v5540_v5, %v5466_v14  ;;  %6144 = vmatmul.f32.vlgmr.msra.gmra.mxu0 %v17556_v20  ;;  %v17797_v28 = vadd.f32 %v5425_v23, %v23205_v42  ;;  %5995 = vmatmul.f32.gmra.mxu1 %v17730_v1  ;;  %v6762_v14 = vsub.f32 %v17788_v57, %v22770_v45 }
 0x57f   : > { %6678 = vmatpush.msra.mxu0 %v17778_v50 }
 0x580   : > { %23206 = vst [vmem:[#allocation38_spill] sm:$0xff] %v17797_v28  ;;  %v6763_v5 = vand.u32 4294901760, %v6762_v14 }
 0x582   : > { %6039 = vmatmul.f32.gmra.mxu2 %v17666_v4  ;;  %6096 = vmatmul.f32.gmra.mxu3 %v17653_v43 }
 0x583   : > { %v5589_v44 = vpop.f32.mrf.mxu0  ;;  %v5643_v53 = vpop.f32.mrf.mxu1 }
 0x585   : > { %v5482_v9 = vpop.f32.mrf.mxu2  ;;  %v5544_v40 = vpop.f32.mrf.mxu3 }
 0x586   : > { %v17806_v56 = vadd.f32 %v5544_v40, %v5474_v63  ;;  %6148 = vmatmul.f32.gmra.mxu0 %v17578_v11  ;;  %6194 = vmatmul.f32.vlgmr.msra.gmra.mxu1 %v17556_v20 }
 0x587   : > { %6764 = vmatpush.msra.mxu1 %v6763_v5 }
 0x58a   : > { %6044 = vmatmul.f32.gmra.mxu2 %v17691_v15  ;;  %6102 = vmatmul.f32.gmra.mxu3 %v17678_v29 }
 0x58b   : > { %v5594_v23 = vpop.f32.mrf.mxu0  ;;  %v5649_v42 = vpop.f32.mrf.mxu1 }
 0x58d   : > { %v5490_v28 = vpop.f32.mrf.mxu2  ;;  %v5548_v45 = vpop.f32.mrf.mxu3 }
 0x58e   : > { %v17812_v6 = vadd.f32 %v5548_v45, %v5482_v9  ;;  %6152 = vmatmul.f32.gmra.mxu0 %v17604_v52  ;;  %6198 = vmatmul.f32.gmra.mxu1 %v17578_v11 }
 0x592   : > { %6049 = vmatmul.f32.gmra.mxu2 %v17716_v48  ;;  %6108 = vmatmul.f32.gmra.mxu3 %v17703_v24 }
 0x593   : > { %v5599_v63 = vpop.f32.mrf.mxu0  ;;  %v5655_v14 = vpop.f32.mrf.mxu1 }
 0x595   : > { %v5498_v40 = vpop.f32.mrf.mxu2  ;;  %v5552_v5 = vpop.f32.mrf.mxu3 }
 0x596   : > { %v17818_v60 = vadd.f32 %v5552_v5, %v5490_v28  ;;  %6156 = vmatmul.f32.gmra.mxu0 %v17629_v32  ;;  %6202 = vmatmul.f32.gmra.mxu1 %v17604_v52  ;;  %v5585_v28 = vadd.f32 %v5584_v46, %v17763_v33  ;;  %v5590_v33 = vadd.f32 %v5589_v44, %v17780_v22 }
 0x598   : > { %v5650_v46 = vadd.f32 %v5649_v42, %v5590_v33 }
 0x59a   : > { %6054 = vmatmul.f32.gmra.mxu2 %v17738_v31  ;;  %6114 = vmatmul.f32.gmra.mxu3 %v17728_v17  ;;  %v5644_v17 = vadd.f32 %v5643_v53, %v5585_v28 }
 0x59b   : > { %v5604_v45 = vpop.f32.mrf.mxu0  ;;  %v5661_v9 = vpop.f32.mrf.mxu1 }
 0x59d   : > { %v5506_v30 = vpop.f32.mrf.mxu2  ;;  %v5556_v37 = vpop.f32.mrf.mxu3 }
 0x59e   : > { %v17824_v48 = vadd.f32 %v5556_v37, %v5498_v40  ;;  %6160 = vmatmul.f32.gmra.mxu0 %v17655_v38  ;;  %6206 = vmatmul.f32.gmra.mxu1 %v17629_v32 }
 0x5a2   : > { %6120 = vmatmul.f32.gmra.mxu3 %v17754_v27  ;;  %6248 = vmatmul.f32.vlgmr.msra.gmra.mxu2 %v17599_v59 }
 0x5a3   : > { %6815 = vmatpush.msra.mxu2 %v17788_v57  ;;  %v17832_v5 = vpop.f32.mrf.mxu0  ;;  %v5667_v31 = vpop.f32.mrf.mxu1 }
 0x5a5   : > { %v5560_v24 = vpop.f32.mrf.mxu3  ;;  %v5709_v62 = vpop.f32.mrf.mxu2 }
 0x5a6   : > { %v17834_v37 = vadd.f32 %v5560_v24, %v5506_v30  ;;  %v5710_v40 = vadd.f32 %v5709_v62, %v5644_v17  ;;  %6164 = vmatmul.f32.gmra.mxu0 %v17680_v58  ;;  %6210 = vmatmul.f32.gmra.mxu1 %v17655_v38 }
 0x5aa   : > { %6256 = vmatmul.f32.gmra.mxu2 %v17624_v16  ;;  %6330 = vmatmul.f32.vlgmr.msra.gmra.mxu3 %v17556_v20  ;;  %v5595_v16 = vadd.f32 %v5594_v23, %v17792_v21  ;;  %v5600_v21 = vadd.f32 %v5599_v63, %v17806_v56 }
 0x5ab   : > { %6873 = vmatpush.msra.mxu3 %v17778_v50  ;;  %v17842_v59 = vpop.f32.mrf.mxu0  ;;  %v5673_v53 = vpop.f32.mrf.mxu1 }
 0x5ac   : > { %v5656_v44 = vadd.f32 %v5655_v14, %v5595_v16  ;;  %v5662_v23 = vadd.f32 %v5661_v9, %v5600_v21 }
 0x5ad   : > { %v5713_v28 = vpop.f32.mrf.mxu2  ;;  %v5759_v30 = vpop.f32.mrf.mxu3 }
 0x5ae   : > { %v5714_v24 = vadd.f32 %v5713_v28, %v5650_v46  ;;  %v5760_v62 = vadd.f32 %v5759_v30, %v5710_v40  ;;  %6168 = vmatmul.f32.gmra.mxu0 %v17705_v35  ;;  %6214 = vmatmul.f32.gmra.mxu1 %v17680_v58 }
 0x5b0   : > { %v17847_v17 = vadd.f32 %v5760_v62, %v17447_v55 }
 0x5b2   : > { %6264 = vmatmul.f32.gmra.mxu2 %v17650_v39  ;;  %6334 = vmatmul.f32.gmra.mxu3 %v17578_v11 }
 0x5b3   : > { %v17852_v22 = vpop.f32.mrf.mxu0  ;;  %v5679_v42 = vpop.f32.mrf.mxu1 }
 0x5b5   : > { %v5717_v33 = vpop.f32.mrf.mxu2  ;;  %v5763_v46 = vpop.f32.mrf.mxu3 }
 0x5b6   : > { %v5718_v40 = vadd.f32 %v5717_v33, %v5656_v44  ;;  %v5764_v28 = vadd.f32 %v5763_v46, %v5714_v24  ;;  %6172 = vmatmul.f32.gmra.mxu0 %v17730_v1  ;;  %6218 = vmatmul.f32.gmra.mxu1 %v17705_v35 }
 0x5b8   : > { %v17857_v55 = vadd.f32 %v5764_v28, %v17457_v25  ;;  %v23207_v25 = vand.u32 4294901760, %v17788_v57 }
 0x5ba   : > { %6272 = vmatmul.f32.gmra.mxu2 %v17675_v18  ;;  %6338 = vmatmul.f32.gmra.mxu3 %v17604_v52  ;;  %v5605_v18 = vadd.f32 %v5604_v45, %v17812_v6 }
 0x5bb   : > { %v17862_v39 = vpop.f32.mrf.mxu0  ;;  %v5685_v14 = vpop.f32.mrf.mxu1 }
 0x5bc   : > { %v5668_v9 = vadd.f32 %v5667_v31, %v5605_v18 }
 0x5bd   : > { %v5721_v30 = vpop.f32.mrf.mxu2  ;;  %v5767_v62 = vpop.f32.mrf.mxu3 }
 0x5be   : > { %v5722_v24 = vadd.f32 %v5721_v30, %v5662_v23  ;;  %v5768_v16 = vadd.f32 %v5767_v62, %v5718_v40  ;;  %6382 = vmatmul.f32.vlgmr.msrb.gmra.mxu0 %v17569_v8  ;;  %6222 = vmatmul.f32.gmra.mxu1 %v17730_v1 }
 0x5bf   : > { %6941 = vmatpush.msrb.mxu0 %v23207_v25 }
 0x5c0   : > { %v17869_v56 = vadd.f32 %v5768_v16, %v17469_v26 }
 0x5c2   : > { %6280 = vmatmul.f32.gmra.mxu2 %v17700_v47  ;;  %6342 = vmatmul.f32.gmra.mxu3 %v17629_v32  ;;  %v5610_v47 = vadd.f32 %v17832_v5, %v17818_v60  ;;  %v6613_v60 = vsel %vm6609_vm11, %v23199_v0, 0.0  ;;  %v5615_v5 = vadd.f32 %v17842_v59, %v17824_v48  ;;  %v5620_v59 = vadd.f32 %v17852_v22, %v17834_v37 }
 0x5c3   : > { %v17874_v63 = vpop.f32.mrf.mxu0  ;;  %v5968_v44 = vpop.f32.mrf.mxu1 }
 0x5c4   : > { %v5674_v6 = vadd.f32 %v5673_v53, %v5610_v47  ;;  %v5686_v30 = vadd.f32 %v5685_v14, %v5620_v59  ;;  %v5969_v14 = vadd.f32 %v5968_v44, %v17862_v39  ;;  %v23209_v44 = vld [vmem:[#allocation56_spill] sm:$0xff] }
 0x5c5   : > { %v5725_v33 = vpop.f32.mrf.mxu2  ;;  %v5771_v8 = vpop.f32.mrf.mxu3 }
 0x5c6   : > { %v5726_v46 = vadd.f32 %v5725_v33, %v5668_v9  ;;  %v5772_v40 = vadd.f32 %v5771_v8, %v5722_v24  ;;  %6387 = vmatmul.f32.gmra.mxu0 %v17593_v2  ;;  %6441 = vmatmul.f32.vlgmr.msrb.gmra.mxu1 %v17576_v19  ;;  %v17891_v19 = vperm.slane %v17747_v41, 1 }
 0x5c7   : > { %6991 = vmatpush.msrb.mxu1 %v17778_v50 }
 0x5c8   : > { %v17879_v26 = vadd.f32 %v5772_v40, %v17479_v12  ;;  %23208 = vst [vmem:[#allocation6_spill] sm:$0xff] %v17891_v19  ;;  %v6622_v50 = vmul.f32 %v17891_v19, %v6613_v60  ;;  %v23211_v60 = vld [vmem:[#allocation64_spill] sm:$0xff] }
 0x5ca   : > { %6288 = vmatmul.f32.gmra.mxu2 %v17725_v36  ;;  %6346 = vmatmul.f32.gmra.mxu3 %v17655_v38 }
 0x5cb   : > { %v17886_v31 = vpop.f32.mrf.mxu0  ;;  %v17888_v57 = vpop.f32.mrf.mxu1 }
 0x5cd   : > { %v5729_v2 = vpop.f32.mrf.mxu2  ;;  %v5775_v45 = vpop.f32.mrf.mxu3 }
 0x5ce   : > { %v5730_v12 = vadd.f32 %v5729_v2, %v5674_v6  ;;  %v5776_v28 = vadd.f32 %v5775_v45, %v5726_v46  ;;  %6392 = vmatmul.f32.gmra.mxu0 %v17617_v51  ;;  %6447 = vmatmul.f32.gmra.mxu1 %v17602_v54  ;;  %v5680_v51 = vadd.f32 %v5679_v42, %v5615_v5  ;;  %v6660_v54 = vsel %vm1870_vm6, %v6622_v50, 0  ;;  %v23212_v50 = vld [vmem:[#allocation58_spill] sm:$0xff] }
 0x5d0   : > { %v17898_v36 = vadd.f32 %v5776_v28, %v17498_v10 }
 0x5d2   : > { %6296 = vmatmul.f32.gmra.mxu2 %v17751_v49  ;;  %6350 = vmatmul.f32.gmra.mxu3 %v17680_v58  ;;  %v17915_v49 = vand.u32 4294901760, %v6660_v54 }
 0x5d3   : > { %v17905_v41 = vpop.f32.mrf.mxu0  ;;  %v17907_v53 = vpop.f32.mrf.mxu1 }
 0x5d5   : > { %v5733_v0 = vpop.f32.mrf.mxu2  ;;  %v5779_v21 = vpop.f32.mrf.mxu3 }
 0x5d6   : > { %v5734_v10 = vadd.f32 %v5733_v0, %v5680_v51  ;;  %v5780_v23 = vadd.f32 %v5779_v21, %v5730_v12  ;;  %6397 = vmatmul.f32.gmra.mxu0 %v17640_v3  ;;  %6453 = vmatmul.f32.gmra.mxu1 %v17627_v13  ;;  %v17926_v3 = vsub.f32 %v6660_v54, %v17915_v49  ;;  %v14128_v54 = vld [vmem:[%s22656_s4 + $0x190] sm:$0xff] }
 0x5d7   : > { %v5977_v0 = vadd.f32 %v17907_v53, %v17886_v31  ;;  %v6639_v31 = vsel %vm1845_vm4, %v14128_v54, 0 }
 0x5d8   : > { %v17913_v48 = vadd.f32 %v5780_v23, %v17513_v7  ;;  %v7124_v37 = vand.u32 4294901760, %v17926_v3 }
 0x5da   : > { %6304 = vmatmul.f32.gmra.mxu2 %v17775_v34  ;;  %6354 = vmatmul.f32.gmra.mxu3 %v17705_v35  ;;  %v7125_v18 = vsub.f32 %v17926_v3, %v7124_v37 }
 0x5db   : > { %v17921_v42 = vpop.f32.mrf.mxu0  ;;  %v17923_v62 = vpop.f32.mrf.mxu1 }
 0x5dc   : > { %v7126_v46 = vand.u32 4294901760, %v7125_v18  ;;  %v14129_v18 = vld [vmem:[%s22656_s4 + $0x198] sm:$0xff] }
 0x5dd   : > { %v5737_v13 = vpop.f32.mrf.mxu2  ;;  %v5783_v7 = vpop.f32.mrf.mxu3 }
 0x5de   : > { %v5738_v24 = vadd.f32 %v5737_v13, %v5686_v30  ;;  %v5784_v16 = vadd.f32 %v5783_v7, %v5734_v10  ;;  %6402 = vmatmul.f32.gmra.mxu0 %v17666_v4  ;;  %6459 = vmatmul.f32.gmra.mxu1 %v17653_v43  ;;  %v14126_v43 = vld [vmem:[%s22656_s4 + $0x180] sm:$0xff]  ;;  %v23213_v30 = vld [vmem:[#allocation63_spill] sm:$0xff] }
 0x5df   : > { %v6633_v39 = vsel %vm1845_vm4, %v14126_v43, 0 }
 0x5e0   : > { %v17931_v34 = vadd.f32 %v5784_v16, %v17531_v61  ;;  %v17956_v40 = vand.u32 4294901760, %v6633_v39 }
 0x5e2   : > { %6358 = vmatmul.f32.gmra.mxu3 %v17730_v1  ;;  %6507 = vmatmul.f32.vlgmr.msrb.gmra.mxu2 %v17556_v20 }
 0x5e3   : > { %7041 = vmatpush.msrb.mxu2 %v17915_v49  ;;  %v17937_v22 = vpop.f32.mrf.mxu0  ;;  %v17940_v25 = vpop.f32.mrf.mxu1 }
 0x5e5   : > { %v5787_v61 = vpop.f32.mrf.mxu3  ;;  %v6020_v4 = vpop.f32.mrf.mxu2 }
 0x5e6   : > { %v5788_v9 = vadd.f32 %v5787_v61, %v5738_v24  ;;  %v6021_v33 = vadd.f32 %v6020_v4, %v5969_v14  ;;  %6407 = vmatmul.f32.gmra.mxu0 %v17691_v15  ;;  %6465 = vmatmul.f32.gmra.mxu1 %v17678_v29  ;;  %v5973_v15 = vadd.f32 %v17888_v57, %v17874_v63  ;;  %v14127_v29 = vld [vmem:[%s22656_s4 + $0x188] sm:$0xff]  ;;  %v23214_v24 = vld [vmem:[#allocation60_spill] sm:$0xff]  ;;  %v18004_v14 = vand.u32 4294901760, %v6639_v31 }
 0x5e7   : > { %v6636_v5 = vsel %vm1845_vm4, %v14127_v29, 0  ;;  %v5981_v61 = vadd.f32 %v17923_v62, %v17905_v41  ;;  %v6642_v41 = vsel %vm1845_vm4, %v14129_v18, 0  ;;  %v14131_v18 = vld [vmem:[%s22656_s4 + $0x1a8] sm:$0xff] }
 0x5e8   : > { %v17952_v8 = vadd.f32 %v5788_v9, %v23209_v44  ;;  %v17978_v57 = vand.u32 4294901760, %v6636_v5  ;;  %v18029_v29 = vand.u32 4294901760, %v6642_v41 }
 0x5ea   : > { %23210 = vst [vmem:[#allocation17_spill] sm:$0xff] %v17952_v8  ;;  %6511 = vmatmul.f32.gmra.mxu2 %v17578_v11  ;;  %6557 = vmatmul.f32.vlgmr.msrb.gmra.mxu3 %v17556_v20  ;;  %v17969_v20 = vsub.f32 %v6633_v39, %v17956_v40  ;;  %v17993_v7 = vsub.f32 %v6636_v5, %v17978_v57 }
 0x5eb   : > { %7127 = vmatpush.msrb.mxu3 %v7126_v46  ;;  %v17958_v47 = vpop.f32.mrf.mxu0  ;;  %v17962_v6 = vpop.f32.mrf.mxu1  ;;  %v18017_v46 = vsub.f32 %v6639_v31, %v18004_v14 }
 0x5ec   : > { %v17976_v63 = vand.u32 4294901760, %v17969_v20  ;;  %v18002_v16 = vand.u32 4294901760, %v17993_v7 }
 0x5ed   : > { %v6025_v2 = vpop.f32.mrf.mxu2  ;;  %v6079_v45 = vpop.f32.mrf.mxu3 }
 0x5ee   : > { %v6026_v12 = vadd.f32 %v6025_v2, %v5973_v15  ;;  %v6080_v28 = vadd.f32 %v6079_v45, %v6021_v33  ;;  %6412 = vmatmul.f32.gmra.mxu0 %v23211_v60  ;;  %6471 = vmatmul.f32.gmra.mxu1 %v23212_v50  ;;  %v6682_v13 = vsub.f32 %v17969_v20, %v17976_v63  ;;  %v18027_v15 = vand.u32 4294901760, %v18017_v46  ;;  %v14130_v60 = vld [vmem:[%s22656_s4 + $0x1a0] sm:$0xff] }
 0x5ef   : > { %v6690_v44 = vsub.f32 %v17993_v7, %v18002_v16 }
 0x5f0   : > { %v17999_v53 = vand.u32 4294901760, %v6682_v13 }
 0x5f1   : > { %v18024_v62 = vand.u32 4294901760, %v6690_v44 }
 0x5f2   : > { %6515 = vmatmul.f32.gmra.mxu2 %v17604_v52  ;;  %6561 = vmatmul.f32.gmra.mxu3 %v17578_v11 }
 0x5f3   : > { %v17980_v51 = vpop.f32.mrf.mxu0  ;;  %v17984_v21 = vpop.f32.mrf.mxu1 }
 0x5f5   : > { %v6030_v10 = vpop.f32.mrf.mxu2  ;;  %v6085_v23 = vpop.f32.mrf.mxu3 }
 0x5f6   : > { %v6031_v59 = vadd.f32 %v6030_v10, %v5977_v0  ;;  %v6086_v11 = vadd.f32 %v6085_v23, %v6026_v12  ;;  %6417 = vmatmul.f32.gmra.mxu0 %v23213_v30  ;;  %6477 = vmatmul.f32.gmra.mxu1 %v23214_v24  ;;  %v6698_v10 = vsub.f32 %v18017_v46, %v18027_v15  ;;  %v23215_v23 = vld [vmem:[#allocation7_spill] sm:$0xff] }
 0x5fa   : > { %6519 = vmatmul.f32.gmra.mxu2 %v17629_v32  ;;  %6565 = vmatmul.f32.gmra.mxu3 %v17604_v52 }
 0x5fb   : > { %v6145_v43 = vpop.f32.mrf.mxu0  ;;  %v18008_v4 = vpop.f32.mrf.mxu1 }
 0x5fc   : > { %v6146_v2 = vadd.f32 %v6145_v43, %v6080_v28  ;;  %v18040_v28 = vsub.f32 %v6642_v41, %v18029_v29  ;;  %v5989_v43 = vadd.f32 %v17962_v6, %v17937_v22  ;;  %v6648_v6 = vsel %vm1845_vm4, %v14131_v18, 0 }
 0x5fd   : > { %v6035_v9 = vpop.f32.mrf.mxu2  ;;  %v6091_v33 = vpop.f32.mrf.mxu3 }
 0x5fe   : > { %v6036_v52 = vadd.f32 %v6035_v9, %v5981_v61  ;;  %v6092_v39 = vadd.f32 %v6091_v33, %v6031_v59  ;;  %6684 = vmatmul.f32.vlgmr.msra.gmra.mxu0 %v17999_v53  ;;  %6483 = vmatmul.f32.gmra.mxu1 %v17754_v27  ;;  %v5985_v27 = vadd.f32 %v17940_v25, %v17921_v42  ;;  %v6645_v25 = vsel %vm1845_vm4, %v14130_v60, 0 }
 0x5ff   : > { %7178 = vmatpush.msra.mxu0 %v17926_v3  ;;  %v18050_v59 = vand.u32 4294901760, %v6698_v10  ;;  %v18053_v30 = vand.u32 4294901760, %v18040_v28  ;;  %v18055_v13 = vand.u32 4294901760, %v6645_v25  ;;  %v18147_v3 = vld [vmem:[%s22655_s3 + $0xe] sm:$0x3] }
 0x601   : > { %v6706_v41 = vsub.f32 %v18040_v28, %v18053_v30 }
 0x602   : > { %6523 = vmatmul.f32.gmra.mxu2 %v17655_v38  ;;  %6569 = vmatmul.f32.gmra.mxu3 %v17629_v32 }
 0x603   : > { %v6149_v45 = vpop.f32.mrf.mxu0  ;;  %v6195_v12 = vpop.f32.mrf.mxu1 }
 0x604   : > { %v6196_v32 = vadd.f32 %v6195_v12, %v6146_v2  ;;  %v6150_v24 = vadd.f32 %v6149_v45, %v6086_v11  ;;  %v18066_v11 = vsub.f32 %v6645_v25, %v18055_v13  ;;  %v23217_v2 = vld [vmem:[#allocation22_spill] sm:$0xff]  ;;  %v18075_v45 = vand.u32 4294901760, %v6706_v41 }
 0x605   : > { %v6040_v50 = vpop.f32.mrf.mxu2  ;;  %v6097_v5 = vpop.f32.mrf.mxu3  ;;  %v18080_v12 = vand.u32 4294901760, %v6648_v6 }
 0x606   : > { %v6041_v0 = vadd.f32 %v6040_v50, %v5985_v27  ;;  %v6098_v54 = vadd.f32 %v6097_v5, %v6036_v52  ;;  %6692 = vmatmul.f32.gmra.mxu0 %v18024_v62  ;;  %v18043_v42 = vadd.f32 %v6196_v32, %v23215_v23  ;;  %6766 = vmatmul.f32.vlgmr.msra.gmra.mxu1 %v17956_v40  ;;  %v18078_v27 = vand.u32 4294901760, %v18066_v11 }
 0x607   : > { %7236 = vmatpush.msra.mxu1 %v17915_v49  ;;  %v5993_v5 = vadd.f32 %v17984_v21, %v17958_v47 }
 0x608   : > { %23216 = vst [vmem:[#allocation30_spill] sm:$0xff] %v18043_v42 }
 0x60a   : > { %6527 = vmatmul.f32.gmra.mxu2 %v17680_v58  ;;  %6573 = vmatmul.f32.gmra.mxu3 %v17655_v38 }
 0x60b   : > { %v6153_v31 = vpop.f32.mrf.mxu0  ;;  %v6199_v61 = vpop.f32.mrf.mxu1 }
 0x60c   : > { %v6200_v38 = vadd.f32 %v6199_v61, %v6150_v24  ;;  %v6154_v60 = vadd.f32 %v6153_v31, %v6092_v39  ;;  %v18091_v39 = vsub.f32 %v6648_v6, %v18080_v12  ;;  %v23219_v31 = vld [vmem:[#allocation10_spill] sm:$0xff] }
 0x60d   : > { %v6045_v9 = vpop.f32.mrf.mxu2  ;;  %v6103_v33 = vpop.f32.mrf.mxu3 }
 0x60e   : > { %v6046_v52 = vadd.f32 %v6045_v9, %v5989_v43  ;;  %v6104_v44 = vadd.f32 %v6103_v33, %v6041_v0  ;;  %6700 = vmatmul.f32.gmra.mxu0 %v18050_v59  ;;  %v18069_v22 = vadd.f32 %v6200_v38, %v23217_v2  ;;  %6770 = vmatmul.f32.gmra.mxu1 %v17978_v57  ;;  %v14132_v0 = vld [vmem:[%s22656_s4 + $0x1b0] sm:$0xff]  ;;  %v18103_v18 = vand.u32 4294901760, %v18091_v39  ;;  %v14133_v2 = vld [vmem:[%s22656_s4 + $0x1b8] sm:$0xff] }
 0x60f   : > { %v6714_v43 = vsub.f32 %v18066_v11, %v18078_v27  ;;  %v6651_v21 = vsel %vm1845_vm4, %v14132_v0, 0 }
 0x610   : > { %23218 = vst [vmem:[#allocation34_spill] sm:$0xff] %v18069_v22  ;;  %v18105_v9 = vand.u32 4294901760, %v6651_v21  ;;  %v6722_v0 = vsub.f32 %v18091_v39, %v18103_v18 }
 0x611   : > { %v18100_v61 = vand.u32 4294901760, %v6714_v43  ;;  %23221 = vst [vmem:[#allocation16_spill] sm:$0xff] %v18103_v18 }
 0x612   : > { %6531 = vmatmul.f32.gmra.mxu2 %v17705_v35  ;;  %6577 = vmatmul.f32.gmra.mxu3 %v17680_v58 }
 0x613   : > { %v6157_v50 = vpop.f32.mrf.mxu0  ;;  %v6203_v32 = vpop.f32.mrf.mxu1 }
 0x614   : > { %v6204_v58 = vadd.f32 %v6203_v32, %v6154_v60  ;;  %v6158_v33 = vadd.f32 %v6157_v50, %v6098_v54  ;;  %v18116_v54 = vsub.f32 %v6651_v21, %v18105_v9  ;;  %v23223_v50 = vld [vmem:[#allocation59_spill] sm:$0xff] }
 0x615   : > { %v6050_v10 = vpop.f32.mrf.mxu2  ;;  %v6109_v23 = vpop.f32.mrf.mxu3 }
 0x616   : > { %v6051_v25 = vadd.f32 %v6050_v10, %v5993_v5  ;;  %v6110_v24 = vadd.f32 %v6109_v23, %v6046_v52  ;;  %6708 = vmatmul.f32.gmra.mxu0 %v18075_v45  ;;  %v18094_v47 = vadd.f32 %v6204_v58, %v23219_v31  ;;  %6774 = vmatmul.f32.gmra.mxu1 %v18004_v14  ;;  %v18125_v10 = vand.u32 4294901760, %v6722_v0  ;;  %v23230_v0 = vld [vmem:[#allocation71_spill] sm:$0xff] }
 0x617   : > { %v5997_v52 = vadd.f32 %v18008_v4, %v17980_v51  ;;  %23222 = vst [vmem:[#allocation4_spill] sm:$0xff] %v18116_v54  ;;  %v6654_v4 = vsel %vm1845_vm4, %v14133_v2, 0  ;;  %v18128_v23 = vand.u32 4294901760, %v18116_v54 }
 0x618   : > { %23220 = vst [vmem:[#allocation33_spill] sm:$0xff] %v18094_v47  ;;  %v18130_v58 = vand.u32 4294901760, %v6654_v4 }
 0x619   : > { %23225 = vst [vmem:[#allocation37_spill] sm:$0xff] %v18128_v23 }
 0x61a   : > { %6535 = vmatmul.f32.gmra.mxu2 %v17730_v1  ;;  %6581 = vmatmul.f32.gmra.mxu3 %v17705_v35  ;;  %v18138_v2 = vsub.f32 %v6654_v4, %v18130_v58 }
 0x61b   : > { %v6161_v38 = vpop.f32.mrf.mxu0  ;;  %v6207_v41 = vpop.f32.mrf.mxu1 }
 0x61c   : > { %v6208_v35 = vadd.f32 %v6207_v41, %v6158_v33  ;;  %23226 = vst [vmem:[#allocation3_spill] sm:$0xff] %v18138_v2 }
 0x61d   : > { %v6055_v6 = vpop.f32.mrf.mxu2  ;;  %v6115_v60 = vpop.f32.mrf.mxu3 }
 0x61e   : > { %v6056_v5 = vadd.f32 %v6055_v6, %v5997_v52  ;;  %v6116_v32 = vadd.f32 %v6115_v60, %v6051_v25  ;;  %6716 = vmatmul.f32.gmra.mxu0 %v18100_v61  ;;  %v18119_v51 = vadd.f32 %v6208_v35, %v23223_v50  ;;  %6778 = vmatmul.f32.gmra.mxu1 %v18029_v29  ;;  %v23227_v6 = vld [vmem:[#allocation67_spill] sm:$0xff]  ;;  %v23231_v50 = vld [vmem:[#allocation66_spill] sm:$0xff] }
 0x61f   : > { %v6162_v25 = vadd.f32 %v6161_v38, %v6104_v44  ;;  %v18154_v44 = vand.u32 4294901760, %v18138_v2  ;;  %v18157_v38 = vperm.slane %v18147_v3, 0  ;;  %v7409_v4 = vsel %vm7408_vm12, %v23231_v50, %v23230_v0 }
 0x620   : > { %23224 = vst [vmem:[#allocation25_spill] sm:$0xff] %v18119_v51 }
 0x621   : > { %23229 = vst [vmem:[#allocation31_spill] sm:$0xff] %v18157_v38 }
 0x622   : > { %6585 = vmatmul.f32.gmra.mxu3 %v17730_v1  ;;  %6818 = vmatmul.f32.vlgmr.msra.gmra.mxu2 %v17969_v20  ;;  %v6730_v1 = vsub.f32 %v18116_v54, %v18128_v23 }
 0x623   : > { %7304 = vmatpush.msra.mxu2 %v7124_v37  ;;  %v6165_v43 = vpop.f32.mrf.mxu0  ;;  %v6211_v31 = vpop.f32.mrf.mxu1 }
 0x624   : > { %v6212_v52 = vadd.f32 %v6211_v31, %v6162_v25  ;;  %v18151_v37 = vand.u32 4294901760, %v6730_v1  ;;  %v6166_v35 = vadd.f32 %v6165_v43, %v6110_v24  ;;  %v7420_v24 = vmul.f32 %v18157_v38, %v7409_v4  ;;  %v23232_v43 = vld [vmem:[#allocation21_spill] sm:$0xff] }
 0x625   : > { %v6121_v21 = vpop.f32.mrf.mxu3  ;;  %v6249_v33 = vpop.f32.mrf.mxu2 }
 0x626   : > { %v6122_v41 = vadd.f32 %v6121_v21, %v6056_v5  ;;  %6724 = vmatmul.f32.gmra.mxu0 %v18125_v10  ;;  %v18141_v60 = vadd.f32 %v6212_v52, %v23227_v6  ;;  %6782 = vmatmul.f32.gmra.mxu1 %v18055_v13  ;;  %v6738_v6 = vsub.f32 %v18138_v2, %v18154_v44 }
 0x628   : > { %23228 = vst [vmem:[#allocation41_spill] sm:$0xff] %v18141_v60  ;;  %v18175_v50 = vand.u32 4294901760, %v6738_v6 }
 0x62a   : > { %6823 = vmatmul.f32.gmra.mxu2 %v17993_v7  ;;  %6877 = vmatmul.f32.vlgmr.msra.gmra.mxu3 %v17976_v63 }
 0x62b   : > { %7354 = vmatpush.msra.mxu3 %v17915_v49  ;;  %v6169_v5 = vpop.f32.mrf.mxu0  ;;  %v6215_v25 = vpop.f32.mrf.mxu1 }
 0x62c   : > { %v6216_v52 = vadd.f32 %v6215_v25, %v6166_v35  ;;  %v6170_v35 = vadd.f32 %v6169_v5, %v6116_v32 }
 0x62d   : > { %v6257_v31 = vpop.f32.mrf.mxu2  ;;  %v6331_v21 = vpop.f32.mrf.mxu3 }
 0x62e   : > { %v18163_v1 = vadd.f32 %v6331_v21, %v6249_v33  ;;  %6732 = vmatmul.f32.gmra.mxu0 %v18151_v37  ;;  %v18170_v49 = vadd.f32 %v6216_v52, %v23232_v43  ;;  %6786 = vmatmul.f32.gmra.mxu1 %v18080_v12  ;;  %v7456_v33 = vsel %vm1870_vm6, %v7420_v24, 0  ;;  %v23234_v43 = vld [vmem:[#allocation13_spill] sm:$0xff] }
 0x62f   : > { %v18178_v4 = vand.u32 4294901760, %v7456_v33 }
 0x630   : > { %23233 = vst [vmem:[#allocation19_spill] sm:$0xff] %v18170_v49 }
 0x631   : > { %v18188_v6 = vsub.f32 %v7456_v33, %v18178_v4 }
 0x632   : > { %6828 = vmatmul.f32.gmra.mxu2 %v18017_v46  ;;  %6883 = vmatmul.f32.gmra.mxu3 %v18002_v16 }
 0x633   : > { %v6173_v25 = vpop.f32.mrf.mxu0  ;;  %v6219_v21 = vpop.f32.mrf.mxu1 }
 0x634   : > { %v6220_v51 = vadd.f32 %v6219_v21, %v6170_v35  ;;  %v6174_v32 = vadd.f32 %v6173_v25, %v6122_v41 }
 0x635   : > { %v6265_v19 = vpop.f32.mrf.mxu2  ;;  %v6335_v60 = vpop.f32.mrf.mxu3 }
 0x636   : > { %v18180_v52 = vadd.f32 %v6335_v60, %v6257_v31  ;;  %6740 = vmatmul.f32.gmra.mxu0 %v18175_v50  ;;  %v18184_v38 = vadd.f32 %v6220_v51, %v23234_v43  ;;  %6790 = vmatmul.f32.gmra.mxu1 %v18105_v9  ;;  %v22779_v51 = vand.u32 4294901760, %v18188_v6  ;;  %v23236_v43 = vld [vmem:[#allocation38_spill] sm:$0xff] }
 0x638   : > { %23235 = vst [vmem:[#allocation45_spill] sm:$0xff] %v18184_v38 }
 0x63a   : > { %6833 = vmatmul.f32.gmra.mxu2 %v18040_v28  ;;  %6889 = vmatmul.f32.gmra.mxu3 %v18027_v15 }
 0x63b   : > { %v6383_v5 = vpop.f32.mrf.mxu0  ;;  %v6223_v24 = vpop.f32.mrf.mxu1 }
 0x63c   : > { %v6224_v31 = vadd.f32 %v6223_v24, %v6174_v32 }
 0x63d   : > { %v6273_v35 = vpop.f32.mrf.mxu2  ;;  %v6339_v60 = vpop.f32.mrf.mxu3 }
 0x63e   : > { %v18192_v21 = vadd.f32 %v6339_v60, %v6265_v19  ;;  %6943 = vmatmul.f32.vlgmr.msrb.gmra.mxu0 %v17956_v40  ;;  %v18197_v38 = vadd.f32 %v6224_v31, %v23236_v43  ;;  %6794 = vmatmul.f32.gmra.mxu1 %v18130_v58  ;;  %v7561_v19 = vsub.f32 %v18188_v6, %v22779_v51 }
 0x63f   : > { %7477 = vmatpush.msrb.mxu0 %v18178_v4 }
 0x640   : > { %23237 = vst [vmem:[#allocation42_spill] sm:$0xff] %v18197_v38  ;;  %v7562_v60 = vand.u32 4294901760, %v7561_v19 }
 0x642   : > { %6838 = vmatmul.f32.gmra.mxu2 %v18066_v11  ;;  %6895 = vmatmul.f32.gmra.mxu3 %v18053_v30 }
 0x643   : > { %v6388_v41 = vpop.f32.mrf.mxu0  ;;  %v6442_v33 = vpop.f32.mrf.mxu1 }
 0x645   : > { %v6281_v25 = vpop.f32.mrf.mxu2  ;;  %v6343_v32 = vpop.f32.mrf.mxu3 }
 0x646   : > { %v18206_v24 = vadd.f32 %v6343_v32, %v6273_v35  ;;  %6947 = vmatmul.f32.gmra.mxu0 %v17978_v57  ;;  %6993 = vmatmul.f32.vlgmr.msrb.gmra.mxu1 %v17956_v40 }
 0x647   : > { %7563 = vmatpush.msrb.mxu1 %v7562_v60 }
 0x64a   : > { %6843 = vmatmul.f32.gmra.mxu2 %v18091_v39  ;;  %6901 = vmatmul.f32.gmra.mxu3 %v18078_v27 }
 0x64b   : > { %v6393_v31 = vpop.f32.mrf.mxu0  ;;  %v6448_v43 = vpop.f32.mrf.mxu1 }
 0x64d   : > { %v6289_v38 = vpop.f32.mrf.mxu2  ;;  %v6347_v51 = vpop.f32.mrf.mxu3 }
 0x64e   : > { %v18212_v49 = vadd.f32 %v6347_v51, %v6281_v25  ;;  %6951 = vmatmul.f32.gmra.mxu0 %v18004_v14  ;;  %6997 = vmatmul.f32.gmra.mxu1 %v17978_v57 }
 0x652   : > { %6848 = vmatmul.f32.gmra.mxu2 %v18116_v54  ;;  %6907 = vmatmul.f32.gmra.mxu3 %v18103_v18 }
 0x653   : > { %v6398_v35 = vpop.f32.mrf.mxu0  ;;  %v6454_v19 = vpop.f32.mrf.mxu1 }
 0x655   : > { %v6297_v32 = vpop.f32.mrf.mxu2  ;;  %v6351_v60 = vpop.f32.mrf.mxu3 }
 0x656   : > { %v18218_v47 = vadd.f32 %v6351_v60, %v6289_v38  ;;  %6955 = vmatmul.f32.gmra.mxu0 %v18029_v29  ;;  %7001 = vmatmul.f32.gmra.mxu1 %v18004_v14  ;;  %v6384_v38 = vadd.f32 %v6383_v5, %v18163_v1  ;;  %v6389_v1 = vadd.f32 %v6388_v41, %v18180_v52 }
 0x658   : > { %v6449_v5 = vadd.f32 %v6448_v43, %v6389_v1 }
 0x65a   : > { %6853 = vmatmul.f32.gmra.mxu2 %v18138_v2  ;;  %6913 = vmatmul.f32.gmra.mxu3 %v18128_v23  ;;  %v6443_v23 = vadd.f32 %v6442_v33, %v6384_v38 }
 0x65b   : > { %v6403_v51 = vpop.f32.mrf.mxu0  ;;  %v6460_v25 = vpop.f32.mrf.mxu1 }
 0x65d   : > { %v6305_v22 = vpop.f32.mrf.mxu2  ;;  %v6355_v42 = vpop.f32.mrf.mxu3 }
 0x65e   : > { %v18224_v54 = vadd.f32 %v6355_v42, %v6297_v32  ;;  %6959 = vmatmul.f32.gmra.mxu0 %v18055_v13  ;;  %7005 = vmatmul.f32.gmra.mxu1 %v18029_v29 }
 0x662   : > { %6919 = vmatmul.f32.gmra.mxu3 %v18154_v44  ;;  %7047 = vmatmul.f32.vlgmr.msrb.gmra.mxu2 %v17999_v53 }
 0x663   : > { %7614 = vmatpush.msrb.mxu2 %v18188_v6  ;;  %v18232_v60 = vpop.f32.mrf.mxu0  ;;  %v6466_v2 = vpop.f32.mrf.mxu1 }
 0x665   : > { %v6359_v18 = vpop.f32.mrf.mxu3  ;;  %v6508_v8 = vpop.f32.mrf.mxu2 }
 0x666   : > { %v18234_v42 = vadd.f32 %v6359_v18, %v6305_v22  ;;  %v6509_v32 = vadd.f32 %v6508_v8, %v6443_v23  ;;  %6963 = vmatmul.f32.gmra.mxu0 %v18080_v12  ;;  %7009 = vmatmul.f32.gmra.mxu1 %v18055_v13 }
 0x66a   : > { %7055 = vmatmul.f32.gmra.mxu2 %v18024_v62  ;;  %7129 = vmatmul.f32.vlgmr.msrb.gmra.mxu3 %v17956_v40  ;;  %v6394_v62 = vadd.f32 %v6393_v31, %v18192_v21  ;;  %v6399_v21 = vadd.f32 %v6398_v35, %v18206_v24 }
 0x66b   : > { %7672 = vmatpush.msrb.mxu3 %v18178_v4  ;;  %v18242_v53 = vpop.f32.mrf.mxu0  ;;  %v6472_v33 = vpop.f32.mrf.mxu1 }
 0x66c   : > { %v6455_v41 = vadd.f32 %v6454_v19, %v6394_v62  ;;  %v6461_v31 = vadd.f32 %v6460_v25, %v6399_v21 }
 0x66d   : > { %v6512_v38 = vpop.f32.mrf.mxu2  ;;  %v6558_v22 = vpop.f32.mrf.mxu3 }
 0x66e   : > { %v6513_v18 = vadd.f32 %v6512_v38, %v6449_v5  ;;  %v6559_v8 = vadd.f32 %v6558_v22, %v6509_v32  ;;  %6967 = vmatmul.f32.gmra.mxu0 %v18105_v9  ;;  %7013 = vmatmul.f32.gmra.mxu1 %v18080_v12 }
 0x670   : > { %v18247_v23 = vadd.f32 %v6559_v8, %v17847_v17 }
 0x672   : > { %7063 = vmatmul.f32.gmra.mxu2 %v18050_v59  ;;  %7133 = vmatmul.f32.gmra.mxu3 %v17978_v57 }
 0x673   : > { %v18252_v52 = vpop.f32.mrf.mxu0  ;;  %v6478_v43 = vpop.f32.mrf.mxu1 }
 0x675   : > { %v6516_v1 = vpop.f32.mrf.mxu2  ;;  %v6562_v5 = vpop.f32.mrf.mxu3 }
 0x676   : > { %v6517_v32 = vadd.f32 %v6516_v1, %v6455_v41  ;;  %v6563_v38 = vadd.f32 %v6562_v5, %v6513_v18  ;;  %6971 = vmatmul.f32.gmra.mxu0 %v18130_v58  ;;  %7017 = vmatmul.f32.gmra.mxu1 %v18105_v9 }
 0x678   : > { %v18257_v17 = vadd.f32 %v6563_v38, %v17857_v55  ;;  %v23238_v55 = vand.u32 4294901760, %v18188_v6 }
 0x67a   : > { %7071 = vmatmul.f32.gmra.mxu2 %v18075_v45  ;;  %7137 = vmatmul.f32.gmra.mxu3 %v18004_v14  ;;  %v6404_v45 = vadd.f32 %v6403_v51, %v18212_v49 }
 0x67b   : > { %v18262_v59 = vpop.f32.mrf.mxu0  ;;  %v6484_v19 = vpop.f32.mrf.mxu1 }
 0x67c   : > { %v6467_v25 = vadd.f32 %v6466_v2, %v6404_v45 }
 0x67d   : > { %v6520_v22 = vpop.f32.mrf.mxu2  ;;  %v6566_v8 = vpop.f32.mrf.mxu3 }
 0x67e   : > { %v6521_v18 = vadd.f32 %v6520_v22, %v6461_v31  ;;  %v6567_v62 = vadd.f32 %v6566_v8, %v6517_v32  ;;  %7181 = vmatmul.f32.vlgmr.msra.gmra.mxu0 %v17969_v20  ;;  %7021 = vmatmul.f32.gmra.mxu1 %v18130_v58 }
 0x67f   : > { %7740 = vmatpush.msra.mxu0 %v23238_v55 }
 0x680   : > { %v18269_v24 = vadd.f32 %v6567_v62, %v17869_v56 }
 0x682   : > { %7079 = vmatmul.f32.gmra.mxu2 %v18100_v61  ;;  %7141 = vmatmul.f32.gmra.mxu3 %v18029_v29  ;;  %v6409_v61 = vadd.f32 %v18232_v60, %v18218_v47  ;;  %v7412_v47 = vsel %vm7408_vm12, %v23230_v0, 0.0  ;;  %v6414_v60 = vadd.f32 %v18242_v53, %v18224_v54  ;;  %v6419_v53 = vadd.f32 %v18252_v52, %v18234_v42 }
 0x683   : > { %v18274_v35 = vpop.f32.mrf.mxu0  ;;  %v6767_v41 = vpop.f32.mrf.mxu1 }
 0x684   : > { %v6473_v49 = vadd.f32 %v6472_v33, %v6409_v61  ;;  %v6485_v22 = vadd.f32 %v6484_v19, %v6419_v53  ;;  %v6768_v19 = vadd.f32 %v6767_v41, %v18262_v59  ;;  %v23240_v41 = vld [vmem:[#allocation17_spill] sm:$0xff] }
 0x685   : > { %v6524_v1 = vpop.f32.mrf.mxu2  ;;  %v6570_v20 = vpop.f32.mrf.mxu3 }
 0x686   : > { %v6525_v5 = vadd.f32 %v6524_v1, %v6467_v25  ;;  %v6571_v32 = vadd.f32 %v6570_v20, %v6521_v18  ;;  %7186 = vmatmul.f32.gmra.mxu0 %v17993_v7  ;;  %7240 = vmatmul.f32.vlgmr.msra.gmra.mxu1 %v17976_v63  ;;  %v18291_v63 = vperm.slane %v18147_v3, 1 }
 0x687   : > { %7790 = vmatpush.msra.mxu1 %v18178_v4 }
 0x688   : > { %v18279_v56 = vadd.f32 %v6571_v32, %v17879_v26  ;;  %23239 = vst [vmem:[#allocation15_spill] sm:$0xff] %v18291_v63  ;;  %v7421_v4 = vmul.f32 %v18291_v63, %v7412_v47  ;;  %v23242_v47 = vld [vmem:[#allocation4_spill] sm:$0xff] }
 0x68a   : > { %7087 = vmatmul.f32.gmra.mxu2 %v18125_v10  ;;  %7145 = vmatmul.f32.gmra.mxu3 %v18055_v13 }
 0x68b   : > { %v18286_v2 = vpop.f32.mrf.mxu0  ;;  %v18288_v6 = vpop.f32.mrf.mxu1 }
 0x68d   : > { %v6528_v7 = vpop.f32.mrf.mxu2  ;;  %v6574_v51 = vpop.f32.mrf.mxu3 }
 0x68e   : > { %v6529_v26 = vadd.f32 %v6528_v7, %v6473_v49  ;;  %v6575_v38 = vadd.f32 %v6574_v51, %v6525_v5  ;;  %7191 = vmatmul.f32.gmra.mxu0 %v18017_v46  ;;  %7246 = vmatmul.f32.gmra.mxu1 %v18002_v16  ;;  %v6479_v46 = vadd.f32 %v6478_v43, %v6414_v60  ;;  %v7459_v16 = vsel %vm1870_vm6, %v7421_v4, 0  ;;  %v23243_v4 = vld [vmem:[#allocation16_spill] sm:$0xff] }
 0x690   : > { %v18298_v10 = vadd.f32 %v6575_v38, %v17898_v36 }
 0x692   : > { %7095 = vmatmul.f32.gmra.mxu2 %v18151_v37  ;;  %7149 = vmatmul.f32.gmra.mxu3 %v18080_v12  ;;  %v18315_v37 = vand.u32 4294901760, %v7459_v16 }
 0x693   : > { %v18305_v3 = vpop.f32.mrf.mxu0  ;;  %v18307_v33 = vpop.f32.mrf.mxu1 }
 0x695   : > { %v6532_v0 = vpop.f32.mrf.mxu2  ;;  %v6578_v21 = vpop.f32.mrf.mxu3 }
 0x696   : > { %v6533_v36 = vadd.f32 %v6532_v0, %v6479_v46  ;;  %v6579_v31 = vadd.f32 %v6578_v21, %v6529_v26  ;;  %7196 = vmatmul.f32.gmra.mxu0 %v18040_v28  ;;  %7252 = vmatmul.f32.gmra.mxu1 %v18027_v15  ;;  %v18326_v28 = vsub.f32 %v7459_v16, %v18315_v37  ;;  %v14137_v16 = vld [vmem:[%s22656_s4 + $0x1d0] sm:$0xff] }
 0x697   : > { %v6776_v0 = vadd.f32 %v18307_v33, %v18286_v2  ;;  %v7438_v2 = vsel %vm1845_vm4, %v14137_v16, 0 }
 0x698   : > { %v18313_v54 = vadd.f32 %v6579_v31, %v17913_v48  ;;  %v7923_v42 = vand.u32 4294901760, %v18326_v28 }
 0x69a   : > { %7103 = vmatmul.f32.gmra.mxu2 %v18175_v50  ;;  %7153 = vmatmul.f32.gmra.mxu3 %v18105_v9  ;;  %v7924_v45 = vsub.f32 %v18326_v28, %v7923_v42 }
 0x69b   : > { %v18321_v43 = vpop.f32.mrf.mxu0  ;;  %v18323_v8 = vpop.f32.mrf.mxu1 }
 0x69c   : > { %v7925_v5 = vand.u32 4294901760, %v7924_v45  ;;  %v14138_v45 = vld [vmem:[%s22656_s4 + $0x1d8] sm:$0xff] }
 0x69d   : > { %v6536_v15 = vpop.f32.mrf.mxu2  ;;  %v6582_v48 = vpop.f32.mrf.mxu3 }
 0x69e   : > { %v6537_v18 = vadd.f32 %v6536_v15, %v6485_v22  ;;  %v6583_v62 = vadd.f32 %v6582_v48, %v6533_v36  ;;  %7201 = vmatmul.f32.gmra.mxu0 %v18066_v11  ;;  %7258 = vmatmul.f32.gmra.mxu1 %v18053_v30  ;;  %v14135_v30 = vld [vmem:[%s22656_s4 + $0x1c0] sm:$0xff]  ;;  %v23244_v22 = vld [vmem:[#allocation3_spill] sm:$0xff] }
 0x69f   : > { %v7432_v59 = vsel %vm1845_vm4, %v14135_v30, 0 }
 0x6a0   : > { %v18331_v50 = vadd.f32 %v6583_v62, %v17931_v34  ;;  %v18356_v32 = vand.u32 4294901760, %v7432_v59 }
 0x6a2   : > { %7157 = vmatmul.f32.gmra.mxu3 %v18130_v58  ;;  %7306 = vmatmul.f32.vlgmr.msra.gmra.mxu2 %v17956_v40 }
 0x6a3   : > { %7840 = vmatpush.msra.mxu2 %v18315_v37  ;;  %v18337_v52 = vpop.f32.mrf.mxu0  ;;  %v18340_v55 = vpop.f32.mrf.mxu1 }
 0x6a5   : > { %v6586_v34 = vpop.f32.mrf.mxu3  ;;  %v6819_v11 = vpop.f32.mrf.mxu2 }
 0x6a6   : > { %v6587_v25 = vadd.f32 %v6586_v34, %v6537_v18  ;;  %v6820_v1 = vadd.f32 %v6819_v11, %v6768_v19  ;;  %7206 = vmatmul.f32.gmra.mxu0 %v18091_v39  ;;  %7264 = vmatmul.f32.gmra.mxu1 %v18078_v27  ;;  %v6772_v39 = vadd.f32 %v18288_v6, %v18274_v35  ;;  %v14136_v27 = vld [vmem:[%s22656_s4 + $0x1c8] sm:$0xff]  ;;  %v23245_v18 = vld [vmem:[#allocation37_spill] sm:$0xff]  ;;  %v18404_v19 = vand.u32 4294901760, %v7438_v2 }
 0x6a7   : > { %v7435_v60 = vsel %vm1845_vm4, %v14136_v27, 0  ;;  %v6780_v34 = vadd.f32 %v18323_v8, %v18305_v3  ;;  %v7441_v3 = vsel %vm1845_vm4, %v14138_v45, 0  ;;  %v14140_v45 = vld [vmem:[%s22656_s4 + $0x1e8] sm:$0xff] }
 0x6a8   : > { %v18352_v20 = vadd.f32 %v6587_v25, %v23240_v41  ;;  %v18378_v6 = vand.u32 4294901760, %v7435_v60  ;;  %v18429_v27 = vand.u32 4294901760, %v7441_v3 }
 0x6aa   : > { %23241 = vst [vmem:[#allocation20_spill] sm:$0xff] %v18352_v20  ;;  %7310 = vmatmul.f32.gmra.mxu2 %v17978_v57  ;;  %7356 = vmatmul.f32.vlgmr.msra.gmra.mxu3 %v17956_v40  ;;  %v18369_v40 = vsub.f32 %v7432_v59, %v18356_v32  ;;  %v18393_v48 = vsub.f32 %v7435_v60, %v18378_v6 }
 0x6ab   : > { %7926 = vmatpush.msra.mxu3 %v7925_v5  ;;  %v18358_v61 = vpop.f32.mrf.mxu0  ;;  %v18362_v49 = vpop.f32.mrf.mxu1  ;;  %v18417_v5 = vsub.f32 %v7438_v2, %v18404_v19 }
 0x6ac   : > { %v18376_v35 = vand.u32 4294901760, %v18369_v40  ;;  %v18402_v62 = vand.u32 4294901760, %v18393_v48 }
 0x6ad   : > { %v6824_v7 = vpop.f32.mrf.mxu2  ;;  %v6878_v51 = vpop.f32.mrf.mxu3 }
 0x6ae   : > { %v6825_v26 = vadd.f32 %v6824_v7, %v6772_v39  ;;  %v6879_v38 = vadd.f32 %v6878_v51, %v6820_v1  ;;  %7211 = vmatmul.f32.gmra.mxu0 %v23242_v47  ;;  %7270 = vmatmul.f32.gmra.mxu1 %v23243_v4  ;;  %v7481_v15 = vsub.f32 %v18369_v40, %v18376_v35  ;;  %v18427_v39 = vand.u32 4294901760, %v18417_v5  ;;  %v14139_v47 = vld [vmem:[%s22656_s4 + $0x1e0] sm:$0xff] }
 0x6af   : > { %v7489_v41 = vsub.f32 %v18393_v48, %v18402_v62 }
 0x6b0   : > { %v18399_v33 = vand.u32 4294901760, %v7481_v15 }
 0x6b1   : > { %v18424_v8 = vand.u32 4294901760, %v7489_v41 }
 0x6b2   : > { %7314 = vmatmul.f32.gmra.mxu2 %v18004_v14  ;;  %7360 = vmatmul.f32.gmra.mxu3 %v17978_v57 }
 0x6b3   : > { %v18380_v46 = vpop.f32.mrf.mxu0  ;;  %v18384_v21 = vpop.f32.mrf.mxu1 }
 0x6b5   : > { %v6829_v36 = vpop.f32.mrf.mxu2  ;;  %v6884_v31 = vpop.f32.mrf.mxu3 }
 0x6b6   : > { %v6830_v53 = vadd.f32 %v6829_v36, %v6776_v0  ;;  %v6885_v57 = vadd.f32 %v6884_v31, %v6825_v26  ;;  %7216 = vmatmul.f32.gmra.mxu0 %v23244_v22  ;;  %7276 = vmatmul.f32.gmra.mxu1 %v23245_v18  ;;  %v7497_v36 = vsub.f32 %v18417_v5, %v18427_v39  ;;  %v23246_v31 = vld [vmem:[#allocation30_spill] sm:$0xff] }
 0x6ba   : > { %7318 = vmatmul.f32.gmra.mxu2 %v18029_v29  ;;  %7364 = vmatmul.f32.gmra.mxu3 %v18004_v14 }
 0x6bb   : > { %v6944_v30 = vpop.f32.mrf.mxu0  ;;  %v18408_v11 = vpop.f32.mrf.mxu1 }
 0x6bc   : > { %v6945_v7 = vadd.f32 %v6944_v30, %v6879_v38  ;;  %v18440_v38 = vsub.f32 %v7441_v3, %v18429_v27  ;;  %v6788_v30 = vadd.f32 %v18362_v49, %v18337_v52  ;;  %v7447_v49 = vsel %vm1845_vm4, %v14140_v45, 0 }
 0x6bd   : > { %v6834_v25 = vpop.f32.mrf.mxu2  ;;  %v6890_v1 = vpop.f32.mrf.mxu3 }
 0x6be   : > { %v6835_v14 = vadd.f32 %v6834_v25, %v6780_v34  ;;  %v6891_v59 = vadd.f32 %v6890_v1, %v6830_v53  ;;  %7483 = vmatmul.f32.vlgmr.msrb.gmra.mxu0 %v18399_v33  ;;  %7282 = vmatmul.f32.gmra.mxu1 %v18154_v44  ;;  %v6784_v44 = vadd.f32 %v18340_v55, %v18321_v43  ;;  %v7444_v55 = vsel %vm1845_vm4, %v14139_v47, 0 }
 0x6bf   : > { %7977 = vmatpush.msrb.mxu0 %v18326_v28  ;;  %v18450_v53 = vand.u32 4294901760, %v7497_v36  ;;  %v18453_v22 = vand.u32 4294901760, %v18440_v38  ;;  %v18455_v15 = vand.u32 4294901760, %v7444_v55  ;;  %v18547_v28 = vld [vmem:[%s22655_s3 + $0x10] sm:$0x3] }
 0x6c1   : > { %v7505_v3 = vsub.f32 %v18440_v38, %v18453_v22 }
 0x6c2   : > { %7322 = vmatmul.f32.gmra.mxu2 %v18055_v13  ;;  %7368 = vmatmul.f32.gmra.mxu3 %v18029_v29 }
 0x6c3   : > { %v6948_v51 = vpop.f32.mrf.mxu0  ;;  %v6994_v26 = vpop.f32.mrf.mxu1 }
 0x6c4   : > { %v6995_v29 = vadd.f32 %v6994_v26, %v6945_v7  ;;  %v6949_v18 = vadd.f32 %v6948_v51, %v6885_v57  ;;  %v18466_v57 = vsub.f32 %v7444_v55, %v18455_v15  ;;  %v23248_v7 = vld [vmem:[#allocation34_spill] sm:$0xff]  ;;  %v18475_v51 = vand.u32 4294901760, %v7505_v3 }
 0x6c5   : > { %v6839_v4 = vpop.f32.mrf.mxu2  ;;  %v6896_v60 = vpop.f32.mrf.mxu3  ;;  %v18480_v26 = vand.u32 4294901760, %v7447_v49 }
 0x6c6   : > { %v6840_v0 = vadd.f32 %v6839_v4, %v6784_v44  ;;  %v6897_v16 = vadd.f32 %v6896_v60, %v6835_v14  ;;  %7491 = vmatmul.f32.gmra.mxu0 %v18424_v8  ;;  %v18443_v43 = vadd.f32 %v6995_v29, %v23246_v31  ;;  %7565 = vmatmul.f32.vlgmr.msrb.gmra.mxu1 %v18356_v32  ;;  %v18478_v44 = vand.u32 4294901760, %v18466_v57 }
 0x6c7   : > { %8035 = vmatpush.msrb.mxu1 %v18315_v37  ;;  %v6792_v60 = vadd.f32 %v18384_v21, %v18358_v61 }
 0x6c8   : > { %23247 = vst [vmem:[#allocation32_spill] sm:$0xff] %v18443_v43 }
 0x6ca   : > { %7326 = vmatmul.f32.gmra.mxu2 %v18080_v12  ;;  %7372 = vmatmul.f32.gmra.mxu3 %v18055_v13 }
 0x6cb   : > { %v6952_v2 = vpop.f32.mrf.mxu0  ;;  %v6998_v34 = vpop.f32.mrf.mxu1 }
 0x6cc   : > { %v6999_v13 = vadd.f32 %v6998_v34, %v6949_v18  ;;  %v6953_v47 = vadd.f32 %v6952_v2, %v6891_v59  ;;  %v18491_v59 = vsub.f32 %v7447_v49, %v18480_v26  ;;  %v23250_v2 = vld [vmem:[#allocation33_spill] sm:$0xff] }
 0x6cd   : > { %v6844_v25 = vpop.f32.mrf.mxu2  ;;  %v6902_v1 = vpop.f32.mrf.mxu3 }
 0x6ce   : > { %v6845_v14 = vadd.f32 %v6844_v25, %v6788_v30  ;;  %v6903_v41 = vadd.f32 %v6902_v1, %v6840_v0  ;;  %7499 = vmatmul.f32.gmra.mxu0 %v18450_v53  ;;  %v18469_v52 = vadd.f32 %v6999_v13, %v23248_v7  ;;  %7569 = vmatmul.f32.gmra.mxu1 %v18378_v6  ;;  %v14141_v0 = vld [vmem:[%s22656_s4 + $0x1f0] sm:$0xff]  ;;  %v18503_v45 = vand.u32 4294901760, %v18491_v59  ;;  %v14142_v7 = vld [vmem:[%s22656_s4 + $0x1f8] sm:$0xff] }
 0x6cf   : > { %v7513_v30 = vsub.f32 %v18466_v57, %v18478_v44  ;;  %v7450_v21 = vsel %vm1845_vm4, %v14141_v0, 0 }
 0x6d0   : > { %23249 = vst [vmem:[#allocation24_spill] sm:$0xff] %v18469_v52  ;;  %v18505_v25 = vand.u32 4294901760, %v7450_v21  ;;  %v7521_v0 = vsub.f32 %v18491_v59, %v18503_v45 }
 0x6d1   : > { %v18500_v34 = vand.u32 4294901760, %v7513_v30  ;;  %23252 = vst [vmem:[#allocation61_spill] sm:$0xff] %v18503_v45 }
 0x6d2   : > { %7330 = vmatmul.f32.gmra.mxu2 %v18105_v9  ;;  %7376 = vmatmul.f32.gmra.mxu3 %v18080_v12 }
 0x6d3   : > { %v6956_v4 = vpop.f32.mrf.mxu0  ;;  %v7002_v29 = vpop.f32.mrf.mxu1 }
 0x6d4   : > { %v7003_v12 = vadd.f32 %v7002_v29, %v6953_v47  ;;  %v6957_v1 = vadd.f32 %v6956_v4, %v6897_v16  ;;  %v18516_v16 = vsub.f32 %v7450_v21, %v18505_v25  ;;  %v23254_v4 = vld [vmem:[#allocation25_spill] sm:$0xff] }
 0x6d5   : > { %v6849_v36 = vpop.f32.mrf.mxu2  ;;  %v6908_v31 = vpop.f32.mrf.mxu3 }
 0x6d6   : > { %v6850_v55 = vadd.f32 %v6849_v36, %v6792_v60  ;;  %v6909_v18 = vadd.f32 %v6908_v31, %v6845_v14  ;;  %7507 = vmatmul.f32.gmra.mxu0 %v18475_v51  ;;  %v18494_v61 = vadd.f32 %v7003_v12, %v23250_v2  ;;  %7573 = vmatmul.f32.gmra.mxu1 %v18404_v19  ;;  %v18525_v36 = vand.u32 4294901760, %v7521_v0  ;;  %v23261_v0 = vld [vmem:[#allocation70_spill] sm:$0xff] }
 0x6d7   : > { %v6796_v14 = vadd.f32 %v18408_v11, %v18380_v46  ;;  %23253 = vst [vmem:[#allocation44_spill] sm:$0xff] %v18516_v16  ;;  %v7453_v11 = vsel %vm1845_vm4, %v14142_v7, 0  ;;  %v18528_v31 = vand.u32 4294901760, %v18516_v16 }
 0x6d8   : > { %23251 = vst [vmem:[#allocation62_spill] sm:$0xff] %v18494_v61  ;;  %v18530_v12 = vand.u32 4294901760, %v7453_v11 }
 0x6d9   : > { %23256 = vst [vmem:[#allocation48_spill] sm:$0xff] %v18528_v31 }
 0x6da   : > { %7334 = vmatmul.f32.gmra.mxu2 %v18130_v58  ;;  %7380 = vmatmul.f32.gmra.mxu3 %v18105_v9  ;;  %v18538_v7 = vsub.f32 %v7453_v11, %v18530_v12 }
 0x6db   : > { %v6960_v13 = vpop.f32.mrf.mxu0  ;;  %v7006_v3 = vpop.f32.mrf.mxu1 }
 0x6dc   : > { %v7007_v9 = vadd.f32 %v7006_v3, %v6957_v1  ;;  %23257 = vst [vmem:[#allocation27_spill] sm:$0xff] %v18538_v7 }
 0x6dd   : > { %v6854_v49 = vpop.f32.mrf.mxu2  ;;  %v6914_v47 = vpop.f32.mrf.mxu3 }
 0x6de   : > { %v6855_v60 = vadd.f32 %v6854_v49, %v6796_v14  ;;  %v6915_v29 = vadd.f32 %v6914_v47, %v6850_v55  ;;  %7515 = vmatmul.f32.gmra.mxu0 %v18500_v34  ;;  %v18519_v46 = vadd.f32 %v7007_v9, %v23254_v4  ;;  %7577 = vmatmul.f32.gmra.mxu1 %v18429_v27  ;;  %v23258_v49 = vld [vmem:[#allocation41_spill] sm:$0xff] }
 0x6df   : > { %v6961_v55 = vadd.f32 %v6960_v13, %v6903_v41  ;;  %v18554_v41 = vand.u32 4294901760, %v18538_v7  ;;  %v18557_v13 = vperm.slane %v18547_v28, 0  ;;  %v23262_v4 = vld [vmem:[#allocation69_spill] sm:$0xff] }
 0x6e0   : > { %23255 = vst [vmem:[#allocation36_spill] sm:$0xff] %v18519_v46  ;;  %v8208_v11 = vsel %vm8207_vm13, %v23262_v4, %v23261_v0 }
 0x6e1   : > { %23260 = vst [vmem:[#allocation52_spill] sm:$0xff] %v18557_v13 }
 0x6e2   : > { %7384 = vmatmul.f32.gmra.mxu3 %v18130_v58  ;;  %7617 = vmatmul.f32.vlgmr.msrb.gmra.mxu2 %v18369_v40  ;;  %v7529_v58 = vsub.f32 %v18516_v16, %v18528_v31 }
 0x6e3   : > { %8103 = vmatpush.msrb.mxu2 %v7923_v42  ;;  %v6964_v30 = vpop.f32.mrf.mxu0  ;;  %v7010_v2 = vpop.f32.mrf.mxu1 }
 0x6e4   : > { %v7011_v14 = vadd.f32 %v7010_v2, %v6961_v55  ;;  %v18551_v42 = vand.u32 4294901760, %v7529_v58  ;;  %v6965_v9 = vadd.f32 %v6964_v30, %v6909_v18  ;;  %v8219_v18 = vmul.f32 %v18557_v13, %v8208_v11  ;;  %v23263_v30 = vld [vmem:[#allocation19_spill] sm:$0xff] }
 0x6e5   : > { %v6920_v21 = vpop.f32.mrf.mxu3  ;;  %v7048_v1 = vpop.f32.mrf.mxu2 }
 0x6e6   : > { %v6921_v3 = vadd.f32 %v6920_v21, %v6855_v60  ;;  %7523 = vmatmul.f32.gmra.mxu0 %v18525_v36  ;;  %v18541_v47 = vadd.f32 %v7011_v14, %v23258_v49  ;;  %7581 = vmatmul.f32.gmra.mxu1 %v18455_v15  ;;  %v7537_v49 = vsub.f32 %v18538_v7, %v18554_v41 }
 0x6e8   : > { %23259 = vst [vmem:[#allocation26_spill] sm:$0xff] %v18541_v47  ;;  %v18575_v4 = vand.u32 4294901760, %v7537_v49 }
 0x6ea   : > { %7622 = vmatmul.f32.gmra.mxu2 %v18393_v48  ;;  %7676 = vmatmul.f32.vlgmr.msrb.gmra.mxu3 %v18376_v35 }
 0x6eb   : > { %8153 = vmatpush.msrb.mxu3 %v18315_v37  ;;  %v6968_v60 = vpop.f32.mrf.mxu0  ;;  %v7014_v55 = vpop.f32.mrf.mxu1 }
 0x6ec   : > { %v7015_v14 = vadd.f32 %v7014_v55, %v6965_v9  ;;  %v6969_v9 = vadd.f32 %v6968_v60, %v6915_v29 }
 0x6ed   : > { %v7056_v2 = vpop.f32.mrf.mxu2  ;;  %v7130_v21 = vpop.f32.mrf.mxu3 }
 0x6ee   : > { %v18563_v58 = vadd.f32 %v7130_v21, %v7048_v1  ;;  %7531 = vmatmul.f32.gmra.mxu0 %v18551_v42  ;;  %v18570_v37 = vadd.f32 %v7015_v14, %v23263_v30  ;;  %7585 = vmatmul.f32.gmra.mxu1 %v18480_v26  ;;  %v8255_v1 = vsel %vm1870_vm6, %v8219_v18, 0  ;;  %v23265_v30 = vld [vmem:[#allocation45_spill] sm:$0xff] }
 0x6ef   : > { %v18578_v11 = vand.u32 4294901760, %v8255_v1 }
 0x6f0   : > { %23264 = vst [vmem:[#allocation51_spill] sm:$0xff] %v18570_v37 }
 0x6f1   : > { %v18588_v49 = vsub.f32 %v8255_v1, %v18578_v11 }
 0x6f2   : > { %7627 = vmatmul.f32.gmra.mxu2 %v18417_v5  ;;  %7682 = vmatmul.f32.gmra.mxu3 %v18402_v62 }
 0x6f3   : > { %v6972_v55 = vpop.f32.mrf.mxu0  ;;  %v7018_v21 = vpop.f32.mrf.mxu1 }
 0x6f4   : > { %v7019_v46 = vadd.f32 %v7018_v21, %v6969_v9  ;;  %v6973_v29 = vadd.f32 %v6972_v55, %v6921_v3 }
 0x6f5   : > { %v7064_v63 = vpop.f32.mrf.mxu2  ;;  %v7134_v47 = vpop.f32.mrf.mxu3 }
 0x6f6   : > { %v18580_v14 = vadd.f32 %v7134_v47, %v7056_v2  ;;  %7539 = vmatmul.f32.gmra.mxu0 %v18575_v4  ;;  %v18584_v13 = vadd.f32 %v7019_v46, %v23265_v30  ;;  %7589 = vmatmul.f32.gmra.mxu1 %v18505_v25  ;;  %v22788_v46 = vand.u32 4294901760, %v18588_v49  ;;  %v23267_v30 = vld [vmem:[#allocation42_spill] sm:$0xff] }
 0x6f8   : > { %23266 = vst [vmem:[#allocation43_spill] sm:$0xff] %v18584_v13 }
 0x6fa   : > { %7632 = vmatmul.f32.gmra.mxu2 %v18440_v38  ;;  %7688 = vmatmul.f32.gmra.mxu3 %v18427_v39 }
 0x6fb   : > { %v7182_v60 = vpop.f32.mrf.mxu0  ;;  %v7022_v18 = vpop.f32.mrf.mxu1 }
 0x6fc   : > { %v7023_v2 = vadd.f32 %v7022_v18, %v6973_v29 }
 0x6fd   : > { %v7072_v9 = vpop.f32.mrf.mxu2  ;;  %v7138_v47 = vpop.f32.mrf.mxu3 }
 0x6fe   : > { %v18592_v21 = vadd.f32 %v7138_v47, %v7064_v63  ;;  %7742 = vmatmul.f32.vlgmr.msra.gmra.mxu0 %v18356_v32  ;;  %v18597_v13 = vadd.f32 %v7023_v2, %v23267_v30  ;;  %7593 = vmatmul.f32.gmra.mxu1 %v18530_v12  ;;  %v8360_v63 = vsub.f32 %v18588_v49, %v22788_v46 }
 0x6ff   : > { %8276 = vmatpush.msra.mxu0 %v18578_v11 }
 0x700   : > { %23268 = vst [vmem:[#allocation39_spill] sm:$0xff] %v18597_v13  ;;  %v8361_v47 = vand.u32 4294901760, %v8360_v63 }
 0x702   : > { %7637 = vmatmul.f32.gmra.mxu2 %v18466_v57  ;;  %7694 = vmatmul.f32.gmra.mxu3 %v18453_v22 }
 0x703   : > { %v7187_v3 = vpop.f32.mrf.mxu0  ;;  %v7241_v1 = vpop.f32.mrf.mxu1 }
 0x705   : > { %v7080_v55 = vpop.f32.mrf.mxu2  ;;  %v7142_v29 = vpop.f32.mrf.mxu3 }
 0x706   : > { %v18606_v18 = vadd.f32 %v7142_v29, %v7072_v9  ;;  %7746 = vmatmul.f32.gmra.mxu0 %v18378_v6  ;;  %7792 = vmatmul.f32.vlgmr.msra.gmra.mxu1 %v18356_v32 }
 0x707   : > { %8362 = vmatpush.msra.mxu1 %v8361_v47 }
 0x70a   : > { %7642 = vmatmul.f32.gmra.mxu2 %v18491_v59  ;;  %7700 = vmatmul.f32.gmra.mxu3 %v18478_v44 }
 0x70b   : > { %v7192_v2 = vpop.f32.mrf.mxu0  ;;  %v7247_v30 = vpop.f32.mrf.mxu1 }
 0x70d   : > { %v7088_v13 = vpop.f32.mrf.mxu2  ;;  %v7146_v46 = vpop.f32.mrf.mxu3 }
 0x70e   : > { %v18612_v37 = vadd.f32 %v7146_v46, %v7080_v55  ;;  %7750 = vmatmul.f32.gmra.mxu0 %v18404_v19  ;;  %7796 = vmatmul.f32.gmra.mxu1 %v18378_v6 }
 0x712   : > { %7647 = vmatmul.f32.gmra.mxu2 %v18516_v16  ;;  %7706 = vmatmul.f32.gmra.mxu3 %v18503_v45 }
 0x713   : > { %v7197_v9 = vpop.f32.mrf.mxu0  ;;  %v7253_v63 = vpop.f32.mrf.mxu1 }
 0x715   : > { %v7096_v29 = vpop.f32.mrf.mxu2  ;;  %v7150_v47 = vpop.f32.mrf.mxu3 }
 0x716   : > { %v18618_v61 = vadd.f32 %v7150_v47, %v7088_v13  ;;  %7754 = vmatmul.f32.gmra.mxu0 %v18429_v27  ;;  %7800 = vmatmul.f32.gmra.mxu1 %v18404_v19  ;;  %v7183_v13 = vadd.f32 %v7182_v60, %v18563_v58  ;;  %v7188_v58 = vadd.f32 %v7187_v3, %v18580_v14 }
 0x718   : > { %v7248_v60 = vadd.f32 %v7247_v30, %v7188_v58 }
 0x71a   : > { %7652 = vmatmul.f32.gmra.mxu2 %v18538_v7  ;;  %7712 = vmatmul.f32.gmra.mxu3 %v18528_v31  ;;  %v7242_v31 = vadd.f32 %v7241_v1, %v7183_v13 }
 0x71b   : > { %v7202_v46 = vpop.f32.mrf.mxu0  ;;  %v7259_v55 = vpop.f32.mrf.mxu1 }
 0x71d   : > { %v7104_v52 = vpop.f32.mrf.mxu2  ;;  %v7154_v43 = vpop.f32.mrf.mxu3 }
 0x71e   : > { %v18624_v16 = vadd.f32 %v7154_v43, %v7096_v29  ;;  %7758 = vmatmul.f32.gmra.mxu0 %v18455_v15  ;;  %7804 = vmatmul.f32.gmra.mxu1 %v18429_v27 }
 0x722   : > { %7718 = vmatmul.f32.gmra.mxu3 %v18554_v41  ;;  %7846 = vmatmul.f32.vlgmr.msra.gmra.mxu2 %v18399_v33 }
 0x723   : > { %8413 = vmatpush.msra.mxu2 %v18588_v49  ;;  %v18632_v47 = vpop.f32.mrf.mxu0  ;;  %v7265_v7 = vpop.f32.mrf.mxu1 }
 0x725   : > { %v7158_v45 = vpop.f32.mrf.mxu3  ;;  %v7307_v20 = vpop.f32.mrf.mxu2 }
 0x726   : > { %v18634_v43 = vadd.f32 %v7158_v45, %v7104_v52  ;;  %v7308_v29 = vadd.f32 %v7307_v20, %v7242_v31  ;;  %7762 = vmatmul.f32.gmra.mxu0 %v18480_v26  ;;  %7808 = vmatmul.f32.gmra.mxu1 %v18455_v15 }
 0x72a   : > { %7854 = vmatmul.f32.gmra.mxu2 %v18424_v8  ;;  %7928 = vmatmul.f32.vlgmr.msra.gmra.mxu3 %v18356_v32  ;;  %v7193_v8 = vadd.f32 %v7192_v2, %v18592_v21  ;;  %v7198_v21 = vadd.f32 %v7197_v9, %v18606_v18 }
 0x72b   : > { %8471 = vmatpush.msra.mxu3 %v18578_v11  ;;  %v18642_v33 = vpop.f32.mrf.mxu0  ;;  %v7271_v1 = vpop.f32.mrf.mxu1 }
 0x72c   : > { %v7254_v3 = vadd.f32 %v7253_v63, %v7193_v8  ;;  %v7260_v2 = vadd.f32 %v7259_v55, %v7198_v21 }
 0x72d   : > { %v7311_v13 = vpop.f32.mrf.mxu2  ;;  %v7357_v52 = vpop.f32.mrf.mxu3 }
 0x72e   : > { %v7312_v45 = vadd.f32 %v7311_v13, %v7248_v60  ;;  %v7358_v20 = vadd.f32 %v7357_v52, %v7308_v29  ;;  %7766 = vmatmul.f32.gmra.mxu0 %v18505_v25  ;;  %7812 = vmatmul.f32.gmra.mxu1 %v18480_v26 }
 0x730   : > { %v18647_v31 = vadd.f32 %v7358_v20, %v18247_v23 }
 0x732   : > { %7862 = vmatmul.f32.gmra.mxu2 %v18450_v53  ;;  %7932 = vmatmul.f32.gmra.mxu3 %v18378_v6 }
 0x733   : > { %v18652_v14 = vpop.f32.mrf.mxu0  ;;  %v7277_v30 = vpop.f32.mrf.mxu1 }
 0x735   : > { %v7315_v58 = vpop.f32.mrf.mxu2  ;;  %v7361_v60 = vpop.f32.mrf.mxu3 }
 0x736   : > { %v7316_v29 = vadd.f32 %v7315_v58, %v7254_v3  ;;  %v7362_v13 = vadd.f32 %v7361_v60, %v7312_v45  ;;  %7770 = vmatmul.f32.gmra.mxu0 %v18530_v12  ;;  %7816 = vmatmul.f32.gmra.mxu1 %v18505_v25 }
 0x738   : > { %v18657_v23 = vadd.f32 %v7362_v13, %v18257_v17  ;;  %v23269_v17 = vand.u32 4294901760, %v18588_v49 }
 0x73a   : > { %7870 = vmatmul.f32.gmra.mxu2 %v18475_v51  ;;  %7936 = vmatmul.f32.gmra.mxu3 %v18404_v19  ;;  %v7203_v51 = vadd.f32 %v7202_v46, %v18612_v37 }
 0x73b   : > { %v18662_v53 = vpop.f32.mrf.mxu0  ;;  %v7283_v63 = vpop.f32.mrf.mxu1 }
 0x73c   : > { %v7266_v55 = vadd.f32 %v7265_v7, %v7203_v51 }
 0x73d   : > { %v7319_v52 = vpop.f32.mrf.mxu2  ;;  %v7365_v20 = vpop.f32.mrf.mxu3 }
 0x73e   : > { %v7320_v45 = vadd.f32 %v7319_v52, %v7260_v2  ;;  %v7366_v8 = vadd.f32 %v7365_v20, %v7316_v29  ;;  %7980 = vmatmul.f32.vlgmr.msrb.gmra.mxu0 %v18369_v40  ;;  %7820 = vmatmul.f32.gmra.mxu1 %v18530_v12 }
 0x73f   : > { %8539 = vmatpush.msrb.mxu0 %v23269_v17 }
 0x740   : > { %v18669_v18 = vadd.f32 %v7366_v8, %v18269_v24 }
 0x742   : > { %7878 = vmatmul.f32.gmra.mxu2 %v18500_v34  ;;  %7940 = vmatmul.f32.gmra.mxu3 %v18429_v27  ;;  %v7208_v34 = vadd.f32 %v18632_v47, %v18618_v61  ;;  %v8211_v61 = vsel %vm8207_vm13, %v23261_v0, 0.0  ;;  %v7213_v47 = vadd.f32 %v18642_v33, %v18624_v16  ;;  %v7218_v33 = vadd.f32 %v18652_v14, %v18634_v43 }
 0x743   : > { %v18674_v9 = vpop.f32.mrf.mxu0  ;;  %v7566_v3 = vpop.f32.mrf.mxu1 }
 0x744   : > { %v7272_v37 = vadd.f32 %v7271_v1, %v7208_v34  ;;  %v7284_v52 = vadd.f32 %v7283_v63, %v7218_v33  ;;  %v7567_v63 = vadd.f32 %v7566_v3, %v18662_v53  ;;  %v23271_v3 = vld [vmem:[#allocation20_spill] sm:$0xff] }
 0x745   : > { %v7323_v58 = vpop.f32.mrf.mxu2  ;;  %v7369_v40 = vpop.f32.mrf.mxu3 }
 0x746   : > { %v7324_v60 = vadd.f32 %v7323_v58, %v7266_v55  ;;  %v7370_v29 = vadd.f32 %v7369_v40, %v7320_v45  ;;  %7985 = vmatmul.f32.gmra.mxu0 %v18393_v48  ;;  %8039 = vmatmul.f32.vlgmr.msrb.gmra.mxu1 %v18376_v35  ;;  %v18691_v35 = vperm.slane %v18547_v28, 1 }
 0x747   : > { %8589 = vmatpush.msrb.mxu1 %v18578_v11 }
 0x748   : > { %v18679_v24 = vadd.f32 %v7370_v29, %v18279_v56  ;;  %23270 = vst [vmem:[#allocation47_spill] sm:$0xff] %v18691_v35  ;;  %v8220_v11 = vmul.f32 %v18691_v35, %v8211_v61  ;;  %v23272_v61 = vld [vmem:[#allocation44_spill] sm:$0xff] }
 0x74a   : > { %7886 = vmatmul.f32.gmra.mxu2 %v18525_v36  ;;  %7944 = vmatmul.f32.gmra.mxu3 %v18455_v15 }
 0x74b   : > { %v18686_v7 = vpop.f32.mrf.mxu0  ;;  %v18688_v49 = vpop.f32.mrf.mxu1 }
 0x74d   : > { %v7327_v48 = vpop.f32.mrf.mxu2  ;;  %v7373_v46 = vpop.f32.mrf.mxu3 }
 0x74e   : > { %v7328_v56 = vadd.f32 %v7327_v48, %v7272_v37  ;;  %v7374_v13 = vadd.f32 %v7373_v46, %v7324_v60  ;;  %7990 = vmatmul.f32.gmra.mxu0 %v18417_v5  ;;  %8045 = vmatmul.f32.gmra.mxu1 %v18402_v62  ;;  %v7278_v5 = vadd.f32 %v7277_v30, %v7213_v47  ;;  %v8258_v62 = vsel %vm1870_vm6, %v8220_v11, 0  ;;  %v23273_v11 = vld [vmem:[#allocation61_spill] sm:$0xff] }
 0x750   : > { %v18698_v36 = vadd.f32 %v7374_v13, %v18298_v10 }
 0x752   : > { %7894 = vmatmul.f32.gmra.mxu2 %v18551_v42  ;;  %7948 = vmatmul.f32.gmra.mxu3 %v18480_v26  ;;  %v18715_v42 = vand.u32 4294901760, %v8258_v62 }
 0x753   : > { %v18705_v28 = vpop.f32.mrf.mxu0  ;;  %v18707_v1 = vpop.f32.mrf.mxu1 }
 0x755   : > { %v7331_v0 = vpop.f32.mrf.mxu2  ;;  %v7377_v21 = vpop.f32.mrf.mxu3 }
 0x756   : > { %v7332_v10 = vadd.f32 %v7331_v0, %v7278_v5  ;;  %v7378_v2 = vadd.f32 %v7377_v21, %v7328_v56  ;;  %7995 = vmatmul.f32.gmra.mxu0 %v18440_v38  ;;  %8051 = vmatmul.f32.gmra.mxu1 %v18427_v39  ;;  %v18726_v38 = vsub.f32 %v8258_v62, %v18715_v42  ;;  %v14146_v62 = vld [vmem:[%s22656_s4 + $0x210] sm:$0xff] }
 0x757   : > { %v7575_v0 = vadd.f32 %v18707_v1, %v18686_v7  ;;  %v8237_v7 = vsel %vm1845_vm4, %v14146_v62, 0 }
 0x758   : > { %v18713_v16 = vadd.f32 %v7378_v2, %v18313_v54  ;;  %v8722_v43 = vand.u32 4294901760, %v18726_v38 }
 0x75a   : > { %7902 = vmatmul.f32.gmra.mxu2 %v18575_v4  ;;  %7952 = vmatmul.f32.gmra.mxu3 %v18505_v25  ;;  %v8723_v51 = vsub.f32 %v18726_v38, %v8722_v43 }
 0x75b   : > { %v18721_v30 = vpop.f32.mrf.mxu0  ;;  %v18723_v20 = vpop.f32.mrf.mxu1 }
 0x75c   : > { %v8724_v60 = vand.u32 4294901760, %v8723_v51  ;;  %v14147_v51 = vld [vmem:[%s22656_s4 + $0x218] sm:$0xff] }
 0x75d   : > { %v7335_v39 = vpop.f32.mrf.mxu2  ;;  %v7381_v54 = vpop.f32.mrf.mxu3 }
 0x75e   : > { %v7336_v45 = vadd.f32 %v7335_v39, %v7284_v52  ;;  %v7382_v8 = vadd.f32 %v7381_v54, %v7332_v10  ;;  %8000 = vmatmul.f32.gmra.mxu0 %v18466_v57  ;;  %8057 = vmatmul.f32.gmra.mxu1 %v18453_v22  ;;  %v14144_v22 = vld [vmem:[%s22656_s4 + $0x200] sm:$0xff]  ;;  %v23274_v52 = vld [vmem:[#allocation27_spill] sm:$0xff] }
 0x75f   : > { %v8231_v53 = vsel %vm1845_vm4, %v14144_v22, 0 }
 0x760   : > { %v18731_v4 = vadd.f32 %v7382_v8, %v18331_v50  ;;  %v18756_v29 = vand.u32 4294901760, %v8231_v53 }
 0x762   : > { %7956 = vmatmul.f32.gmra.mxu3 %v18530_v12  ;;  %8105 = vmatmul.f32.vlgmr.msrb.gmra.mxu2 %v18356_v32 }
 0x763   : > { %8639 = vmatpush.msrb.mxu2 %v18715_v42  ;;  %v18737_v14 = vpop.f32.mrf.mxu0  ;;  %v18740_v17 = vpop.f32.mrf.mxu1 }
 0x765   : > { %v7385_v50 = vpop.f32.mrf.mxu3  ;;  %v7618_v57 = vpop.f32.mrf.mxu2 }
 0x766   : > { %v7386_v55 = vadd.f32 %v7385_v50, %v7336_v45  ;;  %v7619_v58 = vadd.f32 %v7618_v57, %v7567_v63  ;;  %8005 = vmatmul.f32.gmra.mxu0 %v18491_v59  ;;  %8063 = vmatmul.f32.gmra.mxu1 %v18478_v44  ;;  %v7571_v59 = vadd.f32 %v18688_v49, %v18674_v9  ;;  %v14145_v44 = vld [vmem:[%s22656_s4 + $0x208] sm:$0xff]  ;;  %v23275_v45 = vld [vmem:[#allocation48_spill] sm:$0xff]  ;;  %v18804_v63 = vand.u32 4294901760, %v8237_v7 }
 0x767   : > { %v8234_v47 = vsel %vm1845_vm4, %v14145_v44, 0  ;;  %v7579_v50 = vadd.f32 %v18723_v20, %v18705_v28  ;;  %v8240_v28 = vsel %vm1845_vm4, %v14147_v51, 0  ;;  %v14149_v51 = vld [vmem:[%s22656_s4 + $0x228] sm:$0xff] }
 0x768   : > { %v18752_v40 = vadd.f32 %v7386_v55, %v23271_v3  ;;  %v18778_v49 = vand.u32 4294901760, %v8234_v47  ;;  %v18829_v44 = vand.u32 4294901760, %v8240_v28 }
 0x76a   : > { %8109 = vmatmul.f32.gmra.mxu2 %v18378_v6  ;;  %8155 = vmatmul.f32.vlgmr.msrb.gmra.mxu3 %v18356_v32  ;;  %v18769_v32 = vsub.f32 %v8231_v53, %v18756_v29  ;;  %v18793_v54 = vsub.f32 %v8234_v47, %v18778_v49 }
 0x76b   : > { %8725 = vmatpush.msrb.mxu3 %v8724_v60  ;;  %v18758_v34 = vpop.f32.mrf.mxu0  ;;  %v18762_v37 = vpop.f32.mrf.mxu1  ;;  %v18817_v60 = vsub.f32 %v8237_v7, %v18804_v63 }
 0x76c   : > { %v18776_v9 = vand.u32 4294901760, %v18769_v32  ;;  %v18802_v8 = vand.u32 4294901760, %v18793_v54 }
 0x76d   : > { %v7623_v48 = vpop.f32.mrf.mxu2  ;;  %v7677_v46 = vpop.f32.mrf.mxu3 }
 0x76e   : > { %v7624_v56 = vadd.f32 %v7623_v48, %v7571_v59  ;;  %v7678_v13 = vadd.f32 %v7677_v46, %v7619_v58  ;;  %8010 = vmatmul.f32.gmra.mxu0 %v23272_v61  ;;  %8069 = vmatmul.f32.gmra.mxu1 %v23273_v11  ;;  %v8280_v39 = vsub.f32 %v18769_v32, %v18776_v9  ;;  %v18827_v59 = vand.u32 4294901760, %v18817_v60  ;;  %v14148_v61 = vld [vmem:[%s22656_s4 + $0x220] sm:$0xff] }
 0x76f   : > { %v8288_v3 = vsub.f32 %v18793_v54, %v18802_v8 }
 0x770   : > { %v18799_v1 = vand.u32 4294901760, %v8280_v39 }
 0x771   : > { %v18824_v20 = vand.u32 4294901760, %v8288_v3 }
 0x772   : > { %8113 = vmatmul.f32.gmra.mxu2 %v18404_v19  ;;  %8159 = vmatmul.f32.gmra.mxu3 %v18378_v6 }
 0x773   : > { %v18780_v5 = vpop.f32.mrf.mxu0  ;;  %v18784_v21 = vpop.f32.mrf.mxu1 }
 0x775   : > { %v7628_v10 = vpop.f32.mrf.mxu2  ;;  %v7683_v2 = vpop.f32.mrf.mxu3 }
 0x776   : > { %v7629_v33 = vadd.f32 %v7628_v10, %v7575_v0  ;;  %v7684_v6 = vadd.f32 %v7683_v2, %v7624_v56  ;;  %8015 = vmatmul.f32.gmra.mxu0 %v23274_v52  ;;  %8075 = vmatmul.f32.gmra.mxu1 %v23275_v45  ;;  %v8296_v10 = vsub.f32 %v18817_v60, %v18827_v59  ;;  %v23276_v2 = vld [vmem:[#allocation32_spill] sm:$0xff] }
 0x77a   : > { %8117 = vmatmul.f32.gmra.mxu2 %v18429_v27  ;;  %8163 = vmatmul.f32.gmra.mxu3 %v18404_v19 }
 0x77b   : > { %v7743_v22 = vpop.f32.mrf.mxu0  ;;  %v18808_v57 = vpop.f32.mrf.mxu1 }
 0x77c   : > { %v7744_v48 = vadd.f32 %v7743_v22, %v7678_v13  ;;  %v18840_v13 = vsub.f32 %v8240_v28, %v18829_v44  ;;  %v7587_v22 = vadd.f32 %v18762_v37, %v18737_v14  ;;  %v8246_v37 = vsel %vm1845_vm4, %v14149_v51, 0 }
 0x77d   : > { %v7633_v55 = vpop.f32.mrf.mxu2  ;;  %v7689_v58 = vpop.f32.mrf.mxu3 }
 0x77e   : > { %v7634_v19 = vadd.f32 %v7633_v55, %v7579_v50  ;;  %v7690_v53 = vadd.f32 %v7689_v58, %v7629_v33  ;;  %8282 = vmatmul.f32.vlgmr.msra.gmra.mxu0 %v18799_v1  ;;  %8081 = vmatmul.f32.gmra.mxu1 %v18554_v41  ;;  %v7583_v41 = vadd.f32 %v18740_v17, %v18721_v30  ;;  %v8243_v17 = vsel %vm1845_vm4, %v14148_v61, 0 }
 0x77f   : > { %8776 = vmatpush.msra.mxu0 %v18726_v38  ;;  %v18850_v33 = vand.u32 4294901760, %v8296_v10  ;;  %v18853_v52 = vand.u32 4294901760, %v18840_v13  ;;  %v18855_v39 = vand.u32 4294901760, %v8243_v17 }
 0x781   : > { %v8304_v28 = vsub.f32 %v18840_v13, %v18853_v52 }
 0x782   : > { %8121 = vmatmul.f32.gmra.mxu2 %v18455_v15  ;;  %8167 = vmatmul.f32.gmra.mxu3 %v18429_v27 }
 0x783   : > { %v7747_v46 = vpop.f32.mrf.mxu0  ;;  %v7793_v56 = vpop.f32.mrf.mxu1 }
 0x784   : > { %v7794_v27 = vadd.f32 %v7793_v56, %v7744_v48  ;;  %v7748_v45 = vadd.f32 %v7747_v46, %v7684_v6  ;;  %v18866_v6 = vsub.f32 %v8243_v17, %v18855_v39  ;;  %v23278_v48 = vld [vmem:[#allocation24_spill] sm:$0xff]  ;;  %v18875_v46 = vand.u32 4294901760, %v8304_v28 }
 0x785   : > { %v7638_v11 = vpop.f32.mrf.mxu2  ;;  %v7695_v47 = vpop.f32.mrf.mxu3  ;;  %v18880_v56 = vand.u32 4294901760, %v8246_v37 }
 0x786   : > { %v7639_v0 = vadd.f32 %v7638_v11, %v7583_v41  ;;  %v7696_v62 = vadd.f32 %v7695_v47, %v7634_v19  ;;  %8290 = vmatmul.f32.gmra.mxu0 %v18824_v20  ;;  %v18843_v30 = vadd.f32 %v7794_v27, %v23276_v2  ;;  %8364 = vmatmul.f32.vlgmr.msra.gmra.mxu1 %v18756_v29  ;;  %v18878_v41 = vand.u32 4294901760, %v18866_v6 }
 0x787   : > { %8834 = vmatpush.msra.mxu1 %v18715_v42  ;;  %v7591_v47 = vadd.f32 %v18784_v21, %v18758_v34 }
 0x788   : > { %23277 = vst [vmem:[#allocation40_spill] sm:$0xff] %v18843_v30 }
 0x78a   : > { %8125 = vmatmul.f32.gmra.mxu2 %v18480_v26  ;;  %8171 = vmatmul.f32.gmra.mxu3 %v18455_v15 }
 0x78b   : > { %v7751_v7 = vpop.f32.mrf.mxu0  ;;  %v7797_v50 = vpop.f32.mrf.mxu1 }
 0x78c   : > { %v7798_v15 = vadd.f32 %v7797_v50, %v7748_v45  ;;  %v7752_v61 = vadd.f32 %v7751_v7, %v7690_v53  ;;  %v18891_v53 = vsub.f32 %v8246_v37, %v18880_v56  ;;  %v23280_v7 = vld [vmem:[#allocation62_spill] sm:$0xff] }
 0x78d   : > { %v7643_v55 = vpop.f32.mrf.mxu2  ;;  %v7701_v58 = vpop.f32.mrf.mxu3 }
 0x78e   : > { %v7644_v19 = vadd.f32 %v7643_v55, %v7587_v22  ;;  %v7702_v3 = vadd.f32 %v7701_v58, %v7639_v0  ;;  %8298 = vmatmul.f32.gmra.mxu0 %v18850_v33  ;;  %v18869_v14 = vadd.f32 %v7798_v15, %v23278_v48  ;;  %8368 = vmatmul.f32.gmra.mxu1 %v18778_v49  ;;  %v14150_v0 = vld [vmem:[%s22656_s4 + $0x230] sm:$0xff]  ;;  %v18903_v51 = vand.u32 4294901760, %v18891_v53  ;;  %v14151_v48 = vld [vmem:[%s22656_s4 + $0x238] sm:$0xff] }
 0x78f   : > { %v8312_v22 = vsub.f32 %v18866_v6, %v18878_v41  ;;  %v8249_v21 = vsel %vm1845_vm4, %v14150_v0, 0 }
 0x790   : > { %23279 = vst [vmem:[#allocation29_spill] sm:$0xff] %v18869_v14  ;;  %v18905_v55 = vand.u32 4294901760, %v8249_v21  ;;  %v8320_v0 = vsub.f32 %v18891_v53, %v18903_v51 }
 0x791   : > { %v18900_v50 = vand.u32 4294901760, %v8312_v22  ;;  %23282 = vst [vmem:[#allocation65_spill] sm:$0xff] %v18903_v51 }
 0x792   : > { %8129 = vmatmul.f32.gmra.mxu2 %v18505_v25  ;;  %8175 = vmatmul.f32.gmra.mxu3 %v18480_v26 }
 0x793   : > { %v7755_v11 = vpop.f32.mrf.mxu0  ;;  %v7801_v27 = vpop.f32.mrf.mxu1 }
 0x794   : > { %v7802_v26 = vadd.f32 %v7801_v27, %v7752_v61  ;;  %v7756_v58 = vadd.f32 %v7755_v11, %v7696_v62  ;;  %v18916_v62 = vsub.f32 %v8249_v21, %v18905_v55  ;;  %v23283_v11 = vld [vmem:[#allocation36_spill] sm:$0xff] }
 0x795   : > { %v7648_v10 = vpop.f32.mrf.mxu2  ;;  %v7707_v2 = vpop.f32.mrf.mxu3 }
 0x796   : > { %v7649_v17 = vadd.f32 %v7648_v10, %v7591_v47  ;;  %v7708_v45 = vadd.f32 %v7707_v2, %v7644_v19  ;;  %8306 = vmatmul.f32.gmra.mxu0 %v18875_v46  ;;  %v18894_v34 = vadd.f32 %v7802_v26, %v23280_v7  ;;  %8372 = vmatmul.f32.gmra.mxu1 %v18804_v63  ;;  %v18925_v10 = vand.u32 4294901760, %v8320_v0 }
 0x797   : > { %v7595_v19 = vadd.f32 %v18808_v57, %v18780_v5  ;;  %v8252_v57 = vsel %vm1845_vm4, %v14151_v48, 0  ;;  %v18928_v2 = vand.u32 4294901760, %v18916_v62 }
 0x798   : > { %23281 = vst [vmem:[#allocation46_spill] sm:$0xff] %v18894_v34  ;;  %v18930_v26 = vand.u32 4294901760, %v8252_v57 }
 0x799   : > { %23285 = vst [vmem:[#allocation49_spill] sm:$0xff] %v18928_v2 }
 0x79a   : > { %8133 = vmatmul.f32.gmra.mxu2 %v18530_v12  ;;  %8179 = vmatmul.f32.gmra.mxu3 %v18505_v25  ;;  %v18938_v48 = vsub.f32 %v8252_v57, %v18930_v26 }
 0x79b   : > { %v7759_v15 = vpop.f32.mrf.mxu0  ;;  %v7805_v28 = vpop.f32.mrf.mxu1 }
 0x79c   : > { %v7806_v25 = vadd.f32 %v7805_v28, %v7756_v58  ;;  %23286 = vst [vmem:[#allocation53_spill] sm:$0xff] %v18938_v48 }
 0x79d   : > { %v7653_v37 = vpop.f32.mrf.mxu2  ;;  %v7713_v61 = vpop.f32.mrf.mxu3 }
 0x79e   : > { %v7654_v47 = vadd.f32 %v7653_v37, %v7595_v19  ;;  %v7714_v27 = vadd.f32 %v7713_v61, %v7649_v17  ;;  %8314 = vmatmul.f32.gmra.mxu0 %v18900_v50  ;;  %v18919_v5 = vadd.f32 %v7806_v25, %v23283_v11  ;;  %8376 = vmatmul.f32.gmra.mxu1 %v18829_v44  ;;  %v23287_v37 = vld [vmem:[#allocation26_spill] sm:$0xff] }
 0x79f   : > { %v7760_v17 = vadd.f32 %v7759_v15, %v7702_v3 }
 0x7a0   : > { %23284 = vst [vmem:[#allocation68_spill] sm:$0xff] %v18919_v5 }
 0x7a2   : > { %8183 = vmatmul.f32.gmra.mxu3 %v18530_v12  ;;  %8416 = vmatmul.f32.vlgmr.msra.gmra.mxu2 %v18769_v32  ;;  %v8328_v12 = vsub.f32 %v18916_v62, %v18928_v2 }
 0x7a3   : > { %8902 = vmatpush.msra.mxu2 %v8722_v43  ;;  %v7763_v22 = vpop.f32.mrf.mxu0  ;;  %v7809_v7 = vpop.f32.mrf.mxu1  ;;  %v18949_v43 = vand.u32 4294901760, %v18938_v48 }
 0x7a4   : > { %v7810_v19 = vadd.f32 %v7809_v7, %v7760_v17  ;;  %v18946_v38 = vand.u32 4294901760, %v8328_v12  ;;  %v7764_v3 = vadd.f32 %v7763_v22, %v7708_v45  ;;  %v23290_v7 = vld [vmem:[#allocation51_spill] sm:$0xff] }
 0x7a5   : > { %v7719_v21 = vpop.f32.mrf.mxu3  ;;  %v7847_v58 = vpop.f32.mrf.mxu2  ;;  %23289 = vst [vmem:[#allocation56_spill] sm:$0xff] %v18949_v43  ;;  %v8336_v17 = vsub.f32 %v18938_v48, %v18949_v43 }
 0x7a6   : > { %v7720_v28 = vadd.f32 %v7719_v21, %v7654_v47  ;;  %8322 = vmatmul.f32.gmra.mxu0 %v18925_v10  ;;  %v18941_v61 = vadd.f32 %v7810_v19, %v23287_v37  ;;  %8380 = vmatmul.f32.gmra.mxu1 %v18855_v39 }
 0x7a8   : > { %23288 = vst [vmem:[#allocation55_spill] sm:$0xff] %v18941_v61 }
 0x7aa   : > { %8421 = vmatmul.f32.gmra.mxu2 %v18793_v54  ;;  %8475 = vmatmul.f32.vlgmr.msra.gmra.mxu3 %v18776_v9 }
 0x7ab   : > { %8952 = vmatpush.msra.mxu3 %v18715_v42  ;;  %v7767_v15 = vpop.f32.mrf.mxu0  ;;  %v7813_v25 = vpop.f32.mrf.mxu1  ;;  %v18963_v42 = vand.u32 4294901760, %v8336_v17 }
 0x7ac   : > { %v7814_v11 = vadd.f32 %v7813_v25, %v7764_v3  ;;  %v7768_v45 = vadd.f32 %v7767_v15, %v7714_v27  ;;  %v23292_v25 = vld [vmem:[#allocation43_spill] sm:$0xff] }
 0x7ad   : > { %v7855_v47 = vpop.f32.mrf.mxu2  ;;  %v7929_v0 = vpop.f32.mrf.mxu3 }
 0x7ae   : > { %v18952_v57 = vadd.f32 %v7929_v0, %v7847_v58  ;;  %8330 = vmatmul.f32.gmra.mxu0 %v18946_v38  ;;  %v18958_v21 = vadd.f32 %v7814_v11, %v23290_v7  ;;  %8384 = vmatmul.f32.gmra.mxu1 %v18880_v56 }
 0x7b0   : > { %23291 = vst [vmem:[#allocation64_spill] sm:$0xff] %v18958_v21 }
 0x7b2   : > { %8426 = vmatmul.f32.gmra.mxu2 %v18817_v60  ;;  %8481 = vmatmul.f32.gmra.mxu3 %v18802_v8 }
 0x7b3   : > { %v7771_v22 = vpop.f32.mrf.mxu0  ;;  %v7817_v58 = vpop.f32.mrf.mxu1 }
 0x7b4   : > { %v7818_v37 = vadd.f32 %v7817_v58, %v7768_v45  ;;  %v7772_v11 = vadd.f32 %v7771_v22, %v7720_v28 }
 0x7b5   : > { %v7863_v19 = vpop.f32.mrf.mxu2  ;;  %v7933_v12 = vpop.f32.mrf.mxu3 }
 0x7b6   : > { %v18965_v3 = vadd.f32 %v7933_v12, %v7855_v47  ;;  %8338 = vmatmul.f32.gmra.mxu0 %v18963_v42  ;;  %v18969_v0 = vadd.f32 %v7818_v37, %v23292_v25  ;;  %8388 = vmatmul.f32.gmra.mxu1 %v18905_v55  ;;  %v23294_v47 = vld [vmem:[#allocation39_spill] sm:$0xff] }
 0x7b8   : > { %23293 = vst [vmem:[#allocation58_spill] sm:$0xff] %v18969_v0 }
 0x7ba   : > { %8431 = vmatmul.f32.gmra.mxu2 %v18840_v13  ;;  %8487 = vmatmul.f32.gmra.mxu3 %v18827_v59 }
 0x7bb   : > { %v7981_v27 = vpop.f32.mrf.mxu0  ;;  %v7821_v15 = vpop.f32.mrf.mxu1 }
 0x7bc   : > { %v7822_v35 = vadd.f32 %v7821_v15, %v7772_v11 }
 0x7bd   : > { %v7871_v17 = vpop.f32.mrf.mxu2  ;;  %v7937_v7 = vpop.f32.mrf.mxu3 }
 0x7be   : > { %v18974_v45 = vadd.f32 %v7937_v7, %v7863_v19  ;;  %8541 = vmatmul.f32.vlgmr.msrb.gmra.mxu0 %v18756_v29  ;;  %v18978_v58 = vadd.f32 %v7822_v35, %v23294_v47  ;;  %8392 = vmatmul.f32.gmra.mxu1 %v18930_v26 }
 0x7c0   : > { %23295 = vst [vmem:[#allocation63_spill] sm:$0xff] %v18978_v58 }
 0x7c2   : > { %8436 = vmatmul.f32.gmra.mxu2 %v18866_v6  ;;  %8493 = vmatmul.f32.gmra.mxu3 %v18853_v52 }
 0x7c3   : > { %v7986_v12 = vpop.f32.mrf.mxu0  ;;  %v8040_v28 = vpop.f32.mrf.mxu1 }
 0x7c5   : > { %v7879_v22 = vpop.f32.mrf.mxu2  ;;  %v7941_v37 = vpop.f32.mrf.mxu3 }
 0x7c6   : > { %v18983_v25 = vadd.f32 %v7941_v37, %v7871_v17  ;;  %8545 = vmatmul.f32.gmra.mxu0 %v18778_v49  ;;  %8591 = vmatmul.f32.vlgmr.msrb.gmra.mxu1 %v18756_v29 }
 0x7ca   : > { %8441 = vmatmul.f32.gmra.mxu2 %v18891_v53  ;;  %8499 = vmatmul.f32.gmra.mxu3 %v18878_v41 }
 0x7cb   : > { %v7991_v35 = vpop.f32.mrf.mxu0  ;;  %v8046_v19 = vpop.f32.mrf.mxu1 }
 0x7cd   : > { %v7887_v11 = vpop.f32.mrf.mxu2  ;;  %v7945_v15 = vpop.f32.mrf.mxu3 }
 0x7ce   : > { %v18989_v7 = vadd.f32 %v7945_v15, %v7879_v22  ;;  %8549 = vmatmul.f32.gmra.mxu0 %v18804_v63  ;;  %8595 = vmatmul.f32.gmra.mxu1 %v18778_v49 }
 0x7d2   : > { %8446 = vmatmul.f32.gmra.mxu2 %v18916_v62  ;;  %8505 = vmatmul.f32.gmra.mxu3 %v18903_v51 }
 0x7d3   : > { %v7996_v17 = vpop.f32.mrf.mxu0  ;;  %v8052_v47 = vpop.f32.mrf.mxu1 }
 0x7d5   : > { %v7895_v37 = vpop.f32.mrf.mxu2  ;;  %v7949_v58 = vpop.f32.mrf.mxu3 }
 0x7d6   : > { %v18995_v0 = vadd.f32 %v7949_v58, %v7887_v11  ;;  %8553 = vmatmul.f32.gmra.mxu0 %v18829_v44  ;;  %8599 = vmatmul.f32.gmra.mxu1 %v18804_v63  ;;  %v7982_v58 = vadd.f32 %v7981_v27, %v18952_v57 }
 0x7d8   : > { %v8041_v34 = vadd.f32 %v8040_v28, %v7982_v58 }
 0x7da   : > { %8451 = vmatmul.f32.gmra.mxu2 %v18938_v48  ;;  %8511 = vmatmul.f32.gmra.mxu3 %v18928_v2 }
 0x7db   : > { %v8001_v22 = vpop.f32.mrf.mxu0  ;;  %v8058_v15 = vpop.f32.mrf.mxu1 }
 0x7dd   : > { %v7903_v21 = vpop.f32.mrf.mxu2  ;;  %v7953_v61 = vpop.f32.mrf.mxu3 }
 0x7de   : > { %v19001_v5 = vadd.f32 %v7953_v61, %v7895_v37  ;;  %8557 = vmatmul.f32.gmra.mxu0 %v18855_v39  ;;  %8603 = vmatmul.f32.gmra.mxu1 %v18829_v44  ;;  %v7987_v61 = vadd.f32 %v7986_v12, %v18965_v3 }
 0x7e2   : > { %8517 = vmatmul.f32.gmra.mxu3 %v18949_v43  ;;  %8645 = vmatmul.f32.vlgmr.msrb.gmra.mxu2 %v18799_v1  ;;  %v8047_v1 = vadd.f32 %v8046_v19, %v7987_v61 }
 0x7e3   : > { %v8006_v11 = vpop.f32.mrf.mxu0  ;;  %v8064_v14 = vpop.f32.mrf.mxu1 }
 0x7e5   : > { %v7957_v30 = vpop.f32.mrf.mxu3  ;;  %v8106_v2 = vpop.f32.mrf.mxu2 }
 0x7e6   : > { %v19008_v48 = vadd.f32 %v7957_v30, %v7903_v21  ;;  %v8107_v51 = vadd.f32 %v8106_v2, %v8041_v34  ;;  %8561 = vmatmul.f32.gmra.mxu0 %v18880_v56  ;;  %8607 = vmatmul.f32.gmra.mxu1 %v18855_v39  ;;  %v7992_v34 = vadd.f32 %v7991_v35, %v18974_v45 }
 0x7e8   : > { %v8053_v2 = vadd.f32 %v8052_v47, %v7992_v34 }
 0x7ea   : > { %8653 = vmatmul.f32.gmra.mxu2 %v18824_v20  ;;  %8727 = vmatmul.f32.vlgmr.msrb.gmra.mxu3 %v18756_v29 }
 0x7eb   : > { %v8011_v57 = vpop.f32.mrf.mxu0  ;;  %v8070_v27 = vpop.f32.mrf.mxu1 }
 0x7ed   : > { %v8110_v28 = vpop.f32.mrf.mxu2  ;;  %v8156_v37 = vpop.f32.mrf.mxu3 }
 0x7ee   : > { %v8111_v58 = vadd.f32 %v8110_v28, %v8047_v1  ;;  %v8157_v43 = vadd.f32 %v8156_v37, %v8107_v51  ;;  %8565 = vmatmul.f32.gmra.mxu0 %v18905_v55  ;;  %8611 = vmatmul.f32.gmra.mxu1 %v18880_v56 }
 0x7f0   : > { %v19018_v30 = vadd.f32 %v8157_v43, %v18647_v31  ;;  %v7997_v43 = vadd.f32 %v7996_v17, %v18983_v25  ;;  %v8002_v25 = vadd.f32 %v8001_v22, %v18989_v7 }
 0x7f2   : > { %8661 = vmatmul.f32.gmra.mxu2 %v18850_v33  ;;  %8731 = vmatmul.f32.gmra.mxu3 %v18778_v49  ;;  %v8059_v45 = vadd.f32 %v8058_v15, %v7997_v43  ;;  %v8065_v17 = vadd.f32 %v8064_v14, %v8002_v25  ;;  %v23298_v25 = vld [vmem:[#allocation49_spill] sm:$0xff] }
 0x7f3   : > { %v8016_v20 = vpop.f32.mrf.mxu0  ;;  %v8076_v21 = vpop.f32.mrf.mxu1 }
 0x7f5   : > { %v8114_v3 = vpop.f32.mrf.mxu2  ;;  %v8160_v12 = vpop.f32.mrf.mxu3 }
 0x7f6   : > { %v8115_v19 = vadd.f32 %v8114_v3, %v8053_v2  ;;  %v8161_v51 = vadd.f32 %v8160_v12, %v8111_v58  ;;  %8569 = vmatmul.f32.gmra.mxu0 %v18930_v26  ;;  %8615 = vmatmul.f32.gmra.mxu1 %v18905_v55 }
 0x7f8   : > { %v19026_v31 = vadd.f32 %v8161_v51, %v18657_v23 }
 0x7fa   : > { %8669 = vmatmul.f32.gmra.mxu2 %v18875_v46  ;;  %8735 = vmatmul.f32.gmra.mxu3 %v18804_v63 }
 0x7fb   : > { %v19031_v33 = vpop.f32.mrf.mxu0  ;;  %v8082_v35 = vpop.f32.mrf.mxu1 }
 0x7fd   : > { %v8118_v47 = vpop.f32.mrf.mxu2  ;;  %v8164_v61 = vpop.f32.mrf.mxu3 }
 0x7fe   : > { %v8119_v1 = vadd.f32 %v8118_v47, %v8059_v45  ;;  %v8165_v28 = vadd.f32 %v8164_v61, %v8115_v19  ;;  %8779 = vmatmul.f32.vlgmr.msra.gmra.mxu0 %v18769_v32  ;;  %8619 = vmatmul.f32.gmra.mxu1 %v18930_v26 }
 0x800   : > { %v19036_v23 = vadd.f32 %v8165_v28, %v18669_v18  ;;  %v23297_v28 = vld [vmem:[#allocation53_spill] sm:$0xff] }
 0x802   : > { %8677 = vmatmul.f32.gmra.mxu2 %v18900_v50  ;;  %8739 = vmatmul.f32.gmra.mxu3 %v18829_v44  ;;  %v8007_v50 = vadd.f32 %v8006_v11, %v18995_v0 }
 0x803   : > { %v19041_v46 = vpop.f32.mrf.mxu0  ;;  %v19043_v15 = vpop.f32.mrf.mxu1 }
 0x804   : > { %v8071_v7 = vadd.f32 %v8070_v27, %v8007_v50 }
 0x805   : > { %v8122_v37 = vpop.f32.mrf.mxu2  ;;  %v8168_v58 = vpop.f32.mrf.mxu3 }
 0x806   : > { %v8123_v34 = vadd.f32 %v8122_v37, %v8065_v17  ;;  %v8169_v32 = vadd.f32 %v8168_v58, %v8119_v1  ;;  %8784 = vmatmul.f32.gmra.mxu0 %v18793_v54  ;;  %8838 = vmatmul.f32.vlgmr.msra.gmra.mxu1 %v18776_v9  ;;  %v8012_v9 = vadd.f32 %v8011_v57, %v19001_v5  ;;  %v23296_v1 = vld [vmem:[#allocation65_spill] sm:$0xff] }
 0x808   : > { %v19048_v18 = vadd.f32 %v8169_v32, %v18679_v24  ;;  %v8077_v0 = vadd.f32 %v8076_v21, %v8012_v9  ;;  %v23299_v32 = vld [vmem:[#allocation56_spill] sm:$0xff] }
 0x80a   : > { %8685 = vmatmul.f32.gmra.mxu2 %v18925_v10  ;;  %8743 = vmatmul.f32.gmra.mxu3 %v18855_v39 }
 0x80b   : > { %v19053_v14 = vpop.f32.mrf.mxu0  ;;  %v19055_v22 = vpop.f32.mrf.mxu1 }
 0x80d   : > { %v8126_v2 = vpop.f32.mrf.mxu2  ;;  %v8172_v3 = vpop.f32.mrf.mxu3 }
 0x80e   : > { %v8127_v12 = vadd.f32 %v8126_v2, %v8071_v7  ;;  %v8173_v54 = vadd.f32 %v8172_v3, %v8123_v34  ;;  %8789 = vmatmul.f32.gmra.mxu0 %v18817_v60  ;;  %8844 = vmatmul.f32.gmra.mxu1 %v18802_v8  ;;  %v8017_v8 = vadd.f32 %v8016_v20, %v19008_v48 }
 0x810   : > { %v19060_v24 = vadd.f32 %v8173_v54, %v18698_v36 }
 0x812   : > { %8693 = vmatmul.f32.gmra.mxu2 %v18946_v38  ;;  %8747 = vmatmul.f32.gmra.mxu3 %v18880_v56  ;;  %v8083_v38 = vadd.f32 %v8082_v35, %v8017_v8 }
 0x813   : > { %v19065_v10 = vpop.f32.mrf.mxu0  ;;  %v19067_v11 = vpop.f32.mrf.mxu1 }
 0x815   : > { %v8130_v27 = vpop.f32.mrf.mxu2  ;;  %v8176_v19 = vpop.f32.mrf.mxu3 }
 0x816   : > { %v8131_v51 = vadd.f32 %v8130_v27, %v8077_v0  ;;  %v8177_v60 = vadd.f32 %v8176_v19, %v8127_v12  ;;  %8794 = vmatmul.f32.gmra.mxu0 %v18840_v13  ;;  %8850 = vmatmul.f32.gmra.mxu1 %v18827_v59 }
 0x818   : > { %v19072_v36 = vadd.f32 %v8177_v60, %v18713_v16 }
 0x81a   : > { %8701 = vmatmul.f32.gmra.mxu2 %v18963_v42  ;;  %8751 = vmatmul.f32.gmra.mxu3 %v18905_v55 }
 0x81b   : > { %v19077_v5 = vpop.f32.mrf.mxu0  ;;  %v19079_v57 = vpop.f32.mrf.mxu1 }
 0x81d   : > { %v8134_v21 = vpop.f32.mrf.mxu2  ;;  %v8180_v43 = vpop.f32.mrf.mxu3 }
 0x81e   : > { %v8135_v45 = vadd.f32 %v8134_v21, %v8083_v38  ;;  %v8181_v13 = vadd.f32 %v8180_v43, %v8131_v51  ;;  %8799 = vmatmul.f32.gmra.mxu0 %v18866_v6  ;;  %8856 = vmatmul.f32.gmra.mxu1 %v18853_v52  ;;  %v23302_v21 = vld [vmem:[#allocation29_spill] sm:$0xff] }
 0x820   : > { %v19084_v16 = vadd.f32 %v8181_v13, %v18731_v4 }
 0x822   : > { %8755 = vmatmul.f32.gmra.mxu3 %v18930_v26  ;;  %8904 = vmatmul.f32.vlgmr.msra.gmra.mxu2 %v18756_v29 }
 0x823   : > { %v19088_v59 = vpop.f32.mrf.mxu0  ;;  %v19090_v48 = vpop.f32.mrf.mxu1 }
 0x825   : > { %v8184_v42 = vpop.f32.mrf.mxu3  ;;  %v8417_v20 = vpop.f32.mrf.mxu2 }
 0x826   : > { %v8185_v35 = vadd.f32 %v8184_v42, %v8135_v45  ;;  %8804 = vmatmul.f32.gmra.mxu0 %v18891_v53  ;;  %8862 = vmatmul.f32.gmra.mxu1 %v18878_v41 }
 0x828   : > { %v19095_v52 = vadd.f32 %v8185_v35, %v18752_v40 }
 0x82a   : > { %8908 = vmatmul.f32.gmra.mxu2 %v18778_v49  ;;  %8954 = vmatmul.f32.vlgmr.msra.gmra.mxu3 %v18756_v29 }
 0x82b   : > { %v19099_v4 = vpop.f32.mrf.mxu0  ;;  %v19101_v6 = vpop.f32.mrf.mxu1 }
 0x82d   : > { %v8422_v47 = vpop.f32.mrf.mxu2  ;;  %v8476_v61 = vpop.f32.mrf.mxu3 }
 0x82e   : > { %8809 = vmatmul.f32.gmra.mxu0 %v18916_v62  ;;  %8868 = vmatmul.f32.gmra.mxu1 %v23296_v1 }
 0x832   : > { %8912 = vmatmul.f32.gmra.mxu2 %v18804_v63  ;;  %8958 = vmatmul.f32.gmra.mxu3 %v18778_v49  ;;  %v8366_v49 = vadd.f32 %v19043_v15, %v19031_v33  ;;  %v23300_v15 = vld [vmem:[#allocation40_spill] sm:$0xff] }
 0x833   : > { %v19107_v40 = vpop.f32.mrf.mxu0  ;;  %v19109_v41 = vpop.f32.mrf.mxu1 }
 0x834   : > { %v8418_v34 = vadd.f32 %v8417_v20, %v8366_v49 }
 0x835   : > { %v8427_v53 = vpop.f32.mrf.mxu2  ;;  %v8482_v29 = vpop.f32.mrf.mxu3 }
 0x836   : > { %8814 = vmatmul.f32.gmra.mxu0 %v23297_v28  ;;  %8874 = vmatmul.f32.gmra.mxu1 %v23298_v25  ;;  %v8477_v50 = vadd.f32 %v8476_v61, %v8418_v34  ;;  %v23304_v25 = vld [vmem:[#allocation68_spill] sm:$0xff] }
 0x83a   : > { %8916 = vmatmul.f32.gmra.mxu2 %v18829_v44  ;;  %8962 = vmatmul.f32.gmra.mxu3 %v18804_v63  ;;  %v8370_v63 = vadd.f32 %v19055_v22, %v19041_v46  ;;  %v8374_v22 = vadd.f32 %v19067_v11, %v19053_v14  ;;  %v8378_v11 = vadd.f32 %v19079_v57, %v19065_v10 }
 0x83b   : > { %v8542_v62 = vpop.f32.mrf.mxu0  ;;  %v19115_v17 = vpop.f32.mrf.mxu1 }
 0x83c   : > { %v8543_v7 = vadd.f32 %v8542_v62, %v8477_v50  ;;  %v8423_v33 = vadd.f32 %v8422_v47, %v8370_v63  ;;  %v8428_v38 = vadd.f32 %v8427_v53, %v8374_v22  ;;  %v23303_v47 = vld [vmem:[#allocation46_spill] sm:$0xff] }
 0x83d   : > { %v8432_v37 = vpop.f32.mrf.mxu2  ;;  %v8488_v58 = vpop.f32.mrf.mxu3 }
 0x83e   : > { %8880 = vmatmul.f32.gmra.mxu1 %v23299_v32  ;;  %v8483_v27 = vadd.f32 %v8482_v29, %v8423_v33  ;;  %v8489_v45 = vadd.f32 %v8488_v58, %v8428_v38  ;;  %v8433_v35 = vadd.f32 %v8432_v37, %v8378_v11 }
 0x842   : > { %8920 = vmatmul.f32.gmra.mxu2 %v18855_v39  ;;  %8966 = vmatmul.f32.gmra.mxu3 %v18829_v44 }
 0x843   : > { %v8546_v2 = vpop.f32.mrf.mxu0  ;;  %v8592_v3 = vpop.f32.mrf.mxu1 }
 0x844   : > { %v8593_v9 = vadd.f32 %v8592_v3, %v8543_v7  ;;  %v8547_v44 = vadd.f32 %v8546_v2, %v8483_v27 }
 0x845   : > { %v8437_v12 = vpop.f32.mrf.mxu2  ;;  %v8494_v54 = vpop.f32.mrf.mxu3 }
 0x846   : > { %v19125_v0 = vadd.f32 %v8593_v9, %v23300_v15  ;;  %v8495_v53 = vadd.f32 %v8494_v54, %v8433_v35  ;;  %v23305_v9 = vld [vmem:[#allocation55_spill] sm:$0xff] }
 0x848   : > { %23301 = vst [vmem:[#allocation60_spill] sm:$0xff] %v19125_v0  ;;  %10147 = vrot.lane.b32.xlu2 %v19125_v0, %s14194_s21  ;;  %9586 = vrot.lane.b32.xlu1 %v19125_v0, %s14195_s22 }
 0x849   : > { %9025 = vrot.lane.b32.xlu0 %v19125_v0, %s14196_s23 }
 0x84a   : > { %8924 = vmatmul.f32.gmra.mxu2 %v18880_v56  ;;  %8970 = vmatmul.f32.gmra.mxu3 %v18855_v39 }
 0x84b   : > { %v8596_v46 = vpop.f32.mrf.mxu1  ;;  %v8550_v8 = vpop.f32.mrf.mxu0 }
 0x84c   : > { %v8597_v60 = vadd.f32 %v8596_v46, %v8547_v44  ;;  %v8551_v39 = vadd.f32 %v8550_v8, %v8489_v45  ;;  %v23309_v45 = vld [vmem:[#allocation58_spill] sm:$0xff] }
 0x84d   : > { %v8442_v19 = vpop.f32.mrf.mxu2  ;;  %v8500_v51 = vpop.f32.mrf.mxu3 }
 0x84e   : > { %v19138_v43 = vadd.f32 %v8597_v60, %v23302_v21 }
 0x850   : > { %9590 = vrot.lane.b32.xlu2 %v19138_v43, %s14195_s22  ;;  %9029 = vrot.lane.b32.xlu1 %v19138_v43, %s14196_s23 }
 0x851   : > { %10151 = vrot.lane.b32.xlu0 %v19138_v43, %s14194_s21 }
 0x852   : > { %8928 = vmatmul.f32.gmra.mxu2 %v18905_v55  ;;  %8974 = vmatmul.f32.gmra.mxu3 %v18880_v56 }
 0x853   : > { %v8600_v14 = vpop.f32.mrf.mxu1  ;;  %v8554_v1 = vpop.f32.mrf.mxu0 }
 0x854   : > { %v8601_v20 = vadd.f32 %v8600_v14, %v8551_v39  ;;  %v8555_v56 = vadd.f32 %v8554_v1, %v8495_v53  ;;  %v8394_v14 = vadd.f32 %v19115_v17, %v19107_v40 }
 0x855   : > { %v8447_v13 = vpop.f32.mrf.mxu2  ;;  %v8506_v42 = vpop.f32.mrf.mxu3 }
 0x856   : > { %v19151_v61 = vadd.f32 %v8601_v20, %v23303_v47 }
 0x858   : > { %9033 = vrot.lane.b32.xlu2 %v19151_v61, %s14196_s23  ;;  %10712 = vrot.lane.b32.xlu1 %v19138_v43, %s14198_s9 }
 0x859   : > { %9594 = vrot.lane.b32.xlu0 %v19151_v61, %s14195_s22 }
 0x85a   : > { %8932 = vmatmul.f32.gmra.mxu2 %v18930_v26  ;;  %8978 = vmatmul.f32.gmra.mxu3 %v18905_v55  ;;  %v8382_v55 = vadd.f32 %v19090_v48, %v19077_v5 }
 0x85b   : > { %v8604_v10 = vpop.f32.mrf.mxu1  ;;  %v8558_v49 = vpop.f32.mrf.mxu0 }
 0x85c   : > { %v8605_v28 = vadd.f32 %v8604_v10, %v8555_v56  ;;  %v8438_v58 = vadd.f32 %v8437_v12, %v8382_v55  ;;  %v23311_v56 = vld [vmem:[#allocation63_spill] sm:$0xff] }
 0x85d   : > { %v8452_v57 = vpop.f32.mrf.mxu2  ;;  %v8512_v29 = vpop.f32.mrf.mxu3 }
 0x85e   : > { %v19162_v62 = vadd.f32 %v8605_v28, %v23304_v25  ;;  %v8501_v50 = vadd.f32 %v8500_v51, %v8438_v58  ;;  %v23307_v51 = vld [vmem:[#allocation64_spill] sm:$0xff]  ;;  %v8453_v11 = vadd.f32 %v8452_v57, %v8394_v14 }
 0x860   : > { %10716 = vrot.lane.b32.xlu2 %v19151_v61, %s14198_s9  ;;  %10155 = vrot.lane.b32.xlu1 %v19151_v61, %s14194_s21  ;;  %v8559_v7 = vadd.f32 %v8558_v49, %v8501_v50 }
 0x861   : > { %9037 = vrot.lane.b32.xlu0 %v19162_v62, %s14196_s23 }
 0x862   : > { %8982 = vmatmul.f32.gmra.mxu3 %v18930_v26  ;;  %v8386_v26 = vadd.f32 %v19101_v6, %v19088_v59  ;;  %v8390_v59 = vadd.f32 %v19109_v41, %v19099_v4 }
 0x863   : > { %v8608_v37 = vpop.f32.mrf.mxu1  ;;  %v8562_v48 = vpop.f32.mrf.mxu0 }
 0x864   : > { %v8609_v5 = vadd.f32 %v8608_v37, %v8559_v7  ;;  %v8443_v2 = vadd.f32 %v8442_v19, %v8386_v26  ;;  %v8448_v27 = vadd.f32 %v8447_v13, %v8390_v59 }
 0x865   : > { %v8518_v34 = vpop.f32.mrf.mxu3  ;;  %v19173_v32 = vpop.f32.mrf.mxu2 }
 0x866   : > { %v8507_v54 = vadd.f32 %v8506_v42, %v8443_v2  ;;  %v19186_v33 = vadd.f32 %v8609_v5, %v23305_v9  ;;  %v8513_v19 = vadd.f32 %v8512_v29, %v8448_v27  ;;  %v8519_v35 = vadd.f32 %v8518_v34, %v8453_v11 }
 0x868   : > { %10159 = vrot.lane.b32.xlu2 %v19162_v62, %s14194_s21  ;;  %9598 = vrot.lane.b32.xlu1 %v19162_v62, %s14195_s22  ;;  %23306 = vst [vmem:[#allocation7_spill] sm:$0xff] %v19186_v33  ;;  %v8563_v15 = vadd.f32 %v8562_v48, %v8507_v54 }
 0x869   : > { %10720 = vrot.lane.b32.xlu0 %v19162_v62, %s14198_s9 }
 0x86b   : > { %v8612_v12 = vpop.f32.mrf.mxu1  ;;  %v8566_v22 = vpop.f32.mrf.mxu0 }
 0x86c   : > { %v8613_v6 = vadd.f32 %v8612_v12, %v8563_v15  ;;  %v8567_v38 = vadd.f32 %v8566_v22, %v8513_v19 }
 0x86d   : > { %v19183_v3 = vpop.f32.mrf.mxu2  ;;  %v8728_v63 = vpop.f32.mrf.mxu3 }
 0x86e   : > { %v19199_v60 = vadd.f32 %v8613_v6, %v23307_v51  ;;  %v8729_v7 = vadd.f32 %v8728_v63, %v19173_v32 }
 0x870   : > { %9602 = vrot.lane.b32.xlu2 %v19186_v33, %s14195_s22  ;;  %9041 = vrot.lane.b32.xlu1 %v19186_v33, %s14196_s23  ;;  %23308 = vst [vmem:[#allocation22_spill] sm:$0xff] %v19199_v60 }
 0x871   : > { %10163 = vrot.lane.b32.xlu0 %v19186_v33, %s14194_s21 }
 0x873   : > { %v8616_v8 = vpop.f32.mrf.mxu1  ;;  %v8570_v20 = vpop.f32.mrf.mxu0 }
 0x874   : > { %v8617_v4 = vadd.f32 %v8616_v8, %v8567_v38  ;;  %v8571_v1 = vadd.f32 %v8570_v20, %v8519_v35 }
 0x875   : > { %v19196_v44 = vpop.f32.mrf.mxu2  ;;  %v8732_v46 = vpop.f32.mrf.mxu3 }
 0x876   : > { %v19210_v39 = vadd.f32 %v8617_v4, %v23309_v45  ;;  %v8733_v59 = vadd.f32 %v8732_v46, %v19183_v3 }
 0x878   : > { %10167 = vrot.lane.b32.xlu2 %v19199_v60, %s14194_s21  ;;  %10724 = vrot.lane.b32.xlu1 %v19186_v33, %s14198_s9  ;;  %23310 = vst [vmem:[#allocation10_spill] sm:$0xff] %v19210_v39 }
 0x879   : > { %9045 = vrot.lane.b32.xlu0 %v19199_v60, %s14196_s23 }
 0x87b   : > { %v8620_v47 = vpop.f32.mrf.mxu1  ;;  %v8780_v28 = vpop.f32.mrf.mxu0 }
 0x87c   : > { %v8621_v53 = vadd.f32 %v8620_v47, %v8571_v1  ;;  %v8781_v26 = vadd.f32 %v8780_v28, %v8729_v7 }
 0x87d   : > { %v19207_v41 = vpop.f32.mrf.mxu2  ;;  %v8736_v21 = vpop.f32.mrf.mxu3 }
 0x87e   : > { %v19233_v10 = vadd.f32 %v8621_v53, %v23311_v56  ;;  %v8737_v8 = vadd.f32 %v8736_v21, %v19196_v44 }
 0x880   : > { %9049 = vrot.lane.b32.xlu2 %v19210_v39, %s14196_s23  ;;  %9606 = vrot.lane.b32.xlu1 %v19199_v60, %s14195_s22  ;;  %23312 = vst [vmem:[#allocation59_spill] sm:$0xff] %v19233_v10 }
 0x881   : > { %10728 = vrot.lane.b32.xlu0 %v19199_v60, %s14198_s9 }
 0x883   : > { %v8839_v25 = vpop.f32.mrf.mxu1  ;;  %v8785_v37 = vpop.f32.mrf.mxu0 }
 0x884   : > { %v8840_v5 = vadd.f32 %v8839_v25, %v8781_v26  ;;  %v8786_v27 = vadd.f32 %v8785_v37, %v8733_v59 }
 0x885   : > { %v19220_v13 = vpop.f32.mrf.mxu2  ;;  %v8740_v42 = vpop.f32.mrf.mxu3 }
 0x886   : > { %v8741_v35 = vadd.f32 %v8740_v42, %v19207_v41 }
 0x888   : > { %10732 = vrot.lane.b32.xlu2 %v19210_v39, %s14198_s9  ;;  %10171 = vrot.lane.b32.xlu1 %v19210_v39, %s14194_s21 }
 0x889   : > { %9610 = vrot.lane.b32.xlu0 %v19210_v39, %s14195_s22 }
 0x88b   : > { %v8845_v58 = vpop.f32.mrf.mxu1  ;;  %v8790_v48 = vpop.f32.mrf.mxu0 }
 0x88c   : > { %v8846_v19 = vadd.f32 %v8845_v58, %v8786_v27  ;;  %v8791_v4 = vadd.f32 %v8790_v48, %v8737_v8 }
 0x88d   : > { %v19228_v40 = vpop.f32.mrf.mxu2  ;;  %v19230_v17 = vpop.f32.mrf.mxu3 }
 0x890   : > { %9614 = vrot.lane.b32.xlu2 %v19233_v10, %s14195_s22  ;;  %9053 = vrot.lane.b32.xlu1 %v19233_v10, %s14196_s23 }
 0x891   : > { %10175 = vrot.lane.b32.xlu0 %v19233_v10, %s14194_s21 }
 0x893   : > { %v8851_v12 = vpop.f32.mrf.mxu1  ;;  %v8795_v32 = vpop.f32.mrf.mxu0 }
 0x894   : > { %v8852_v14 = vadd.f32 %v8851_v12, %v8791_v4  ;;  %v8796_v56 = vadd.f32 %v8795_v32, %v8741_v35 }
 0x895   : > { %v19241_v57 = vpop.f32.mrf.mxu2  ;;  %v19243_v29 = vpop.f32.mrf.mxu3 }
 0x898   : > { %10736 = vrot.lane.b32.xlu1 %v19233_v10, %s14198_s9 }
 0x89b   : > { %v8857_v38 = vpop.f32.mrf.mxu1  ;;  %v8800_v47 = vpop.f32.mrf.mxu0 }
 0x89c   : > { %v8858_v37 = vadd.f32 %v8857_v38, %v8796_v56 }
 0x89d   : > { %v19247_v49 = vpop.f32.mrf.mxu2  ;;  %v19249_v55 = vpop.f32.mrf.mxu3 }
 0x89e   : > { %v8753_v38 = vadd.f32 %v19249_v55, %v19241_v57 }
 0x8a2   : > { %v19254_v2 = vpop.permute.xlu2 %10147 }
 0x8a3   : > { %23313 = vst [vmem:[#allocation67_spill] sm:$0xff] %v19254_v2  ;;  %v8863_v25 = vpop.f32.mrf.mxu1 }
 0x8a5   : > { %v19251_v34 = vpop.f32.mrf.mxu3  ;;  %v8905_v50 = vpop.f32.mrf.mxu2 }
 0x8a6   : > { %v8906_v54 = vadd.f32 %v8905_v50, %v8840_v5  ;;  %v8805_v5 = vpop.f32.mrf.mxu0  ;;  %v8757_v56 = vadd.f32 %v19251_v34, %v19247_v49 }
 0x8aa   : > { %v19266_v51 = vpop.permute.xlu2 %9590 }
 0x8ab   : > { %23315 = vst [vmem:[#allocation66_spill] sm:$0xff] %v19266_v51 }
 0x8ad   : > { %v8909_v9 = vpop.f32.mrf.mxu2  ;;  %v8955_v15 = vpop.f32.mrf.mxu3 }
 0x8ae   : > { %v8956_v6 = vadd.f32 %v8955_v15, %v8906_v54  ;;  %v8910_v63 = vadd.f32 %v8909_v9, %v8846_v19  ;;  %v8869_v15 = vpop.f32.mrf.mxu1 }
 0x8b0   : > { %v19258_v22 = vadd.f32 %v8956_v6, %v19018_v30 }
 0x8b2   : > { %23314 = vst [vmem:[#allocation71_spill] sm:$0xff] %v19258_v22  ;;  %10149 = vrot.lane.b32.xlu0 %v19258_v22, %s14194_s21  ;;  %9588 = vrot.lane.b32.xlu2 %v19258_v22, %s14195_s22 }
 0x8b3   : > { %9027 = vrot.lane.b32.xlu1 %v19258_v22, %s14196_s23 }
 0x8b5   : > { %v8913_v3 = vpop.f32.mrf.mxu2  ;;  %v8959_v46 = vpop.f32.mrf.mxu3 }
 0x8b6   : > { %v8960_v30 = vadd.f32 %v8959_v46, %v8910_v63  ;;  %v8914_v20 = vadd.f32 %v8913_v3, %v8852_v14  ;;  %v8810_v63 = vpop.f32.mrf.mxu0 }
 0x8b8   : > { %v19270_v45 = vadd.f32 %v8960_v30, %v19026_v31  ;;  %v19281_v31 = vpop.permute.xlu2 %9033 }
 0x8ba   : > { %9031 = vrot.lane.b32.xlu0 %v19270_v45, %s14196_s23  ;;  %10153 = vrot.lane.b32.xlu2 %v19270_v45, %s14194_s21  ;;  %v19278_v11 = vpop.permute.xlu1 %9586 }
 0x8bb   : > { %9592 = vrot.lane.b32.xlu1 %v19270_v45, %s14195_s22  ;;  %23316 = vst [vmem:[#allocation21_spill] sm:$0xff] %v19278_v11  ;;  %v19283_v53 = vpop.permute.xlu0 %9025 }
 0x8bd   : > { %v8917_v44 = vpop.f32.mrf.mxu2  ;;  %v8963_v21 = vpop.f32.mrf.mxu3 }
 0x8be   : > { %v8964_v1 = vadd.f32 %v8963_v21, %v8914_v20  ;;  %v8918_v42 = vadd.f32 %v8917_v44, %v8858_v37  ;;  %v8811_v20 = vadd.f32 %v8810_v63, %v8753_v38 }
 0x8c0   : > { %v19286_v28 = vadd.f32 %v8964_v1, %v19036_v23  ;;  %v8745_v23 = vadd.f32 %v19230_v17, %v19220_v13  ;;  %v19298_v48 = vpop.permute.xlu2 %10716 }
 0x8c1   : > { %23318 = vst [vmem:[#allocation38_spill] sm:$0xff] %v19298_v48 }
 0x8c2   : > { %23317 = vst [vmem:[#allocation13_spill] sm:$0xff] %v19286_v28  ;;  %9596 = vrot.lane.b32.xlu0 %v19286_v28, %s14195_s22  ;;  %9035 = vrot.lane.b32.xlu2 %v19286_v28, %s14196_s23  ;;  %v19294_v41 = vpop.permute.xlu1 %9029  ;;  %v8801_v26 = vadd.f32 %v8800_v47, %v8745_v23  ;;  %v8815_v47 = vpop.f32.mrf.mxu0 }
 0x8c3   : > { %10157 = vrot.lane.b32.xlu1 %v19286_v28, %s14194_s21  ;;  %v19303_v54 = vpop.permute.xlu0 %10151 }
 0x8c4   : > { %23320 = vst [vmem:[#allocation4_spill] sm:$0xff] %v19303_v54  ;;  %v8864_v9 = vadd.f32 %v8863_v25, %v8801_v26 }
 0x8c5   : > { %v8921_v58 = vpop.f32.mrf.mxu2  ;;  %v8967_v50 = vpop.f32.mrf.mxu3 }
 0x8c6   : > { %v8968_v7 = vadd.f32 %v8967_v50, %v8918_v42  ;;  %v8922_v17 = vadd.f32 %v8921_v58, %v8864_v9  ;;  %v8816_v42 = vadd.f32 %v8815_v47, %v8757_v56 }
 0x8c8   : > { %v19301_v12 = vadd.f32 %v8968_v7, %v19048_v18  ;;  %v8749_v18 = vadd.f32 %v19243_v29, %v19228_v40  ;;  %v19318_v46 = vpop.permute.xlu2 %10159 }
 0x8c9   : > { %23323 = vst [vmem:[#allocation37_spill] sm:$0xff] %v19318_v46 }
 0x8ca   : > { %23319 = vst [vmem:[#allocation17_spill] sm:$0xff] %v19301_v12  ;;  %10161 = vrot.lane.b32.xlu0 %v19301_v12, %s14194_s21  ;;  %9600 = vrot.lane.b32.xlu2 %v19301_v12, %s14195_s22  ;;  %v19311_v13 = vpop.permute.xlu1 %10712  ;;  %v8806_v19 = vadd.f32 %v8805_v5, %v8749_v18 }
 0x8cb   : > { %9039 = vrot.lane.b32.xlu1 %v19301_v12, %s14196_s23  ;;  %23321 = vst [vmem:[#allocation16_spill] sm:$0xff] %v19311_v13  ;;  %v19324_v8 = vpop.permute.xlu0 %9594 }
 0x8cc   : > { %v8870_v3 = vadd.f32 %v8869_v15, %v8806_v19  ;;  %23324 = vst [vmem:[#allocation30_spill] sm:$0xff] %v19324_v8 }
 0x8cd   : > { %v8925_v59 = vpop.f32.mrf.mxu2  ;;  %v8971_v6 = vpop.f32.mrf.mxu3 }
 0x8ce   : > { %v8972_v27 = vadd.f32 %v8971_v6, %v8922_v17  ;;  %v8926_v29 = vadd.f32 %v8925_v59, %v8870_v3  ;;  %v23335_v3 = vld [vmem:[#allocation9_spill] sm:$0xff] }
 0x8d0   : > { %v19316_v32 = vadd.f32 %v8972_v27, %v19060_v24  ;;  %v8875_v24 = vpop.f32.mrf.mxu1  ;;  %v19343_v57 = vpop.permute.xlu2 %9602 }
 0x8d1   : > { %v8876_v21 = vadd.f32 %v8875_v24, %v8811_v20 }
 0x8d2   : > { %23322 = vst [vmem:[#allocation3_spill] sm:$0xff] %v19316_v32  ;;  %9604 = vrot.lane.b32.xlu0 %v19316_v32, %s14195_s22  ;;  %9043 = vrot.lane.b32.xlu2 %v19316_v32, %s14196_s23  ;;  %v19328_v40 = vpop.permute.xlu1 %10155 }
 0x8d3   : > { %10165 = vrot.lane.b32.xlu1 %v19316_v32, %s14194_s21  ;;  %23325 = vst [vmem:[#allocation34_spill] sm:$0xff] %v19328_v40  ;;  %v19345_v1 = vpop.permute.xlu0 %9037 }
 0x8d4   : > { %v9084_v38 = vsel %vm1824_vm5, 0.0, %v19345_v1 }
 0x8d5   : > { %v8975_v30 = vpop.f32.mrf.mxu3  ;;  %v8929_v14 = vpop.f32.mrf.mxu2 }
 0x8d6   : > { %v8976_v4 = vadd.f32 %v8975_v30, %v8926_v29  ;;  %v8930_v55 = vadd.f32 %v8929_v14, %v8876_v21 }
 0x8d8   : > { %v19333_v44 = vadd.f32 %v8976_v4, %v19072_v36  ;;  %v8881_v37 = vpop.f32.mrf.mxu1  ;;  %v19360_v26 = vpop.permute.xlu2 %10167 }
 0x8d9   : > { %v8882_v23 = vadd.f32 %v8881_v37, %v8816_v42  ;;  %23329 = vst [vmem:[#allocation70_spill] sm:$0xff] %v19360_v26  ;;  %v9082_v37 = vsel %vm1824_vm5, 0.0, %v19294_v41 }
 0x8da   : > { %23326 = vst [vmem:[#allocation33_spill] sm:$0xff] %v19333_v44  ;;  %9047 = vrot.lane.b32.xlu0 %v19333_v44, %s14196_s23  ;;  %10169 = vrot.lane.b32.xlu2 %v19333_v44, %s14194_s21  ;;  %v19341_v35 = vpop.permute.xlu1 %9598 }
 0x8db   : > { %9608 = vrot.lane.b32.xlu1 %v19333_v44, %s14195_s22  ;;  %23327 = vst [vmem:[#allocation25_spill] sm:$0xff] %v19341_v35 }
 0x8dd   : > { %v8979_v36 = vpop.f32.mrf.mxu3  ;;  %v8933_v50 = vpop.f32.mrf.mxu2 }
 0x8de   : > { %v8980_v25 = vadd.f32 %v8979_v36, %v8930_v55  ;;  %v8934_v49 = vadd.f32 %v8933_v50, %v8882_v23  ;;  %v9083_v55 = vsel %vm1824_vm5, 0.0, %v19281_v31 }
 0x8e0   : > { %v19350_v58 = vadd.f32 %v8980_v25, %v19084_v16  ;;  %v19362_v16 = vpop.permute.xlu0 %10720  ;;  %v19375_v17 = vpop.permute.xlu2 %9049  ;;  %v9095_v25 = vmul.f32 %v9084_v38, %v23335_v3 }
 0x8e1   : > { %23330 = vst [vmem:[#allocation69_spill] sm:$0xff] %v19362_v16  ;;  %v9087_v19 = vsel %vm1824_vm5, 0.0, %v19375_v17 }
 0x8e2   : > { %23328 = vst [vmem:[#allocation41_spill] sm:$0xff] %v19350_v58  ;;  %10730 = vrot.lane.b32.xlu0 %v19333_v44, %s14198_s9  ;;  %9612 = vrot.lane.b32.xlu2 %v19350_v58, %s14195_s22  ;;  %v19358_v7 = vpop.permute.xlu1 %9041  ;;  %v9101_v29 = vmul.f32 %v9087_v19, %v23335_v3 }
 0x8e3   : > { %9051 = vrot.lane.b32.xlu1 %v19350_v58, %s14196_s23  ;;  %v9085_v24 = vsel %vm1824_vm5, 0.0, %v19358_v7 }
 0x8e4   : > { %v19413_v4 = vand.u32 4294901760, %v9101_v29  ;;  %v9097_v14 = vmul.f32 %v9085_v24, %v23335_v3  ;;  %v19451_v24 = vand.u32 4294901760, %v9095_v25 }
 0x8e5   : > { %v8983_v34 = vpop.f32.mrf.mxu3 }
 0x8e6   : > { %v8984_v5 = vadd.f32 %v8983_v34, %v8934_v49  ;;  %v19432_v42 = vand.u32 4294901760, %v9097_v14  ;;  %v19437_v23 = vsub.f32 %v9101_v29, %v19413_v4  ;;  %v9093_v49 = vmul.f32 %v9083_v55, %v23335_v3 }
 0x8e7   : > { %v9081_v29 = vsel %vm1824_vm5, 0.0, %v19283_v53 }
 0x8e8   : > { %v19365_v9 = vadd.f32 %v8984_v5, %v19095_v52  ;;  %v19377_v59 = vpop.permute.xlu0 %10163  ;;  %v19387_v6 = vpop.permute.xlu2 %10732  ;;  %v19467_v55 = vand.u32 4294901760, %v9093_v49 }
 0x8e9   : > { %23332 = vst [vmem:[#allocation45_spill] sm:$0xff] %v19377_v59 }
 0x8ea   : > { %10173 = vrot.lane.b32.xlu0 %v19350_v58, %s14194_s21  ;;  %9055 = vrot.lane.b32.xlu2 %v19365_v9, %s14196_s23  ;;  %v19373_v15 = vpop.permute.xlu1 %10724  ;;  %23333 = vst [vmem:[#allocation42_spill] sm:$0xff] %v19387_v6  ;;  %s306_s23 = scalar_lea.vmem %s22660_s8, %s14162_s0 }
 0x8eb   : > { %10734 = vrot.lane.b32.xlu1 %v19350_v58, %s14198_s9  ;;  %23331 = vst [vmem:[#allocation19_spill] sm:$0xff] %v19373_v15  ;;  %v23338_v15 = vand.u32 4294901760, %v19437_v23 }
 0x8f0   : > { %v19393_v18 = vpop.permute.xlu0 %9045  ;;  %v19420_v21 = vpop.permute.xlu2 %9614 }
 0x8f1   : > { %v9086_v63 = vsel %vm1824_vm5, 0.0, %v19393_v18 }
 0x8f2   : > { %10708 = vrot.lane.b32.xlu0 %v19125_v0, %s14198_s9  ;;  %10726 = vrot.lane.b32.xlu2 %v19316_v32, %s14198_s9  ;;  %v19385_v52 = vpop.permute.xlu1 %9606  ;;  %v9099_v30 = vmul.f32 %v9086_v63, %v23335_v3  ;;  %v9091_v63 = vmul.f32 %v9082_v37, %v23335_v3 }
 0x8f3   : > { %10722 = vrot.lane.b32.xlu1 %v19301_v12, %s14198_s9 }
 0x8f4   : > { %v19426_v36 = vand.u32 4294901760, %v9099_v30  ;;  %v19479_v13 = vand.u32 4294901760, %v9091_v63 }
 0x8f6   : > { %v19448_v19 = vsub.f32 %v9099_v30, %v19426_v36  ;;  %v19464_v30 = vsub.f32 %v9097_v14, %v19432_v42  ;;  %v9089_v14 = vmul.f32 %v9081_v29, %v23335_v3 }
 0x8f8   : > { %v19440_v34 = vpop.permute.xlu0 %10728  ;;  %v22807_v16 = vand.u32 4294901760, %v19464_v30 }
 0x8f9   : > { %23336 = vst [vmem:[#allocation44_spill] sm:$0xff] %v19440_v34 }
 0x8fa   : > { %9616 = vrot.lane.b32.xlu0 %v19365_v9, %s14195_s22  ;;  %10718 = vrot.lane.b32.xlu2 %v19286_v28, %s14198_s9  ;;  %v19397_v27 = vpop.permute.xlu1 %10171 }
 0x8fb   : > { %10710 = vrot.lane.b32.xlu1 %v19258_v22, %s14198_s9  ;;  %23334 = vst [vmem:[#allocation20_spill] sm:$0xff] %v19397_v27 }
 0x900   : > { %v19502_v34 = vpop.permute.xlu0 %9610 }
 0x902   : > { %10714 = vrot.lane.b32.xlu0 %v19270_v45, %s14198_s9  ;;  %11794 = vrot.lane.b32.xlu2 %v19233_v10, %s14197_s28  ;;  %v19418_v20 = vpop.permute.xlu1 %9053 }
 0x903   : > { %11790 = vrot.lane.b32.xlu1 %v19210_v39, %s14197_s28  ;;  %v9088_v47 = vsel %vm1824_vm5, 0.0, %v19418_v20 }
 0x904   : > { %v9103_v56 = vmul.f32 %v9088_v47, %v23335_v3  ;;  %v19484_v47 = vsub.f32 %v9095_v25, %v19451_v24  ;;  %v19494_v3 = vsub.f32 %v9093_v49, %v19467_v55  ;;  %v23339_v25 = vand.u32 4294901760, %v19448_v19 }
 0x906   : > { %v19434_v50 = vand.u32 4294901760, %v9103_v56  ;;  %v9166_v29 = vsub.f32 %v19448_v19, %v23339_v25  ;;  %v9177_v49 = vand.u32 4294901760, %v19484_v47  ;;  %v9172_v25 = vsub.f32 %v19464_v30, %v22807_v16 }
 0x908   : > { %v19443_v5 = vsub.f32 %v9103_v56, %v19434_v50  ;;  %9119 = vmatpush.msrb.mxu0 %v19434_v50  ;;  %9251 = vmatpush.msrb.mxu3 %v19434_v50  ;;  %v9167_v2 = vand.u32 4294901760, %v9166_v29  ;;  %v9173_v54 = vand.u32 4294901760, %v9172_v25 }
 0x90a   : > { %11786 = vrot.lane.b32.xlu0 %v19199_v60, %s14197_s28  ;;  %11792 = vrot.lane.b32.xlu2 %v19350_v58, %s14197_s28  ;;  %v22803_v38 = vand.u32 4294901760, %v19443_v5  ;;  %v19548_v40 = vpop.permute.xlu1 %10736 }
 0x90b   : > { %11788 = vrot.lane.b32.xlu1 %v19333_v44, %s14197_s28  ;;  %9121 = vmatpush.msrb.mxu0 %v19413_v4  ;;  %23343 = vst [vmem:[#allocation32_spill] sm:$0xff] %v19548_v40 }
 0x90c   : > { %v19469_v56 = vpop.permute.xlu2 %9588  ;;  %9214 = vmatpush.msrb.mxu2 %v19443_v5  ;;  %9253 = vmatpush.msrb.mxu3 %v19413_v4  ;;  %v9154_v37 = vsub.f32 %v19443_v5, %v22803_v38  ;;  %v9160_v38 = vsub.f32 %v19437_v23, %v23338_v15  ;;  %v19509_v15 = vsub.f32 %v9091_v63, %v19479_v13  ;;  %v9183_v63 = vand.u32 4294901760, %v19494_v3 }
 0x90d   : > { %23337 = vst [vmem:[#allocation61_spill] sm:$0xff] %v19469_v56  ;;  %9123 = vmatpush.msrb.mxu0 %v19426_v36  ;;  %v23345_v56 = vand.u32 4294901760, %v19448_v19 }
 0x90e   : > { %9217 = vmatpush.msrb.mxu2 %v19437_v23  ;;  %9255 = vmatpush.msrb.mxu3 %v19426_v36  ;;  %v9155_v48 = vand.u32 4294901760, %v9154_v37  ;;  %v19500_v37 = vand.u32 4294901760, %v9089_v14  ;;  %v9184_v29 = vsub.f32 %v19494_v3, %v9183_v63 }
 0x90f   : > { %9125 = vmatpush.msrb.mxu0 %v19432_v42 }
 0x910   : > { %9220 = vmatpush.msrb.mxu2 %v19448_v19  ;;  %9257 = vmatpush.msrb.mxu3 %v19432_v42  ;;  %v9194_v16 = vsub.f32 %v9089_v14, %v19500_v37  ;;  %v9185_v25 = vand.u32 4294901760, %v9184_v29 }
 0x911   : > { %9127 = vmatpush.msrb.mxu0 %v19451_v24  ;;  %9156 = vmatpush.msrb.mxu1 %v9155_v48  ;;  %v9161_v48 = vand.u32 4294901760, %v9160_v38  ;;  %v9178_v38 = vsub.f32 %v19484_v47, %v9177_v49 }
 0x912   : > { %11784 = vrot.lane.b32.xlu0 %v19316_v32, %s14197_s28  ;;  %11782 = vrot.lane.b32.xlu2 %v19186_v33, %s14197_s28  ;;  %v9195_v14 = vand.u32 4294901760, %v9194_v16 }
 0x913   : > { %10177 = vrot.lane.b32.xlu1 %v19365_v9, %s14194_s21  ;;  %9223 = vmatpush.msrb.mxu2 %v19464_v30 }
 0x914   : > { %v19518_v6 = vpop.permute.xlu2 %10153  ;;  %9259 = vmatpush.msrb.mxu3 %v19451_v24  ;;  %9129 = vmatpush.msrb.mxu0 %v19467_v55  ;;  %v9196_v46 = vsub.f32 %v9194_v16, %v9195_v14 }
 0x915   : > { %23340 = vst [vmem:[#allocation27_spill] sm:$0xff] %v19518_v6  ;;  %9162 = vmatpush.msrb.mxu1 %v9161_v48  ;;  %9226 = vmatpush.msrb.mxu2 %v19484_v47  ;;  %v9189_v6 = vand.u32 4294901760, %v19509_v15  ;;  %v9179_v47 = vand.u32 4294901760, %v9178_v38  ;;  %v19542_v48 = vpop.permute.xlu0 %10175 }
 0x916   : > { %9261 = vmatpush.msrb.mxu3 %v19467_v55  ;;  %9131 = vmatpush.msrb.mxu0 %v19479_v13  ;;  %23341 = vst [vmem:[#allocation48_spill] sm:$0xff] %v19542_v48 }
 0x917   : > { %9168 = vmatpush.msrb.mxu1 %v9167_v2  ;;  %9229 = vmatpush.msrb.mxu2 %v19494_v3  ;;  %v9190_v2 = vsub.f32 %v19509_v15, %v9189_v6  ;;  %v23342_v3 = vand.u32 4294901760, %v19443_v5  ;;  %v9105_v5 = vld [vmem:[%s22658_s6] sm:$0x7] }
 0x918   : > { %9263 = vmatpush.msrb.mxu3 %v19479_v13  ;;  %9133 = vmatpush.msrb.mxu0 %v19500_v37  ;;  %v9108_v29 = vsel %vm9106_vm14, %v9105_v5, 0  ;;  %v23355_v5 = vld [vmem:[#allocation5_spill] sm:$0xff] }
 0x919   : > { %9174 = vmatpush.msrb.mxu1 %v9173_v54  ;;  %9232 = vmatpush.msrb.mxu2 %v19509_v15  ;;  %v23344_v15 = vand.u32 4294901760, %v19437_v23  ;;  %v9191_v38 = vand.u32 4294901760, %v9190_v2  ;;  %v9197_v23 = vand.u32 4294901760, %v9196_v46  ;;  %v19566_v19 = vand.u32 4294901760, %v9108_v29 }
 0x91a   : > { %11774 = vrot.lane.b32.xlu0 %v19151_v61, %s14197_s28  ;;  %11780 = vrot.lane.b32.xlu2 %v19301_v12, %s14197_s28 }
 0x91b   : > { %11778 = vrot.lane.b32.xlu1 %v19162_v62, %s14197_s28  ;;  %9265 = vmatpush.msrb.mxu3 %v19500_v37  ;;  %v19577_v46 = vsub.f32 %v9108_v29, %v19566_v19 }
 0x91c   : > { %v19544_v54 = vpop.permute.xlu2 %9035  ;;  %9284 = vmatpush.msra.mxu0 %v23342_v3  ;;  %9180 = vmatpush.msrb.mxu1 %v9179_v47 }
 0x91d   : > { %9235 = vmatpush.msrb.mxu2 %v9194_v16  ;;  %v23346_v16 = vand.u32 4294901760, %v19464_v30  ;;  %v19581_v30 = vand.u32 4294901760, %v19577_v46 }
 0x91e   : > { %9288 = vmatpush.msra.mxu0 %v23344_v15  ;;  %9186 = vmatpush.msrb.mxu1 %v9185_v25 }
 0x91f   : > { %9238 = vmatmul.f32.vlgmr.msrb.gmra.mxu2 %v19577_v46  ;;  %9269 = vmatmul.f32.vlgmr.msrb.gmra.mxu3 %v19581_v30 }
 0x920   : > { %9292 = vmatpush.msra.mxu0 %v23345_v56  ;;  %9192 = vmatpush.msrb.mxu1 %v9191_v38 }
 0x922   : > { %11772 = vrot.lane.b32.xlu0 %v19270_v45, %s14197_s28  ;;  %11770 = vrot.lane.b32.xlu2 %v19138_v43, %s14197_s28 }
 0x923   : > { %11776 = vrot.lane.b32.xlu1 %v19286_v28, %s14197_s28  ;;  %9296 = vmatpush.msra.mxu0 %v23346_v16 }
 0x924   : > { %v19568_v56 = vpop.permute.xlu0 %10149  ;;  %v19570_v47 = vpop.permute.xlu2 %9600  ;;  %9198 = vmatpush.msrb.mxu1 %v9197_v23 }
 0x925   : > { %23347 = vst [vmem:[#allocation24_spill] sm:$0xff] %v19568_v56  ;;  %v19572_v2 = vpop.permute.xlu1 %9027  ;;  %9300 = vmatpush.msra.mxu0 %v9177_v49  ;;  %9200 = vmatmul.f32.vlgmr.msrb.gmra.mxu1 %v19566_v19 }
 0x926   : > { %23348 = vst [vmem:[#allocation62_spill] sm:$0xff] %v19570_v47  ;;  %9327 = vmatpush.msra.mxu1 %v19434_v50  ;;  %v9137_v50 = vsub.f32 %v19577_v46, %v19581_v30 }
 0x927   : > { %9304 = vmatpush.msra.mxu0 %v9183_v63 }
 0x928   : > { %9329 = vmatpush.msra.mxu1 %v19413_v4 }
 0x929   : > { %9308 = vmatpush.msra.mxu0 %v9189_v6  ;;  %v19596_v6 = vand.u32 4294901760, %v9137_v50 }
 0x92a   : > { %9331 = vmatpush.msra.mxu1 %v19426_v36  ;;  %12355 = vrot.lane.b32.xlu0 %v19233_v10, %s14199_s14 }
 0x92b   : > { %11768 = vrot.lane.b32.xlu2 %v19258_v22, %s14197_s28  ;;  %11766 = vrot.lane.b32.xlu1 %v19125_v0, %s14197_s28 }
 0x92c   : > { %9312 = vmatpush.msra.mxu0 %v9195_v14  ;;  %v19593_v4 = vpop.permute.xlu0 %9031  ;;  %v9044_v49 = vpop.permute.xlu2 %9043  ;;  %9333 = vmatpush.msra.mxu1 %v19432_v42 }
 0x92d   : > { %v19599_v36 = vpop.permute.xlu1 %9592  ;;  %9139 = vmatmul.f32.vlgmr.msrb.gmra.mxu0 %v19596_v6 }
 0x92e   : > { %23349 = vst [vmem:[#allocation36_spill] sm:$0xff] %v19599_v36  ;;  %9335 = vmatpush.msra.mxu1 %v19451_v24 }
 0x930   : > { %9337 = vmatpush.msra.mxu1 %v19467_v55 }
 0x932   : > { %12353 = vrot.lane.b32.xlu0 %v19350_v58, %s14199_s14  ;;  %9339 = vmatpush.msra.mxu1 %v19479_v13 }
 0x933   : > { %10738 = vrot.lane.b32.xlu2 %v19365_v9, %s14198_s9  ;;  %12347 = vrot.lane.b32.xlu1 %v19199_v60, %s14199_s14 }
 0x934   : > { %v19611_v42 = vpop.permute.xlu0 %9596  ;;  %v19613_v63 = vpop.permute.xlu2 %10169  ;;  %9341 = vmatpush.msra.mxu1 %v19500_v37 }
 0x935   : > { %23350 = vst [vmem:[#allocation26_spill] sm:$0xff] %v19611_v42  ;;  %v19616_v24 = vpop.permute.xlu1 %10157  ;;  %9343 = vmatmul.f32.vlgmr.msra.gmra.mxu1 %v19566_v19  ;;  %9314 = vmatmul.f32.vlgmr.msra.gmra.mxu0 %v19566_v19 }
 0x936   : > { %23351 = vst [vmem:[#allocation51_spill] sm:$0xff] %v19613_v63 }
 0x937   : > { %23352 = vst [vmem:[#allocation43_spill] sm:$0xff] %v19616_v24 }
 0x93a   : > { %12343 = vrot.lane.b32.xlu0 %v19186_v33, %s14199_s14 }
 0x93b   : > { %12351 = vrot.lane.b32.xlu2 %v19210_v39, %s14199_s14  ;;  %12345 = vrot.lane.b32.xlu1 %v19316_v32, %s14199_s14 }
 0x93c   : > { %v19626_v13 = vpop.permute.xlu0 %10161  ;;  %v9613_v55 = vpop.permute.xlu2 %9612 }
 0x93d   : > { %23353 = vst [vmem:[#allocation39_spill] sm:$0xff] %v19626_v13  ;;  %v19630_v37 = vsel %vm2623_vm7, %v19502_v34, %v9613_v55  ;;  %v9040_v14 = vpop.permute.xlu1 %9039  ;;  %v9649_v13 = vsel %vm2623_vm7, 0.0, %v19420_v21 }
 0x942   : > { %12341 = vrot.lane.b32.xlu0 %v19301_v12, %s14199_s14 }
 0x943   : > { %12349 = vrot.lane.b32.xlu2 %v19333_v44, %s14199_s14  ;;  %12335 = vrot.lane.b32.xlu1 %v19151_v61, %s14199_s14 }
 0x944   : > { %v19638_v3 = vpop.permute.xlu0 %9604  ;;  %v9056_v25 = vpop.permute.xlu2 %9055 }
 0x945   : > { %v9064_v15 = vsel %vm1824_vm5, %v19418_v20, %v9056_v25  ;;  %v19642_v38 = vpop.permute.xlu1 %10165 }
 0x946   : > { %23354 = vst [vmem:[#allocation65_spill] sm:$0xff] %v19642_v38  ;;  %v9104_v23 = vmul.f32 %v9064_v15, %v23355_v5 }
 0x948   : > { %v19645_v29 = vand.u32 4294901760, %v9104_v23 }
 0x94a   : > { %v19648_v16 = vsub.f32 %v9104_v23, %v19645_v29  ;;  %12331 = vrot.lane.b32.xlu0 %v19138_v43, %s14199_s14  ;;  %9356 = vmatpush.msra.mxu2 %v19645_v29  ;;  %v9061_v23 = vsel %vm1824_vm5, %v19358_v7, %v9044_v49  ;;  %v23356_v7 = vld [vmem:[#allocation8_spill] sm:$0xff] }
 0x94b   : > { %12339 = vrot.lane.b32.xlu2 %v19162_v62, %s14199_s14  ;;  %12333 = vrot.lane.b32.xlu1 %v19270_v45, %s14199_s14  ;;  %v9098_v40 = vmul.f32 %v9061_v23, %v23355_v5  ;;  %v9664_v49 = vmul.f32 %v9649_v13, %v23356_v7  ;;  %v9059_v23 = vsel %vm1824_vm5, %v19281_v31, %v19544_v54  ;;  %v9647_v13 = vsel %vm2623_vm7, 0.0, %v19385_v52 }
 0x94c   : > { %v22812_v20 = vand.u32 4294901760, %v19648_v16  ;;  %9488 = vmatpush.msrb.mxu1 %v19645_v29  ;;  %v9048_v50 = vpop.permute.xlu0 %9047  ;;  %9451 = vmatpush.msrb.mxu0 %v19648_v16  ;;  %v19699_v38 = vpop.permute.xlu2 %10726  ;;  %v9058_v31 = vsel %vm1824_vm5, %v19294_v41, %v19593_v4  ;;  %v9094_v54 = vmul.f32 %v9059_v23, %v23355_v5 }
 0x94d   : > { %v9062_v55 = vsel %vm1824_vm5, %v19393_v18, %v9048_v50  ;;  %v19662_v25 = vpop.permute.xlu1 %9608  ;;  %v9060_v18 = vsel %vm1824_vm5, %v19345_v1, %v9040_v14  ;;  %v9648_v50 = vsel %vm2623_vm7, 0.0, %v19502_v34  ;;  %23358 = vst [vmem:[#allocation49_spill] sm:$0xff] %v19699_v38  ;;  %v19704_v63 = vand.u32 4294901760, %v9664_v49 }
 0x94e   : > { %v9391_v15 = vsub.f32 %v19648_v16, %v22812_v20  ;;  %v9100_v56 = vmul.f32 %v9062_v55, %v23355_v5  ;;  %v9096_v1 = vmul.f32 %v9060_v18, %v23355_v5  ;;  %v19692_v20 = vand.u32 4294901760, %v9098_v40 }
 0x94f   : > { %v9662_v34 = vmul.f32 %v9648_v50, %v23356_v7  ;;  %v9646_v18 = vsel %vm2623_vm7, 0.0, %v19343_v57  ;;  %v9057_v38 = vsel %vm1824_vm5, %v19283_v53, %v19572_v2  ;;  %v9092_v23 = vmul.f32 %v9058_v31, %v23355_v5 }
 0x950   : > { %v9392_v24 = vand.u32 4294901760, %v9391_v15  ;;  %v19684_v55 = vand.u32 4294901760, %v9100_v56  ;;  %v19726_v41 = vsub.f32 %v9098_v40, %v19692_v20  ;;  %v9644_v2 = vsel %vm2623_vm7, 0.0, %v19324_v8 }
 0x951   : > { %v19729_v4 = vand.u32 4294901760, %v9662_v34  ;;  %v9645_v40 = vsel %vm2623_vm7, 0.0, %v19341_v35  ;;  %v9654_v8 = vmul.f32 %v9644_v2, %v23356_v7 }
 0x952   : > { %11796 = vrot.lane.b32.xlu0 %v19365_v9, %s14197_s28  ;;  %9393 = vmatpush.msra.mxu3 %v9392_v24 }
 0x953   : > { %12337 = vrot.lane.b32.xlu2 %v19286_v28, %s14199_s14  ;;  %12916 = vrot.lane.b32.xlu1 %v19233_v10, %s14201_s18  ;;  %v19768_v31 = vsub.f32 %v9662_v34, %v19729_v4  ;;  %v19826_v48 = vand.u32 4294901760, %v9654_v8 }
 0x954   : > { %v19686_v15 = vpop.permute.xlu0 %10730  ;;  %v19787_v27 = vpop.permute.xlu2 %10718 }
 0x955   : > { %23357 = vst [vmem:[#allocation53_spill] sm:$0xff] %v19686_v15  ;;  %v9052_v14 = vpop.permute.xlu1 %9051 }
 0x956   : > { %v9063_v24 = vsel %vm1824_vm5, %v19375_v17, %v9052_v14  ;;  %v19710_v17 = vsub.f32 %v9100_v56, %v19684_v55  ;;  %v19713_v14 = vand.u32 4294901760, %v9096_v1  ;;  %v9658_v56 = vmul.f32 %v9646_v18, %v23356_v7  ;;  %23362 = vst [vmem:[#allocation29_spill] sm:$0xff] %v19787_v27 }
 0x957   : > { %v9102_v15 = vmul.f32 %v9063_v24, %v23355_v5  ;;  %v9660_v24 = vmul.f32 %v9647_v13, %v23356_v7  ;;  %v19743_v13 = vsub.f32 %v9664_v49, %v19704_v63 }
 0x958   : > { %v19758_v49 = vsub.f32 %v9096_v1, %v19713_v14  ;;  %v23361_v34 = vand.u32 4294901760, %v19710_v17 }
 0x959   : > { %v19715_v50 = vand.u32 4294901760, %v9102_v15  ;;  %v19762_v26 = vand.u32 4294901760, %v9660_v24 }
 0x95a   : > { %12329 = vrot.lane.b32.xlu0 %v19258_v22, %s14199_s14 }
 0x95b   : > { %12327 = vrot.lane.b32.xlu2 %v19125_v0, %s14199_s14  ;;  %12914 = vrot.lane.b32.xlu1 %v19350_v58, %s14201_s18  ;;  %v19736_v53 = vsub.f32 %v9102_v15, %v19715_v50  ;;  %v19749_v58 = vand.u32 4294901760, %v9094_v54  ;;  %v9090_v15 = vmul.f32 %v9057_v38, %v23355_v5  ;;  %v9656_v5 = vmul.f32 %v9645_v40, %v23356_v7 }
 0x95c   : > { %9358 = vmatpush.msra.mxu2 %v19715_v50  ;;  %9490 = vmatpush.msrb.mxu1 %v19715_v50  ;;  %v19746_v18 = vpop.permute.xlu0 %10173  ;;  %v9403_v40 = vsub.f32 %v19710_v17, %v23361_v34  ;;  %v19796_v38 = vsub.f32 %v9660_v24, %v19762_v26  ;;  %v23363_v34 = vand.u32 4294901760, %v19726_v41 }
 0x95d   : > { %23359 = vst [vmem:[#allocation56_spill] sm:$0xff] %v19746_v18  ;;  %9454 = vmatpush.msrb.mxu0 %v19736_v53  ;;  %v19754_v59 = vpop.permute.xlu1 %10734  ;;  %v22820_v36 = vand.u32 4294901760, %v19736_v53  ;;  %v9643_v18 = vsel %vm2623_vm7, 0.0, %v19266_v51  ;;  %v19777_v51 = vand.u32 4294901760, %v9658_v56  ;;  %v19785_v42 = vand.u32 4294901760, %v9090_v15 }
 0x95e   : > { %9360 = vmatpush.msra.mxu2 %v19684_v55  ;;  %23360 = vst [vmem:[#allocation40_spill] sm:$0xff] %v19754_v59  ;;  %9492 = vmatpush.msrb.mxu1 %v19684_v55  ;;  %v19770_v59 = vand.u32 4294901760, %v9092_v23  ;;  %v19792_v35 = vsub.f32 %v9094_v54, %v19749_v58  ;;  %v9409_v27 = vsub.f32 %v19726_v41, %v23363_v34  ;;  %v19806_v47 = vand.u32 4294901760, %v9656_v5 }
 0x95f   : > { %9457 = vmatpush.msrb.mxu0 %v19710_v17  ;;  %v9397_v1 = vsub.f32 %v19736_v53, %v22820_v36  ;;  %v9652_v2 = vmul.f32 %v9643_v18, %v23356_v7  ;;  %v19818_v34 = vsub.f32 %v9658_v56, %v19777_v51  ;;  %v23367_v56 = vand.u32 4294901760, %v19758_v49 }
 0x960   : > { %9362 = vmatpush.msra.mxu2 %v19692_v20  ;;  %9494 = vmatpush.msrb.mxu1 %v19692_v20  ;;  %v19813_v54 = vsub.f32 %v9092_v23, %v19770_v59  ;;  %v19843_v10 = vsub.f32 %v9656_v5, %v19806_v47  ;;  %v19856_v5 = vsub.f32 %v9654_v8, %v19826_v48  ;;  %v23371_v8 = vand.u32 4294901760, %v19796_v38 }
 0x961   : > { %9460 = vmatpush.msrb.mxu0 %v19726_v41  ;;  %v9398_v36 = vand.u32 4294901760, %v9397_v1  ;;  %v9642_v1 = vsel %vm2623_vm7, 0.0, %v19278_v11  ;;  %v9404_v11 = vand.u32 4294901760, %v9403_v40  ;;  %v9415_v18 = vsub.f32 %v19758_v49, %v23367_v56 }
 0x962   : > { %9364 = vmatpush.msra.mxu2 %v19713_v14  ;;  %9496 = vmatpush.msrb.mxu1 %v19713_v14  ;;  %v9650_v24 = vmul.f32 %v9642_v1, %v23356_v7  ;;  %v19851_v7 = vand.u32 4294901760, %v9652_v2 }
 0x963   : > { %12912 = vrot.lane.b32.xlu0 %v19210_v39, %s14201_s18  ;;  %12908 = vrot.lane.b32.xlu2 %v19199_v60, %s14201_s18  ;;  %v23365_v60 = vand.u32 4294901760, %v19743_v13  ;;  %v9416_v1 = vand.u32 4294901760, %v9415_v18 }
 0x964   : > { %12904 = vrot.lane.b32.xlu1 %v19186_v33, %s14201_s18  ;;  %9366 = vmatpush.msra.mxu2 %v19749_v58  ;;  %v19821_v39 = vpop.permute.xlu0 %10708 }
 0x965   : > { %9399 = vmatpush.msra.mxu3 %v9398_v36  ;;  %23364 = vst [vmem:[#allocation46_spill] sm:$0xff] %v19821_v39  ;;  %v9715_v33 = vsub.f32 %v19743_v13, %v23365_v60  ;;  %9463 = vmatpush.msrb.mxu0 %v19758_v49  ;;  %v19830_v23 = vpop.permute.xlu1 %10722  ;;  %v19836_v36 = vsub.f32 %v9090_v15, %v19785_v42  ;;  %v9410_v60 = vand.u32 4294901760, %v9409_v27  ;;  %v23368_v15 = vand.u32 4294901760, %v19768_v31  ;;  %v19871_v27 = vpop.permute.xlu2 %11794 }
 0x966   : > { %9498 = vmatpush.msrb.mxu1 %v19749_v58  ;;  %23366 = vst [vmem:[#allocation68_spill] sm:$0xff] %v19830_v23  ;;  %9368 = vmatpush.msra.mxu2 %v19770_v59  ;;  %v19864_v23 = vand.u32 4294901760, %v9650_v24 }
 0x967   : > { %9405 = vmatpush.msra.mxu3 %v9404_v11  ;;  %9466 = vmatpush.msrb.mxu0 %v19792_v35  ;;  %v9721_v56 = vsub.f32 %v19768_v31, %v23368_v15  ;;  %v9716_v11 = vand.u32 4294901760, %v9715_v33  ;;  %v23369_v15 = vand.u32 4294901760, %v19792_v35  ;;  %v23370_v33 = vand.u32 4294901760, %v19648_v16  ;;  %23372 = vst [vmem:[#allocation55_spill] sm:$0xff] %v19871_v27 }
 0x968   : > { %9500 = vmatpush.msrb.mxu1 %v19770_v59  ;;  %9370 = vmatpush.msra.mxu2 %v19785_v42  ;;  %v19879_v16 = vsub.f32 %v9652_v2, %v19851_v7  ;;  %v23376_v2 = vand.u32 4294901760, %v19836_v36 }
 0x969   : > { %9411 = vmatpush.msra.mxu3 %v9410_v60  ;;  %9469 = vmatpush.msrb.mxu0 %v19813_v54  ;;  %v9421_v40 = vsub.f32 %v19792_v35, %v23369_v15  ;;  %v9727_v60 = vsub.f32 %v19796_v38, %v23371_v8  ;;  %v9722_v18 = vand.u32 4294901760, %v9721_v56  ;;  %v23373_v15 = vand.u32 4294901760, %v19813_v54 }
 0x96a   : > { %9502 = vmatpush.msrb.mxu1 %v19785_v42  ;;  %9521 = vmatpush.msrb.mxu2 %v23370_v33  ;;  %v9433_v0 = vsub.f32 %v19836_v36, %v23376_v2 }
 0x96b   : > { %9417 = vmatpush.msra.mxu3 %v9416_v1  ;;  %9472 = vmatpush.msrb.mxu0 %v19836_v36  ;;  %v9427_v22 = vsub.f32 %v19813_v54, %v23373_v15  ;;  %v23375_v1 = vand.u32 4294901760, %v19818_v34  ;;  %v9422_v8 = vand.u32 4294901760, %v9421_v40 }
 0x96c   : > { %9717 = vmatpush.msra.mxu1 %v9716_v11  ;;  %v23374_v11 = vand.u32 4294901760, %v19736_v53  ;;  %v19884_v33 = vpop.permute.xlu0 %9616  ;;  %12910 = vrot.lane.b32.xlu0 %v19333_v44, %s14201_s18  ;;  %v23379_v53 = vand.u32 4294901760, %v19843_v10  ;;  %v9750_v44 = vand.u32 4294901760, %v19879_v16 }
 0x96d   : > { %9680 = vmatpush.msra.mxu0 %v19704_v63  ;;  %v9733_v56 = vsub.f32 %v19818_v34, %v23375_v1  ;;  %v10711_v15 = vpop.permute.xlu1 %10710  ;;  %12906 = vrot.lane.b32.xlu2 %v19316_v32, %s14201_s18  ;;  %v23378_v1 = vand.u32 4294901760, %v19710_v17  ;;  %v9428_v2 = vand.u32 4294901760, %v9427_v22 }
 0x96e   : > { %9525 = vmatpush.msrb.mxu2 %v23374_v11  ;;  %9723 = vmatpush.msra.mxu1 %v9722_v18  ;;  %v19896_v11 = vsub.f32 %v9650_v24, %v19864_v23  ;;  %v9728_v18 = vand.u32 4294901760, %v9727_v60  ;;  %v19904_v40 = vsel %vm4221_vm9, %v19821_v39, %v10711_v15  ;;  %v9739_v24 = vsub.f32 %v19843_v10, %v23379_v53 }
 0x96f   : > { %12357 = vrot.lane.b32.xlu1 %v19365_v9, %s14199_s14  ;;  %23377 = vst [vmem:[#allocation64_spill] sm:$0xff] %v19904_v40  ;;  %9423 = vmatpush.msra.mxu3 %v9422_v8  ;;  %v9734_v27 = vand.u32 4294901760, %v9733_v56  ;;  %v23380_v60 = vand.u32 4294901760, %v19726_v41  ;;  %v9434_v15 = vand.u32 4294901760, %v9433_v0  ;;  %v23381_v8 = vand.u32 4294901760, %v19856_v5 }
 0x970   : > { %9529 = vmatpush.msrb.mxu2 %v23378_v1  ;;  %9682 = vmatpush.msra.mxu0 %v19729_v4  ;;  %v9756_v22 = vand.u32 4294901760, %v19896_v11  ;;  %v23382_v53 = vand.u32 4294901760, %v19758_v49  ;;  %v9740_v56 = vand.u32 4294901760, %v9739_v24  ;;  %v9751_v0 = vsub.f32 %v19879_v16, %v9750_v44 }
 0x971   : > { %9729 = vmatpush.msra.mxu1 %v9728_v18  ;;  %9429 = vmatpush.msra.mxu3 %v9428_v2  ;;  %v9745_v17 = vsub.f32 %v19856_v5, %v23381_v8  ;;  %v19929_v18 = vpop.permute.xlu2 %11792 }
 0x972   : > { %9533 = vmatpush.msrb.mxu2 %v23380_v60  ;;  %9684 = vmatpush.msra.mxu0 %v19762_v26  ;;  %23384 = vst [vmem:[#allocation63_spill] sm:$0xff] %v19929_v18  ;;  %v9757_v2 = vsub.f32 %v19896_v11, %v9756_v22  ;;  %v23388_v60 = vand.u32 4294901760, %v19836_v36 }
 0x973   : > { %9735 = vmatpush.msra.mxu1 %v9734_v27  ;;  %9435 = vmatpush.msra.mxu3 %v9434_v15  ;;  %v23385_v27 = vand.u32 4294901760, %v19792_v35  ;;  %v9746_v1 = vand.u32 4294901760, %v9745_v17  ;;  %v9752_v35 = vand.u32 4294901760, %v9751_v0  ;;  %v23395_v17 = vand.u32 4294901760, %v19796_v38 }
 0x974   : > { %9537 = vmatpush.msrb.mxu2 %v23382_v53  ;;  %9686 = vmatpush.msra.mxu0 %v19777_v51  ;;  %v19927_v41 = vpop.permute.xlu0 %10714  ;;  %v9758_v24 = vand.u32 4294901760, %v9757_v2  ;;  %v23397_v53 = vand.u32 4294901760, %v19818_v34  ;;  %v23405_v2 = vld [vmem:[#allocation25_spill] sm:$0xff] }
 0x975   : > { %9564 = vmatpush.msrb.mxu3 %v19645_v29  ;;  %23383 = vst [vmem:[#allocation58_spill] sm:$0xff] %v19927_v41  ;;  %9741 = vmatpush.msra.mxu1 %v9740_v56  ;;  %v11791_v49 = vpop.permute.xlu1 %11790  ;;  %v23398_v56 = vand.u32 4294901760, %v19843_v10 }
 0x976   : > { %9541 = vmatpush.msrb.mxu2 %v23385_v27  ;;  %9688 = vmatpush.msra.mxu0 %v19806_v47  ;;  %v19937_v29 = vsel %vm5810_vm10, %v11791_v49, %v19929_v18  ;;  %v23404_v49 = vld [vmem:[#allocation62_spill] sm:$0xff] }
 0x977   : > { %9566 = vmatpush.msrb.mxu3 %v19715_v50  ;;  %23386 = vst [vmem:[#allocation9_spill] sm:$0xff] %v19937_v29  ;;  %9747 = vmatpush.msra.mxu1 %v9746_v1  ;;  %v23387_v50 = vand.u32 4294901760, %v19813_v54  ;;  %v14152_v54 = vld [vmem:[%s22658_s6 + $0x4] sm:$0x7]  ;;  %v23403_v1 = vand.u32 4294901760, %v19856_v5  ;;  %v23424_v29 = vld [vmem:[#allocation67_spill] sm:$0xff] }
 0x978   : > { %12900 = vrot.lane.b32.xlu0 %v19162_v62, %s14201_s18  ;;  %12896 = vrot.lane.b32.xlu2 %v19151_v61, %s14201_s18  ;;  %v9669_v36 = vsel %vm9106_vm14, %v14152_v54, 0  ;;  %v23420_v18 = vld [vmem:[#allocation34_spill] sm:$0xff]  ;;  %v10203_v40 = vsel %vm3422_vm8, 0.0, %v23424_v29 }
 0x979   : > { %12902 = vrot.lane.b32.xlu1 %v19301_v12, %s14201_s18  ;;  %9545 = vmatpush.msrb.mxu2 %v23387_v50 }
 0x97a   : > { %9568 = vmatpush.msrb.mxu3 %v19684_v55  ;;  %9690 = vmatpush.msra.mxu0 %v19826_v48 }
 0x97b   : > { %9753 = vmatpush.msra.mxu1 %v9752_v35  ;;  %9549 = vmatpush.msrb.mxu2 %v23388_v60  ;;  %v9621_v35 = vsel %vm2623_vm7, %v23405_v2, %v23404_v49  ;;  %v23407_v60 = vld [vmem:[#allocation50_spill] sm:$0xff] }
 0x97c   : > { %9570 = vmatpush.msrb.mxu3 %v19692_v20  ;;  %9692 = vmatpush.msra.mxu0 %v19851_v7  ;;  %v11787_v15 = vpop.permute.xlu0 %11786 }
 0x97d   : > { %9759 = vmatpush.msra.mxu1 %v9758_v24  ;;  %9376 = vmatmul.f32.vlgmr.msra.gmra.mxu2 %v19596_v6  ;;  %v19961_v55 = vpop.permute.xlu1 %11788  ;;  %v19980_v6 = vand.u32 4294901760, %v9669_v36  ;;  %v23406_v24 = vld [vmem:[#allocation20_spill] sm:$0xff] }
 0x97e   : > { %9506 = vmatmul.f32.vlgmr.msrb.gmra.mxu1 %v19581_v30  ;;  %23389 = vst [vmem:[#allocation5_spill] sm:$0xff] %v19961_v55  ;;  %9775 = vmatpush.msra.mxu2 %v19743_v13  ;;  %v19967_v20 = vsel %vm5810_vm10, %v11787_v15, %v19961_v55  ;;  %v23391_v30 = vand.u32 4294901760, %v19743_v13 }
 0x97f   : > { %9888 = vmatpush.msrb.mxu1 %v19704_v63  ;;  %23390 = vst [vmem:[#allocation8_spill] sm:$0xff] %v19967_v20  ;;  %9572 = vmatpush.msrb.mxu3 %v19713_v14  ;;  %v23392_v14 = vand.u32 4294901760, %v19768_v31 }
 0x980   : > { %9694 = vmatpush.msra.mxu0 %v19864_v23  ;;  %9778 = vmatpush.msra.mxu2 %v19768_v31  ;;  %v20003_v31 = vsub.f32 %v9669_v36, %v19980_v6 }
 0x981   : > { %9475 = vmatmul.f32.vlgmr.msrb.gmra.mxu0 %v19577_v46  ;;  %9890 = vmatpush.msrb.mxu1 %v19729_v4  ;;  %v11783_v46 = vpop.permute.xlu2 %11782 }
 0x982   : > { %9845 = vmatpush.msrb.mxu0 %v23391_v30  ;;  %9574 = vmatpush.msrb.mxu3 %v19749_v58  ;;  %v9625_v58 = vsel %vm2623_vm7, %v19420_v21, %v19884_v33  ;;  %v23396_v21 = vld [vmem:[#allocation11_spill] sm:$0xff]  ;;  %v23408_v30 = vld [vmem:[#allocation26_spill] sm:$0xff] }
 0x983   : > { %12898 = vrot.lane.b32.xlu0 %v19286_v28, %s14201_s18  ;;  %12894 = vrot.lane.b32.xlu2 %v19270_v45, %s14201_s18  ;;  %v9665_v33 = vmul.f32 %v9625_v58, %v23396_v21 }
 0x984   : > { %12892 = vrot.lane.b32.xlu1 %v19138_v43, %s14201_s18  ;;  %9781 = vmatpush.msra.mxu2 %v19796_v38  ;;  %v19989_v13 = vpop.permute.xlu0 %11784  ;;  %v9663_v38 = vmul.f32 %v19630_v37, %v23396_v21  ;;  %v23399_v37 = vld [vmem:[#allocation60_spill] sm:$0xff] }
 0x985   : > { %9849 = vmatpush.msrb.mxu0 %v23392_v14  ;;  %23393 = vst [vmem:[#allocation72_spill] sm:$0xff] %v19989_v13  ;;  %9892 = vmatpush.msrb.mxu1 %v19762_v26  ;;  %v19998_v8 = vsel %vm5810_vm10, %v11783_v46, %v19989_v13  ;;  %v23409_v46 = vld [vmem:[#allocation30_spill] sm:$0xff] }
 0x986   : > { %9576 = vmatpush.msrb.mxu3 %v19770_v59  ;;  %23394 = vst [vmem:[#allocation73_spill] sm:$0xff] %v19998_v8  ;;  %9784 = vmatpush.msra.mxu2 %v19818_v34  ;;  %v9623_v59 = vsel %vm2623_vm7, %v19385_v52, %v19662_v25  ;;  %v9622_v52 = vsel %vm2623_vm7, %v19343_v57, %v19638_v3  ;;  %v20031_v25 = vand.u32 4294901760, %v9665_v33  ;;  %v23400_v34 = vld [vmem:[#allocation59_spill] sm:$0xff]  ;;  %v23402_v3 = vld [vmem:[#allocation48_spill] sm:$0xff] }
 0x987   : > { %9437 = vmatmul.f32.vlgmr.msra.gmra.mxu3 %v19566_v19  ;;  %9853 = vmatpush.msrb.mxu0 %v23395_v17  ;;  %v10210_v0 = vsel %vm3422_vm8, 0.0, %v23402_v3  ;;  %v9659_v27 = vmul.f32 %v9622_v52, %v23396_v21 }
 0x988   : > { %9894 = vmatpush.msrb.mxu1 %v19777_v51  ;;  %9578 = vmatpush.msrb.mxu3 %v19785_v42  ;;  %v20022_v42 = vand.u32 4294901760, %v20003_v31  ;;  %v10225_v15 = vmul.f32 %v10210_v0, %v23407_v60 }
 0x989   : > { %9787 = vmatpush.msra.mxu2 %v19843_v10  ;;  %9857 = vmatpush.msrb.mxu0 %v23397_v53  ;;  %v20040_v10 = vand.u32 4294901760, %v9663_v38  ;;  %v20079_v14 = vand.u32 4294901760, %v9659_v27  ;;  %v23412_v53 = vld [vmem:[#allocation66_spill] sm:$0xff] }
 0x98a   : > { %9812 = vmatpush.msra.mxu3 %v19704_v63  ;;  %9896 = vmatpush.msrb.mxu1 %v19806_v47  ;;  %v9661_v63 = vmul.f32 %v9623_v59, %v23396_v21  ;;  %v9698_v57 = vsub.f32 %v20003_v31, %v20022_v42  ;;  %v23411_v59 = vld [vmem:[#allocation36_spill] sm:$0xff] }
 0x98b   : > { %9790 = vmatpush.msra.mxu2 %v19856_v5  ;;  %9861 = vmatpush.msrb.mxu0 %v23398_v56  ;;  %v10209_v5 = vsel %vm3422_vm8, 0.0, %v23406_v24  ;;  %v20073_v36 = vsub.f32 %v9663_v38, %v20040_v10  ;;  %v9619_v38 = vsel %vm2623_vm7, %v23412_v53, %v23411_v59  ;;  %v20098_v56 = vand.u32 4294901760, %v10225_v15  ;;  %v23418_v53 = vld [vmem:[#allocation10_spill] sm:$0xff] }
 0x98c   : > { %9814 = vmatpush.msra.mxu3 %v19729_v4  ;;  %9898 = vmatpush.msrb.mxu1 %v19826_v48  ;;  %v23401_v4 = vld [vmem:[#allocation71_spill] sm:$0xff]  ;;  %v20055_v50 = vand.u32 4294901760, %v9661_v63  ;;  %v20070_v54 = vand.u32 4294901760, %v9698_v57  ;;  %v20171_v8 = vpop.permute.xlu0 %11774 }
 0x98d   : > { %12888 = vrot.lane.b32.xlu0 %v23399_v37, %s14201_s18  ;;  %13477 = vrot.lane.b32.xlu2 %v23400_v34, %s14200_s17  ;;  %23422 = vst [vmem:[#allocation11_spill] sm:$0xff] %v20171_v8 }
 0x98e   : > { %12890 = vrot.lane.b32.xlu1 %v23401_v4, %s14201_s18  ;;  %9551 = vmatmul.f32.vlgmr.msrb.gmra.mxu2 %v19566_v19  ;;  %v20089_v17 = vsub.f32 %v9661_v63, %v20055_v50 }
 0x98f   : > { %9816 = vmatpush.msra.mxu3 %v19762_v26  ;;  %9793 = vmatpush.msra.mxu2 %v19879_v16  ;;  %v20058_v26 = vsub.f32 %v9665_v33, %v20031_v25  ;;  %v10223_v33 = vmul.f32 %v10209_v5, %v23407_v60 }
 0x990   : > { %9865 = vmatpush.msrb.mxu0 %v23403_v1  ;;  %9900 = vmatpush.msrb.mxu1 %v19851_v7  ;;  %v9653_v1 = vmul.f32 %v9619_v38, %v23396_v21 }
 0x991   : > { %9580 = vmatmul.f32.vlgmr.msrb.gmra.mxu3 %v19566_v19  ;;  %9796 = vmatpush.msra.mxu2 %v19896_v11  ;;  %v9657_v19 = vmul.f32 %v9621_v35, %v23396_v21  ;;  %v22838_v58 = vand.u32 4294901760, %v20058_v26  ;;  %v20110_v11 = vsub.f32 %v9659_v27, %v20079_v14  ;;  %v20121_v35 = vand.u32 4294901760, %v10223_v33  ;;  %v23415_v27 = vld [vmem:[#allocation21_spill] sm:$0xff] }
 0x992   : > { %9818 = vmatpush.msra.mxu3 %v19777_v51  ;;  %9869 = vmatpush.msrb.mxu0 %v9750_v44  ;;  %v9620_v51 = vsel %vm2623_vm7, %v23409_v46, %v23408_v30  ;;  %v23410_v44 = vld [vmem:[#allocation70_spill] sm:$0xff]  ;;  %v23417_v46 = vld [vmem:[#allocation37_spill] sm:$0xff]  ;;  %v20153_v13 = vand.u32 4294901760, %v9653_v1 }
 0x993   : > { %9902 = vmatpush.msrb.mxu1 %v19864_v23  ;;  %9917 = vmatpush.msrb.mxu2 %v20031_v25  ;;  %v10208_v16 = vsel %vm3422_vm8, 0.0, %v23410_v44  ;;  %v9655_v52 = vmul.f32 %v9620_v51, %v23396_v21  ;;  %v20105_v57 = vand.u32 4294901760, %v9657_v19  ;;  %v9952_v49 = vsub.f32 %v20058_v26, %v22838_v58  ;;  %v23416_v30 = vld [vmem:[#allocation22_spill] sm:$0xff] }
 0x994   : > { %9761 = vmatmul.f32.vlgmr.msra.gmra.mxu1 %v19980_v6  ;;  %9820 = vmatpush.msra.mxu3 %v19806_v47  ;;  %v22840_v47 = vand.u32 4294901760, %v20073_v36  ;;  %v10221_v63 = vmul.f32 %v10208_v16, %v23407_v60  ;;  %v10206_v51 = vsel %vm3422_vm8, 0.0, %v23417_v46  ;;  %v20132_v16 = vsub.f32 %v10225_v15, %v20098_v56  ;;  %v20252_v39 = vpop.permute.xlu0 %11772 }
 0x995   : > { %10049 = vmatpush.msra.mxu1 %v20031_v25  ;;  %9873 = vmatpush.msrb.mxu0 %v9756_v22  ;;  %v23413_v22 = vld [vmem:[#allocation45_spill] sm:$0xff]  ;;  %v20134_v59 = vand.u32 4294901760, %v9655_v52  ;;  %v20149_v15 = vsub.f32 %v9657_v19, %v20105_v57  ;;  %v10217_v55 = vmul.f32 %v10206_v51, %v23407_v60  ;;  %v10205_v19 = vsel %vm3422_vm8, 0.0, %v23420_v18  ;;  %23432 = vst [vmem:[#allocation60_spill] sm:$0xff] %v20252_v39 }
 0x996   : > { %9919 = vmatpush.msrb.mxu2 %v20040_v10  ;;  %9700 = vmatmul.f32.vlgmr.msra.gmra.mxu0 %v20070_v54  ;;  %v10207_v0 = vsel %vm3422_vm8, 0.0, %v23413_v22  ;;  %v9958_v38 = vsub.f32 %v20073_v36, %v22840_v47  ;;  %v9953_v47 = vand.u32 4294901760, %v9952_v49  ;;  %v20164_v58 = vsub.f32 %v10223_v33, %v20121_v35 }
 0x997   : > { %10051 = vmatpush.msra.mxu1 %v20040_v10  ;;  %10012 = vmatpush.msra.mxu0 %v20058_v26  ;;  %v23423_v49 = vand.u32 4294901760, %v20110_v11 }
 0x998   : > { %9822 = vmatpush.msra.mxu3 %v19826_v48  ;;  %9921 = vmatpush.msrb.mxu2 %v20055_v50  ;;  %v23414_v48 = vld [vmem:[#allocation61_spill] sm:$0xff]  ;;  %v9959_v51 = vand.u32 4294901760, %v9958_v38  ;;  %v10215_v38 = vmul.f32 %v10205_v19, %v23407_v60 }
 0x999   : > { %10053 = vmatpush.msra.mxu1 %v20055_v50  ;;  %v9618_v5 = vsel %vm2623_vm7, %v23415_v27, %v23414_v48  ;;  %10015 = vmatpush.msra.mxu0 %v20073_v36  ;;  %v20143_v48 = vand.u32 4294901760, %v10221_v63  ;;  %v10219_v27 = vmul.f32 %v10207_v0, %v23407_v60  ;;  %v23419_v0 = vand.u32 4294901760, %v20089_v17 }
 0x99a   : > { %13469 = vrot.lane.b32.xlu0 %v23416_v30, %s14200_s17  ;;  %12918 = vrot.lane.b32.xlu2 %v19365_v9, %s14201_s18  ;;  %v9651_v2 = vmul.f32 %v9618_v5, %v23396_v21  ;;  %v23421_v21 = vld [vmem:[#allocation4_spill] sm:$0xff]  ;;  %v9970_v8 = vsub.f32 %v20110_v11, %v23423_v49  ;;  %v20218_v41 = vand.u32 4294901760, %v10215_v38 }
 0x99b   : > { %13473 = vrot.lane.b32.xlu1 %v23418_v53, %s14200_s17  ;;  %9824 = vmatpush.msra.mxu3 %v19851_v7  ;;  %v9964_v7 = vsub.f32 %v20089_v17, %v23419_v0  ;;  %v10204_v5 = vsel %vm3422_vm8, 0.0, %v23421_v21  ;;  %v20175_v0 = vsub.f32 %v9655_v52, %v20134_v59  ;;  %v20178_v33 = vsub.f32 %v10221_v63, %v20143_v48 }
 0x99c   : > { %9923 = vmatpush.msrb.mxu2 %v20079_v14  ;;  %10018 = vmatpush.msra.mxu0 %v20089_v17  ;;  %v20189_v20 = vand.u32 4294901760, %v9651_v2  ;;  %v20193_v63 = vsub.f32 %v9653_v1, %v20153_v13  ;;  %v10213_v19 = vmul.f32 %v10204_v5, %v23407_v60  ;;  %v9971_v49 = vand.u32 4294901760, %v9970_v8 }
 0x99d   : > { %10055 = vmatpush.msra.mxu1 %v20079_v14  ;;  %9826 = vmatpush.msra.mxu3 %v19864_v23  ;;  %v20180_v23 = vand.u32 4294901760, %v10219_v27  ;;  %v9965_v52 = vand.u32 4294901760, %v9964_v7  ;;  %v23425_v7 = vand.u32 4294901760, %v20132_v16  ;;  %v23426_v5 = vand.u32 4294901760, %v20149_v15 }
 0x99e   : > { %9925 = vmatpush.msrb.mxu2 %v20105_v57  ;;  %10021 = vmatpush.msra.mxu0 %v20110_v11  ;;  %v10211_v8 = vmul.f32 %v10203_v40, %v23407_v60 }
 0x99f   : > { %9954 = vmatpush.msrb.mxu3 %v9953_v47  ;;  %10057 = vmatpush.msra.mxu1 %v20105_v57  ;;  %v20200_v47 = vand.u32 4294901760, %v10217_v55  ;;  %v10276_v1 = vsub.f32 %v20132_v16, %v23425_v7  ;;  %v20209_v30 = vsub.f32 %v10219_v27, %v20180_v23  ;;  %v23427_v7 = vld [vmem:[#allocation41_spill] sm:$0xff] }
 0x9a0   : > { %9927 = vmatpush.msrb.mxu2 %v20134_v59  ;;  %10024 = vmatpush.msra.mxu0 %v20149_v15  ;;  %v23428_v27 = vld [vmem:[#allocation33_spill] sm:$0xff] }
 0x9a1   : > { %9960 = vmatpush.msrb.mxu3 %v9959_v51  ;;  %10059 = vmatpush.msra.mxu1 %v20134_v59  ;;  %v20225_v51 = vsub.f32 %v9651_v2, %v20189_v20  ;;  %v20234_v34 = vsub.f32 %v10217_v55, %v20200_v47  ;;  %v10277_v2 = vand.u32 4294901760, %v10276_v1  ;;  %v23433_v1 = vand.u32 4294901760, %v20058_v26 }
 0x9a2   : > { %9929 = vmatpush.msrb.mxu2 %v20153_v13  ;;  %10027 = vmatpush.msra.mxu0 %v20175_v0  ;;  %v23435_v26 = vand.u32 4294901760, %v20073_v36 }
 0x9a3   : > { %9966 = vmatpush.msrb.mxu3 %v9965_v52  ;;  %10061 = vmatpush.msra.mxu1 %v20153_v13  ;;  %v9976_v52 = vsub.f32 %v20149_v15, %v23426_v5  ;;  %v23429_v5 = vand.u32 4294901760, %v20164_v58 }
 0x9a4   : > { %13467 = vrot.lane.b32.xlu0 %v19316_v32, %s14200_s17  ;;  %13475 = vrot.lane.b32.xlu2 %v23427_v7, %s14200_s17  ;;  %v20236_v7 = vand.u32 4294901760, %v10213_v19  ;;  %v23430_v32 = vand.u32 4294901760, %v20175_v0 }
 0x9a5   : > { %13471 = vrot.lane.b32.xlu1 %v23428_v27, %s14200_s17  ;;  %9931 = vmatpush.msrb.mxu2 %v20189_v20  ;;  %v10282_v53 = vsub.f32 %v20164_v58, %v23429_v5  ;;  %v9977_v60 = vand.u32 4294901760, %v9976_v52  ;;  %v20250_v27 = vsub.f32 %v10215_v38, %v20218_v41  ;;  %v9993_v52 = vand.u32 4294901760, %v20225_v51 }
 0x9a6   : > { %9972 = vmatpush.msrb.mxu3 %v9971_v49  ;;  %10030 = vmatpush.msra.mxu0 %v20193_v63  ;;  %v9982_v40 = vsub.f32 %v20175_v0, %v23430_v32  ;;  %v23431_v49 = vand.u32 4294901760, %v20178_v33  ;;  %v23434_v32 = vand.u32 4294901760, %v20193_v63  ;;  %v20261_v5 = vand.u32 4294901760, %v10211_v8 }
 0x9a7   : > { %10063 = vmatpush.msra.mxu1 %v20189_v20  ;;  %9799 = vmatmul.f32.vlgmr.msra.gmra.mxu2 %v20003_v31  ;;  %v20264_v38 = vsub.f32 %v10213_v19, %v20236_v7  ;;  %v23437_v19 = vand.u32 4294901760, %v20089_v17  ;;  %v9994_v4 = vsub.f32 %v20225_v51, %v9993_v52  ;;  %v10305_v36 = vand.u32 4294901760, %v20250_v27 }
 0x9a8   : > { %9904 = vmatmul.f32.vlgmr.msrb.gmra.mxu1 %v19980_v6  ;;  %v10288_v55 = vsub.f32 %v20178_v33, %v23431_v49  ;;  %10082 = vmatpush.msra.mxu2 %v23433_v1  ;;  %v9988_v29 = vsub.f32 %v20193_v63, %v23434_v32  ;;  %v10283_v49 = vand.u32 4294901760, %v10282_v53  ;;  %v10299_v1 = vand.u32 4294901760, %v20234_v34 }
 0x9a9   : > { %10278 = vmatpush.msrb.mxu1 %v10277_v2  ;;  %9978 = vmatpush.msrb.mxu3 %v9977_v60  ;;  %v9983_v2 = vand.u32 4294901760, %v9982_v40  ;;  %v23436_v32 = vand.u32 4294901760, %v20209_v30  ;;  %v20280_v40 = vsub.f32 %v10211_v8, %v20261_v5  ;;  %v9995_v8 = vand.u32 4294901760, %v9994_v4 }
 0x9aa   : > { %10033 = vmatpush.msra.mxu0 %v20225_v51  ;;  %10086 = vmatpush.msra.mxu2 %v23435_v26  ;;  %v10289_v60 = vand.u32 4294901760, %v10288_v55  ;;  %v9989_v39 = vand.u32 4294901760, %v9988_v29  ;;  %v10300_v17 = vsub.f32 %v20234_v34, %v10299_v1  ;;  %v10311_v29 = vand.u32 4294901760, %v20264_v38  ;;  %v23438_v51 = vld [vmem:[#allocation7_spill] sm:$0xff]  ;;  %v20299_v26 = vpop.permute.xlu0 %12355 }
 0x9ab   : > { %9875 = vmatmul.f32.vlgmr.msrb.gmra.mxu0 %v19980_v6  ;;  %10284 = vmatpush.msrb.mxu1 %v10283_v49  ;;  %v10294_v53 = vsub.f32 %v20209_v30, %v23436_v32  ;;  %v10306_v49 = vsub.f32 %v20250_v27, %v10305_v36  ;;  %23440 = vst [vmem:[#allocation48_spill] sm:$0xff] %v20299_v26  ;;  %v10317_v4 = vand.u32 4294901760, %v20280_v40  ;;  %v23442_v32 = vand.u32 4294901760, %v20175_v0 }
 0x9ac   : > { %10241 = vmatpush.msrb.mxu0 %v20098_v56  ;;  %9984 = vmatpush.msrb.mxu3 %v9983_v2  ;;  %v23441_v2 = vand.u32 4294901760, %v20149_v15  ;;  %v23443_v15 = vand.u32 4294901760, %v20193_v63 }
 0x9ad   : > { %10090 = vmatpush.msra.mxu2 %v23437_v19  ;;  %10290 = vmatpush.msrb.mxu1 %v10289_v60  ;;  %v10295_v55 = vand.u32 4294901760, %v10294_v53  ;;  %v10301_v60 = vand.u32 4294901760, %v10300_v17  ;;  %v10307_v53 = vand.u32 4294901760, %v10306_v49 }
 0x9ae   : > { %10243 = vmatpush.msrb.mxu0 %v20121_v35  ;;  %9990 = vmatpush.msrb.mxu3 %v9989_v39  ;;  %v23439_v39 = vand.u32 4294901760, %v20110_v11  ;;  %v10312_v11 = vsub.f32 %v20264_v38, %v10311_v29 }
 0x9af   : > { %13479 = vrot.lane.b32.xlu0 %v19365_v9, %s14200_s17  ;;  %13465 = vrot.lane.b32.xlu2 %v23438_v51, %s14200_s17 }
 0x9b0   : > { %13461 = vrot.lane.b32.xlu1 %v19162_v62, %s14200_s17  ;;  %9830 = vmatmul.f32.vlgmr.msra.gmra.mxu3 %v20022_v42  ;;  %v10313_v19 = vand.u32 4294901760, %v10312_v11 }
 0x9b1   : > { %10094 = vmatpush.msra.mxu2 %v23439_v39  ;;  %10245 = vmatpush.msrb.mxu0 %v20143_v48 }
 0x9b2   : > { %10296 = vmatpush.msrb.mxu1 %v10295_v55  ;;  %9996 = vmatpush.msrb.mxu3 %v9995_v8  ;;  %v23451_v55 = vld [vmem:[#allocation51_spill] sm:$0xff]  ;;  %v23452_v8 = vld [vmem:[#allocation65_spill] sm:$0xff] }
 0x9b3   : > { %10098 = vmatpush.msra.mxu2 %v23441_v2  ;;  %10247 = vmatpush.msrb.mxu0 %v20180_v23  ;;  %v10184_v39 = vsel %vm3422_vm8, %v23410_v44, %v23451_v55  ;;  %v10183_v49 = vsel %vm3422_vm8, %v23413_v22, %v23452_v8  ;;  %v23453_v44 = vand.u32 4294901760, %v20209_v30  ;;  %v23464_v55 = vld [vmem:[#allocation24_spill] sm:$0xff] }
 0x9b4   : > { %10125 = vmatpush.msra.mxu3 %v20031_v25  ;;  %10302 = vmatpush.msrb.mxu1 %v10301_v60  ;;  %v10318_v25 = vsub.f32 %v20280_v40, %v10317_v4 }
 0x9b5   : > { %10102 = vmatpush.msra.mxu2 %v23442_v32  ;;  %10249 = vmatpush.msrb.mxu0 %v20200_v47 }
 0x9b6   : > { %10127 = vmatpush.msra.mxu3 %v20040_v10  ;;  %10308 = vmatpush.msrb.mxu1 %v10307_v53  ;;  %v10319_v10 = vand.u32 4294901760, %v10318_v25  ;;  %v23459_v25 = vld [vmem:[#allocation44_spill] sm:$0xff] }
 0x9b7   : > { %10106 = vmatpush.msra.mxu2 %v23443_v15  ;;  %10251 = vmatpush.msrb.mxu0 %v20218_v41 }
 0x9b8   : > { %10129 = vmatpush.msra.mxu3 %v20055_v50  ;;  %10314 = vmatpush.msrb.mxu1 %v10313_v19  ;;  %v14153_v50 = vld [vmem:[%s22658_s6 + $0x8] sm:$0x7] }
 0x9b9   : > { %9937 = vmatmul.f32.vlgmr.msrb.gmra.mxu2 %v20070_v54  ;;  %13457 = vrot.lane.b32.xlu0 %v19151_v61, %s14200_s17  ;;  %v20333_v54 = vpop.permute.xlu0 %12353  ;;  %v10230_v0 = vsel %vm9106_vm14, %v14153_v50, 0 }
 0x9ba   : > { %13463 = vrot.lane.b32.xlu2 %v19301_v12, %s14200_s17  ;;  %13459 = vrot.lane.b32.xlu1 %v19286_v28, %s14200_s17  ;;  %23444 = vst [vmem:[#allocation62_spill] sm:$0xff] %v20333_v54  ;;  %v20344_v63 = vand.u32 4294901760, %v10230_v0 }
 0x9bb   : > { %10110 = vmatpush.msra.mxu2 %v9993_v52  ;;  %10131 = vmatpush.msra.mxu3 %v20079_v14  ;;  %v10178_v14 = vpop.permute.xlu1 %10177  ;;  %v23446_v52 = vand.u32 4294901760, %v20164_v58 }
 0x9bc   : > { %10253 = vmatpush.msrb.mxu0 %v20236_v7  ;;  %10320 = vmatpush.msrb.mxu1 %v10319_v10  ;;  %v10769_v10 = vsel %vm4221_vm9, 0.0, %v23459_v25 }
 0x9bd   : > { %9998 = vmatmul.f32.vlgmr.msrb.gmra.mxu3 %v19980_v6  ;;  %10067 = vmatmul.f32.vlgmr.msra.gmra.mxu1 %v20022_v42  ;;  %v23445_v42 = vand.u32 4294901760, %v20132_v16 }
 0x9be   : > { %10336 = vmatpush.msrb.mxu2 %v20132_v16  ;;  %10449 = vmatpush.msra.mxu1 %v20098_v56  ;;  %v23447_v16 = vld [vmem:[#allocation56_spill] sm:$0xff] }
 0x9bf   : > { %10133 = vmatpush.msra.mxu3 %v20105_v57  ;;  %10255 = vmatpush.msrb.mxu0 %v20261_v5  ;;  %v10186_v57 = vsel %vm3422_vm8, %v23402_v3, %v10178_v14  ;;  %v23448_v3 = vand.u32 4294901760, %v20178_v33 }
 0x9c0   : > { %10339 = vmatpush.msrb.mxu2 %v20164_v58  ;;  %10036 = vmatmul.f32.vlgmr.msra.gmra.mxu0 %v20003_v31  ;;  %v20359_v31 = vsub.f32 %v10230_v0, %v20344_v63  ;;  %v23449_v58 = vld [vmem:[#allocation57_spill] sm:$0xff] }
 0x9c1   : > { %10451 = vmatpush.msra.mxu1 %v20121_v35  ;;  %10406 = vmatpush.msra.mxu0 %v23445_v42  ;;  %v10226_v17 = vmul.f32 %v10186_v57, %v23449_v58  ;;  %v23461_v42 = vld [vmem:[#allocation27_spill] sm:$0xff] }
 0x9c2   : > { %10135 = vmatpush.msra.mxu3 %v20134_v59  ;;  %10342 = vmatpush.msrb.mxu2 %v20178_v33  ;;  %v10185_v59 = vsel %vm3422_vm8, %v23406_v24, %v23447_v16  ;;  %v20384_v33 = vand.u32 4294901760, %v20359_v31  ;;  %v23463_v57 = vld [vmem:[#allocation19_spill] sm:$0xff] }
 0x9c3   : > { %10453 = vmatpush.msra.mxu1 %v20143_v48  ;;  %10410 = vmatpush.msra.mxu0 %v23446_v52  ;;  %v10224_v24 = vmul.f32 %v10185_v59, %v23449_v58  ;;  %v20393_v2 = vand.u32 4294901760, %v10226_v17  ;;  %v10768_v52 = vsel %vm4221_vm9, 0.0, %v23463_v57 }
 0x9c4   : > { %10137 = vmatpush.msra.mxu3 %v20153_v13  ;;  %10112 = vmatmul.f32.vlgmr.msra.gmra.mxu2 %v19980_v6  ;;  %v20372_v13 = vpop.permute.xlu0 %12343  ;;  %v10259_v32 = vsub.f32 %v20359_v31, %v20384_v33 }
 0x9c5   : > { %10455 = vmatpush.msra.mxu1 %v20180_v23  ;;  %10345 = vmatpush.msrb.mxu2 %v20209_v30  ;;  %23450 = vst [vmem:[#allocation25_spill] sm:$0xff] %v20372_v13  ;;  %v10220_v30 = vmul.f32 %v10183_v49, %v23449_v58  ;;  %v20406_v11 = vand.u32 4294901760, %v10224_v24  ;;  %v20423_v53 = vsub.f32 %v10226_v17, %v20393_v2  ;;  %v23466_v49 = vld [vmem:[#allocation38_spill] sm:$0xff] }
 0x9c6   : > { %10414 = vmatpush.msra.mxu0 %v23448_v3  ;;  %13455 = vrot.lane.b32.xlu0 %v19270_v45, %s14200_s17  ;;  %v20442_v14 = vand.u32 4294901760, %v10259_v32  ;;  %v23468_v32 = vld [vmem:[#allocation69_spill] sm:$0xff] }
 0x9c7   : > { %13453 = vrot.lane.b32.xlu2 %v19138_v43, %s14200_s17  ;;  %13449 = vrot.lane.b32.xlu1 %v23399_v37, %s14200_s17  ;;  %v20437_v50 = vand.u32 4294901760, %v10220_v30  ;;  %v22847_v59 = vand.u32 4294901760, %v20423_v53 }
 0x9c8   : > { %10139 = vmatpush.msra.mxu3 %v20189_v20  ;;  %10348 = vmatpush.msrb.mxu2 %v20234_v34  ;;  %v10222_v20 = vmul.f32 %v10184_v39, %v23449_v58  ;;  %v9002_v34 = vld [vmem:[%s22659_s7] sm:$0x7]  ;;  %v23465_v39 = vld [vmem:[#allocation67_spill] sm:$0xff] }
 0x9c9   : > { %10141 = vmatmul.f32.vlgmr.msra.gmra.mxu3 %v19980_v6  ;;  %10418 = vmatpush.msra.mxu0 %v23453_v44  ;;  %v23454_v6 = vld [vmem:[#allocation32_spill] sm:$0xff]  ;;  %v10766_v44 = vsel %vm4221_vm9, 0.0, %v23466_v49 }
 0x9ca   : > { %10373 = vmatpush.msrb.mxu3 %v20098_v56  ;;  %10457 = vmatpush.msra.mxu1 %v20200_v47  ;;  %v10771_v60 = vsel %vm4221_vm9, 0.0, %v23454_v6  ;;  %v23455_v56 = vld [vmem:[#allocation39_spill] sm:$0xff] }
 0x9cb   : > { %10351 = vmatpush.msrb.mxu2 %v20250_v27  ;;  %10422 = vmatpush.msra.mxu0 %v10299_v1  ;;  %v10182_v22 = vsel %vm3422_vm8, %v23417_v46, %v23455_v56  ;;  %v20420_v1 = vand.u32 4294901760, %v10222_v20  ;;  %v23458_v27 = vld [vmem:[#allocation43_spill] sm:$0xff] }
 0x9cc   : > { %10375 = vmatpush.msrb.mxu3 %v20121_v35  ;;  %10459 = vmatpush.msra.mxu1 %v20218_v41  ;;  %v23456_v35 = vld [vmem:[#allocation42_spill] sm:$0xff]  ;;  %v10218_v19 = vmul.f32 %v10182_v22, %v23449_v58  ;;  %v20440_v0 = vpop.permute.xlu0 %12341  ;;  %v23467_v22 = vld [vmem:[#allocation16_spill] sm:$0xff] }
 0x9cd   : > { %10354 = vmatpush.msrb.mxu2 %v20264_v38  ;;  %10426 = vmatpush.msra.mxu0 %v10305_v36  ;;  %v10770_v46 = vsel %vm4221_vm9, 0.0, %v23456_v35  ;;  %v10181_v36 = vsel %vm3422_vm8, %v23420_v18, %v23458_v27  ;;  %23460 = vst [vmem:[#allocation20_spill] sm:$0xff] %v20440_v0  ;;  %v20445_v18 = vsub.f32 %v10224_v24, %v20406_v11  ;;  %v23471_v0 = vld [vmem:[#allocation46_spill] sm:$0xff] }
 0x9ce   : > { %10377 = vmatpush.msrb.mxu3 %v20143_v48  ;;  %10461 = vmatpush.msra.mxu1 %v20236_v7  ;;  %v23457_v48 = vld [vmem:[#allocation12_spill] sm:$0xff]  ;;  %v10180_v38 = vsel %vm3422_vm8, %v23421_v21, %v23461_v42  ;;  %v10216_v16 = vmul.f32 %v10181_v36, %v23449_v58  ;;  %v20461_v3 = vsub.f32 %v10222_v20, %v20420_v1  ;;  %v20469_v8 = vand.u32 4294901760, %v10218_v19 }
 0x9cf   : > { %10357 = vmatpush.msrb.mxu2 %v20280_v40  ;;  %v10786_v15 = vmul.f32 %v10771_v60, %v23457_v48  ;;  %10430 = vmatpush.msra.mxu0 %v10311_v29  ;;  %v23462_v29 = vld [vmem:[#allocation71_spill] sm:$0xff]  ;;  %v10782_v21 = vmul.f32 %v10769_v10, %v23457_v48  ;;  %v10179_v24 = vsel %vm3422_vm8, %v23465_v39, %v23464_v55  ;;  %v22846_v56 = vand.u32 4294901760, %v20445_v18 }
 0x9d0   : > { %10379 = vmatpush.msrb.mxu3 %v20180_v23  ;;  %10463 = vmatpush.msra.mxu1 %v20261_v5  ;;  %v10784_v23 = vmul.f32 %v10770_v46, %v23457_v48  ;;  %v10214_v20 = vmul.f32 %v10180_v38, %v23449_v58  ;;  %v20480_v60 = vsub.f32 %v10220_v30, %v20437_v50  ;;  %v10767_v40 = vsel %vm4221_vm9, 0.0, %v23468_v32 }
 0x9d1   : > { %9005 = vperm.xlu0 %14183, %v9002_v34   ;;  %13451 = vrot.lane.b32.xlu2 %v23462_v29, %s14200_s17  ;;  %v20464_v17 = vand.u32 4294901760, %v10786_v15  ;;  %v10780_v34 = vmul.f32 %v10768_v52, %v23457_v48  ;;  %v10212_v46 = vmul.f32 %v10179_v24, %v23449_v58  ;;  %v20493_v30 = vand.u32 4294901760, %v10216_v16  ;;  %v20514_v52 = vpop.permute.xlu2 %11780 }
 0x9d2   : > { %10322 = vmatmul.f32.vlgmr.msrb.gmra.mxu1 %v20344_v63  ;;  %10478 = vmatpush.msra.mxu2 %v20393_v2  ;;  %v10513_v27 = vsub.f32 %v20423_v53, %v22847_v59  ;;  %v22849_v36 = vand.u32 4294901760, %v20461_v3  ;;  %v20501_v10 = vand.u32 4294901760, %v10782_v21  ;;  %v20509_v58 = vsub.f32 %v10218_v19, %v20469_v8  ;;  %23469 = vst [vmem:[#allocation50_spill] sm:$0xff] %v20514_v52 }
 0x9d3   : > { %10610 = vmatpush.msrb.mxu1 %v20393_v2  ;;  %10381 = vmatpush.msrb.mxu3 %v20200_v47  ;;  %v10765_v47 = vsel %vm4221_vm9, 0.0, %v23467_v22  ;;  %v20504_v42 = vsub.f32 %v10786_v15, %v20464_v17  ;;  %v20512_v38 = vand.u32 4294901760, %v10214_v20  ;;  %v10519_v15 = vsub.f32 %v20445_v18, %v22846_v56 }
 0x9d4   : > { %10434 = vmatpush.msra.mxu0 %v10317_v4  ;;  %10480 = vmatpush.msra.mxu2 %v20406_v11  ;;  %v20487_v4 = vand.u32 4294901760, %v10784_v23  ;;  %v10776_v39 = vmul.f32 %v10766_v44, %v23457_v48  ;;  %v10774_v19 = vmul.f32 %v10765_v47, %v23457_v48  ;;  %v10514_v56 = vand.u32 4294901760, %v10513_v27  ;;  %v20535_v59 = vpop.permute.xlu0 %12331 }
 0x9d5   : > { %10261 = vmatmul.f32.vlgmr.msrb.gmra.mxu0 %v20442_v14  ;;  %10612 = vmatpush.msrb.mxu1 %v20406_v11  ;;  %23470 = vst [vmem:[#allocation26_spill] sm:$0xff] %v20535_v59  ;;  %v20541_v44 = vsub.f32 %v10216_v16, %v20493_v30  ;;  %v20544_v47 = vsub.f32 %v10782_v21, %v20501_v10  ;;  %v10764_v13 = vsel %vm4221_vm9, 0.0, %v23471_v0  ;;  %v10520_v16 = vand.u32 4294901760, %v10519_v15 }
 0x9d6   : > { %10573 = vmatpush.msrb.mxu0 %v20423_v53  ;;  %10383 = vmatpush.msrb.mxu3 %v20218_v41  ;;  %v10778_v41 = vmul.f32 %v10767_v40, %v23457_v48  ;;  %v20525_v24 = vsub.f32 %v10784_v23, %v20487_v4  ;;  %v20527_v40 = vand.u32 4294901760, %v10780_v34  ;;  %v10525_v23 = vsub.f32 %v20461_v3, %v22849_v36 }
 0x9d7   : > { %10482 = vmatpush.msra.mxu2 %v20420_v1  ;;  %10614 = vmatpush.msrb.mxu1 %v20420_v1  ;;  %v23472_v21 = vand.u32 4294901760, %v20480_v60  ;;  %v20559_v55 = vsub.f32 %v10214_v20, %v20512_v38  ;;  %v20561_v0 = vand.u32 4294901760, %v10776_v39  ;;  %v10772_v15 = vmul.f32 %v10764_v13, %v23457_v48 }
 0x9d8   : > { %10576 = vmatpush.msrb.mxu0 %v20445_v18  ;;  %10385 = vmatpush.msrb.mxu3 %v20236_v7  ;;  %v20531_v7 = vand.u32 4294901760, %v10212_v46  ;;  %v20552_v27 = vand.u32 4294901760, %v10778_v41  ;;  %v20564_v59 = vsub.f32 %v10780_v34, %v20527_v40  ;;  %v23473_v34 = vand.u32 4294901760, %v20504_v42 }
 0x9d9   : > { %10360 = vmatmul.f32.vlgmr.msrb.gmra.mxu2 %v20359_v31  ;;  %10616 = vmatpush.msrb.mxu1 %v20437_v50  ;;  %v10531_v36 = vsub.f32 %v20480_v60, %v23472_v21  ;;  %v10526_v21 = vand.u32 4294901760, %v10525_v23  ;;  %v20584_v23 = vand.u32 4294901760, %v10774_v19  ;;  %v20598_v26 = vsub.f32 %v10776_v39, %v20561_v0 }
 0x9da   : > { %10484 = vmatpush.msra.mxu2 %v20437_v50  ;;  %10579 = vmatpush.msrb.mxu0 %v20461_v3  ;;  %v20572_v20 = vsub.f32 %v10212_v46, %v20531_v7  ;;  %v10837_v54 = vsub.f32 %v20504_v42, %v23473_v34  ;;  %v20587_v46 = vsub.f32 %v10778_v41, %v20552_v27  ;;  %v23475_v34 = vand.u32 4294901760, %v20525_v24 }
 0x9db   : > { %10387 = vmatpush.msrb.mxu3 %v20261_v5  ;;  %10618 = vmatpush.msrb.mxu1 %v20469_v8  ;;  %v20600_v41 = vand.u32 4294901760, %v10772_v15  ;;  %v23479_v29 = vand.u32 4294901760, %v20544_v47  ;;  %v23481_v28 = vand.u32 4294901760, %v20559_v55  ;;  %v23483_v12 = vand.u32 4294901760, %v20445_v18 }
 0x9dc   : > { %10391 = vmatmul.f32.vlgmr.msrb.gmra.mxu3 %v20384_v33  ;;  %10486 = vmatpush.msra.mxu2 %v20469_v8  ;;  %v10554_v52 = vand.u32 4294901760, %v20572_v20  ;;  %v10838_v39 = vand.u32 4294901760, %v10837_v54  ;;  %v10866_v54 = vand.u32 4294901760, %v20598_v26 }
 0x9dd   : > { %10515 = vmatpush.msra.mxu3 %v10514_v56  ;;  %10582 = vmatpush.msrb.mxu0 %v20480_v60  ;;  %v23474_v56 = vand.u32 4294901760, %v20509_v58 }
 0x9de   : > { %10488 = vmatpush.msra.mxu2 %v20493_v30  ;;  %10620 = vmatpush.msrb.mxu1 %v20493_v30 }
 0x9df   : > { %10521 = vmatpush.msra.mxu3 %v10520_v16  ;;  %10585 = vmatpush.msrb.mxu0 %v20509_v58  ;;  %v10537_v13 = vsub.f32 %v20509_v58, %v23474_v56  ;;  %v10532_v16 = vand.u32 4294901760, %v10531_v36  ;;  %v10843_v56 = vsub.f32 %v20525_v24, %v23475_v34  ;;  %v23477_v36 = vand.u32 4294901760, %v20541_v44 }
 0x9e0   : > { %10490 = vmatpush.msra.mxu2 %v20512_v38  ;;  %10622 = vmatpush.msrb.mxu1 %v20512_v38  ;;  %v23478_v34 = vand.u32 4294901760, %v20423_v53  ;;  %v10549_v53 = vsub.f32 %v20559_v55, %v23481_v28  ;;  %v10555_v28 = vsub.f32 %v20572_v20, %v10554_v52 }
 0x9e1   : > { %10527 = vmatpush.msra.mxu3 %v10526_v21  ;;  %10588 = vmatpush.msrb.mxu0 %v20541_v44  ;;  %v20602_v21 = vpop.permute.xlu2 %11770  ;;  %v10543_v5 = vsub.f32 %v20541_v44, %v23477_v36  ;;  %v10538_v48 = vand.u32 4294901760, %v10537_v13  ;;  %v20620_v36 = vpop.permute.xlu0 %11796  ;;  %v10844_v13 = vand.u32 4294901760, %v10843_v56  ;;  %v23484_v56 = vand.u32 4294901760, %v20461_v3 }
 0x9e2   : > { %10492 = vmatpush.msra.mxu2 %v20531_v7  ;;  %23476 = vst [vmem:[#allocation30_spill] sm:$0xff] %v20602_v21  ;;  %10624 = vmatpush.msrb.mxu1 %v20531_v7  ;;  %v10849_v21 = vsub.f32 %v20544_v47, %v23479_v29  ;;  %v23482_v29 = vand.u32 4294901760, %v20564_v59  ;;  %v10867_v3 = vsub.f32 %v20598_v26, %v10866_v54 }
 0x9e3   : > { %10533 = vmatpush.msra.mxu3 %v10532_v16  ;;  %10591 = vmatpush.msrb.mxu0 %v20559_v55  ;;  %v20616_v16 = vsub.f32 %v10774_v19, %v20584_v23  ;;  %23480 = vst [vmem:[#allocation70_spill] sm:$0xff] %v20620_v36  ;;  %v10544_v36 = vand.u32 4294901760, %v10543_v5  ;;  %v23486_v5 = vand.u32 4294901760, %v20480_v60 }
 0x9e4   : > { %10643 = vmatpush.msrb.mxu2 %v23478_v34  ;;  %10465 = vmatmul.f32.vlgmr.msra.gmra.mxu1 %v20344_v63  ;;  %v10855_v19 = vsub.f32 %v20564_v59, %v23482_v29  ;;  %v20630_v34 = vsub.f32 %v10772_v15, %v20600_v41  ;;  %v10550_v15 = vand.u32 4294901760, %v10549_v53  ;;  %v23487_v53 = vand.u32 4294901760, %v20509_v58 }
 0x9e5   : > { %10436 = vmatmul.f32.vlgmr.msra.gmra.mxu0 %v20344_v63  ;;  %10839 = vmatpush.msra.mxu1 %v10838_v39  ;;  %v23485_v39 = vand.u32 4294901760, %v20587_v46 }
 0x9e6   : > { %10539 = vmatpush.msra.mxu3 %v10538_v48  ;;  %10594 = vmatpush.msrb.mxu0 %v20572_v20  ;;  %v10850_v48 = vand.u32 4294901760, %v10849_v21  ;;  %v10856_v18 = vand.u32 4294901760, %v10855_v19  ;;  %v10556_v20 = vand.u32 4294901760, %v10555_v28  ;;  %v10878_v21 = vand.u32 4294901760, %v20630_v34 }
 0x9e7   : > { %10647 = vmatpush.msrb.mxu2 %v23483_v12  ;;  %10845 = vmatpush.msra.mxu1 %v10844_v13  ;;  %v10861_v29 = vsub.f32 %v20587_v46, %v23485_v39  ;;  %v10872_v12 = vand.u32 4294901760, %v20616_v16  ;;  %v23488_v19 = vand.u32 4294901760, %v20541_v44  ;;  %v10868_v28 = vand.u32 4294901760, %v10867_v3  ;;  %v14154_v44 = vld [vmem:[%s22658_s6 + $0xc] sm:$0x7] }
 0x9e8   : > { %10802 = vmatpush.msra.mxu0 %v20464_v17  ;;  %10545 = vmatpush.msra.mxu3 %v10544_v36  ;;  %v10879_v58 = vsub.f32 %v20630_v34, %v10878_v21  ;;  %v23494_v39 = vand.u32 4294901760, %v20525_v24 }
 0x9e9   : > { %10651 = vmatpush.msrb.mxu2 %v23484_v56  ;;  %10851 = vmatpush.msra.mxu1 %v10850_v48  ;;  %v20652_v36 = vpop.permute.xlu2 %11768  ;;  %v10862_v13 = vand.u32 4294901760, %v10861_v29  ;;  %v10873_v60 = vsub.f32 %v20616_v16, %v10872_v12  ;;  %v20663_v48 = vpop.permute.xlu0 %12329 }
 0x9ea   : > { %10804 = vmatpush.msra.mxu0 %v20487_v4  ;;  %10551 = vmatpush.msra.mxu3 %v10550_v15  ;;  %23489 = vst [vmem:[#allocation36_spill] sm:$0xff] %v20663_v48  ;;  %v10880_v15 = vand.u32 4294901760, %v10879_v58 }
 0x9eb   : > { %10655 = vmatpush.msrb.mxu2 %v23486_v5  ;;  %10857 = vmatpush.msra.mxu1 %v10856_v18  ;;  %v10874_v56 = vand.u32 4294901760, %v10873_v60  ;;  %v23497_v18 = vand.u32 4294901760, %v20544_v47 }
 0x9ec   : > { %10806 = vmatpush.msra.mxu0 %v20501_v10  ;;  %10557 = vmatpush.msra.mxu3 %v10556_v20  ;;  %v23499_v20 = vand.u32 4294901760, %v20564_v59 }
 0x9ed   : > { %10659 = vmatpush.msrb.mxu2 %v23487_v53  ;;  %10863 = vmatpush.msra.mxu1 %v10862_v13  ;;  %v23501_v53 = vand.u32 4294901760, %v20587_v46 }
 0x9ee   : > { %10686 = vmatpush.msrb.mxu3 %v20393_v2  ;;  %10808 = vmatpush.msra.mxu0 %v20527_v40  ;;  %v23490_v2 = vand.u32 4294901760, %v20559_v55 }
 0x9ef   : > { %10663 = vmatpush.msrb.mxu2 %v23488_v19  ;;  %10869 = vmatpush.msra.mxu1 %v10868_v28  ;;  %v23504_v19 = vld [vmem:[#allocation35_spill] sm:$0xff] }
 0x9f0   : > { %10688 = vmatpush.msrb.mxu3 %v20406_v11  ;;  %10810 = vmatpush.msra.mxu0 %v20552_v27  ;;  %v10791_v11 = vsel %vm9106_vm14, %v14154_v44, 0  ;;  %v23505_v28 = vld [vmem:[#allocation59_spill] sm:$0xff]  ;;  %v23507_v44 = vld [vmem:[#allocation10_spill] sm:$0xff] }
 0x9f1   : > { %10667 = vmatpush.msrb.mxu2 %v23490_v2  ;;  %10875 = vmatpush.msra.mxu1 %v10874_v56  ;;  %v10739_v55 = vpop.permute.xlu2 %10738  ;;  %v11283_v58 = vmul.f32 %v23505_v28, %v23504_v19  ;;  %v20770_v56 = vpop.permute.xlu1 %11778 }
 0x9f2   : > { %10690 = vmatpush.msrb.mxu3 %v20420_v1  ;;  %10812 = vmatpush.msra.mxu0 %v20561_v0  ;;  %v20685_v1 = vand.u32 4294901760, %v10791_v11  ;;  %v20879_v28 = vpop.f32.mrf.mxu0 }
 0x9f3   : > { %10498 = vmatmul.f32.vlgmr.msra.gmra.mxu2 %v20442_v14  ;;  %10881 = vmatpush.msra.mxu1 %v10880_v15  ;;  %v23492_v14 = vand.u32 4294901760, %v20504_v42  ;;  %v11281_v15 = vmul.f32 %v23507_v44, %v23504_v19 }
 0x9f4   : > { %10671 = vmatpush.msrb.mxu2 %v10554_v52  ;;  %10692 = vmatpush.msrb.mxu3 %v20437_v50  ;;  %v20691_v50 = vpop.permute.xlu0 %12912 }
 0x9f5   : > { %10814 = vmatpush.msra.mxu0 %v20584_v23  ;;  %10559 = vmatmul.f32.vlgmr.msra.gmra.mxu3 %v20344_v63  ;;  %23491 = vst [vmem:[#allocation66_spill] sm:$0xff] %v20691_v50  ;;  %v23555_v50 = vld [vmem:[#allocation11_spill] sm:$0xff] }
 0x9f6   : > { %10628 = vmatmul.f32.vlgmr.msrb.gmra.mxu1 %v20384_v33  ;;  %10897 = vmatpush.msra.mxu2 %v20504_v42  ;;  %v10747_v33 = vsel %vm4221_vm9, %v23454_v6, %v10739_v55  ;;  %v23495_v6 = vld [vmem:[#allocation28_spill] sm:$0xff]  ;;  %v23508_v55 = vld [vmem:[#allocation22_spill] sm:$0xff] }
 0x9f7   : > { %11010 = vmatpush.msrb.mxu1 %v20464_v17  ;;  %10694 = vmatpush.msrb.mxu3 %v20469_v8  ;;  %v20701_v8 = vsub.f32 %v10791_v11, %v20685_v1  ;;  %v10787_v42 = vmul.f32 %v10747_v33, %v23495_v6  ;;  %v11279_v33 = vmul.f32 %v23508_v55, %v23504_v19 }
 0x9f8   : > { %10816 = vmatpush.msra.mxu0 %v20600_v41  ;;  %10900 = vmatpush.msra.mxu2 %v20525_v24 }
 0x9f9   : > { %10597 = vmatmul.f32.vlgmr.msrb.gmra.mxu0 %v20359_v31  ;;  %11012 = vmatpush.msrb.mxu1 %v20487_v4  ;;  %v23493_v31 = vld [vmem:[#allocation40_spill] sm:$0xff]  ;;  %v20722_v24 = vand.u32 4294901760, %v20701_v8 }
 0x9fa   : > { %10967 = vmatpush.msrb.mxu0 %v23492_v14  ;;  %10696 = vmatpush.msrb.mxu3 %v20493_v30  ;;  %v10746_v52 = vsel %vm4221_vm9, %v23456_v35, %v23493_v31  ;;  %v23496_v30 = vld [vmem:[#allocation53_spill] sm:$0xff] }
 0x9fb   : > { %10903 = vmatpush.msra.mxu2 %v20544_v47  ;;  %11014 = vmatpush.msrb.mxu1 %v20501_v10  ;;  %v10745_v29 = vsel %vm4221_vm9, %v23459_v25, %v23496_v30  ;;  %v10785_v35 = vmul.f32 %v10746_v52, %v23495_v6  ;;  %v20730_v47 = vand.u32 4294901760, %v10787_v42 }
 0x9fc   : > { %10971 = vmatpush.msrb.mxu0 %v23494_v39  ;;  %10698 = vmatpush.msrb.mxu3 %v20512_v38  ;;  %v23498_v38 = vld [vmem:[#allocation49_spill] sm:$0xff]  ;;  %v10783_v25 = vmul.f32 %v10745_v29, %v23495_v6  ;;  %v23509_v39 = vld [vmem:[#allocation64_spill] sm:$0xff] }
 0x9fd   : > { %10673 = vmatmul.f32.vlgmr.msrb.gmra.mxu2 %v20344_v63  ;;  %11016 = vmatpush.msrb.mxu1 %v20527_v40  ;;  %v10744_v5 = vsel %vm4221_vm9, %v23463_v57, %v23498_v38  ;;  %v20738_v57 = vand.u32 4294901760, %v10785_v35  ;;  %v20755_v60 = vsub.f32 %v10787_v42, %v20730_v47  ;;  %v10773_v42 = vmul.f32 %v23509_v39, %v23495_v6 }
 0x9fe   : > { %10906 = vmatpush.msra.mxu2 %v20564_v59  ;;  %10975 = vmatpush.msrb.mxu0 %v23497_v18  ;;  %v10820_v59 = vsub.f32 %v20701_v8, %v20722_v24  ;;  %v20752_v13 = vand.u32 4294901760, %v10783_v25 }
 0x9ff   : > { %10700 = vmatpush.msrb.mxu3 %v20531_v7  ;;  %11018 = vmatpush.msrb.mxu1 %v20552_v27  ;;  %v10781_v7 = vmul.f32 %v10744_v5, %v23495_v6 }
 0xa00   : > { %10702 = vmatmul.f32.vlgmr.msrb.gmra.mxu3 %v20344_v63  ;;  %10909 = vmatpush.msra.mxu2 %v20587_v46  ;;  %v23500_v63 = vld [vmem:[#allocation68_spill] sm:$0xff] }
 0xa01   : > { %10934 = vmatpush.msra.mxu3 %v20464_v17  ;;  %10979 = vmatpush.msrb.mxu0 %v23499_v20  ;;  %v10743_v3 = vsel %vm4221_vm9, %v23468_v32, %v23500_v63  ;;  %v20746_v17 = vpop.permute.xlu0 %12910  ;;  %v23503_v32 = vld [vmem:[#allocation29_spill] sm:$0xff]  ;;  %v20768_v2 = vand.u32 4294901760, %v10781_v7  ;;  %v20857_v63 = vand.u32 4294901760, %v10773_v42 }
 0xa02   : > { %10912 = vmatpush.msra.mxu2 %v20598_v26  ;;  %23502 = vst [vmem:[#allocation45_spill] sm:$0xff] %v20746_v17  ;;  %11020 = vmatpush.msrb.mxu1 %v20561_v0  ;;  %v10779_v46 = vmul.f32 %v10743_v3, %v23495_v6  ;;  %v20775_v26 = vand.u32 4294901760, %v10820_v59  ;;  %v20859_v3 = vpop.permute.xlu1 %11776 }
 0xa03   : > { %10936 = vmatpush.msra.mxu3 %v20487_v4  ;;  %10983 = vmatpush.msrb.mxu0 %v23501_v53  ;;  %v10742_v4 = vsel %vm4221_vm9, %v23466_v49, %v23503_v32  ;;  %v20778_v49 = vsub.f32 %v10785_v35, %v20738_v57  ;;  %23511 = vst [vmem:[#allocation21_spill] sm:$0xff] %v20859_v3 }
 0xa04   : > { %10915 = vmatpush.msra.mxu2 %v20616_v16  ;;  %11022 = vmatpush.msrb.mxu1 %v20584_v23  ;;  %v11073_v16 = vand.u32 4294901760, %v20755_v60  ;;  %v20794_v11 = vand.u32 4294901760, %v10779_v46 }
 0xa05   : > { %10938 = vmatpush.msra.mxu3 %v20501_v10  ;;  %10987 = vmatpush.msrb.mxu0 %v10866_v54  ;;  %v23506_v10 = vld [vmem:[#allocation58_spill] sm:$0xff]  ;;  %v22861_v31 = vand.u32 4294901760, %v20778_v49 }
 0xa06   : > { %10918 = vmatpush.msra.mxu2 %v20630_v34  ;;  %v10741_v54 = vsel %vm4221_vm9, %v23467_v22, %v23506_v10  ;;  %11024 = vmatpush.msrb.mxu1 %v20600_v41  ;;  %v20799_v22 = vand.u32 4294901760, %v11283_v58  ;;  %v20812_v34 = vand.u32 4294901760, %v11281_v15  ;;  %v11074_v29 = vsub.f32 %v20755_v60, %v11073_v16 }
 0xa07   : > { %10940 = vmatpush.msra.mxu3 %v20527_v40  ;;  %10991 = vmatpush.msrb.mxu0 %v10872_v12  ;;  %v10777_v40 = vmul.f32 %v10742_v4, %v23495_v6  ;;  %v20792_v12 = vsub.f32 %v10783_v25, %v20752_v13  ;;  %v10775_v14 = vmul.f32 %v10741_v54, %v23495_v6 }
 0xa08   : > { %11039 = vmatpush.msrb.mxu2 %v20730_v47  ;;  %10883 = vmatmul.f32.vlgmr.msra.gmra.mxu1 %v20685_v1  ;;  %v20834_v6 = vsub.f32 %v11283_v58, %v20799_v22  ;;  %v11080_v38 = vsub.f32 %v20778_v49, %v22861_v31  ;;  %v11275_v25 = vmul.f32 %v19162_v62, %v23504_v19  ;;  %v11075_v62 = vand.u32 4294901760, %v11074_v29 }
 0xa09   : > { %10942 = vmatpush.msra.mxu3 %v20552_v27  ;;  %11171 = vmatpush.msra.mxu1 %v20730_v47  ;;  %v20807_v27 = vsub.f32 %v10781_v7, %v20768_v2  ;;  %v20816_v52 = vand.u32 4294901760, %v10777_v40  ;;  %v20822_v30 = vpop.permute.xlu0 %12900  ;;  %v22859_v18 = vand.u32 4294901760, %v20792_v12  ;;  %v20838_v35 = vand.u32 4294901760, %v10775_v14 }
 0xa0a   : > { %10995 = vmatpush.msrb.mxu0 %v10878_v21  ;;  %11041 = vmatpush.msrb.mxu2 %v20738_v57  ;;  %v11277_v21 = vmul.f32 %v23438_v51, %v23504_v19  ;;  %23510 = vst [vmem:[#allocation61_spill] sm:$0xff] %v20822_v30  ;;  %v20831_v51 = vsub.f32 %v10779_v46, %v20794_v11  ;;  %v11081_v46 = vand.u32 4294901760, %v11080_v38  ;;  %v20887_v54 = vand.u32 4294901760, %v11275_v25  ;;  %v20950_v31 = vpop.permute.xlu1 %11766 }
 0xa0b   : > { %10822 = vmatmul.f32.vlgmr.msra.gmra.mxu0 %v20775_v26  ;;  %11173 = vmatpush.msra.mxu1 %v20738_v57  ;;  %v22857_v5 = vand.u32 4294901760, %v20807_v27  ;;  %v20851_v20 = vsub.f32 %v11281_v15, %v20812_v34  ;;  %v11086_v53 = vsub.f32 %v20792_v12, %v22859_v18  ;;  %v20867_v59 = vsub.f32 %v10777_v40, %v20816_v52  ;;  %v20945_v18 = vpop.f32.mrf.mxu3 }
 0xa0c   : > { %11134 = vmatpush.msra.mxu0 %v20755_v60  ;;  %10944 = vmatpush.msra.mxu3 %v20561_v0  ;;  %v20836_v0 = vand.u32 4294901760, %v11279_v33  ;;  %v20853_v7 = vand.u32 4294901760, %v11277_v21  ;;  %v22856_v32 = vand.u32 4294901760, %v20831_v51  ;;  %v20885_v10 = vsub.f32 %v10775_v14, %v20838_v35 }
 0xa0d   : > { %11043 = vmatpush.msrb.mxu2 %v20752_v13  ;;  %11175 = vmatpush.msra.mxu1 %v20752_v13  ;;  %v11092_v58 = vsub.f32 %v20807_v27, %v22857_v5  ;;  %v22858_v44 = vand.u32 4294901760, %v20851_v20  ;;  %v11269_v40 = vmul.f32 %v23399_v37, %v23504_v19  ;;  %v11087_v55 = vand.u32 4294901760, %v11086_v53 }
 0xa0e   : > { %11137 = vmatpush.msra.mxu0 %v20778_v49  ;;  %10946 = vmatpush.msra.mxu3 %v20584_v23  ;;  %v11273_v23 = vmul.f32 %v19151_v61, %v23504_v19  ;;  %v22855_v61 = vand.u32 4294901760, %v20834_v6  ;;  %v20874_v4 = vsub.f32 %v11279_v33, %v20836_v0  ;;  %v20895_v15 = vsub.f32 %v11277_v21, %v20853_v7  ;;  %v20908_v21 = vpop.f32.mrf.mxu2 }
 0xa0f   : > { %10921 = vmatmul.f32.vlgmr.msra.gmra.mxu2 %v20701_v8  ;;  %11177 = vmatpush.msra.mxu1 %v20768_v2  ;;  %v20901_v33 = vsub.f32 %v10773_v42, %v20857_v63  ;;  %v22860_v14 = vand.u32 4294901760, %v20867_v59  ;;  %v11093_v38 = vand.u32 4294901760, %v11092_v58  ;;  %v20922_v53 = vsub.f32 %v11275_v25, %v20887_v54 }
 0xa10   : > { %11045 = vmatpush.msrb.mxu2 %v20768_v2  ;;  %11140 = vmatpush.msra.mxu0 %v20792_v12  ;;  %v20904_v39 = vand.u32 4294901760, %v11273_v23  ;;  %v11334_v37 = vsub.f32 %v20834_v6, %v22855_v61  ;;  %v22862_v42 = vand.u32 4294901760, %v20874_v4  ;;  %v22865_v61 = vand.u32 4294901760, %v20895_v15 }
 0xa11   : > { %10948 = vmatpush.msra.mxu3 %v20600_v41  ;;  %v11271_v41 = vmul.f32 %v19138_v43, %v23504_v19  ;;  %11179 = vmatpush.msra.mxu1 %v20794_v11  ;;  %v20891_v43 = vpop.f32.mrf.mxu1  ;;  %v11098_v19 = vsub.f32 %v20831_v51, %v22856_v32  ;;  %v20918_v29 = vpop.permute.xlu0 %12898  ;;  %v11104_v25 = vsub.f32 %v20867_v59, %v22860_v14  ;;  %v20940_v5 = vand.u32 4294901760, %v11269_v40 }
 0xa12   : > { %10952 = vmatmul.f32.vlgmr.msra.gmra.mxu3 %v20722_v24  ;;  %11047 = vmatpush.msrb.mxu2 %v20794_v11  ;;  %23512 = vst [vmem:[#allocation37_spill] sm:$0xff] %v20918_v29  ;;  %v20938_v32 = vsub.f32 %v11273_v23, %v20904_v39  ;;  %v11346_v14 = vsub.f32 %v20874_v4, %v22862_v42  ;;  %v22866_v60 = vand.u32 4294901760, %v20922_v53  ;;  %v23513_v42 = vand.u32 4294901760, %v20778_v49  ;;  %v20967_v29 = vpop.f32.mrf.mxu0 }
 0xa13   : > { %11076 = vmatpush.msrb.mxu3 %v11075_v62  ;;  %11143 = vmatpush.msra.mxu0 %v20807_v27  ;;  %v22864_v62 = vand.u32 4294901760, %v20885_v10  ;;  %v11105_v58 = vand.u32 4294901760, %v11104_v25 }
 0xa14   : > { %11049 = vmatpush.msrb.mxu2 %v20816_v52  ;;  %11181 = vmatpush.msra.mxu1 %v20816_v52 }
 0xa15   : > { %11082 = vmatpush.msrb.mxu3 %v11081_v46  ;;  %11146 = vmatpush.msra.mxu0 %v20831_v51  ;;  %v20924_v46 = vand.u32 4294901760, %v11271_v41  ;;  %v11110_v23 = vsub.f32 %v20885_v10, %v22864_v62  ;;  %v23514_v62 = vand.u32 4294901760, %v20901_v33 }
 0xa16   : > { %11051 = vmatpush.msrb.mxu2 %v20838_v35  ;;  %11183 = vmatpush.msra.mxu1 %v20838_v35  ;;  %v20979_v49 = vpop.f32.mrf.mxu2 }
 0xa17   : > { %11088 = vmatpush.msrb.mxu3 %v11087_v55  ;;  %11149 = vmatpush.msra.mxu0 %v20867_v59  ;;  %v11340_v55 = vsub.f32 %v20851_v20, %v22858_v44  ;;  %v11335_v44 = vand.u32 4294901760, %v11334_v37  ;;  %v11111_v25 = vand.u32 4294901760, %v11110_v23 }
 0xa18   : > { %11053 = vmatpush.msrb.mxu2 %v20857_v63  ;;  %11185 = vmatpush.msra.mxu1 %v20857_v63 }
 0xa19   : > { %11094 = vmatpush.msrb.mxu3 %v11093_v38  ;;  %11152 = vmatpush.msra.mxu0 %v20885_v10  ;;  %v11099_v38 = vand.u32 4294901760, %v11098_v19  ;;  %v11341_v37 = vand.u32 4294901760, %v11340_v55  ;;  %v11352_v19 = vsub.f32 %v20895_v15, %v22865_v61  ;;  %v20974_v55 = vsub.f32 %v11269_v40, %v20940_v5  ;;  %v20977_v61 = vpop.f32.mrf.mxu1 }
 0xa1a   : > { %11204 = vmatpush.msra.mxu2 %v11073_v16  ;;  %11026 = vmatmul.f32.vlgmr.msrb.gmra.mxu1 %v20685_v1  ;;  %v20959_v16 = vsub.f32 %v11271_v41, %v20924_v46  ;;  %v11116_v41 = vsub.f32 %v20901_v33, %v23514_v62  ;;  %v11358_v62 = vsub.f32 %v20922_v53, %v22866_v60  ;;  %v20997_v60 = vpop.f32.mrf.mxu3 }
 0xa1b   : > { %10997 = vmatmul.f32.vlgmr.msrb.gmra.mxu0 %v20685_v1  ;;  %11336 = vmatpush.msrb.mxu1 %v11335_v44  ;;  %v23517_v44 = vand.u32 4294901760, %v20807_v27 }
 0xa1c   : > { %11100 = vmatpush.msrb.mxu3 %v11099_v38  ;;  %11155 = vmatpush.msra.mxu0 %v20901_v33  ;;  %v11347_v38 = vand.u32 4294901760, %v11346_v14  ;;  %v11369_v40 = vand.u32 4294901760, %v20959_v16  ;;  %v20988_v14 = vpop.permute.xlu0 %12888 }
 0xa1d   : > { %11208 = vmatpush.msra.mxu2 %v23513_v42  ;;  %11342 = vmatpush.msrb.mxu1 %v11341_v37  ;;  %v23515_v42 = vand.u32 4294901760, %v20792_v12  ;;  %v11353_v37 = vand.u32 4294901760, %v11352_v19  ;;  %23516 = vst [vmem:[#allocation34_spill] sm:$0xff] %v20988_v14  ;;  %v23518_v12 = vand.u32 4294901760, %v20938_v32  ;;  %v23519_v19 = vand.u32 4294901760, %v20831_v51  ;;  %v23552_v14 = vld [vmem:[#allocation50_spill] sm:$0xff] }
 0xa1e   : > { %11299 = vmatpush.msrb.mxu0 %v20799_v22  ;;  %11106 = vmatpush.msrb.mxu3 %v11105_v58  ;;  %v11117_v58 = vand.u32 4294901760, %v11116_v41  ;;  %v11370_v27 = vsub.f32 %v20959_v16, %v11369_v40  ;;  %v21006_v41 = vpop.permute.xlu1 %12347  ;;  %v11801_v30 = vsel %vm5810_vm10, %v20770_v56, %v23552_v14 }
 0xa1f   : > { %11212 = vmatpush.msra.mxu2 %v23515_v42  ;;  %11348 = vmatpush.msrb.mxu1 %v11347_v38  ;;  %v11364_v23 = vsub.f32 %v20938_v32, %v23518_v12  ;;  %v11375_v42 = vand.u32 4294901760, %v20974_v55  ;;  %v11359_v38 = vand.u32 4294901760, %v11358_v62  ;;  %23520 = vst [vmem:[#allocation4_spill] sm:$0xff] %v21006_v41  ;;  %v21013_v62 = vpop.f32.mrf.mxu0  ;;  %v21026_v12 = vpop.f32.mrf.mxu2 }
 0xa20   : > { %11301 = vmatpush.msrb.mxu0 %v20812_v34  ;;  %11112 = vmatpush.msrb.mxu3 %v11111_v25  ;;  %23522 = vst [vmem:[#allocation7_spill] sm:$0xff] %v21013_v62 }
 0xa21   : > { %11216 = vmatpush.msra.mxu2 %v23517_v44  ;;  %11354 = vmatpush.msrb.mxu1 %v11353_v37  ;;  %v23521_v44 = vand.u32 4294901760, %v20867_v59  ;;  %v11365_v25 = vand.u32 4294901760, %v11364_v23  ;;  %v11376_v51 = vsub.f32 %v20974_v55, %v11375_v42  ;;  %v23524_v37 = vand.u32 4294901760, %v20885_v10  ;;  %v14155_v59 = vld [vmem:[%s22658_s6 + $0x10] sm:$0x7]  ;;  %23525 = vst [vmem:[#allocation57_spill] sm:$0xff] %v21026_v12 }
 0xa22   : > { %11303 = vmatpush.msrb.mxu0 %v20836_v0  ;;  %11118 = vmatpush.msrb.mxu3 %v11117_v58  ;;  %v11371_v58 = vand.u32 4294901760, %v11370_v27  ;;  %v23526_v23 = vand.u32 4294901760, %v20901_v33  ;;  %v11288_v10 = vsel %vm9106_vm14, %v14155_v59, 0  ;;  %v23530_v27 = vand.u32 4294901760, %v20834_v6  ;;  %v23557_v12 = vld [vmem:[#allocation60_spill] sm:$0xff] }
 0xa23   : > { %11220 = vmatpush.msra.mxu2 %v23519_v19  ;;  %11360 = vmatpush.msrb.mxu1 %v11359_v38 }
 0xa24   : > { %11247 = vmatpush.msra.mxu3 %v20730_v47  ;;  %11305 = vmatpush.msrb.mxu0 %v20853_v7  ;;  %v21017_v47 = vpop.f32.mrf.mxu1  ;;  %v21033_v19 = vpop.permute.xlu0 %13469 }
 0xa25   : > { %11224 = vmatpush.msra.mxu2 %v23521_v44  ;;  %23523 = vst [vmem:[#allocation56_spill] sm:$0xff] %v21017_v47  ;;  %11366 = vmatpush.msrb.mxu1 %v11365_v25 }
 0xa26   : > { %11249 = vmatpush.msra.mxu3 %v20738_v57  ;;  %11307 = vmatpush.msrb.mxu0 %v20887_v54  ;;  %v11377_v57 = vand.u32 4294901760, %v11376_v51  ;;  %23527 = vst [vmem:[#allocation51_spill] sm:$0xff] %v21033_v19  ;;  %v21046_v38 = vpop.permute.xlu1 %12345  ;;  %v23531_v51 = vand.u32 4294901760, %v20851_v20 }
 0xa27   : > { %11228 = vmatpush.msra.mxu2 %v23524_v37  ;;  %11372 = vmatpush.msrb.mxu1 %v11371_v58  ;;  %23529 = vst [vmem:[#allocation32_spill] sm:$0xff] %v21046_v38 }
 0xa28   : > { %11251 = vmatpush.msra.mxu3 %v20752_v13  ;;  %11309 = vmatpush.msrb.mxu0 %v20904_v39  ;;  %v21038_v13 = vpop.f32.mrf.mxu3 }
 0xa29   : > { %11059 = vmatmul.f32.vlgmr.msrb.gmra.mxu2 %v20775_v26  ;;  %11378 = vmatpush.msrb.mxu1 %v11377_v57  ;;  %23528 = vst [vmem:[#allocation65_spill] sm:$0xff] %v21038_v13  ;;  %v21042_v26 = vand.u32 4294901760, %v11288_v10  ;;  %v11800_v13 = vsel %vm5810_vm10, %v23555_v50, %v20859_v3 }
 0xa2a   : > { %11232 = vmatpush.msra.mxu2 %v23526_v23  ;;  %11253 = vmatpush.msra.mxu3 %v20768_v2  ;;  %v9701_v2 = vpop.f32.mrf.mxu0  ;;  %v9800_v44 = vpop.f32.mrf.mxu2 }
 0xa2b   : > { %11311 = vmatpush.msrb.mxu0 %v20924_v46  ;;  %11120 = vmatmul.f32.vlgmr.msrb.gmra.mxu3 %v20685_v1 }
 0xa2c   : > { %11189 = vmatmul.f32.vlgmr.msra.gmra.mxu1 %v20722_v24  ;;  %11394 = vmatpush.msrb.mxu2 %v20834_v6  ;;  %v9762_v33 = vpop.f32.mrf.mxu1  ;;  %v21069_v58 = vpop.permute.xlu0 %13467 }
 0xa2d   : > { %11507 = vmatpush.msra.mxu1 %v20799_v22  ;;  %11255 = vmatpush.msra.mxu3 %v20794_v11  ;;  %v9763_v24 = vadd.f32 %v9762_v33, %v9701_v2  ;;  %v21056_v11 = vsub.f32 %v11288_v10, %v21042_v26  ;;  %23534 = vst [vmem:[#allocation39_spill] sm:$0xff] %v21069_v58 }
 0xa2e   : > { %11313 = vmatpush.msrb.mxu0 %v20940_v5  ;;  %11397 = vmatpush.msrb.mxu2 %v20851_v20 }
 0xa2f   : > { %11158 = vmatmul.f32.vlgmr.msra.gmra.mxu0 %v20701_v8  ;;  %11509 = vmatpush.msra.mxu1 %v20812_v34  ;;  %v9801_v25 = vadd.f32 %v9800_v44, %v9763_v24  ;;  %v23532_v8 = vld [vmem:[#allocation23_spill] sm:$0xff]  ;;  %v21073_v20 = vand.u32 4294901760, %v21056_v11 }
 0xa30   : > { %11464 = vmatpush.msra.mxu0 %v23530_v27  ;;  %11257 = vmatpush.msra.mxu3 %v20816_v52  ;;  %v11284_v6 = vmul.f32 %v19365_v9, %v23532_v8  ;;  %v23533_v52 = vand.u32 4294901760, %v20874_v4  ;;  %v21092_v27 = vpop.permute.xlu1 %12335  ;;  %v23541_v44 = vld [vmem:[#allocation55_spill] sm:$0xff] }
 0xa31   : > { %11400 = vmatpush.msrb.mxu2 %v20874_v4  ;;  %11511 = vmatpush.msra.mxu1 %v20836_v0  ;;  %v23536_v4 = vand.u32 4294901760, %v20895_v15  ;;  %23539 = vst [vmem:[#allocation42_spill] sm:$0xff] %v21092_v27 }
 0xa32   : > { %11468 = vmatpush.msra.mxu0 %v23531_v51  ;;  %11259 = vmatpush.msra.mxu3 %v20838_v35  ;;  %v23535_v35 = vld [vmem:[#allocation41_spill] sm:$0xff]  ;;  %v9876_v9 = vpop.f32.mrf.mxu0  ;;  %v21082_v23 = vand.u32 4294901760, %v11284_v6  ;;  %v23542_v51 = vand.u32 4294901760, %v20922_v53 }
 0xa33   : > { %11234 = vmatmul.f32.vlgmr.msra.gmra.mxu2 %v20685_v1  ;;  %v9831_v37 = vpop.f32.mrf.mxu3  ;;  %11513 = vmatpush.msra.mxu1 %v20853_v7  ;;  %v11282_v59 = vmul.f32 %v23535_v35, %v23532_v8 }
 0xa34   : > { %11403 = vmatpush.msrb.mxu2 %v20895_v15  ;;  %11472 = vmatpush.msra.mxu0 %v23533_v52  ;;  %v9832_v57 = vadd.f32 %v9831_v37, %v9801_v25  ;;  %v9905_v33 = vpop.f32.mrf.mxu1  ;;  %v23540_v15 = vld [vmem:[#allocation70_spill] sm:$0xff]  ;;  %v11317_v52 = vsub.f32 %v21056_v11, %v21073_v20 }
 0xa35   : > { %11261 = vmatpush.msra.mxu3 %v20857_v63  ;;  %v23537_v63 = vld [vmem:[#allocation33_spill] sm:$0xff]  ;;  %11515 = vmatpush.msra.mxu1 %v20887_v54  ;;  %v11805_v25 = vsel %vm5810_vm10, %v23541_v44, %v23540_v15  ;;  %v21102_v37 = vand.u32 4294901760, %v11282_v59 }
 0xa36   : > { %11263 = vmatmul.f32.vlgmr.msra.gmra.mxu3 %v20685_v1  ;;  %11406 = vmatpush.msrb.mxu2 %v20922_v53  ;;  %v11280_v10 = vmul.f32 %v23537_v63, %v23532_v8  ;;  %v9877_v2 = vadd.f32 %v9876_v9, %v9832_v57  ;;  %v23538_v1 = vld [vmem:[#allocation3_spill] sm:$0xff]  ;;  %v23544_v57 = vld [vmem:[#allocation17_spill] sm:$0xff]  ;;  %v23545_v63 = vld [vmem:[#allocation54_spill] sm:$0xff] }
 0xa37   : > { %11431 = vmatpush.msrb.mxu3 %v20799_v22  ;;  %11476 = vmatpush.msra.mxu0 %v23536_v4  ;;  %v11278_v24 = vmul.f32 %v23538_v1, %v23532_v8  ;;  %v11272_v22 = vmul.f32 %v19270_v45, %v23532_v8  ;;  %v23543_v45 = vand.u32 4294901760, %v20938_v32  ;;  %v11276_v9 = vmul.f32 %v23544_v57, %v23532_v8  ;;  %v21118_v4 = vpop.permute.xlu2 %12351  ;;  %v23546_v1 = vld [vmem:[#allocation9_spill] sm:$0xff] }
 0xa38   : > { %11409 = vmatpush.msrb.mxu2 %v20938_v32  ;;  %v21104_v35 = vadd.f32 %v9905_v33, %v9877_v2  ;;  %11517 = vmatpush.msra.mxu1 %v20904_v39  ;;  %v21114_v53 = vand.u32 4294901760, %v11280_v10  ;;  %v11844_v2 = vmul.f32 %v11805_v25, %v23545_v63  ;;  %v21128_v32 = vand.u32 4294901760, %v11317_v52  ;;  %v23547_v25 = vld [vmem:[#allocation13_spill] sm:$0xff] }
 0xa39   : > { %11433 = vmatpush.msrb.mxu3 %v20812_v34  ;;  %11480 = vmatpush.msra.mxu0 %v23542_v51  ;;  %v21112_v34 = vsub.f32 %v11284_v6, %v21082_v23  ;;  %v21131_v6 = vsub.f32 %v11282_v59, %v21102_v37  ;;  %v21133_v33 = vand.u32 4294901760, %v11272_v22  ;;  %v11842_v44 = vmul.f32 %v23546_v1, %v23545_v63 }
 0xa3a   : > { %11412 = vmatpush.msrb.mxu2 %v20959_v16  ;;  %11519 = vmatpush.msra.mxu1 %v20924_v46  ;;  %v21141_v16 = vpop.permute.xlu0 %13479  ;;  %v21148_v59 = vand.u32 4294901760, %v11276_v9  ;;  %v21153_v1 = vand.u32 4294901760, %v11844_v2 }
 0xa3b   : > { %11435 = vmatpush.msrb.mxu3 %v20836_v0  ;;  %11484 = vmatpush.msra.mxu0 %v23543_v45  ;;  %v21123_v0 = vand.u32 4294901760, %v11278_v24  ;;  %23548 = vst [vmem:[#allocation12_spill] sm:$0xff] %v21141_v16  ;;  %v23549_v45 = vld [vmem:[#allocation8_spill] sm:$0xff]  ;;  %v21167_v19 = vsub.f32 %v11272_v22, %v21133_v33  ;;  %v23554_v22 = vand.u32 4294901760, %v21112_v34 }
 0xa3c   : > { %11415 = vmatpush.msrb.mxu2 %v20974_v55  ;;  %11521 = vmatpush.msra.mxu1 %v20940_v5  ;;  %v9938_v51 = vpop.f32.mrf.mxu2  ;;  %v11840_v57 = vmul.f32 %v23549_v45, %v23545_v63  ;;  %v23550_v45 = vld [vmem:[#allocation71_spill] sm:$0xff]  ;;  %v21169_v55 = vand.u32 4294901760, %v11842_v44 }
 0xa3d   : > { %11437 = vmatpush.msrb.mxu3 %v20853_v7  ;;  %11488 = vmatpush.msra.mxu0 %v11369_v40  ;;  %v11274_v7 = vmul.f32 %v23547_v25, %v23532_v8  ;;  %v21146_v40 = vsub.f32 %v11280_v10, %v21114_v53  ;;  %v21159_v25 = vsub.f32 %v11278_v24, %v21123_v0  ;;  %v10037_v10 = vpop.f32.mrf.mxu0 }
 0xa3e   : > { %11536 = vmatpush.msra.mxu2 %v21082_v23  ;;  %11380 = vmatmul.f32.vlgmr.msrb.gmra.mxu1 %v21042_v26  ;;  %v11270_v58 = vmul.f32 %v23550_v45, %v23532_v8  ;;  %v10068_v8 = vpop.f32.mrf.mxu1  ;;  %v21180_v45 = vpop.permute.xlu1 %12333  ;;  %v21191_v17 = vand.u32 4294901760, %v11840_v57  ;;  %v21211_v56 = vsub.f32 %v11842_v44, %v21169_v55 }
 0xa3f   : > { %11439 = vmatpush.msrb.mxu3 %v20887_v54  ;;  %11668 = vmatpush.msrb.mxu1 %v21082_v23  ;;  %v21178_v52 = vand.u32 4294901760, %v11274_v7  ;;  %23553 = vst [vmem:[#allocation43_spill] sm:$0xff] %v21180_v45  ;;  %v21218_v45 = vpop.permute.xlu2 %12349 }
 0xa40   : > { %11492 = vmatpush.msra.mxu0 %v11375_v42  ;;  %v9999_v54 = vpop.f32.mrf.mxu3  ;;  %11538 = vmatpush.msra.mxu2 %v21102_v37  ;;  %v23551_v42 = vld [vmem:[#allocation73_spill] sm:$0xff]  ;;  %v21208_v50 = vand.u32 4294901760, %v11270_v58  ;;  %23559 = vst [vmem:[#allocation44_spill] sm:$0xff] %v21218_v45  ;;  %v21233_v27 = vsub.f32 %v11840_v57, %v21191_v17 }
 0xa41   : > { %11319 = vmatmul.f32.vlgmr.msrb.gmra.mxu0 %v21128_v32  ;;  %v10000_v16 = vadd.f32 %v9999_v54, %v9938_v51  ;;  %v11838_v24 = vmul.f32 %v23551_v42, %v23545_v63  ;;  %11670 = vmatpush.msrb.mxu1 %v21102_v37  ;;  %v11571_v51 = vsub.f32 %v21112_v34, %v23554_v22  ;;  %v23558_v22 = vld [vmem:[#allocation30_spill] sm:$0xff] }
 0xa42   : > { %11631 = vmatpush.msrb.mxu0 %v21112_v34  ;;  %11441 = vmatpush.msrb.mxu3 %v20904_v39  ;;  %v21188_v54 = vsub.f32 %v11276_v9, %v21148_v59  ;;  %v21197_v39 = vsub.f32 %v11844_v2, %v21153_v1  ;;  %v11836_v9 = vmul.f32 %v11801_v30, %v23545_v63 }
 0xa43   : > { %11540 = vmatpush.msra.mxu2 %v21114_v53  ;;  %v10038_v42 = vadd.f32 %v10037_v10, %v10000_v16  ;;  %11672 = vmatpush.msrb.mxu1 %v21114_v53  ;;  %v23556_v16 = vand.u32 4294901760, %v21131_v6  ;;  %v21213_v48 = vand.u32 4294901760, %v11838_v24  ;;  %v11799_v30 = vsel %vm5810_vm10, %v23558_v22, %v23557_v12 }
 0xa44   : > { %11634 = vmatpush.msrb.mxu0 %v21131_v6  ;;  %11443 = vmatpush.msrb.mxu3 %v20924_v46  ;;  %v21223_v46 = vsub.f32 %v11274_v7, %v21178_v52  ;;  %v11572_v44 = vand.u32 4294901760, %v11571_v51  ;;  %v11798_v7 = vsel %vm5810_vm10, %v20950_v31, %v20652_v36  ;;  %v21244_v47 = vand.u32 4294901760, %v11836_v9 }
 0xa45   : > { %11418 = vmatmul.f32.vlgmr.msrb.gmra.mxu2 %v21056_v11  ;;  %v11577_v10 = vsub.f32 %v21131_v6, %v23556_v16  ;;  %v10069_v2 = vadd.f32 %v10068_v8, %v10038_v42  ;;  %v11834_v8 = vmul.f32 %v11800_v13, %v23545_v63  ;;  %11674 = vmatpush.msrb.mxu1 %v21123_v0  ;;  %v23560_v42 = vand.u32 4294901760, %v21146_v40  ;;  %v21247_v16 = vpop.permute.xlu0 %13457 }
 0xa46   : > { %11542 = vmatpush.msra.mxu2 %v21123_v0  ;;  %11637 = vmatpush.msrb.mxu0 %v21146_v40  ;;  %v11832_v57 = vmul.f32 %v11799_v30, %v23545_v63  ;;  %23562 = vst [vmem:[#allocation27_spill] sm:$0xff] %v21247_v16  ;;  %v21251_v38 = vsub.f32 %v11838_v24, %v21213_v48  ;;  %v21279_v16 = vpop.permute.xlu1 %12916 }
 0xa47   : > { %11445 = vmatpush.msrb.mxu3 %v20940_v5  ;;  %v11583_v22 = vsub.f32 %v21146_v40, %v23560_v42  ;;  %v23561_v5 = vand.u32 4294901760, %v21159_v25  ;;  %v10113_v42 = vpop.f32.mrf.mxu2  ;;  %v11578_v31 = vand.u32 4294901760, %v11577_v10  ;;  %11676 = vmatpush.msrb.mxu1 %v21148_v59  ;;  %v21259_v30 = vand.u32 4294901760, %v11834_v8  ;;  %23565 = vst [vmem:[#allocation19_spill] sm:$0xff] %v21279_v16 }
 0xa48   : > { %11449 = vmatmul.f32.vlgmr.msrb.gmra.mxu3 %v21073_v20  ;;  %11544 = vmatpush.msra.mxu2 %v21148_v59  ;;  %v10114_v13 = vadd.f32 %v10113_v42, %v10069_v2  ;;  %v23563_v2 = vand.u32 4294901760, %v21197_v39  ;;  %v23564_v42 = vand.u32 4294901760, %v21188_v54  ;;  %v21277_v24 = vand.u32 4294901760, %v11832_v57 }
 0xa49   : > { %v11589_v51 = vsub.f32 %v21159_v25, %v23561_v5  ;;  %11573 = vmatpush.msra.mxu3 %v11572_v44  ;;  %11640 = vmatpush.msrb.mxu0 %v21159_v25  ;;  %v21256_v5 = vsub.f32 %v11270_v58, %v21208_v50  ;;  %v11830_v44 = vmul.f32 %v11798_v7, %v23545_v63  ;;  %v11584_v10 = vand.u32 4294901760, %v11583_v22 }
 0xa4a   : > { %11546 = vmatpush.msra.mxu2 %v21178_v52  ;;  %11678 = vmatpush.msrb.mxu1 %v21178_v52  ;;  %v11895_v58 = vsub.f32 %v21197_v39, %v23563_v2  ;;  %v11595_v62 = vsub.f32 %v21188_v54, %v23564_v42  ;;  %v21275_v22 = vsub.f32 %v11836_v9, %v21244_v47  ;;  %v23567_v42 = vand.u32 4294901760, %v21211_v56 }
 0xa4b   : > { %11579 = vmatpush.msra.mxu3 %v11578_v31  ;;  %11643 = vmatpush.msrb.mxu0 %v21188_v54  ;;  %v11590_v2 = vand.u32 4294901760, %v11589_v51  ;;  %v21292_v16 = vsub.f32 %v11834_v8, %v21259_v30  ;;  %v23568_v51 = vand.u32 4294901760, %v21223_v46  ;;  %v23570_v63 = vand.u32 4294901760, %v21112_v34 }
 0xa4c   : > { %11548 = vmatpush.msra.mxu2 %v21133_v33  ;;  %v10142_v31 = vpop.f32.mrf.mxu3  ;;  %11680 = vmatpush.msrb.mxu1 %v21133_v33  ;;  %v11901_v7 = vsub.f32 %v21211_v56, %v23567_v42  ;;  %v21302_v42 = vpop.permute.xlu2 %12339  ;;  %v11896_v8 = vand.u32 4294901760, %v11895_v58  ;;  %v11596_v9 = vand.u32 4294901760, %v11595_v62  ;;  %v11918_v34 = vand.u32 4294901760, %v21275_v22 }
 0xa4d   : > { %11585 = vmatpush.msra.mxu3 %v11584_v10  ;;  %11646 = vmatpush.msrb.mxu0 %v21223_v46  ;;  %v21282_v41 = vadd.f32 %v10142_v31, %v10114_v13  ;;  %v21294_v10 = vand.u32 4294901760, %v11830_v44  ;;  %v9202_v13 = vadd.f32 %v20891_v43, %v20879_v28  ;;  %v11601_v31 = vsub.f32 %v21223_v46, %v23568_v51  ;;  %v21329_v3 = vpop.permute.xlu0 %13455 }
 0xa4e   : > { %11550 = vmatpush.msra.mxu2 %v21208_v50  ;;  %23569 = vst [vmem:[#allocation67_spill] sm:$0xff] %v21302_v42  ;;  %11682 = vmatpush.msrb.mxu1 %v21208_v50  ;;  %v21311_v43 = vsub.f32 %v11832_v57, %v21277_v24  ;;  %v11902_v62 = vand.u32 4294901760, %v11901_v7  ;;  %v23573_v58 = vand.u32 4294901760, %v21251_v38  ;;  %v23574_v57 = vand.u32 4294901760, %v21256_v5 }
 0xa4f   : > { %23566 = vst [vmem:[#allocation24_spill] sm:$0xff] %v21282_v41  ;;  %11591 = vmatpush.msra.mxu3 %v11590_v2  ;;  %11649 = vmatpush.msrb.mxu0 %v21167_v19  ;;  %v23571_v41 = vand.u32 4294901760, %v21233_v27  ;;  %v23572_v2 = vand.u32 4294901760, %v21167_v19  ;;  %v21326_v42 = vsub.f32 %v11830_v44, %v21294_v10  ;;  %v9240_v45 = vadd.f32 %v20908_v21, %v9202_v13 }
 0xa50   : > { %11701 = vmatpush.msrb.mxu2 %v23570_v63  ;;  %11523 = vmatmul.f32.vlgmr.msra.gmra.mxu1 %v21042_v26  ;;  %v11613_v63 = vsub.f32 %v21256_v5, %v23574_v57  ;;  %23575 = vst [vmem:[#allocation38_spill] sm:$0xff] %v21329_v3  ;;  %v11602_v7 = vand.u32 4294901760, %v11601_v31  ;;  %v10323_v57 = vpop.f32.mrf.mxu1  ;;  %v23577_v44 = vand.u32 4294901760, %v21146_v40  ;;  %v11919_v13 = vsub.f32 %v21275_v22, %v11918_v34 }
 0xa51   : > { %v11907_v28 = vsub.f32 %v21233_v27, %v23571_v41  ;;  %11494 = vmatmul.f32.vlgmr.msra.gmra.mxu0 %v21042_v26  ;;  %v11607_v51 = vsub.f32 %v21167_v19, %v23572_v2  ;;  %11897 = vmatpush.msra.mxu1 %v11896_v8  ;;  %v11913_v41 = vsub.f32 %v21251_v38, %v23573_v58  ;;  %v11924_v8 = vand.u32 4294901760, %v21292_v16 }
 0xa52   : > { %11597 = vmatpush.msra.mxu3 %v11596_v9  ;;  %11652 = vmatpush.msrb.mxu0 %v21256_v5  ;;  %v23576_v9 = vand.u32 4294901760, %v21131_v6  ;;  %v10262_v58 = vpop.f32.mrf.mxu0  ;;  %v11930_v6 = vand.u32 4294901760, %v21311_v43  ;;  %v23578_v40 = vand.u32 4294901760, %v21159_v25 }
 0xa53   : > { %11903 = vmatpush.msra.mxu1 %v11902_v62  ;;  %v11908_v2 = vand.u32 4294901760, %v11907_v28  ;;  %v11608_v21 = vand.u32 4294901760, %v11607_v51  ;;  %v10324_v31 = vadd.f32 %v10323_v57, %v10262_v58  ;;  %v21343_v62 = vpop.permute.xlu1 %12914  ;;  %v9271_v28 = vadd.f32 %v20945_v18, %v9240_v45  ;;  %11556 = vmatmul.f32.vlgmr.msra.gmra.mxu2 %v21128_v32 }
 0xa54   : > { %11705 = vmatpush.msrb.mxu2 %v23576_v9  ;;  %11860 = vmatpush.msra.mxu0 %v21153_v1  ;;  %v11914_v9 = vand.u32 4294901760, %v11913_v41  ;;  %v11614_v51 = vand.u32 4294901760, %v11613_v63  ;;  %v23579_v41 = vand.u32 4294901760, %v21188_v54  ;;  %v11931_v18 = vsub.f32 %v21311_v43, %v11930_v6  ;;  %v21358_v25 = vpop.permute.xlu2 %12337 }
 0xa55   : > { %11603 = vmatpush.msra.mxu3 %v11602_v7  ;;  %11909 = vmatpush.msra.mxu1 %v11908_v2  ;;  %v11925_v7 = vsub.f32 %v21292_v16, %v11924_v8  ;;  %v11920_v2 = vand.u32 4294901760, %v11919_v13  ;;  %v9316_v45 = vadd.f32 %v20967_v29, %v9271_v28  ;;  %v23580_v63 = vand.u32 4294901760, %v21223_v46  ;;  %v14156_v29 = vld [vmem:[%s22658_s6 + $0x14] sm:$0x7]  ;;  %v21375_v13 = vpop.permute.xlu0 %9005 }
 0xa56   : > { %11709 = vmatpush.msrb.mxu2 %v23577_v44  ;;  %11862 = vmatpush.msra.mxu0 %v21169_v55  ;;  %v11936_v44 = vand.u32 4294901760, %v21326_v42  ;;  %v23582_v28 = vand.u32 4294901760, %v21256_v5 }
 0xa57   : > { %11609 = vmatpush.msra.mxu3 %v11608_v21  ;;  %11915 = vmatpush.msra.mxu1 %v11914_v9  ;;  %v11926_v58 = vand.u32 4294901760, %v11925_v7  ;;  %v11932_v21 = vand.u32 4294901760, %v11931_v18 }
 0xa58   : > { %11713 = vmatpush.msrb.mxu2 %v23578_v40  ;;  %11864 = vmatpush.msra.mxu0 %v21191_v17  ;;  %v11937_v54 = vsub.f32 %v21326_v42, %v11936_v44 }
 0xa59   : > { %11615 = vmatpush.msra.mxu3 %v11614_v51  ;;  %11921 = vmatpush.msra.mxu1 %v11920_v2  ;;  %v23583_v51 = vld [vmem:[#allocation63_spill] sm:$0xff]  ;;  %v23584_v2 = vld [vmem:[#allocation14_spill] sm:$0xff] }
 0xa5a   : > { %11717 = vmatpush.msrb.mxu2 %v23579_v41  ;;  %11866 = vmatpush.msra.mxu0 %v21213_v48  ;;  %v11938_v9 = vand.u32 4294901760, %v11937_v54 }
 0xa5b   : > { %11744 = vmatpush.msrb.mxu3 %v21082_v23  ;;  %11927 = vmatpush.msra.mxu1 %v11926_v58  ;;  %v23581_v23 = vand.u32 4294901760, %v21167_v19  ;;  %v21387_v7 = vpop.permute.xlu1 %12904  ;;  %v23585_v58 = vld [vmem:[#allocation5_spill] sm:$0xff] }
 0xa5c   : > { %11721 = vmatpush.msrb.mxu2 %v23580_v63  ;;  %11868 = vmatpush.msra.mxu0 %v21244_v47  ;;  %v10361_v57 = vpop.f32.mrf.mxu2  ;;  %v11827_v54 = vsel %vm5810_vm10, %v23585_v58, 0.0  ;;  %v23597_v58 = vld [vmem:[#allocation7_spill] sm:$0xff] }
 0xa5d   : > { %11746 = vmatpush.msrb.mxu3 %v21102_v37  ;;  %v10362_v46 = vadd.f32 %v10361_v57, %v10324_v31  ;;  %v9345_v37 = vadd.f32 %v20977_v61, %v9316_v45  ;;  %11933 = vmatpush.msra.mxu1 %v11932_v21  ;;  %v11849_v31 = vsel %vm9106_vm14, %v14156_v29, 0  ;;  %v21398_v45 = vpop.permute.xlu2 %12327  ;;  %v11829_v57 = vsel %vm5810_vm10, %v23540_v15, 0.0 }
 0xa5e   : > { %11725 = vmatpush.msrb.mxu2 %v23581_v23  ;;  %11870 = vmatpush.msra.mxu0 %v21259_v30  ;;  %v23586_v23 = vand.u32 4294901760, %v21197_v39  ;;  %v23587_v21 = vand.u32 4294901760, %v21211_v56  ;;  %v11841_v15 = vmul.f32 %v11827_v54, %v23584_v2  ;;  %v11825_v29 = vsel %vm5810_vm10, %v23552_v14, 0.0 }
 0xa5f   : > { %11748 = vmatpush.msrb.mxu3 %v21114_v53  ;;  %v10392_v19 = vpop.f32.mrf.mxu3  ;;  %v11828_v53 = vsel %vm5810_vm10, %v23583_v51, 0.0  ;;  %v9584_v61 = vadd.f32 %v9345_v37, %v21375_v13  ;;  %11939 = vmatpush.msra.mxu1 %v11938_v9  ;;  %v23592_v51 = vld [vmem:[#allocation62_spill] sm:$0xff] }
 0xa60   : > { %11729 = vmatpush.msrb.mxu2 %v23582_v28  ;;  %v10393_v40 = vadd.f32 %v10392_v19, %v10362_v46  ;;  %11872 = vmatpush.msra.mxu0 %v21277_v24  ;;  %v11843_v18 = vmul.f32 %v11828_v53, %v23584_v2  ;;  %v23589_v46 = vld [vmem:[#allocation72_spill] sm:$0xff]  ;;  %v21447_v14 = vand.u32 4294901760, %v11841_v15  ;;  %v11837_v19 = vmul.f32 %v11825_v29, %v23584_v2 }
 0xa61   : > { %11750 = vmatpush.msrb.mxu3 %v21123_v0  ;;  %11686 = vmatmul.f32.vlgmr.msrb.gmra.mxu1 %v21073_v20  ;;  %v10466_v5 = vpop.f32.mrf.mxu1  ;;  %v21395_v0 = vand.u32 4294901760, %v11849_v31  ;;  %v10145_v63 = vadd.f32 %v21104_v35, %v9584_v61  ;;  %v12365_v53 = vsel %vm6609_vm11, %v21118_v4, %v23592_v51  ;;  %v9439_v61 = vadd.f32 %v20997_v60, %v20979_v49 }
 0xa62   : > { %11617 = vmatmul.f32.vlgmr.msra.gmra.mxu3 %v21042_v26  ;;  %v10437_v32 = vpop.f32.mrf.mxu0  ;;  %11955 = vmatpush.msra.mxu2 %v21197_v39  ;;  %v11845_v39 = vmul.f32 %v11829_v57, %v23584_v2  ;;  %v21487_v4 = vsub.f32 %v11841_v15, %v21447_v14  ;;  %v21489_v60 = vand.u32 4294901760, %v11837_v19 }
 0xa63   : > { %12068 = vmatpush.msrb.mxu1 %v21153_v1  ;;  %v10438_v41 = vadd.f32 %v10437_v32, %v10393_v40  ;;  %11752 = vmatpush.msrb.mxu3 %v21148_v59  ;;  %v21419_v59 = vand.u32 4294901760, %v11843_v18  ;;  %v21440_v37 = vpop.permute.xlu1 %12357  ;;  %v23591_v40 = vld [vmem:[#allocation48_spill] sm:$0xff]  ;;  %v9477_v54 = vadd.f32 %v23597_v58, %v9439_v61 }
 0xa64   : > { %11874 = vmatpush.msra.mxu0 %v21294_v10  ;;  %11958 = vmatpush.msra.mxu2 %v21211_v56  ;;  %v21449_v9 = vand.u32 4294901760, %v11845_v39  ;;  %v22875_v15 = vand.u32 4294901760, %v21487_v4 }
 0xa65   : > { %11655 = vmatmul.f32.vlgmr.msrb.gmra.mxu0 %v21056_v11  ;;  %v10467_v20 = vadd.f32 %v10466_v5, %v10438_v41  ;;  %12070 = vmatpush.msrb.mxu1 %v21169_v55  ;;  %v21415_v11 = vsub.f32 %v11849_v31, %v21395_v0  ;;  %v21455_v28 = vpop.permute.xlu2 %12908  ;;  %v11822_v31 = vsel %vm5810_vm10, %v20652_v36, 0.0  ;;  %v23596_v41 = vld [vmem:[#allocation4_spill] sm:$0xff] }
 0xa66   : > { %12025 = vmatpush.msrb.mxu0 %v23586_v23  ;;  %11754 = vmatpush.msrb.mxu3 %v21178_v52  ;;  %v23588_v52 = vand.u32 4294901760, %v21233_v27  ;;  %v21492_v49 = vmul.f32 %v11822_v31, %v23584_v2 }
 0xa67   : > { %11961 = vmatpush.msra.mxu2 %v21233_v27  ;;  %v21417_v35 = vadd.f32 %v10467_v20, %v10145_v63  ;;  %12072 = vmatpush.msrb.mxu1 %v21191_v17  ;;  %v21436_v56 = vand.u32 4294901760, %v21415_v11  ;;  %v21445_v27 = vsub.f32 %v11843_v18, %v21419_v59 }
 0xa68   : > { %12029 = vmatpush.msrb.mxu0 %v23587_v21  ;;  %11756 = vmatpush.msrb.mxu3 %v21133_v33  ;;  %v11826_v33 = vsel %vm5810_vm10, %v23589_v46, 0.0  ;;  %v21536_v29 = vand.u32 4294901760, %v21492_v49 }
 0xa69   : > { %11731 = vmatmul.f32.vlgmr.msrb.gmra.mxu2 %v21042_v26  ;;  %12074 = vmatpush.msrb.mxu1 %v21213_v48  ;;  %v22876_v36 = vand.u32 4294901760, %v21445_v27 }
 0xa6a   : > { %11964 = vmatpush.msra.mxu2 %v21251_v38  ;;  %12033 = vmatpush.msrb.mxu0 %v23588_v52 }
 0xa6b   : > { %11758 = vmatpush.msrb.mxu3 %v21208_v50  ;;  %v23590_v50 = vand.u32 4294901760, %v21251_v38  ;;  %12076 = vmatpush.msrb.mxu1 %v21244_v47  ;;  %v11878_v38 = vsub.f32 %v21415_v11, %v21436_v56  ;;  %v21519_v57 = vsub.f32 %v21445_v27, %v22876_v36 }
 0xa6c   : > { %11760 = vmatmul.f32.vlgmr.msrb.gmra.mxu3 %v21042_v26  ;;  %11967 = vmatpush.msra.mxu2 %v21275_v22  ;;  %v11839_v26 = vmul.f32 %v11826_v33, %v23584_v2  ;;  %v21481_v22 = vsub.f32 %v11845_v39, %v21449_v9  ;;  %v21546_v33 = vsub.f32 %v11837_v19, %v21489_v60 }
 0xa6d   : > { %11992 = vmatpush.msra.mxu3 %v21153_v1  ;;  %12037 = vmatpush.msrb.mxu0 %v23590_v50  ;;  %v12366_v1 = vsel %vm6609_vm11, %v23591_v40, %v21440_v37  ;;  %v21508_v63 = vand.u32 4294901760, %v11878_v38  ;;  %v21552_v40 = vpop.permute.xlu2 %12906 }
 0xa6e   : > { %11970 = vmatpush.msra.mxu2 %v21292_v16  ;;  %12078 = vmatpush.msrb.mxu1 %v21259_v30  ;;  %v22877_v21 = vand.u32 4294901760, %v21481_v22 }
 0xa6f   : > { %11994 = vmatpush.msra.mxu3 %v21169_v55  ;;  %12041 = vmatpush.msrb.mxu0 %v11918_v34  ;;  %v11823_v55 = vsel %vm5810_vm10, %v23557_v12, 0.0  ;;  %v23593_v34 = vld [vmem:[#allocation21_spill] sm:$0xff]  ;;  %v23594_v12 = vld [vmem:[#allocation18_spill] sm:$0xff] }
 0xa70   : > { %11973 = vmatpush.msra.mxu2 %v21311_v43  ;;  %v11824_v32 = vsel %vm5810_vm10, %v23593_v34, 0.0  ;;  %v12405_v5 = vmul.f32 %v12366_v1, %v23594_v12  ;;  %12080 = vmatpush.msrb.mxu1 %v21277_v24  ;;  %v12403_v16 = vmul.f32 %v12365_v53, %v23594_v12  ;;  %v21511_v20 = vmul.f32 %v11823_v55, %v23584_v2  ;;  %v23598_v43 = vld [vmem:[#allocation32_spill] sm:$0xff] }
 0xa71   : > { %11996 = vmatpush.msra.mxu3 %v21191_v17  ;;  %12045 = vmatpush.msrb.mxu0 %v11924_v8  ;;  %v21499_v17 = vand.u32 4294901760, %v11839_v26  ;;  %v23595_v8 = vld [vmem:[#allocation44_spill] sm:$0xff]  ;;  %v12132_v61 = vsub.f32 %v21481_v22, %v22877_v21  ;;  %v12144_v55 = vsub.f32 %v21487_v4, %v22875_v15  ;;  %v23605_v15 = vld [vmem:[#allocation26_spill] sm:$0xff] }
 0xa72   : > { %11976 = vmatpush.msra.mxu2 %v21326_v42  ;;  %v12364_v18 = vsel %vm6609_vm11, %v23596_v41, %v23595_v8  ;;  %12082 = vmatpush.msrb.mxu1 %v21294_v10  ;;  %v21530_v52 = vand.u32 4294901760, %v12405_v5  ;;  %v21538_v46 = vand.u32 4294901760, %v12403_v16  ;;  %v23600_v42 = vld [vmem:[#allocation20_spill] sm:$0xff]  ;;  %v21559_v53 = vand.u32 4294901760, %v21511_v20 }
 0xa73   : > { %11998 = vmatpush.msra.mxu3 %v21213_v48  ;;  %12049 = vmatpush.msrb.mxu0 %v11930_v6  ;;  %v11835_v48 = vmul.f32 %v11824_v32, %v23584_v2  ;;  %v23599_v6 = vld [vmem:[#allocation25_spill] sm:$0xff]  ;;  %v12401_v39 = vmul.f32 %v12364_v18, %v23594_v12  ;;  %v23602_v1 = vld [vmem:[#allocation56_spill] sm:$0xff]  ;;  %v23603_v18 = vld [vmem:[#allocation42_spill] sm:$0xff]  ;;  %v12133_v36 = vand.u32 4294901760, %v12132_v61  ;;  %v12145_v21 = vand.u32 4294901760, %v12144_v55 }
 0xa74   : > { %12097 = vmatpush.msrb.mxu2 %v21449_v9  ;;  %v12363_v23 = vsel %vm6609_vm11, %v23599_v6, %v23598_v43  ;;  %11941 = vmatmul.f32.vlgmr.msra.gmra.mxu1 %v21395_v0  ;;  %v9508_v38 = vadd.f32 %v23602_v1, %v9477_v54  ;;  %v12361_v58 = vsel %vm6609_vm11, %v23603_v18, %v21358_v25  ;;  %v23604_v18 = vld [vmem:[#allocation43_spill] sm:$0xff]  ;;  %v23608_v55 = vld [vmem:[#allocation65_spill] sm:$0xff] }
 0xa75   : > { %12000 = vmatpush.msra.mxu3 %v21244_v47  ;;  %12229 = vmatpush.msra.mxu1 %v21449_v9  ;;  %v21543_v47 = vsub.f32 %v11839_v26, %v21499_v17  ;;  %v12399_v50 = vmul.f32 %v12363_v23, %v23594_v12  ;;  %v12139_v26 = vand.u32 4294901760, %v21519_v57  ;;  %v21561_v19 = vand.u32 4294901760, %v11835_v48 }
 0xa76   : > { %12053 = vmatpush.msrb.mxu0 %v11936_v44  ;;  %v10499_v2 = vpop.f32.mrf.mxu2  ;;  %12099 = vmatpush.msrb.mxu2 %v21419_v59  ;;  %v23601_v44 = vld [vmem:[#allocation67_spill] sm:$0xff]  ;;  %v10598_v32 = vpop.f32.mrf.mxu0  ;;  %v21571_v41 = vand.u32 4294901760, %v12401_v39  ;;  %v21582_v57 = vsub.f32 %v12403_v16, %v21538_v46 }
 0xa77   : > { %11880 = vmatmul.f32.vlgmr.msra.gmra.mxu0 %v21508_v63  ;;  %v12362_v31 = vsel %vm6609_vm11, %v23601_v44, %v23600_v42  ;;  %12231 = vmatpush.msra.mxu1 %v21419_v59  ;;  %v22878_v23 = vand.u32 4294901760, %v21543_v47  ;;  %v21589_v1 = vand.u32 4294901760, %v12399_v50  ;;  %v21601_v44 = vsub.f32 %v11835_v48, %v21561_v19 }
 0xa78   : > { %12192 = vmatpush.msra.mxu0 %v21481_v22  ;;  %12002 = vmatpush.msra.mxu3 %v21259_v30  ;;  %v10560_v34 = vpop.f32.mrf.mxu3  ;;  %v21577_v30 = vsub.f32 %v12405_v5, %v21530_v52  ;;  %v12397_v6 = vmul.f32 %v12362_v31, %v23594_v12  ;;  %v10629_v5 = vpop.f32.mrf.mxu1  ;;  %v12395_v31 = vmul.f32 %v12361_v58, %v23594_v12 }
 0xa79   : > { %12101 = vmatpush.msrb.mxu2 %v21447_v14  ;;  %12233 = vmatpush.msra.mxu1 %v21447_v14  ;;  %v10561_v54 = vadd.f32 %v10560_v34, %v10499_v2  ;;  %v12360_v2 = vsel %vm6609_vm11, %v23605_v15, %v23604_v18  ;;  %v23606_v34 = vld [vmem:[#allocation57_spill] sm:$0xff]  ;;  %v21604_v15 = vsub.f32 %v12401_v39, %v21571_v41 }
 0xa7a   : > { %12195 = vmatpush.msra.mxu0 %v21445_v27  ;;  %12004 = vmatpush.msra.mxu3 %v21277_v24  ;;  %v9553_v16 = vadd.f32 %v23606_v34, %v9508_v38  ;;  %v23607_v38 = vld [vmem:[#allocation36_spill] sm:$0xff]  ;;  %v12393_v61 = vmul.f32 %v12360_v2, %v23594_v12  ;;  %v12150_v48 = vsub.f32 %v21543_v47, %v22878_v23  ;;  %v23609_v23 = vand.u32 4294901760, %v21546_v33 }
 0xa7b   : > { %11979 = vmatmul.f32.vlgmr.msra.gmra.mxu2 %v21415_v11  ;;  %v10599_v24 = vadd.f32 %v10598_v32, %v10561_v54  ;;  %12235 = vmatpush.msra.mxu1 %v21499_v17  ;;  %v12359_v34 = vsel %vm6609_vm11, %v21398_v45, %v23607_v38  ;;  %v22879_v32 = vand.u32 4294901760, %v21577_v30  ;;  %v21621_v45 = vsub.f32 %v21511_v20, %v21559_v53 }
 0xa7c   : > { %12103 = vmatpush.msrb.mxu2 %v21499_v17  ;;  %12198 = vmatpush.msra.mxu0 %v21487_v4  ;;  %v21624_v39 = vsub.f32 %v12399_v50, %v21589_v1  ;;  %v9582_v54 = vadd.f32 %v23608_v55, %v9553_v16  ;;  %v12391_v20 = vmul.f32 %v12359_v34, %v23594_v12  ;;  %v23611_v50 = vld [vmem:[#allocation24_spill] sm:$0xff] }
 0xa7d   : > { %12006 = vmatpush.msra.mxu3 %v21294_v10  ;;  %v10630_v58 = vadd.f32 %v10629_v5, %v10599_v24  ;;  %v21612_v10 = vand.u32 4294901760, %v12397_v6  ;;  %12237 = vmatpush.msra.mxu1 %v21489_v60  ;;  %v21634_v24 = vand.u32 4294901760, %v12395_v31  ;;  %v12156_v12 = vsub.f32 %v21546_v33, %v23609_v23 }
 0xa7e   : > { %12010 = vmatmul.f32.vlgmr.msra.gmra.mxu3 %v21436_v56  ;;  %12105 = vmatpush.msrb.mxu2 %v21489_v60  ;;  %v9585_v55 = vadd.f32 %v9582_v54, %v21375_v13  ;;  %v21654_v13 = vpop.permute.xlu2 %12896  ;;  %v12151_v54 = vand.u32 4294901760, %v12150_v48  ;;  %v21668_v48 = vand.u32 4294901760, %v12391_v20 }
 0xa7f   : > { %12134 = vmatpush.msrb.mxu3 %v12133_v36  ;;  %12201 = vmatpush.msra.mxu0 %v21543_v47  ;;  %v21631_v36 = vsub.f32 %v21492_v49, %v21536_v29  ;;  %v12456_v49 = vsub.f32 %v21577_v30, %v22879_v32  ;;  %v21650_v34 = vsub.f32 %v12397_v6, %v21612_v10  ;;  %v23612_v6 = vand.u32 4294901760, %v21582_v57 }
 0xa80   : > { %12107 = vmatpush.msrb.mxu2 %v21561_v19  ;;  %v10674_v2 = vpop.f32.mrf.mxu2  ;;  %12239 = vmatpush.msra.mxu1 %v21561_v19  ;;  %23610 = vst [vmem:[#allocation16_spill] sm:$0xff] %v21654_v13  ;;  %v10146_v5 = vadd.f32 %v23611_v50, %v9585_v55  ;;  %v23613_v50 = vand.u32 4294901760, %v21601_v44 }
 0xa81   : > { %12140 = vmatpush.msrb.mxu3 %v12139_v26  ;;  %12204 = vmatpush.msra.mxu0 %v21546_v33  ;;  %v10675_v16 = vadd.f32 %v10674_v2, %v10630_v58  ;;  %v21652_v58 = vand.u32 4294901760, %v12393_v61  ;;  %v12462_v23 = vsub.f32 %v21582_v57, %v23612_v6  ;;  %v22881_v2 = vand.u32 4294901760, %v21631_v36 }
 0xa82   : > { %12109 = vmatpush.msrb.mxu2 %v21559_v53  ;;  %12241 = vmatpush.msra.mxu1 %v21559_v53  ;;  %v12162_v55 = vsub.f32 %v21601_v44, %v23613_v50  ;;  %v23614_v6 = vand.u32 4294901760, %v21481_v22  ;;  %v23616_v50 = vand.u32 4294901760, %v21621_v45 }
 0xa83   : > { %12146 = vmatpush.msrb.mxu3 %v12145_v21  ;;  %12207 = vmatpush.msra.mxu0 %v21601_v44  ;;  %v10703_v32 = vpop.f32.mrf.mxu3  ;;  %v21666_v21 = vsub.f32 %v12395_v31, %v21634_v24  ;;  %v23615_v31 = vand.u32 4294901760, %v21604_v15  ;;  %v21684_v13 = vsub.f32 %v12393_v61, %v21652_v58  ;;  %v21696_v61 = vsub.f32 %v12391_v20, %v21668_v48 }
 0xa84   : > { %12111 = vmatpush.msrb.mxu2 %v21536_v29  ;;  %v10704_v3 = vadd.f32 %v10703_v32, %v10675_v16  ;;  %12243 = vmatpush.msra.mxu1 %v21536_v29  ;;  %v12457_v32 = vand.u32 4294901760, %v12456_v49  ;;  %v12157_v16 = vand.u32 4294901760, %v12156_v12  ;;  %v12168_v22 = vsub.f32 %v21621_v45, %v23616_v50 }
 0xa85   : > { %12152 = vmatpush.msrb.mxu3 %v12151_v54  ;;  %12210 = vmatpush.msra.mxu0 %v21621_v45  ;;  %v12468_v26 = vsub.f32 %v21604_v15, %v23615_v31  ;;  %v12463_v12 = vand.u32 4294901760, %v12462_v23  ;;  %v12163_v31 = vand.u32 4294901760, %v12162_v55  ;;  %v12174_v50 = vsub.f32 %v21631_v36, %v22881_v2 }
 0xa86   : > { %12262 = vmatpush.msra.mxu2 %v23614_v6  ;;  %v21681_v54 = vadd.f32 %v10704_v3, %v10146_v5  ;;  %12084 = vmatmul.f32.vlgmr.msrb.gmra.mxu1 %v21395_v0  ;;  %v23617_v6 = vand.u32 4294901760, %v21624_v39  ;;  %v23618_v5 = vand.u32 4294901760, %v21445_v27  ;;  %v23619_v20 = vand.u32 4294901760, %v21487_v4 }
 0xa87   : > { %12055 = vmatmul.f32.vlgmr.msrb.gmra.mxu0 %v21395_v0  ;;  %12458 = vmatpush.msrb.mxu1 %v12457_v32  ;;  %v12469_v23 = vand.u32 4294901760, %v12468_v26  ;;  %v12169_v49 = vand.u32 4294901760, %v12168_v22  ;;  %v23620_v27 = vand.u32 4294901760, %v21650_v34  ;;  %v23621_v26 = vand.u32 4294901760, %v21543_v47 }
 0xa88   : > { %12158 = vmatpush.msrb.mxu3 %v12157_v16  ;;  %v12474_v3 = vsub.f32 %v21624_v39, %v23617_v6  ;;  %12213 = vmatpush.msra.mxu0 %v21631_v36  ;;  %v10823_v16 = vpop.f32.mrf.mxu0  ;;  %v10884_v6 = vpop.f32.mrf.mxu1  ;;  %v12175_v4 = vand.u32 4294901760, %v12174_v50  ;;  %v23622_v22 = vand.u32 4294901760, %v21666_v21 }
 0xa89   : > { %12266 = vmatpush.msra.mxu2 %v23618_v5  ;;  %12464 = vmatpush.msrb.mxu1 %v12463_v12  ;;  %v12480_v55 = vsub.f32 %v21650_v34, %v23620_v27  ;;  %v12491_v5 = vand.u32 4294901760, %v21684_v13  ;;  %v10885_v2 = vadd.f32 %v10884_v6, %v10823_v16  ;;  %v21713_v12 = vpop.permute.xlu2 %12894  ;;  %v23625_v16 = vand.u32 4294901760, %v21621_v45 }
 0xa8a   : > { %12421 = vmatpush.msrb.mxu0 %v21530_v52  ;;  %12164 = vmatpush.msrb.mxu3 %v12163_v31  ;;  %v12475_v32 = vand.u32 4294901760, %v12474_v3  ;;  %v12486_v31 = vsub.f32 %v21666_v21, %v23622_v22  ;;  %v12389_v22 = vsel %vm6609_vm11, %v23592_v51, 0.0  ;;  %v23628_v51 = vld [vmem:[#allocation6_spill] sm:$0xff] }
 0xa8b   : > { %12270 = vmatpush.msra.mxu2 %v23619_v20  ;;  %12470 = vmatpush.msrb.mxu1 %v12469_v23  ;;  %v12497_v20 = vand.u32 4294901760, %v21696_v61  ;;  %v23623_v23 = vand.u32 4294901760, %v21546_v33  ;;  %v12481_v3 = vand.u32 4294901760, %v12480_v55  ;;  %v12492_v47 = vsub.f32 %v21684_v13, %v12491_v5 }
 0xa8c   : > { %12423 = vmatpush.msrb.mxu0 %v21538_v46  ;;  %12170 = vmatpush.msrb.mxu3 %v12169_v49  ;;  %v23624_v49 = vand.u32 4294901760, %v21601_v44  ;;  %v12487_v50 = vand.u32 4294901760, %v12486_v31  ;;  %v14157_v44 = vld [vmem:[%s22658_s6 + $0x18] sm:$0x7]  ;;  %v23626_v55 = vand.u32 4294901760, %v21631_v36  ;;  %v12390_v31 = vsel %vm6609_vm11, %v21440_v37, 0.0 }
 0xa8d   : > { %12274 = vmatpush.msra.mxu2 %v23621_v26  ;;  %12476 = vmatpush.msrb.mxu1 %v12475_v32  ;;  %v12498_v32 = vsub.f32 %v21696_v61, %v12497_v20  ;;  %v12410_v45 = vsel %vm9106_vm14, %v14157_v44, 0  ;;  %v23629_v37 = vand.u32 4294901760, %v21582_v57 }
 0xa8e   : > { %12425 = vmatpush.msrb.mxu0 %v21571_v41  ;;  %12176 = vmatpush.msrb.mxu3 %v12175_v4  ;;  %v21755_v36 = vand.u32 4294901760, %v12410_v45 }
 0xa8f   : > { %12278 = vmatpush.msra.mxu2 %v23623_v23  ;;  %12482 = vmatpush.msrb.mxu1 %v12481_v3  ;;  %v23627_v23 = vand.u32 4294901760, %v21577_v30 }
 0xa90   : > { %12305 = vmatpush.msra.mxu3 %v21449_v9  ;;  %12427 = vmatpush.msrb.mxu0 %v21589_v1  ;;  %v12493_v9 = vand.u32 4294901760, %v12492_v47  ;;  %v12406_v47 = vmul.f32 %v12390_v31, %v23628_v51 }
 0xa91   : > { %12282 = vmatpush.msra.mxu2 %v23624_v49  ;;  %12488 = vmatpush.msrb.mxu1 %v12487_v50  ;;  %v21748_v4 = vpop.permute.xlu2 %13477  ;;  %v12387_v49 = vsel %vm6609_vm11, %v23598_v43, 0.0  ;;  %v12386_v50 = vsel %vm6609_vm11, %v23600_v42, 0.0  ;;  %v23632_v43 = vld [vmem:[#allocation19_spill] sm:$0xff]  ;;  %v23633_v42 = vand.u32 4294901760, %v21650_v34 }
 0xa92   : > { %12307 = vmatpush.msra.mxu3 %v21419_v59  ;;  %12429 = vmatpush.msrb.mxu0 %v21612_v10  ;;  %v10922_v33 = vpop.f32.mrf.mxu2  ;;  %v12499_v59 = vand.u32 4294901760, %v12498_v32  ;;  %v23631_v32 = vand.u32 4294901760, %v21624_v39 }
 0xa93   : > { %12286 = vmatpush.msra.mxu2 %v23625_v16  ;;  %v10923_v6 = vadd.f32 %v10922_v33, %v10885_v2  ;;  %12494 = vmatpush.msrb.mxu1 %v12493_v9  ;;  %v12388_v2 = vsel %vm6609_vm11, %v23595_v8, 0.0  ;;  %v12398_v16 = vmul.f32 %v12386_v50, %v23628_v51 }
 0xa94   : > { %12309 = vmatpush.msra.mxu3 %v21447_v14  ;;  %12431 = vmatpush.msrb.mxu0 %v21634_v24  ;;  %v12402_v3 = vmul.f32 %v12388_v2, %v23628_v51 }
 0xa95   : > { %12117 = vmatmul.f32.vlgmr.msrb.gmra.mxu2 %v21508_v63  ;;  %v10953_v27 = vpop.f32.mrf.mxu3  ;;  %12500 = vmatpush.msrb.mxu1 %v12499_v59 }
 0xa96   : > { %12290 = vmatpush.msra.mxu2 %v23626_v55  ;;  %12311 = vmatpush.msra.mxu3 %v21499_v17  ;;  %v10954_v26 = vadd.f32 %v10953_v27, %v10923_v6  ;;  %v12384_v27 = vsel %vm6609_vm11, %v23604_v18, 0.0  ;;  %v23636_v55 = vld [vmem:[#allocation31_spill] sm:$0xff] }
 0xa97   : > { %12433 = vmatpush.msrb.mxu0 %v21652_v58  ;;  %12178 = vmatmul.f32.vlgmr.msrb.gmra.mxu3 %v21395_v0  ;;  %v11027_v63 = vpop.f32.mrf.mxu1 }
 0xa98   : > { %12247 = vmatmul.f32.vlgmr.msra.gmra.mxu1 %v21436_v56  ;;  %v10998_v14 = vpop.f32.mrf.mxu0  ;;  %12516 = vmatpush.msrb.mxu2 %v21577_v30  ;;  %v12404_v30 = vmul.f32 %v12389_v22, %v23628_v51 }
 0xa99   : > { %12629 = vmatpush.msra.mxu1 %v21530_v52  ;;  %v10999_v17 = vadd.f32 %v10998_v14, %v10954_v26  ;;  %12313 = vmatpush.msra.mxu3 %v21489_v60  ;;  %v21770_v60 = vpop.permute.xlu1 %12902 }
 0xa9a   : > { %12435 = vmatpush.msrb.mxu0 %v21668_v48  ;;  %12519 = vmatpush.msrb.mxu2 %v21582_v57  ;;  %v21796_v57 = vand.u32 4294901760, %v12402_v3 }
 0xa9b   : > { %12216 = vmatmul.f32.vlgmr.msra.gmra.mxu0 %v21415_v11  ;;  %v11028_v56 = vadd.f32 %v11027_v63, %v10999_v17  ;;  %12631 = vmatpush.msra.mxu1 %v21538_v46  ;;  %v21775_v11 = vsub.f32 %v12410_v45, %v21755_v36  ;;  %v21862_v63 = vand.u32 4294901760, %v12398_v16  ;;  %v12383_v17 = vsel %vm6609_vm11, %v23607_v38, 0.0 }
 0xa9c   : > { %12586 = vmatpush.msra.mxu0 %v23627_v23  ;;  %12315 = vmatpush.msra.mxu3 %v21561_v19  ;;  %v21830_v9 = vsub.f32 %v12402_v3, %v21796_v57 }
 0xa9d   : > { %12522 = vmatpush.msrb.mxu2 %v21604_v15  ;;  %v21778_v8 = vadd.f32 %v11028_v56, %v21417_v35  ;;  %12633 = vmatpush.msra.mxu1 %v21571_v41  ;;  %v23630_v35 = vand.u32 4294901760, %v21604_v15  ;;  %v21794_v19 = vand.u32 4294901760, %v21775_v11  ;;  %v21804_v15 = vand.u32 4294901760, %v12404_v30 }
 0xa9e   : > { %12590 = vmatpush.msra.mxu0 %v23629_v37  ;;  %12317 = vmatpush.msra.mxu3 %v21559_v53  ;;  %v21800_v53 = vpop.permute.xlu2 %12918 }
 0xa9f   : > { %12292 = vmatmul.f32.vlgmr.msra.gmra.mxu2 %v21395_v0  ;;  %12635 = vmatpush.msra.mxu1 %v21589_v1  ;;  %v12927_v33 = vsel %vm7408_vm12, %v23632_v43, %v21800_v53  ;;  %v21844_v59 = vsub.f32 %v12404_v30, %v21804_v15 }
 0xaa0   : > { %12525 = vmatpush.msrb.mxu2 %v21624_v39  ;;  %12594 = vmatpush.msra.mxu0 %v23630_v35  ;;  %v12385_v39 = vsel %vm6609_vm11, %v21358_v25, 0.0  ;;  %v23635_v25 = vand.u32 4294901760, %v21666_v21  ;;  %v12966_v45 = vmul.f32 %v12927_v33, %v23636_v55  ;;  %v23640_v33 = vld [vmem:[#allocation16_spill] sm:$0xff] }
 0xaa1   : > { %12319 = vmatpush.msra.mxu3 %v21536_v29  ;;  %v21808_v29 = vand.u32 4294901760, %v12406_v47  ;;  %12637 = vmatpush.msra.mxu1 %v21612_v10  ;;  %v21838_v6 = vpop.permute.xlu1 %12892  ;;  %v12396_v26 = vmul.f32 %v12385_v39, %v23628_v51  ;;  %v12698_v38 = vand.u32 4294901760, %v21844_v59 }
 0xaa2   : > { %12321 = vmatmul.f32.vlgmr.msra.gmra.mxu3 %v21395_v0  ;;  %12528 = vmatpush.msrb.mxu2 %v21650_v34  ;;  %v12400_v0 = vmul.f32 %v12387_v49, %v23628_v51  ;;  %v21881_v22 = vand.u32 4294901760, %v12966_v45  ;;  %v21921_v49 = vsub.f32 %v12398_v16, %v21862_v63 }
 0xaa3   : > { %12553 = vmatpush.msrb.mxu3 %v21530_v52  ;;  %12598 = vmatpush.msra.mxu0 %v23631_v32  ;;  %v12439_v52 = vsub.f32 %v21775_v11, %v21794_v19  ;;  %v21836_v44 = vsub.f32 %v12406_v47, %v21808_v29  ;;  %v21886_v23 = vand.u32 4294901760, %v12396_v26  ;;  %v12699_v35 = vsub.f32 %v21844_v59, %v12698_v38 }
 0xaa4   : > { %12531 = vmatpush.msrb.mxu2 %v21666_v21  ;;  %12639 = vmatpush.msra.mxu1 %v21634_v24  ;;  %v21852_v14 = vand.u32 4294901760, %v12400_v0  ;;  %v21926_v43 = vsub.f32 %v12966_v45, %v21881_v22 }
 0xaa5   : > { %12555 = vmatpush.msrb.mxu3 %v21538_v46  ;;  %12602 = vmatpush.msra.mxu0 %v23633_v42  ;;  %v23634_v46 = vld [vmem:[#allocation66_spill] sm:$0xff]  ;;  %v21860_v18 = vand.u32 4294901760, %v12439_v52 }
 0xaa6   : > { %12534 = vmatpush.msrb.mxu2 %v21684_v13  ;;  %v12926_v34 = vsel %vm7408_vm12, %v23634_v46, %v21343_v62  ;;  %12641 = vmatpush.msra.mxu1 %v21652_v58  ;;  %v12924_v13 = vsel %vm7408_vm12, %v21387_v7, %v21552_v40  ;;  %v21889_v7 = vmul.f32 %v12383_v17, %v23628_v51 }
 0xaa7   : > { %12557 = vmatpush.msrb.mxu3 %v21571_v41  ;;  %12606 = vmatpush.msra.mxu0 %v23635_v25  ;;  %v23637_v41 = vld [vmem:[#allocation45_spill] sm:$0xff]  ;;  %v12964_v2 = vmul.f32 %v12926_v34, %v23636_v55  ;;  %v12960_v37 = vmul.f32 %v12924_v13, %v23636_v55  ;;  %v21942_v34 = vsub.f32 %v12396_v26, %v21886_v23 }
 0xaa8   : > { %12537 = vmatpush.msrb.mxu2 %v21696_v61  ;;  %v12925_v21 = vsel %vm7408_vm12, %v21455_v28, %v23637_v41  ;;  %12643 = vmatpush.msra.mxu1 %v21668_v48  ;;  %v22885_v28 = vand.u32 4294901760, %v21830_v9  ;;  %v23638_v61 = vld [vmem:[#allocation61_spill] sm:$0xff]  ;;  %v21934_v39 = vand.u32 4294901760, %v21889_v7  ;;  %v12921_v17 = vsel %vm7408_vm12, %v21838_v6, %v21713_v12 }
 0xaa9   : > { %12559 = vmatpush.msrb.mxu3 %v21589_v1  ;;  %12610 = vmatpush.msra.mxu0 %v12491_v5  ;;  %v21871_v1 = vmul.f32 %v12384_v27, %v23628_v51  ;;  %v12692_v5 = vand.u32 4294901760, %v21836_v44  ;;  %v12962_v56 = vmul.f32 %v12925_v21, %v23636_v55  ;;  %v21896_v3 = vand.u32 4294901760, %v12964_v2  ;;  %v21937_v46 = vpop.permute.xlu1 %12890  ;;  %v11190_v27 = vpop.f32.mrf.mxu1 }
 0xaaa   : > { %12658 = vmatpush.msra.mxu2 %v21808_v29  ;;  %12502 = vmatmul.f32.vlgmr.msrb.gmra.mxu1 %v21755_v36  ;;  %v21907_v51 = vsub.f32 %v21830_v9, %v22885_v28  ;;  %v21948_v21 = vand.u32 4294901760, %v12960_v37  ;;  %v22882_v6 = vand.u32 4294901760, %v21926_v43 }
 0xaab   : > { %12561 = vmatpush.msrb.mxu3 %v21612_v10  ;;  %12790 = vmatpush.msrb.mxu1 %v21808_v29  ;;  %v21894_v10 = vsub.f32 %v12400_v0, %v21852_v14  ;;  %v21910_v30 = vand.u32 4294901760, %v21871_v1  ;;  %v12693_v47 = vsub.f32 %v21836_v44, %v12692_v5  ;;  %v21923_v0 = vand.u32 4294901760, %v12962_v56 }
 0xaac   : > { %12614 = vmatpush.msra.mxu0 %v12497_v20  ;;  %v11060_v31 = vpop.f32.mrf.mxu2  ;;  %12660 = vmatpush.msra.mxu2 %v21804_v15  ;;  %v12923_v20 = vsel %vm7408_vm12, %v23638_v61, %v21770_v60  ;;  %v11159_v32 = vpop.f32.mrf.mxu0  ;;  %v21946_v45 = vsub.f32 %v12964_v2, %v21896_v3  ;;  %v12700_v2 = vand.u32 4294901760, %v12699_v35  ;;  %v21980_v35 = vsub.f32 %v12960_v37, %v21948_v21 }
 0xaad   : > { %12441 = vmatmul.f32.vlgmr.msrb.gmra.mxu0 %v21860_v18  ;;  %12792 = vmatpush.msrb.mxu1 %v21804_v15  ;;  %v12958_v16 = vmul.f32 %v12923_v20, %v23636_v55  ;;  %v22884_v25 = vand.u32 4294901760, %v21894_v10  ;;  %v12694_v13 = vand.u32 4294901760, %v12693_v47  ;;  %v21960_v61 = vsub.f32 %v12962_v56, %v21923_v0  ;;  %v23641_v20 = vld [vmem:[#allocation34_spill] sm:$0xff] }
 0xaae   : > { %12753 = vmatpush.msrb.mxu0 %v21836_v44  ;;  %12563 = vmatpush.msrb.mxu3 %v21634_v24  ;;  %v11121_v50 = vpop.f32.mrf.mxu3  ;;  %v23639_v24 = vld [vmem:[#allocation37_spill] sm:$0xff]  ;;  %v21977_v47 = vsub.f32 %v21871_v1, %v21910_v30  ;;  %v21993_v1 = vsub.f32 %v21889_v7, %v21934_v39 }
 0xaaf   : > { %12662 = vmatpush.msra.mxu2 %v21796_v57  ;;  %v12922_v42 = vsel %vm7408_vm12, %v23640_v33, %v23639_v24  ;;  %12794 = vmatpush.msrb.mxu1 %v21796_v57  ;;  %v11122_v52 = vadd.f32 %v11121_v50, %v11060_v31  ;;  %v22883_v31 = vand.u32 4294901760, %v21921_v49  ;;  %v12920_v50 = vsel %vm7408_vm12, %v23641_v20, %v21937_v46 }
 0xab0   : > { %12756 = vmatpush.msrb.mxu0 %v21844_v59  ;;  %12565 = vmatpush.msrb.mxu3 %v21652_v58  ;;  %v12956_v26 = vmul.f32 %v12922_v42, %v23636_v55  ;;  %v21968_v33 = vand.u32 4294901760, %v12958_v16  ;;  %v12711_v56 = vsub.f32 %v21894_v10, %v22884_v25  ;;  %v12706_v42 = vand.u32 4294901760, %v21907_v51 }
 0xab1   : > { %12540 = vmatmul.f32.vlgmr.msrb.gmra.mxu2 %v21775_v11  ;;  %v11160_v58 = vadd.f32 %v11159_v32, %v11122_v52  ;;  %12796 = vmatpush.msrb.mxu1 %v21852_v14  ;;  %v22886_v52 = vand.u32 4294901760, %v21946_v45  ;;  %v13017_v51 = vsub.f32 %v21926_v43, %v22882_v6  ;;  %v22890_v28 = vand.u32 4294901760, %v21993_v1 }
 0xab2   : > { %12664 = vmatpush.msra.mxu2 %v21852_v14  ;;  %12759 = vmatpush.msrb.mxu0 %v21830_v9  ;;  %v22005_v20 = vsub.f32 %v12958_v16, %v21968_v33  ;;  %v22887_v16 = vand.u32 4294901760, %v21980_v35 }
 0xab3   : > { %12567 = vmatpush.msrb.mxu3 %v21668_v48  ;;  %v11191_v32 = vadd.f32 %v11190_v27, %v11160_v58  ;;  %v12954_v48 = vmul.f32 %v12921_v17, %v23636_v55  ;;  %12798 = vmatpush.msrb.mxu1 %v21862_v63  ;;  %v12722_v27 = vand.u32 4294901760, %v21942_v34  ;;  %v21987_v58 = vand.u32 4294901760, %v12956_v26 }
 0xab4   : > { %12571 = vmatmul.f32.vlgmr.msrb.gmra.mxu3 %v21794_v19  ;;  %12666 = vmatpush.msra.mxu2 %v21862_v63  ;;  %v13023_v6 = vsub.f32 %v21946_v45, %v22886_v52 }
 0xab5   : > { %12695 = vmatpush.msra.mxu3 %v12694_v13  ;;  %12762 = vmatpush.msrb.mxu0 %v21894_v10  ;;  %v12952_v13 = vmul.f32 %v12920_v50, %v23636_v55  ;;  %v12717_v55 = vsub.f32 %v21921_v49, %v22883_v31  ;;  %v22007_v7 = vand.u32 4294901760, %v12954_v48  ;;  %v12712_v50 = vand.u32 4294901760, %v12711_v56 }
 0xab6   : > { %12668 = vmatpush.msra.mxu2 %v21886_v23  ;;  %v11235_v17 = vpop.f32.mrf.mxu2  ;;  %12800 = vmatpush.msrb.mxu1 %v21886_v23  ;;  %v22018_v25 = vsub.f32 %v12956_v26, %v21987_v58  ;;  %v12723_v56 = vsub.f32 %v21942_v34, %v12722_v27 }
 0xab7   : > { %12701 = vmatpush.msra.mxu3 %v12700_v2  ;;  %12765 = vmatpush.msrb.mxu0 %v21921_v49  ;;  %v11236_v37 = vadd.f32 %v11235_v17, %v11191_v32  ;;  %v22888_v2 = vand.u32 4294901760, %v21960_v61  ;;  %v22889_v32 = vand.u32 4294901760, %v21977_v47  ;;  %v22037_v52 = vsub.f32 %v12954_v48, %v22007_v7  ;;  %v22051_v48 = vpop.permute.xlu1 %13473 }
 0xab8   : > { %12670 = vmatpush.msra.mxu2 %v21910_v30  ;;  %12802 = vmatpush.msrb.mxu1 %v21910_v30 }
 0xab9   : > { %12707 = vmatpush.msra.mxu3 %v12706_v42  ;;  %12768 = vmatpush.msrb.mxu0 %v21942_v34  ;;  %v11264_v17 = vpop.f32.mrf.mxu3  ;;  %v22020_v42 = vand.u32 4294901760, %v12952_v13  ;;  %v13029_v26 = vsub.f32 %v21960_v61, %v22888_v2  ;;  %v12729_v44 = vsub.f32 %v21977_v47, %v22889_v32  ;;  %v22061_v2 = vpop.permute.xlu2 %13475  ;;  %v23642_v32 = vand.u32 4294901760, %v21830_v9  ;;  %v14158_v34 = vld [vmem:[%s22658_s6 + $0x1c] sm:$0x7] }
 0xaba   : > { %12672 = vmatpush.msra.mxu2 %v21934_v39  ;;  %v11265_v31 = vadd.f32 %v11264_v17, %v11236_v37  ;;  %12804 = vmatpush.msrb.mxu1 %v21934_v39  ;;  %v13018_v37 = vand.u32 4294901760, %v13017_v51  ;;  %v12718_v17 = vand.u32 4294901760, %v12717_v55  ;;  %v13024_v51 = vand.u32 4294901760, %v13023_v6 }
 0xabb   : > { %12713 = vmatpush.msra.mxu3 %v12712_v50  ;;  %12771 = vmatpush.msrb.mxu0 %v21977_v47  ;;  %v12724_v55 = vand.u32 4294901760, %v12723_v56  ;;  %v13046_v6 = vand.u32 4294901760, %v22018_v25  ;;  %v12730_v59 = vand.u32 4294901760, %v12729_v44  ;;  %v13052_v56 = vand.u32 4294901760, %v22037_v52 }
 0xabc   : > { %12823 = vmatpush.msrb.mxu2 %v12692_v5  ;;  %v22034_v50 = vadd.f32 %v11265_v31, %v21681_v54  ;;  %12645 = vmatmul.f32.vlgmr.msra.gmra.mxu1 %v21755_v36  ;;  %v13040_v5 = vand.u32 4294901760, %v22005_v20  ;;  %v13035_v54 = vsub.f32 %v21980_v35, %v22887_v16  ;;  %v22049_v31 = vsub.f32 %v12952_v13, %v22020_v42  ;;  %v11381_v16 = vpop.f32.mrf.mxu1 }
 0xabd   : > { %12616 = vmatmul.f32.vlgmr.msra.gmra.mxu0 %v21755_v36  ;;  %13019 = vmatpush.msra.mxu1 %v13018_v37  ;;  %v12735_v37 = vsub.f32 %v21993_v1, %v22890_v28  ;;  %v13047_v9 = vsub.f32 %v22018_v25, %v13046_v6 }
 0xabe   : > { %12719 = vmatpush.msra.mxu3 %v12718_v17  ;;  %12774 = vmatpush.msrb.mxu0 %v21993_v1  ;;  %v13030_v17 = vand.u32 4294901760, %v13029_v26  ;;  %v11320_v13 = vpop.f32.mrf.mxu0  ;;  %v13036_v26 = vand.u32 4294901760, %v13035_v54 }
 0xabf   : > { %12827 = vmatpush.msrb.mxu2 %v12698_v38  ;;  %13025 = vmatpush.msra.mxu1 %v13024_v51  ;;  %v13041_v38 = vsub.f32 %v22005_v20, %v13040_v5  ;;  %v11382_v28 = vadd.f32 %v11381_v16, %v11320_v13  ;;  %v23643_v51 = vand.u32 4294901760, %v21894_v10  ;;  %v23644_v16 = vand.u32 4294901760, %v21921_v49 }
 0xac0   : > { %12982 = vmatpush.msra.mxu0 %v21881_v22  ;;  %12725 = vmatpush.msra.mxu3 %v12724_v55  ;;  %v12736_v55 = vand.u32 4294901760, %v12735_v37  ;;  %v13053_v10 = vsub.f32 %v22037_v52, %v13052_v56  ;;  %v13048_v54 = vand.u32 4294901760, %v13047_v9  ;;  %v12950_v9 = vsel %vm7408_vm12, %v21343_v62, 0.0 }
 0xac1   : > { %12831 = vmatpush.msrb.mxu2 %v23642_v32  ;;  %13031 = vmatpush.msra.mxu1 %v13030_v17  ;;  %v13058_v32 = vand.u32 4294901760, %v22049_v31  ;;  %v13042_v44 = vand.u32 4294901760, %v13041_v38  ;;  %v22091_v17 = vpop.permute.xlu1 %13471  ;;  %v12949_v62 = vsel %vm7408_vm12, %v23637_v41, 0.0 }
 0xac2   : > { %12984 = vmatpush.msra.mxu0 %v21896_v3  ;;  %12731 = vmatpush.msra.mxu3 %v12730_v59  ;;  %v13054_v13 = vand.u32 4294901760, %v13053_v10  ;;  %v23649_v10 = vand.u32 4294901760, %v21946_v45 }
 0xac3   : > { %12835 = vmatpush.msrb.mxu2 %v23643_v51  ;;  %13037 = vmatpush.msra.mxu1 %v13036_v26  ;;  %v13059_v37 = vsub.f32 %v22049_v31, %v13058_v32  ;;  %v12971_v26 = vsel %vm9106_vm14, %v14158_v34, 0 }
 0xac4   : > { %12986 = vmatpush.msra.mxu0 %v21923_v0  ;;  %12737 = vmatpush.msra.mxu3 %v12736_v55  ;;  %v12951_v55 = vsel %vm7408_vm12, %v21800_v53, 0.0 }
 0xac5   : > { %12839 = vmatpush.msrb.mxu2 %v23644_v16  ;;  %13043 = vmatpush.msra.mxu1 %v13042_v44  ;;  %v13060_v59 = vand.u32 4294901760, %v13059_v37  ;;  %v23647_v16 = vand.u32 4294901760, %v21926_v43 }
 0xac6   : > { %12866 = vmatpush.msrb.mxu3 %v21808_v29  ;;  %12988 = vmatpush.msra.mxu0 %v21948_v21  ;;  %v23645_v29 = vand.u32 4294901760, %v21977_v47  ;;  %v23646_v47 = vand.u32 4294901760, %v21993_v1 }
 0xac7   : > { %12843 = vmatpush.msrb.mxu2 %v12722_v27  ;;  %13049 = vmatpush.msra.mxu1 %v13048_v54 }
 0xac8   : > { %12868 = vmatpush.msrb.mxu3 %v21804_v15  ;;  %12990 = vmatpush.msra.mxu0 %v21968_v33  ;;  %v11419_v49 = vpop.f32.mrf.mxu2  ;;  %v22100_v15 = vpop.permute.xlu2 %13465 }
 0xac9   : > { %12847 = vmatpush.msrb.mxu2 %v23645_v29  ;;  %v11420_v27 = vadd.f32 %v11419_v49, %v11382_v28  ;;  %13055 = vmatpush.msra.mxu1 %v13054_v13  ;;  %v22128_v44 = vpop.permute.xlu1 %13461  ;;  %v23651_v29 = vand.u32 4294901760, %v21980_v35  ;;  %v23652_v13 = vld [vmem:[#allocation12_spill] sm:$0xff] }
 0xaca   : > { %12870 = vmatpush.msrb.mxu3 %v21796_v57  ;;  %12992 = vmatpush.msra.mxu0 %v21987_v58 }
 0xacb   : > { %12678 = vmatmul.f32.vlgmr.msra.gmra.mxu2 %v21860_v18  ;;  %v11450_v38 = vpop.f32.mrf.mxu3  ;;  %13061 = vmatpush.msra.mxu1 %v13060_v59  ;;  %v22112_v18 = vand.u32 4294901760, %v12971_v26  ;;  %v23654_v59 = vld [vmem:[#allocation52_spill] sm:$0xff] }
 0xacc   : > { %12851 = vmatpush.msrb.mxu2 %v23646_v47  ;;  %12872 = vmatpush.msrb.mxu3 %v21852_v14  ;;  %v11451_v51 = vadd.f32 %v11450_v38, %v11420_v27  ;;  %v12948_v14 = vsel %vm7408_vm12, %v21552_v40, 0.0  ;;  %v23648_v40 = vld [vmem:[#allocation15_spill] sm:$0xff] }
 0xacd   : > { %12994 = vmatpush.msra.mxu0 %v22007_v7  ;;  %12739 = vmatmul.f32.vlgmr.msra.gmra.mxu3 %v21755_v36  ;;  %v11524_v28 = vpop.f32.mrf.mxu1  ;;  %v23653_v27 = vld [vmem:[#allocation51_spill] sm:$0xff] }
 0xace   : > { %12808 = vmatmul.f32.vlgmr.msrb.gmra.mxu1 %v21794_v19  ;;  %v11495_v57 = vpop.f32.mrf.mxu0  ;;  %13077 = vmatpush.msra.mxu2 %v21926_v43  ;;  %v12967_v43 = vmul.f32 %v12951_v55, %v23648_v40 }
 0xacf   : > { %13190 = vmatpush.msrb.mxu1 %v21881_v22  ;;  %v11496_v1 = vadd.f32 %v11495_v57, %v11451_v51  ;;  %12874 = vmatpush.msrb.mxu3 %v21862_v63  ;;  %v12961_v63 = vmul.f32 %v12948_v14, %v23648_v40 }
 0xad0   : > { %12996 = vmatpush.msra.mxu0 %v22020_v42  ;;  %13080 = vmatpush.msra.mxu2 %v21946_v45  ;;  %v22145_v54 = vpop.permute.xlu2 %13463  ;;  %v12963_v45 = vmul.f32 %v12949_v62, %v23648_v40  ;;  %v22160_v49 = vand.u32 4294901760, %v12967_v43 }
 0xad1   : > { %12777 = vmatmul.f32.vlgmr.msrb.gmra.mxu0 %v21775_v11  ;;  %v11525_v19 = vadd.f32 %v11524_v28, %v11496_v1  ;;  %13192 = vmatpush.msrb.mxu1 %v21896_v3  ;;  %v22133_v11 = vsub.f32 %v12971_v26, %v22112_v18  ;;  %v22152_v41 = vand.u32 4294901760, %v12961_v63  ;;  %v12945_v26 = vsel %vm7408_vm12, %v21713_v12, 0.0 }
 0xad2   : > { %13147 = vmatpush.msrb.mxu0 %v23647_v16  ;;  %12876 = vmatpush.msrb.mxu3 %v21886_v23  ;;  %v12965_v23 = vmul.f32 %v12950_v9, %v23648_v40  ;;  %v12955_v55 = vmul.f32 %v12945_v26, %v23648_v40  ;;  %v13484_v16 = vsel %vm8207_vm13, %v22128_v44, %v22145_v54 }
 0xad3   : > { %13083 = vmatpush.msra.mxu2 %v21960_v61  ;;  %v22136_v53 = vadd.f32 %v11525_v19, %v21778_v8  ;;  %13194 = vmatpush.msrb.mxu1 %v21923_v0  ;;  %v23650_v8 = vand.u32 4294901760, %v21960_v61  ;;  %v22158_v37 = vand.u32 4294901760, %v22133_v11  ;;  %v12947_v61 = vsel %vm7408_vm12, %v21770_v60, 0.0 }
 0xad4   : > { %13151 = vmatpush.msrb.mxu0 %v23649_v10  ;;  %12878 = vmatpush.msrb.mxu3 %v21910_v30  ;;  %v22164_v30 = vand.u32 4294901760, %v12965_v23  ;;  %v12959_v34 = vmul.f32 %v12947_v61, %v23648_v40  ;;  %v22284_v61 = vand.u32 4294901760, %v12955_v55 }
 0xad5   : > { %12853 = vmatmul.f32.vlgmr.msrb.gmra.mxu2 %v21755_v36  ;;  %13196 = vmatpush.msrb.mxu1 %v21948_v21  ;;  %v13000_v60 = vsub.f32 %v22133_v11, %v22158_v37 }
 0xad6   : > { %13086 = vmatpush.msra.mxu2 %v21980_v35  ;;  %13155 = vmatpush.msrb.mxu0 %v23650_v8  ;;  %v22187_v35 = vsub.f32 %v12967_v43, %v22160_v49  ;;  %v22224_v57 = vand.u32 4294901760, %v12959_v34 }
 0xad7   : > { %12880 = vmatpush.msrb.mxu3 %v21934_v39  ;;  %13198 = vmatpush.msrb.mxu1 %v21968_v33  ;;  %v22173_v39 = vand.u32 4294901760, %v12963_v45 }
 0xad8   : > { %12882 = vmatmul.f32.vlgmr.msrb.gmra.mxu3 %v21755_v36  ;;  %13089 = vmatpush.msra.mxu2 %v22005_v20  ;;  %v13488_v36 = vsel %vm8207_vm13, %v21748_v4, %v23652_v13  ;;  %v13487_v4 = vsel %vm8207_vm13, %v22051_v48, %v22061_v2  ;;  %v22197_v20 = vpop.permute.xlu1 %13459  ;;  %v13486_v48 = vsel %vm8207_vm13, %v23653_v27, %v22091_v17  ;;  %v13454_v47 = vpop.permute.xlu2 %13453  ;;  %v13253_v51 = vand.u32 4294901760, %v22187_v35  ;;  %v23657_v27 = vld [vmem:[#allocation38_spill] sm:$0xff] }
 0xad9   : > { %13114 = vmatpush.msra.mxu3 %v21881_v22  ;;  %13159 = vmatpush.msrb.mxu0 %v23651_v29  ;;  %v22184_v22 = vsub.f32 %v12961_v63, %v22152_v41  ;;  %v13527_v38 = vmul.f32 %v13488_v36, %v23654_v59  ;;  %v13523_v1 = vmul.f32 %v13486_v48, %v23654_v59 }
 0xada   : > { %13092 = vmatpush.msra.mxu2 %v22018_v25  ;;  %13200 = vmatpush.msrb.mxu1 %v21987_v58  ;;  %v22218_v25 = vsub.f32 %v12963_v45, %v22173_v39  ;;  %v22274_v44 = vsub.f32 %v12959_v34, %v22224_v57  ;;  %v13519_v36 = vmul.f32 %v13484_v16, %v23654_v59 }
 0xadb   : > { %13116 = vmatpush.msra.mxu3 %v21896_v3  ;;  %13163 = vmatpush.msrb.mxu0 %v13040_v5  ;;  %v12946_v3 = vsel %vm7408_vm12, %v23639_v24, 0.0  ;;  %v22203_v5 = vsub.f32 %v12965_v23, %v22164_v30  ;;  %v13525_v24 = vmul.f32 %v13487_v4, %v23654_v59  ;;  %v22238_v14 = vand.u32 4294901760, %v13527_v38 }
 0xadc   : > { %13095 = vmatpush.msra.mxu2 %v22037_v52  ;;  %13202 = vmatpush.msrb.mxu1 %v22007_v7  ;;  %v12957_v28 = vmul.f32 %v12946_v3, %v23648_v40  ;;  %v23655_v52 = vld [vmem:[#allocation39_spill] sm:$0xff]  ;;  %v22263_v63 = vand.u32 4294901760, %v13523_v1  ;;  %v13482_v48 = vsel %vm8207_vm13, %v13454_v47, %v23657_v27 }
 0xadd   : > { %13118 = vmatpush.msra.mxu3 %v21923_v0  ;;  %13167 = vmatpush.msrb.mxu0 %v13046_v6  ;;  %v22215_v0 = vand.u32 4294901760, %v13000_v60  ;;  %v22893_v6 = vand.u32 4294901760, %v22184_v22  ;;  %v13259_v12 = vand.u32 4294901760, %v22203_v5  ;;  %v22244_v19 = vand.u32 4294901760, %v13525_v24 }
 0xade   : > { %13098 = vmatpush.msra.mxu2 %v22049_v31  ;;  %13204 = vmatpush.msrb.mxu1 %v22020_v42  ;;  %v22254_v9 = vand.u32 4294901760, %v12957_v28  ;;  %v22277_v23 = vsub.f32 %v13527_v38, %v22238_v14  ;;  %v11687_v4 = vpop.f32.mrf.mxu1  ;;  %v22307_v26 = vsub.f32 %v13523_v1, %v22263_v63  ;;  %v22892_v1 = vand.u32 4294901760, %v22274_v44 }
 0xadf   : > { %13120 = vmatpush.msra.mxu3 %v21948_v21  ;;  %13171 = vmatpush.msrb.mxu0 %v13052_v56  ;;  %v12944_v21 = vsel %vm7408_vm12, %v21937_v46, 0.0  ;;  %v13485_v56 = vsel %vm8207_vm13, %v22100_v15, %v23655_v52  ;;  %v11557_v46 = vpop.f32.mrf.mxu2  ;;  %v22252_v15 = vsub.f32 %v22184_v22, %v22893_v6  ;;  %v13260_v62 = vsub.f32 %v22203_v5, %v13259_v12 }
 0xae0   : > { %13219 = vmatpush.msrb.mxu2 %v22160_v49  ;;  %13063 = vmatmul.f32.vlgmr.msra.gmra.mxu1 %v22112_v18  ;;  %v12953_v31 = vmul.f32 %v12944_v21, %v23648_v40  ;;  %v13254_v40 = vsub.f32 %v22187_v35, %v13253_v51  ;;  %v22287_v29 = vsub.f32 %v13525_v24, %v22244_v19  ;;  %v13450_v60 = vpop.permute.xlu1 %13449  ;;  %v22309_v21 = vpop.permute.xlu2 %13451 }
 0xae1   : > { %13122 = vmatpush.msra.mxu3 %v21968_v33  ;;  %13351 = vmatpush.msra.mxu1 %v22160_v49  ;;  %v13265_v33 = vand.u32 4294901760, %v22218_v25  ;;  %v22302_v38 = vsub.f32 %v12957_v28, %v22254_v9  ;;  %v13481_v28 = vsel %vm8207_vm13, %v13450_v60, %v22309_v21 }
 0xae2   : > { %13175 = vmatpush.msrb.mxu0 %v13058_v32  ;;  %13221 = vmatpush.msrb.mxu2 %v22164_v30  ;;  %v13521_v32 = vmul.f32 %v13485_v56, %v23654_v59  ;;  %v11656_v10 = vpop.f32.mrf.mxu0  ;;  %v22304_v24 = vand.u32 4294901760, %v12953_v31  ;;  %v13255_v47 = vand.u32 4294901760, %v13254_v40  ;;  %v22325_v40 = vsub.f32 %v12955_v55, %v22284_v61 }
 0xae3   : > { %13002 = vmatmul.f32.vlgmr.msra.gmra.mxu0 %v22215_v0  ;;  %13353 = vmatpush.msra.mxu1 %v22164_v30  ;;  %v13266_v34 = vsub.f32 %v22218_v25, %v13265_v33  ;;  %v13283_v60 = vand.u32 4294901760, %v22302_v38 }
 0xae4   : > { %13314 = vmatpush.msra.mxu0 %v22187_v35  ;;  %13124 = vmatpush.msra.mxu3 %v21987_v58  ;;  %v23656_v58 = vld [vmem:[#allocation27_spill] sm:$0xff]  ;;  %v22295_v3 = vand.u32 4294901760, %v13521_v32  ;;  %v22339_v55 = vsub.f32 %v12953_v31, %v22304_v24 }
 0xae5   : > { %13223 = vmatpush.msrb.mxu2 %v22173_v39  ;;  %v11618_v43 = vpop.f32.mrf.mxu3  ;;  %v13483_v8 = vsel %vm8207_vm13, %v23656_v58, %v22197_v20  ;;  %13355 = vmatpush.msra.mxu1 %v22173_v39 }
 0xae6   : > { %13317 = vmatpush.msra.mxu0 %v22203_v5  ;;  %v11619_v45 = vadd.f32 %v11618_v43, %v11557_v46  ;;  %13126 = vmatpush.msra.mxu3 %v22007_v7  ;;  %v13517_v56 = vmul.f32 %v13483_v8, %v23654_v59  ;;  %v22891_v46 = vand.u32 4294901760, %v22277_v23  ;;  %v22320_v43 = vand.u32 4294901760, %v13519_v36 }
 0xae7   : > { %13101 = vmatmul.f32.vlgmr.msra.gmra.mxu2 %v22133_v11  ;;  %13357 = vmatpush.msra.mxu1 %v22152_v41  ;;  %v22328_v58 = vsub.f32 %v13521_v32, %v22295_v3  ;;  %v13267_v8 = vand.u32 4294901760, %v13266_v34  ;;  %v13295_v6 = vand.u32 4294901760, %v22339_v55 }
 0xae8   : > { %13225 = vmatpush.msrb.mxu2 %v22152_v41  ;;  %13320 = vmatpush.msra.mxu0 %v22218_v25  ;;  %v11657_v7 = vadd.f32 %v11656_v10, %v11619_v45  ;;  %v13515_v10 = vmul.f32 %v13482_v48, %v23654_v59  ;;  %v22894_v45 = vand.u32 4294901760, %v22287_v29  ;;  %v22334_v48 = vand.u32 4294901760, %v13517_v56 }
 0xae9   : > { %13128 = vmatpush.msra.mxu3 %v22020_v42  ;;  %v13261_v42 = vand.u32 4294901760, %v13260_v62  ;;  %13359 = vmatpush.msra.mxu1 %v22224_v57  ;;  %v13513_v62 = vmul.f32 %v13481_v28, %v23654_v59  ;;  %v13578_v34 = vsub.f32 %v22277_v23, %v22891_v46  ;;  %v22896_v59 = vand.u32 4294901760, %v22307_v26 }
 0xaea   : > { %13132 = vmatmul.f32.vlgmr.msra.gmra.mxu3 %v22158_v37  ;;  %13227 = vmatpush.msrb.mxu2 %v22224_v57  ;;  %v11688_v16 = vadd.f32 %v11687_v4, %v11657_v7  ;;  %v13278_v7 = vsub.f32 %v22274_v44, %v22892_v1  ;;  %v22353_v31 = vand.u32 4294901760, %v13515_v10  ;;  %v13273_v28 = vand.u32 4294901760, %v22252_v15 }
 0xaeb   : > { %13256 = vmatpush.msrb.mxu3 %v13255_v47  ;;  %13323 = vmatpush.msra.mxu0 %v22184_v22  ;;  %v22351_v47 = vsub.f32 %v13519_v36, %v22320_v43  ;;  %v22895_v36 = vand.u32 4294901760, %v22328_v58  ;;  %v22367_v1 = vand.u32 4294901760, %v13513_v62  ;;  %v13284_v15 = vsub.f32 %v22302_v38, %v13283_v60 }
 0xaec   : > { %13229 = vmatpush.msrb.mxu2 %v22254_v9  ;;  %v11732_v4 = vpop.f32.mrf.mxu2  ;;  %13361 = vmatpush.msra.mxu1 %v22254_v9 }
 0xaed   : > { %13262 = vmatpush.msrb.mxu3 %v13261_v42  ;;  %13326 = vmatpush.msra.mxu0 %v22274_v44  ;;  %v11733_v32 = vadd.f32 %v11732_v4, %v11688_v16  ;;  %v13289_v16 = vand.u32 4294901760, %v22325_v40  ;;  %v13584_v4 = vsub.f32 %v22287_v29, %v22894_v45  ;;  %v22384_v45 = vsub.f32 %v13515_v10, %v22353_v31 }
 0xaee   : > { %13231 = vmatpush.msrb.mxu2 %v22284_v61  ;;  %13363 = vmatpush.msra.mxu1 %v22284_v61  ;;  %v13285_v10 = vand.u32 4294901760, %v13284_v15 }
 0xaef   : > { %13268 = vmatpush.msrb.mxu3 %v13267_v8  ;;  %13329 = vmatpush.msra.mxu0 %v22302_v38  ;;  %v11761_v42 = vpop.f32.mrf.mxu3  ;;  %v22365_v8 = vsub.f32 %v13517_v56, %v22334_v48  ;;  %v13590_v56 = vsub.f32 %v22307_v26, %v22896_v59  ;;  %v13290_v35 = vsub.f32 %v22325_v40, %v13289_v16  ;;  %v14159_v38 = vld [vmem:[%s22658_s6 + $0x20] sm:$0x7] }
 0xaf0   : > { %13233 = vmatpush.msrb.mxu2 %v22304_v24  ;;  %v11762_v46 = vadd.f32 %v11761_v42, %v11733_v32  ;;  %13365 = vmatpush.msra.mxu1 %v22304_v24  ;;  %v13579_v32 = vand.u32 4294901760, %v13578_v34  ;;  %v13279_v42 = vand.u32 4294901760, %v13278_v7  ;;  %v13585_v34 = vand.u32 4294901760, %v13584_v4 }
 0xaf1   : > { %13274 = vmatpush.msrb.mxu3 %v13273_v28  ;;  %13332 = vmatpush.msra.mxu0 %v22325_v40  ;;  %v13296_v7 = vsub.f32 %v22339_v55, %v13295_v6  ;;  %v13591_v4 = vand.u32 4294901760, %v13590_v56  ;;  %v23658_v56 = vand.u32 4294901760, %v22184_v22  ;;  %v13532_v40 = vsel %vm9106_vm14, %v14159_v38, 0 }
 0xaf2   : > { %13384 = vmatpush.msra.mxu2 %v13253_v51  ;;  %v22381_v28 = vadd.f32 %v11762_v46, %v22034_v50  ;;  %13206 = vmatmul.f32.vlgmr.msrb.gmra.mxu1 %v22112_v18  ;;  %v13601_v51 = vand.u32 4294901760, %v22351_v47  ;;  %v13596_v50 = vsub.f32 %v22328_v58, %v22895_v36  ;;  %v22396_v46 = vsub.f32 %v13513_v62, %v22367_v1  ;;  %v11942_v36 = vpop.f32.mrf.mxu1 }
 0xaf3   : > { %13177 = vmatmul.f32.vlgmr.msrb.gmra.mxu0 %v22112_v18  ;;  %13580 = vmatpush.msrb.mxu1 %v13579_v32  ;;  %v13607_v32 = vand.u32 4294901760, %v22365_v8  ;;  %v13291_v62 = vand.u32 4294901760, %v13290_v35 }
 0xaf4   : > { %13280 = vmatpush.msrb.mxu3 %v13279_v42  ;;  %13335 = vmatpush.msra.mxu0 %v22339_v55  ;;  %v11881_v42 = vpop.f32.mrf.mxu0  ;;  %v13602_v5 = vsub.f32 %v22351_v47, %v13601_v51  ;;  %v13597_v59 = vand.u32 4294901760, %v13596_v50  ;;  %v23660_v55 = vand.u32 4294901760, %v22277_v23 }
 0xaf5   : > { %13388 = vmatpush.msra.mxu2 %v13259_v12  ;;  %13586 = vmatpush.msrb.mxu1 %v13585_v34  ;;  %v13613_v12 = vand.u32 4294901760, %v22384_v45  ;;  %v11943_v15 = vadd.f32 %v11942_v36, %v11881_v42  ;;  %v13297_v34 = vand.u32 4294901760, %v13296_v7  ;;  %v13608_v25 = vsub.f32 %v22365_v8, %v13607_v32 }
 0xaf6   : > { %13543 = vmatpush.msrb.mxu0 %v22238_v14  ;;  %13286 = vmatpush.msrb.mxu3 %v13285_v10  ;;  %v23659_v36 = vand.u32 4294901760, %v22274_v44  ;;  %v13603_v35 = vand.u32 4294901760, %v13602_v5 }
 0xaf7   : > { %13392 = vmatpush.msra.mxu2 %v13265_v33  ;;  %13592 = vmatpush.msrb.mxu1 %v13591_v4  ;;  %v13619_v33 = vand.u32 4294901760, %v22396_v46  ;;  %v13614_v22 = vsub.f32 %v22384_v45, %v13613_v12  ;;  %v13609_v50 = vand.u32 4294901760, %v13608_v25  ;;  %v13511_v4 = vsel %vm8207_vm13, %v22061_v2, 0.0 }
 0xaf8   : > { %13545 = vmatpush.msrb.mxu0 %v22244_v19  ;;  %13292 = vmatpush.msrb.mxu3 %v13291_v62  ;;  %v23664_v62 = vand.u32 4294901760, %v22328_v58 }
 0xaf9   : > { %13396 = vmatpush.msra.mxu2 %v23658_v56  ;;  %13598 = vmatpush.msrb.mxu1 %v13597_v59  ;;  %v13620_v59 = vsub.f32 %v22396_v46, %v13619_v33 }
 0xafa   : > { %13547 = vmatpush.msrb.mxu0 %v22263_v63  ;;  %13298 = vmatpush.msrb.mxu3 %v13297_v34 }
 0xafb   : > { %13400 = vmatpush.msra.mxu2 %v23659_v36  ;;  %13604 = vmatpush.msrb.mxu1 %v13603_v35 }
 0xafc   : > { %13427 = vmatpush.msra.mxu3 %v22160_v49  ;;  %13549 = vmatpush.msrb.mxu0 %v22295_v3  ;;  %v13615_v49 = vand.u32 4294901760, %v13614_v22 }
 0xafd   : > { %13404 = vmatpush.msra.mxu2 %v13283_v60  ;;  %13610 = vmatpush.msrb.mxu1 %v13609_v50 }
 0xafe   : > { %13429 = vmatpush.msra.mxu3 %v22164_v30  ;;  %13551 = vmatpush.msrb.mxu0 %v22320_v43  ;;  %v11980_v44 = vpop.f32.mrf.mxu2  ;;  %v13621_v30 = vand.u32 4294901760, %v13620_v59 }
 0xaff   : > { %13408 = vmatpush.msra.mxu2 %v13289_v16  ;;  %v11981_v60 = vadd.f32 %v11980_v44, %v11943_v15  ;;  %13616 = vmatpush.msrb.mxu1 %v13615_v49 }
 0xb00   : > { %13431 = vmatpush.msra.mxu3 %v22173_v39  ;;  %13553 = vmatpush.msrb.mxu0 %v22334_v48 }
 0xb01   : > { %13239 = vmatmul.f32.vlgmr.msrb.gmra.mxu2 %v22215_v0  ;;  %v12011_v10 = vpop.f32.mrf.mxu3  ;;  %13622 = vmatpush.msrb.mxu1 %v13621_v30  ;;  %v22451_v0 = vand.u32 4294901760, %v13532_v40 }
 0xb02   : > { %13412 = vmatpush.msra.mxu2 %v13295_v6  ;;  %13433 = vmatpush.msra.mxu3 %v22152_v41  ;;  %v12012_v16 = vadd.f32 %v12011_v10, %v11981_v60 }
 0xb03   : > { %13555 = vmatpush.msrb.mxu0 %v22353_v31  ;;  %13300 = vmatmul.f32.vlgmr.msrb.gmra.mxu3 %v22112_v18  ;;  %v12085_v7 = vpop.f32.mrf.mxu1 }
 0xb04   : > { %13369 = vmatmul.f32.vlgmr.msra.gmra.mxu1 %v22158_v37  ;;  %v12056_v39 = vpop.f32.mrf.mxu0  ;;  %13638 = vmatpush.msrb.mxu2 %v22277_v23  ;;  %v13512_v37 = vsel %vm8207_vm13, %v23652_v13, 0.0  ;;  %v23661_v13 = vand.u32 4294901760, %v22287_v29  ;;  %v23662_v23 = vld [vmem:[#allocation47_spill] sm:$0xff] }
 0xb05   : > { %13751 = vmatpush.msra.mxu1 %v22238_v14  ;;  %v12057_v6 = vadd.f32 %v12056_v39, %v12012_v16  ;;  %13435 = vmatpush.msra.mxu3 %v22224_v57  ;;  %v22465_v57 = vsub.f32 %v13532_v40, %v22451_v0  ;;  %v13528_v42 = vmul.f32 %v13512_v37, %v23662_v23 }
 0xb06   : > { %13557 = vmatpush.msrb.mxu0 %v22367_v1  ;;  %13641 = vmatpush.msrb.mxu2 %v22287_v29  ;;  %v13526_v2 = vmul.f32 %v13511_v4, %v23662_v23 }
 0xb07   : > { %13338 = vmatmul.f32.vlgmr.msra.gmra.mxu0 %v22133_v11  ;;  %v12086_v41 = vadd.f32 %v12085_v7, %v12057_v6  ;;  %13753 = vmatpush.msra.mxu1 %v22244_v19  ;;  %v22487_v29 = vand.u32 4294901760, %v22465_v57 }
 0xb08   : > { %13708 = vmatpush.msra.mxu0 %v23660_v55  ;;  %13437 = vmatpush.msra.mxu3 %v22254_v9  ;;  %v13510_v9 = vsel %vm8207_vm13, %v22091_v17, 0.0 }
 0xb09   : > { %13644 = vmatpush.msrb.mxu2 %v22307_v26  ;;  %v22468_v11 = vadd.f32 %v12086_v41, %v22136_v53  ;;  %13755 = vmatpush.msra.mxu1 %v22263_v63  ;;  %v23663_v53 = vand.u32 4294901760, %v22307_v26  ;;  %v13524_v17 = vmul.f32 %v13510_v9, %v23662_v23  ;;  %v22494_v26 = vand.u32 4294901760, %v13528_v42 }
 0xb0a   : > { %13712 = vmatpush.msra.mxu0 %v23661_v13  ;;  %13439 = vmatpush.msra.mxu3 %v22284_v61  ;;  %v13509_v61 = vsel %vm8207_vm13, %v23655_v52, 0.0  ;;  %v22503_v52 = vand.u32 4294901760, %v13526_v2 }
 0xb0b   : > { %13414 = vmatmul.f32.vlgmr.msra.gmra.mxu2 %v22112_v18  ;;  %13757 = vmatpush.msra.mxu1 %v22295_v3  ;;  %v22516_v5 = vand.u32 4294901760, %v13524_v17  ;;  %v22519_v15 = vsub.f32 %v13528_v42, %v22494_v26 }
 0xb0c   : > { %13647 = vmatpush.msrb.mxu2 %v22328_v58  ;;  %13716 = vmatpush.msra.mxu0 %v23663_v53  ;;  %v13507_v58 = vsel %vm8207_vm13, %v22197_v20, 0.0 }
 0xb0d   : > { %13441 = vmatpush.msra.mxu3 %v22304_v24  ;;  %v13508_v24 = vsel %vm8207_vm13, %v22145_v54, 0.0  ;;  %13759 = vmatpush.msra.mxu1 %v22320_v43 }
 0xb0e   : > { %13443 = vmatmul.f32.vlgmr.msra.gmra.mxu3 %v22112_v18  ;;  %13650 = vmatpush.msrb.mxu2 %v22351_v47  ;;  %v13522_v18 = vmul.f32 %v13509_v61, %v23662_v23  ;;  %v13520_v54 = vmul.f32 %v13508_v24, %v23662_v23  ;;  %v13518_v47 = vmul.f32 %v13507_v58, %v23662_v23 }
 0xb0f   : > { %13675 = vmatpush.msrb.mxu3 %v22238_v14  ;;  %13720 = vmatpush.msra.mxu0 %v23664_v62  ;;  %v13561_v14 = vsub.f32 %v22465_v57, %v22487_v29 }
 0xb10   : > { %13653 = vmatpush.msrb.mxu2 %v22365_v8  ;;  %13761 = vmatpush.msra.mxu1 %v22334_v48  ;;  %v22528_v20 = vand.u32 4294901760, %v13522_v18  ;;  %v22537_v8 = vsub.f32 %v13526_v2, %v22503_v52  ;;  %v22556_v56 = vand.u32 4294901760, %v13518_v47 }
 0xb11   : > { %13677 = vmatpush.msrb.mxu3 %v22244_v19  ;;  %13724 = vmatpush.msra.mxu0 %v13601_v51  ;;  %v13506_v19 = vsel %vm8207_vm13, %v23657_v27, 0.0  ;;  %v13505_v27 = vsel %vm8207_vm13, %v22309_v21, 0.0  ;;  %v22543_v51 = vand.u32 4294901760, %v13520_v54 }
 0xb12   : > { %13656 = vmatpush.msrb.mxu2 %v22384_v45  ;;  %13763 = vmatpush.msra.mxu1 %v22353_v31  ;;  %v22550_v45 = vsub.f32 %v13524_v17, %v22516_v5  ;;  %v22561_v34 = vsub.f32 %v13522_v18, %v22528_v20  ;;  %v22587_v44 = vsub.f32 %v13518_v47, %v22556_v56 }
 0xb13   : > { %13679 = vmatpush.msrb.mxu3 %v22263_v63  ;;  %13728 = vmatpush.msra.mxu0 %v13607_v32  ;;  %v22534_v63 = vand.u32 4294901760, %v13561_v14  ;;  %v13814_v32 = vand.u32 4294901760, %v22519_v15 }
 0xb14   : > { %13659 = vmatpush.msrb.mxu2 %v22396_v46  ;;  %13765 = vmatpush.msra.mxu1 %v22367_v1  ;;  %v13826_v36 = vand.u32 4294901760, %v22550_v45  ;;  %v13832_v49 = vand.u32 4294901760, %v22561_v34  ;;  %v13844_v6 = vand.u32 4294901760, %v22587_v44 }
 0xb15   : > { %13681 = vmatpush.msrb.mxu3 %v22295_v3  ;;  %13732 = vmatpush.msra.mxu0 %v13613_v12  ;;  %v13516_v3 = vmul.f32 %v13506_v19, %v23662_v23  ;;  %v13514_v12 = vmul.f32 %v13505_v27, %v23662_v23  ;;  %v13815_v25 = vsub.f32 %v22519_v15, %v13814_v32  ;;  %v12248_v38 = vpop.f32.mrf.mxu1 }
 0xb16   : > { %13780 = vmatpush.msra.mxu2 %v22494_v26  ;;  %13624 = vmatmul.f32.vlgmr.msrb.gmra.mxu1 %v22451_v0  ;;  %v13827_v30 = vsub.f32 %v22550_v45, %v13826_v36  ;;  %v13833_v7 = vsub.f32 %v22561_v34, %v13832_v49  ;;  %v13845_v42 = vsub.f32 %v22587_v44, %v13844_v6 }
 0xb17   : > { %13683 = vmatpush.msrb.mxu3 %v22320_v43  ;;  %13912 = vmatpush.msrb.mxu1 %v22494_v26  ;;  %v13820_v43 = vand.u32 4294901760, %v22537_v8  ;;  %v22566_v46 = vand.u32 4294901760, %v13516_v3  ;;  %v22579_v59 = vand.u32 4294901760, %v13514_v12 }
 0xb18   : > { %13736 = vmatpush.msra.mxu0 %v13619_v33  ;;  %v12118_v21 = vpop.f32.mrf.mxu2  ;;  %13782 = vmatpush.msra.mxu2 %v22503_v52  ;;  %v22574_v33 = vsub.f32 %v13520_v54, %v22543_v51  ;;  %v12217_v22 = vpop.f32.mrf.mxu0  ;;  %v13828_v37 = vand.u32 4294901760, %v13827_v30  ;;  %v13834_v23 = vand.u32 4294901760, %v13833_v7  ;;  %v13846_v24 = vand.u32 4294901760, %v13845_v42 }
 0xb19   : > { %13563 = vmatmul.f32.vlgmr.msrb.gmra.mxu0 %v22534_v63  ;;  %13914 = vmatpush.msrb.mxu1 %v22503_v52  ;;  %v13849_v10 = vsub.f32 %v13516_v3, %v22566_v46  ;;  %v13855_v39 = vsub.f32 %v13514_v12, %v22579_v59 }
 0xb1a   : > { %13875 = vmatpush.msrb.mxu0 %v22519_v15  ;;  %13685 = vmatpush.msrb.mxu3 %v22334_v48  ;;  %v12179_v35 = vpop.f32.mrf.mxu3  ;;  %v13821_v48 = vsub.f32 %v22537_v8, %v13820_v43  ;;  %v13838_v40 = vand.u32 4294901760, %v22574_v33 }
 0xb1b   : > { %13784 = vmatpush.msra.mxu2 %v22516_v5  ;;  %13916 = vmatpush.msrb.mxu1 %v22516_v5  ;;  %v12180_v50 = vadd.f32 %v12179_v35, %v12118_v21  ;;  %v13850_v4 = vand.u32 4294901760, %v13849_v10  ;;  %v13856_v9 = vand.u32 4294901760, %v13855_v39 }
 0xb1c   : > { %13878 = vmatpush.msrb.mxu0 %v22537_v8  ;;  %13687 = vmatpush.msrb.mxu3 %v22353_v31  ;;  %v13816_v31 = vand.u32 4294901760, %v13815_v25  ;;  %v13839_v55 = vsub.f32 %v22574_v33, %v13838_v40 }
 0xb1d   : > { %13662 = vmatmul.f32.vlgmr.msrb.gmra.mxu2 %v22465_v57  ;;  %v12218_v60 = vadd.f32 %v12217_v22, %v12180_v50  ;;  %13918 = vmatpush.msrb.mxu1 %v22528_v20  ;;  %v13851_v17 = vsub.f32 %v13849_v10, %v13850_v4  ;;  %v13857_v18 = vsub.f32 %v13855_v39, %v13856_v9 }
 0xb1e   : > { %13786 = vmatpush.msra.mxu2 %v22528_v20  ;;  %13881 = vmatpush.msrb.mxu0 %v22550_v45  ;;  %v13840_v61 = vand.u32 4294901760, %v13839_v55 }
 0xb1f   : > { %13689 = vmatpush.msrb.mxu3 %v22367_v1  ;;  %v12249_v16 = vadd.f32 %v12248_v38, %v12218_v60  ;;  %v13822_v1 = vand.u32 4294901760, %v13821_v48  ;;  %13920 = vmatpush.msrb.mxu1 %v22543_v51  ;;  %v13852_v14 = vand.u32 4294901760, %v13851_v17  ;;  %v13858_v58 = vand.u32 4294901760, %v13857_v18 }
 0xb20   : > { %13693 = vmatmul.f32.vlgmr.msrb.gmra.mxu3 %v22487_v29  ;;  %13788 = vmatpush.msra.mxu2 %v22543_v51 }
 0xb21   : > { %13817 = vmatpush.msra.mxu3 %v13816_v31  ;;  %13884 = vmatpush.msrb.mxu0 %v22561_v34 }
 0xb22   : > { %13790 = vmatpush.msra.mxu2 %v22556_v56  ;;  %v12293_v41 = vpop.f32.mrf.mxu2  ;;  %13922 = vmatpush.msrb.mxu1 %v22556_v56 }
 0xb23   : > { %13823 = vmatpush.msra.mxu3 %v13822_v1  ;;  %13887 = vmatpush.msrb.mxu0 %v22574_v33  ;;  %v12294_v13 = vadd.f32 %v12293_v41, %v12249_v16 }
 0xb24   : > { %13792 = vmatpush.msra.mxu2 %v22566_v46  ;;  %13924 = vmatpush.msrb.mxu1 %v22566_v46 }
 0xb25   : > { %13829 = vmatpush.msra.mxu3 %v13828_v37  ;;  %13890 = vmatpush.msrb.mxu0 %v22587_v44  ;;  %v12322_v53 = vpop.f32.mrf.mxu3 }
 0xb26   : > { %13794 = vmatpush.msra.mxu2 %v22579_v59  ;;  %v12323_v2 = vadd.f32 %v12322_v53, %v12294_v13  ;;  %13926 = vmatpush.msrb.mxu1 %v22579_v59 }
 0xb27   : > { %13835 = vmatpush.msra.mxu3 %v13834_v23  ;;  %13893 = vmatpush.msrb.mxu0 %v13849_v10 }
 0xb28   : > { %13945 = vmatpush.msrb.mxu2 %v13814_v32  ;;  %v22619_v62 = vadd.f32 %v12323_v2, %v22381_v28  ;;  %13738 = vmatmul.f32.vlgmr.msra.gmra.mxu0 %v22451_v0 }
 0xb29   : > { %13841 = vmatpush.msra.mxu3 %v13840_v61  ;;  %13896 = vmatpush.msrb.mxu0 %v13855_v39 }
 0xb2a   : > { %13949 = vmatpush.msrb.mxu2 %v13820_v43  ;;  %13767 = vmatmul.f32.vlgmr.msra.gmra.mxu1 %v22451_v0  ;;  %v12442_v28 = vpop.f32.mrf.mxu0 }
 0xb2b   : > { %13847 = vmatpush.msra.mxu3 %v13846_v24  ;;  %13800 = vmatmul.f32.vlgmr.msra.gmra.mxu2 %v22534_v63 }
 0xb2c   : > { %13953 = vmatpush.msrb.mxu2 %v13826_v36 }
 0xb2d   : > { %13853 = vmatpush.msra.mxu3 %v13852_v14 }
 0xb2e   : > { %13957 = vmatpush.msrb.mxu2 %v13832_v49 }
 0xb2f   : > { %13859 = vmatpush.msra.mxu3 %v13858_v58 }
 0xb30   : > { %13961 = vmatpush.msrb.mxu2 %v13838_v40  ;;  %13861 = vmatmul.f32.vlgmr.msra.gmra.mxu3 %v22451_v0 }
 0xb31   : > { %13988 = vmatpush.msrb.mxu3 %v22494_v26  ;;  %13899 = vmatmul.f32.vlgmr.msrb.gmra.mxu0 %v22465_v57  ;;  %v12503_v57 = vpop.f32.mrf.mxu1 }
 0xb32   : > { %13965 = vmatpush.msrb.mxu2 %v13844_v6  ;;  %13930 = vmatmul.f32.vlgmr.msrb.gmra.mxu1 %v22487_v29  ;;  %v12504_v50 = vadd.f32 %v12503_v57, %v12442_v28 }
 0xb33   : > { %13990 = vmatpush.msrb.mxu3 %v22503_v52 }
 0xb34   : > { %13969 = vmatpush.msrb.mxu2 %v13850_v4  ;;  %v12541_v29 = vpop.f32.mrf.mxu2 }
 0xb35   : > { %13992 = vmatpush.msrb.mxu3 %v22516_v5  ;;  %v12542_v38 = vadd.f32 %v12541_v29, %v12504_v50 }
 0xb36   : > { %13973 = vmatpush.msrb.mxu2 %v13856_v9 }
 0xb37   : > { %13994 = vmatpush.msrb.mxu3 %v22528_v20  ;;  %13975 = vmatmul.f32.vlgmr.msrb.gmra.mxu2 %v22451_v0  ;;  %v12572_v26 = vpop.f32.mrf.mxu3 }
 0xb38   : > { %v12573_v7 = vadd.f32 %v12572_v26, %v12542_v38 }
 0xb39   : > { %13996 = vmatpush.msrb.mxu3 %v22543_v51  ;;  %v12646_v54 = vpop.f32.mrf.mxu1 }
 0xb3a   : > { %v12617_v52 = vpop.f32.mrf.mxu0 }
 0xb3b   : > { %13998 = vmatpush.msrb.mxu3 %v22556_v56  ;;  %v12618_v23 = vadd.f32 %v12617_v52, %v12573_v7 }
 0xb3d   : > { %14000 = vmatpush.msrb.mxu3 %v22566_v46  ;;  %v12647_v24 = vadd.f32 %v12646_v54, %v12618_v23 }
 0xb3f   : > { %14002 = vmatpush.msrb.mxu3 %v22579_v59  ;;  %v12886_v26 = vadd.f32 %v12647_v24, %v22468_v11 }
 0xb40   : > { %14004 = vmatmul.f32.vlgmr.msrb.gmra.mxu3 %v22451_v0 }
 0xb4b   : > { %v12809_v20 = vpop.f32.mrf.mxu1 }
 0xb4e   : > { %v12679_v5 = vpop.f32.mrf.mxu2  ;;  %v12778_v19 = vpop.f32.mrf.mxu0 }
 0xb50   : > { %v12740_v15 = vpop.f32.mrf.mxu3 }
 0xb51   : > { %v12741_v35 = vadd.f32 %v12740_v15, %v12679_v5 }
 0xb53   : > { %v12779_v48 = vadd.f32 %v12778_v19, %v12741_v35 }
 0xb55   : > { %v12810_v40 = vadd.f32 %v12809_v20, %v12779_v48 }
 0xb58   : > { %v12854_v47 = vpop.f32.mrf.mxu2 }
 0xb59   : > { %v12855_v37 = vadd.f32 %v12854_v47, %v12810_v40 }
 0xb5b   : > { %v12883_v63 = vpop.f32.mrf.mxu3 }
 0xb5c   : > { %v12884_v53 = vadd.f32 %v12883_v63, %v12855_v37 }
 0xb5d   : > { %v13064_v27 = vpop.f32.mrf.mxu1 }
 0xb5e   : > { %v12887_v58 = vadd.f32 %v12884_v53, %v22619_v62 }
 0xb60   : > { %v13003_v8 = vpop.f32.mrf.mxu0 }
 0xb61   : > { %v13065_v44 = vadd.f32 %v13064_v27, %v13003_v8 }
 0xb6a   : > { %v13102_v51 = vpop.f32.mrf.mxu2 }
 0xb6b   : > { %v13103_v16 = vadd.f32 %v13102_v51, %v13065_v44 }
 0xb6d   : > { %v13133_v32 = vpop.f32.mrf.mxu3 }
 0xb6e   : > { %v13134_v55 = vadd.f32 %v13133_v32, %v13103_v16 }
 0xb6f   : > { %v13207_v45 = vpop.f32.mrf.mxu1 }
 0xb70   : > { %v13178_v3 = vpop.f32.mrf.mxu0 }
 0xb71   : > { %v13179_v2 = vadd.f32 %v13178_v3, %v13134_v55 }
 0xb73   : > { %v13208_v28 = vadd.f32 %v13207_v45, %v13179_v2 }
 0xb75   : > { %v13447_v19 = vadd.f32 %v13208_v28, %v12886_v26 }
 0xb81   : > { %v13370_v56 = vpop.f32.mrf.mxu1 }
 0xb84   : > { %v13240_v21 = vpop.f32.mrf.mxu2  ;;  %v13339_v12 = vpop.f32.mrf.mxu0 }
 0xb86   : > { %v13301_v0 = vpop.f32.mrf.mxu3 }
 0xb87   : > { %v13302_v59 = vadd.f32 %v13301_v0, %v13240_v21 }
 0xb89   : > { %v13340_v60 = vadd.f32 %v13339_v12, %v13302_v59 }
 0xb8b   : > { %v13371_v6 = vadd.f32 %v13370_v56, %v13340_v60 }
 0xb8e   : > { %v13415_v34 = vpop.f32.mrf.mxu2 }
 0xb8f   : > { %v13416_v42 = vadd.f32 %v13415_v34, %v13371_v6 }
 0xb91   : > { %v13444_v43 = vpop.f32.mrf.mxu3 }
 0xb92   : > { %v13445_v18 = vadd.f32 %v13444_v43, %v13416_v42 }
 0xb93   : > { %v13625_v25 = vpop.f32.mrf.mxu1 }
 0xb94   : > { %v13448_v5 = vadd.f32 %v13445_v18, %v12887_v58 }
 0xb96   : > { %v13564_v46 = vpop.f32.mrf.mxu0 }
 0xb97   : > { %v13626_v31 = vadd.f32 %v13625_v25, %v13564_v46 }
 0xba0   : > { %v13663_v33 = vpop.f32.mrf.mxu2 }
 0xba1   : > { %v13664_v41 = vadd.f32 %v13663_v33, %v13626_v31 }
 0xba3   : > { %v13694_v36 = vpop.f32.mrf.mxu3 }
 0xba4   : > { %v13695_v9 = vadd.f32 %v13694_v36, %v13664_v41 }
 0xba5   : > { %v13739_v22 = vpop.f32.mrf.mxu0 }
 0xba6   : > { %v13740_v14 = vadd.f32 %v13739_v22, %v13695_v9 }
 0xba7   : > { %v13768_v49 = vpop.f32.mrf.mxu1 }
 0xba8   : > { %v13769_v15 = vadd.f32 %v13768_v49, %v13740_v14 }
 0xbaa   : > { %v14008_v47 = vadd.f32 %v13769_v15, %v13447_v19 }
 0xbae   : > { %v13801_v30 = vpop.f32.mrf.mxu2  ;;  %v13900_v1 = vpop.f32.mrf.mxu0 }
 0xbaf   : > { %v13931_v13 = vpop.f32.mrf.mxu1 }
 0xbb3   : > { %v13862_v10 = vpop.f32.mrf.mxu3 }
 0xbb4   : > { %v13863_v39 = vadd.f32 %v13862_v10, %v13801_v30 }
 0xbb6   : > { %v13901_v4 = vadd.f32 %v13900_v1, %v13863_v39 }
 0xbb8   : > { %v13932_v61 = vadd.f32 %v13931_v13, %v13901_v4 }
 0xbba   : > { %v13976_v17 = vpop.f32.mrf.mxu2 }
 0xbbb   : > { %v13977_v57 = vadd.f32 %v13976_v17, %v13932_v61 }
 0xbc3   : > { %v14005_v29 = vpop.f32.mrf.mxu3 }
 0xbc4   : > { %v14006_v52 = vadd.f32 %v14005_v29, %v13977_v57 }
 0xbc6   : > { %v14009_v20 = vadd.f32 %v14006_v52, %v13448_v5 }
 0xbc8   : > { %v14012_v54 = vrot.slane %v14009_v20, 4 }
 0xbca   : > { %v14013_v63 = vsel %vm1870_vm6, %v14008_v47, %v14012_v54 }
 0xbcb   : > { %14015 = vst [vmem:[%s306_s23] sm:$0x77] %v14013_v63 }
 0xbcc PF: > { %s19_s29 = sadd.s32 1, %s14192_s29  }
 0xbcd   : > { %p16_p4 = scmp.ge.s32.totalorder %s19_s29, 4  }
 0xbcf   :  { %18 = sbr.rel (!%p16_p4) target bundleno = 2 (0x2), region = 106 }

</bundles_post_ra>
